<compile_context>
chip_gen: v7x
topology: tpu7x:2x2x1
jax: 0.10.0
libtpu: 0.0.40
codegen_flags: <defaults>
</compile_context>

<pallas_src>
import functools

import jax
import jax.numpy as jnp
from jax import lax
from jax.experimental import pallas as pl
from jax.experimental.pallas import tpu as pltpu

EPS = 1e-5


def param_shapes(k=64):
    # conv/linear weights stored as (in, out) (transposed PyTorch weight with
    # the kernel-size-1 dim squeezed); biases stored as (1, out).
    return [
        ("c1w", (k, 64)),      ("c1b", (1, 64)),
        ("c2w", (64, 128)),    ("c2b", (1, 128)),
        ("c3w", (128, 1024)),  ("c3b", (1, 1024)),
        ("f1w", (1024, 512)),  ("f1b", (1, 512)),
        ("f2w", (512, 256)),   ("f2b", (1, 256)),
        ("f3w", (256, k * k)), ("f3b", (1, k * k)),
    ]


def _inorm_pts(h):
    # InstanceNorm1d over the points axis (axis 0 of an (N, C) tile),
    # single-pass statistics: var = E[x^2] - mean^2 (clamped at 0).
    inv_n = 1.0 / h.shape[0]
    s1 = jnp.sum(h, axis=0, keepdims=True)
    s2 = jnp.sum(h * h, axis=0, keepdims=True)
    m = s1 * inv_n
    v = jnp.maximum(s2 * inv_n - m * m, 0.0)
    return (h - m) * lax.rsqrt(v + EPS)


def _inorm_row(f):
    # InstanceNorm1d applied to a 2D (B, F) activation: per-row over features.
    inv_n = 1.0 / f.shape[1]
    s1 = jnp.sum(f, axis=1, keepdims=True)
    s2 = jnp.sum(f * f, axis=1, keepdims=True)
    m = s1 * inv_n
    v = jnp.maximum(s2 * inv_n - m * m, 0.0)
    return (f - m) * lax.rsqrt(v + EPS)


def stnkd_kernel(
    x_ref,
    c1w, c1b, c2w, c2b, c3w, c3b,
    f1w, f1b, f2w, f2b, f3w, f3b,
    out_ref, pooled_ref,
):
    bt = x_ref.shape[0]
    relu = lambda a: jnp.maximum(a, 0.0)
    dot = functools.partial(jnp.dot, preferred_element_type=jnp.float32)
    bf16 = jnp.bfloat16

    # ---- conv trunk, one point cloud at a time (bounds the (N,1024) live range)
    # TODO(synk): for very large point counts, additionally tile the N axis with
    # running (sum, sumsq, max) accumulators so the (N, 1024) intermediate never
    # exceeds v7x's 64 MiB VMEM.
    def trunk(j, carry):
        x = x_ref[j]                                                      # (N, k) f32
        h = relu(_inorm_pts(dot(x.astype(bf16), c1w[...]) + c1b[...]))    # (N, 64)
        h = relu(_inorm_pts(dot(h.astype(bf16), c2w[...]) + c2b[...]))    # (N, 128)
        h = relu(_inorm_pts(dot(h.astype(bf16), c3w[...]) + c3b[...]))    # (N, 1024)
        pooled_ref[pl.ds(j, 1), :] = jnp.max(h, axis=0, keepdims=True)    # (1, 1024)
        return carry

    lax.fori_loop(0, bt, trunk, 0)

    # ---- fc head, batched over the Bt point clouds of this grid step
    g = pooled_ref[...]                                                   # (Bt, 1024)
    f = relu(_inorm_row(dot(g.astype(bf16), f1w[...]) + f1b[...]))        # (Bt, 512)
    f = relu(_inorm_row(dot(f.astype(bf16), f2w[...]) + f2b[...]))        # (Bt, 256)
    # identity already folded into f3b on the host
    out_ref[0] = dot(f.astype(bf16), f3w[...]) + f3b[...]                 # (Bt, k*k)


def _choose_bt(batch, requested=8):
    # Keep the (parallel) batch grid >= 2 steps when possible (v7x has 2 TCs),
    # and pick a tile size that divides the batch exactly.
    cap = max(1, batch // 2) if batch >= 2 else 1
    cap = min(cap, requested)
    for bt in range(cap, 0, -1):
        if batch % bt == 0:
            return bt
    return 1


def _compiler_params():
    kwargs = dict(dimension_semantics=("parallel",))
    try:
        cap = pltpu.get_tpu_info().vmem_capacity_bytes
        kwargs["vmem_limit_bytes"] = int(min(64 * 1024 * 1024, (cap * 3) // 4))
    except Exception:
        pass  # fall back to the default scoped VMEM limit
    return pltpu.CompilerParams(**kwargs)


def stnkd_forward(x_bkn, params, *, bt_request=8):
    """x_bkn: (B, k, N) float32 in PyTorch NCW layout. Returns (B, k, k)."""
    B, k, N = x_bkn.shape
    shapes = param_shapes(k)
    bt = _choose_bt(B, bt_request)
    G = B // bt

    x_bnk = jnp.transpose(x_bkn, (0, 2, 1)).astype(jnp.float32)  # (B, N, k)

    # bf16 weights (HBM + MXU), f32 biases; fold the flattened identity into f3b.
    kern_params = []
    for name, _shape in shapes:
        p = params[name].astype(jnp.float32)
        if name == "f3b":
            p = p + jnp.eye(k, dtype=jnp.float32).reshape(1, k * k)
        if name.endswith("w"):
            p = p.astype(jnp.bfloat16)
        kern_params.append(p)

    in_specs = [pl.BlockSpec((bt, N, k), lambda i: (i, 0, 0))]
    in_specs += [pl.BlockSpec(shape, lambda i: (0, 0)) for _, shape in shapes]
    out_specs = pl.BlockSpec((1, bt, k * k), lambda i: (i, 0, 0))
    out_shape = jax.ShapeDtypeStruct((G, bt, k * k), jnp.float32)

    out = pl.pallas_call(
        stnkd_kernel,
        out_shape=out_shape,
        grid_spec=pltpu.PrefetchScalarGridSpec(
            num_scalar_prefetch=0,
            grid=(G,),
            in_specs=in_specs,
            out_specs=out_specs,
            scratch_shapes=[pltpu.VMEM((bt, 1024), jnp.float32)],
        ),
        compiler_params=_compiler_params(),
    )(x_bnk, *kern_params)

    return out.reshape(B, k, k)


def init_params(key, k=64):
    params = {}
    for i, (name, shape) in enumerate(param_shapes(k)):
        sub = jax.random.fold_in(key, i)
        scale = 0.1 if name.endswith("w") else 0.02
        params[name] = scale * jax.random.normal(sub, shape, dtype=jnp.float32)
    return params


def stnkd_reference(x_bkn, p):
    """Pure-JAX reference mirroring the PyTorch STNkd forward (f32 math,
    HIGHEST-precision matmuls), using the same bf16-rounded weights that the
    kernel consumes so the comparison isolates kernel correctness."""
    B, k, _N = x_bkn.shape
    q = lambda name: p[name].astype(jnp.bfloat16).astype(jnp.float32)
    x = jnp.transpose(x_bkn, (0, 2, 1)).astype(jnp.float32)  # (B, N, k)
    hi = lax.Precision.HIGHEST
    mm = lambda a, b: jnp.matmul(a, b, precision=hi)

    def in_pts(h):  # (B, N, C): normalize over N
        m = jnp.mean(h, axis=1, keepdims=True)
        v = jnp.mean((h - m) ** 2, axis=1, keepdims=True)
        return (h - m) / jnp.sqrt(v + EPS)

    def in_row(f):  # (B, F): normalize over F (PyTorch unbatched interpretation)
        m = jnp.mean(f, axis=1, keepdims=True)
        v = jnp.mean((f - m) ** 2, axis=1, keepdims=True)
        return (f - m) / jnp.sqrt(v + EPS)

    relu = jax.nn.relu
    h = relu(in_pts(mm(x, q("c1w")) + p["c1b"]))
    h = relu(in_pts(mm(h, q("c2w")) + p["c2b"]))
    h = relu(in_pts(mm(h, q("c3w")) + p["c3b"]))
    g = jnp.max(h, axis=1)                                    # (B, 1024)
    f = relu(in_row(mm(g, q("f1w")) + p["f1b"]))
    f = relu(in_row(mm(f, q("f2w")) + p["f2b"]))
    t = mm(f, q("f3w")) + p["f3b"] + jnp.eye(k, dtype=jnp.float32).reshape(1, k * k)
    return t.reshape(B, k, k)


if __name__ == "__main__":
    key = jax.random.PRNGKey(0)
    B, K, N = 4, 64, 128  # STNkd default k=64; small point count for the demo
    x = jax.random.normal(jax.random.fold_in(key, 100), (B, K, N), dtype=jnp.float32)
    params = init_params(jax.random.fold_in(key, 1), k=K)

    out = stnkd_forward(x, params)
    jax.block_until_ready(out)

    assert out.shape == (B, K, K)
    assert bool(jnp.all(jnp.isfinite(out)))

    ref = stnkd_reference(x, params)
    # Tolerance reflects bf16 weights/activations on the MXU vs. the f32
    # HIGHEST-precision reference path.
    if not jnp.allclose(out, ref, rtol=5e-2, atol=8e-2):
        err = float(jnp.max(jnp.abs(out - ref)))
        raise AssertionError(f"Pallas kernel mismatch vs JAX reference (max abs err {err})")

    print("KERNEL_OK")
</pallas_src>

<mosaic_0001>
module attributes {stable_mosaic.version = 11 : i64} {
  func.func @stnkd_kernel(%arg0: i32, %arg1: memref<2x128x64xf32, #tpu.memory_space<vmem>>, %arg2: memref<64x64xbf16, #tpu.memory_space<vmem>>, %arg3: memref<1x64xf32, #tpu.memory_space<vmem>>, %arg4: memref<64x128xbf16, #tpu.memory_space<vmem>>, %arg5: memref<1x128xf32, #tpu.memory_space<vmem>>, %arg6: memref<128x1024xbf16, #tpu.memory_space<vmem>>, %arg7: memref<1x1024xf32, #tpu.memory_space<vmem>>, %arg8: memref<1024x512xbf16, #tpu.memory_space<vmem>>, %arg9: memref<1x512xf32, #tpu.memory_space<vmem>>, %arg10: memref<512x256xbf16, #tpu.memory_space<vmem>>, %arg11: memref<1x256xf32, #tpu.memory_space<vmem>>, %arg12: memref<256x4096xbf16, #tpu.memory_space<vmem>>, %arg13: memref<1x4096xf32, #tpu.memory_space<vmem>>, %arg14: memref<1x2x4096xf32, #tpu.memory_space<vmem>>, %arg15: memref<2x1024xf32, #tpu.memory_space<vmem>>) attributes {dimension_semantics = [#tpu.dimension_semantics<parallel>], iteration_bounds = array<i64: 2>, scalar_prefetch = 0 : i64, scratch_operands = 1 : i64, tpu.core_type = #tpu.core_type<tc>, window_params = [{transform_indices = @transform_0, window_bounds = array<i64: 2, 128, 64>}, {pipeline_mode = #tpu.pipeline_mode<synchronous>, transform_indices = @transform_1, window_bounds = array<i64: 64, 64>}, {pipeline_mode = #tpu.pipeline_mode<synchronous>, transform_indices = @transform_2, window_bounds = array<i64: 1, 64>}, {pipeline_mode = #tpu.pipeline_mode<synchronous>, transform_indices = @transform_3, window_bounds = array<i64: 64, 128>}, {pipeline_mode = #tpu.pipeline_mode<synchronous>, transform_indices = @transform_4, window_bounds = array<i64: 1, 128>}, {pipeline_mode = #tpu.pipeline_mode<synchronous>, transform_indices = @transform_5, window_bounds = array<i64: 128, 1024>}, {pipeline_mode = #tpu.pipeline_mode<synchronous>, transform_indices = @transform_6, window_bounds = array<i64: 1, 1024>}, {pipeline_mode = #tpu.pipeline_mode<synchronous>, transform_indices = @transform_7, window_bounds = array<i64: 1024, 512>}, {pipeline_mode = #tpu.pipeline_mode<synchronous>, transform_indices = @transform_8, window_bounds = array<i64: 1, 512>}, {pipeline_mode = #tpu.pipeline_mode<synchronous>, transform_indices = @transform_9, window_bounds = array<i64: 512, 256>}, {pipeline_mode = #tpu.pipeline_mode<synchronous>, transform_indices = @transform_10, window_bounds = array<i64: 1, 256>}, {pipeline_mode = #tpu.pipeline_mode<synchronous>, transform_indices = @transform_11, window_bounds = array<i64: 256, 4096>}, {pipeline_mode = #tpu.pipeline_mode<synchronous>, transform_indices = @transform_12, window_bounds = array<i64: 1, 4096>}, {transform_indices = @transform_13, window_bounds = array<i64: 1, 2, 4096>}]} {
    %c0_i32 = arith.constant 0 : i32
    %c2_i32 = arith.constant 2 : i32
    %0 = arith.addi %c0_i32, %c2_i32 : i32
    %c1_i32 = arith.constant 1 : i32
    scf.for %arg16 = %c0_i32 to %0 step %c1_i32  : i32 {
      %67 = arith.index_cast %arg16 : i32 to index
      %c0_33 = arith.constant 0 : index
      %c0_34 = arith.constant 0 : index
      %68 = vector.load %arg1[%67, %c0_33, %c0_34] : memref<2x128x64xf32, #tpu.memory_space<vmem>>, vector<1x128x64xf32>
      %69 = vector.shape_cast %68 : vector<1x128x64xf32> to vector<128x64xf32>
      %70 = arith.truncf %69 : vector<128x64xf32> to vector<128x64xbf16>
      %c0_35 = arith.constant 0 : index
      %c0_36 = arith.constant 0 : index
      %71 = vector.load %arg2[%c0_35, %c0_36] : memref<64x64xbf16, #tpu.memory_space<vmem>>, vector<64x64xbf16>
      %cst_37 = arith.constant dense<0.000000e+00> : vector<128x64xf32>
      %72 = tpu.matmul %70, %71, %cst_37 {dimension_numbers = #tpu.dot_dimension_numbers<[1], [0], [0], [1], [0, 0, 1, 1], [], []>} : vector<128x64xbf16>, vector<64x64xbf16>, vector<128x64xf32> -> vector<128x64xf32>
      %c0_38 = arith.constant 0 : index
      %c0_39 = arith.constant 0 : index
      %73 = vector.load %arg3[%c0_38, %c0_39] : memref<1x64xf32, #tpu.memory_space<vmem>>, vector<1x64xf32>
      %74 = vector.broadcast %73 : vector<1x64xf32> to vector<128x64xf32>
      %75 = arith.addf %72, %74 : vector<128x64xf32>
      %cst_40 = arith.constant dense<0.000000e+00> : vector<64xf32>
      %76 = vector.multi_reduction <add>, %75, %cst_40 [0] : vector<128x64xf32> to vector<64xf32>
      %77 = vector.shape_cast %76 : vector<64xf32> to vector<1x64xf32>
      %78 = arith.mulf %75, %75 : vector<128x64xf32>
      %cst_41 = arith.constant dense<0.000000e+00> : vector<64xf32>
      %79 = vector.multi_reduction <add>, %78, %cst_41 [0] : vector<128x64xf32> to vector<64xf32>
      %80 = vector.shape_cast %79 : vector<64xf32> to vector<1x64xf32>
      %cst_42 = arith.constant 7.812500e-03 : f32
      %81 = vector.broadcast %cst_42 : f32 to vector<1x64xf32>
      %82 = arith.mulf %77, %81 : vector<1x64xf32>
      %cst_43 = arith.constant 7.812500e-03 : f32
      %83 = vector.broadcast %cst_43 : f32 to vector<1x64xf32>
      %84 = arith.mulf %80, %83 : vector<1x64xf32>
      %85 = arith.mulf %82, %82 : vector<1x64xf32>
      %86 = arith.subf %84, %85 : vector<1x64xf32>
      %cst_44 = arith.constant 0.000000e+00 : f32
      %87 = vector.broadcast %cst_44 : f32 to vector<1x64xf32>
      %88 = arith.maximumf %86, %87 : vector<1x64xf32>
      %89 = vector.broadcast %82 : vector<1x64xf32> to vector<128x64xf32>
      %90 = arith.subf %75, %89 : vector<128x64xf32>
      %cst_45 = arith.constant 9.99999974E-6 : f32
      %91 = vector.broadcast %cst_45 : f32 to vector<1x64xf32>
      %92 = arith.addf %88, %91 : vector<1x64xf32>
      %93 = math.rsqrt %92 : vector<1x64xf32>
      %94 = vector.broadcast %93 : vector<1x64xf32> to vector<128x64xf32>
      %95 = arith.mulf %90, %94 : vector<128x64xf32>
      %cst_46 = arith.constant 0.000000e+00 : f32
      %96 = vector.broadcast %cst_46 : f32 to vector<128x64xf32>
      %97 = arith.maximumf %95, %96 : vector<128x64xf32>
      %98 = arith.truncf %97 : vector<128x64xf32> to vector<128x64xbf16>
      %c0_47 = arith.constant 0 : index
      %c0_48 = arith.constant 0 : index
      %99 = vector.load %arg4[%c0_47, %c0_48] : memref<64x128xbf16, #tpu.memory_space<vmem>>, vector<64x128xbf16>
      %cst_49 = arith.constant dense<0.000000e+00> : vector<128x128xf32>
      %100 = tpu.matmul %98, %99, %cst_49 {dimension_numbers = #tpu.dot_dimension_numbers<[1], [0], [0], [1], [0, 0, 1, 1], [], []>} : vector<128x64xbf16>, vector<64x128xbf16>, vector<128x128xf32> -> vector<128x128xf32>
      %c0_50 = arith.constant 0 : index
      %c0_51 = arith.constant 0 : index
      %101 = vector.load %arg5[%c0_50, %c0_51] : memref<1x128xf32, #tpu.memory_space<vmem>>, vector<1x128xf32>
      %102 = vector.broadcast %101 : vector<1x128xf32> to vector<128x128xf32>
      %103 = arith.addf %100, %102 : vector<128x128xf32>
      %cst_52 = arith.constant dense<0.000000e+00> : vector<128xf32>
      %104 = vector.multi_reduction <add>, %103, %cst_52 [0] : vector<128x128xf32> to vector<128xf32>
      %105 = vector.shape_cast %104 : vector<128xf32> to vector<1x128xf32>
      %106 = arith.mulf %103, %103 : vector<128x128xf32>
      %cst_53 = arith.constant dense<0.000000e+00> : vector<128xf32>
      %107 = vector.multi_reduction <add>, %106, %cst_53 [0] : vector<128x128xf32> to vector<128xf32>
      %108 = vector.shape_cast %107 : vector<128xf32> to vector<1x128xf32>
      %cst_54 = arith.constant 7.812500e-03 : f32
      %109 = vector.broadcast %cst_54 : f32 to vector<1x128xf32>
      %110 = arith.mulf %105, %109 : vector<1x128xf32>
      %cst_55 = arith.constant 7.812500e-03 : f32
      %111 = vector.broadcast %cst_55 : f32 to vector<1x128xf32>
      %112 = arith.mulf %108, %111 : vector<1x128xf32>
      %113 = arith.mulf %110, %110 : vector<1x128xf32>
      %114 = arith.subf %112, %113 : vector<1x128xf32>
      %cst_56 = arith.constant 0.000000e+00 : f32
      %115 = vector.broadcast %cst_56 : f32 to vector<1x128xf32>
      %116 = arith.maximumf %114, %115 : vector<1x128xf32>
      %117 = vector.broadcast %110 : vector<1x128xf32> to vector<128x128xf32>
      %118 = arith.subf %103, %117 : vector<128x128xf32>
      %cst_57 = arith.constant 9.99999974E-6 : f32
      %119 = vector.broadcast %cst_57 : f32 to vector<1x128xf32>
      %120 = arith.addf %116, %119 : vector<1x128xf32>
      %121 = math.rsqrt %120 : vector<1x128xf32>
      %122 = vector.broadcast %121 : vector<1x128xf32> to vector<128x128xf32>
      %123 = arith.mulf %118, %122 : vector<128x128xf32>
      %cst_58 = arith.constant 0.000000e+00 : f32
      %124 = vector.broadcast %cst_58 : f32 to vector<128x128xf32>
      %125 = arith.maximumf %123, %124 : vector<128x128xf32>
      %126 = arith.truncf %125 : vector<128x128xf32> to vector<128x128xbf16>
      %c0_59 = arith.constant 0 : index
      %c0_60 = arith.constant 0 : index
      %127 = vector.load %arg6[%c0_59, %c0_60] : memref<128x1024xbf16, #tpu.memory_space<vmem>>, vector<128x1024xbf16>
      %cst_61 = arith.constant dense<0.000000e+00> : vector<128x1024xf32>
      %128 = tpu.matmul %126, %127, %cst_61 {dimension_numbers = #tpu.dot_dimension_numbers<[1], [0], [0], [1], [0, 0, 1, 1], [], []>} : vector<128x128xbf16>, vector<128x1024xbf16>, vector<128x1024xf32> -> vector<128x1024xf32>
      %c0_62 = arith.constant 0 : index
      %c0_63 = arith.constant 0 : index
      %129 = vector.load %arg7[%c0_62, %c0_63] : memref<1x1024xf32, #tpu.memory_space<vmem>>, vector<1x1024xf32>
      %130 = vector.broadcast %129 : vector<1x1024xf32> to vector<128x1024xf32>
      %131 = arith.addf %128, %130 : vector<128x1024xf32>
      %cst_64 = arith.constant dense<0.000000e+00> : vector<1024xf32>
      %132 = vector.multi_reduction <add>, %131, %cst_64 [0] : vector<128x1024xf32> to vector<1024xf32>
      %133 = vector.shape_cast %132 : vector<1024xf32> to vector<1x1024xf32>
      %134 = arith.mulf %131, %131 : vector<128x1024xf32>
      %cst_65 = arith.constant dense<0.000000e+00> : vector<1024xf32>
      %135 = vector.multi_reduction <add>, %134, %cst_65 [0] : vector<128x1024xf32> to vector<1024xf32>
      %136 = vector.shape_cast %135 : vector<1024xf32> to vector<1x1024xf32>
      %cst_66 = arith.constant 7.812500e-03 : f32
      %137 = vector.broadcast %cst_66 : f32 to vector<1x1024xf32>
      %138 = arith.mulf %133, %137 : vector<1x1024xf32>
      %cst_67 = arith.constant 7.812500e-03 : f32
      %139 = vector.broadcast %cst_67 : f32 to vector<1x1024xf32>
      %140 = arith.mulf %136, %139 : vector<1x1024xf32>
      %141 = arith.mulf %138, %138 : vector<1x1024xf32>
      %142 = arith.subf %140, %141 : vector<1x1024xf32>
      %cst_68 = arith.constant 0.000000e+00 : f32
      %143 = vector.broadcast %cst_68 : f32 to vector<1x1024xf32>
      %144 = arith.maximumf %142, %143 : vector<1x1024xf32>
      %145 = vector.broadcast %138 : vector<1x1024xf32> to vector<128x1024xf32>
      %146 = arith.subf %131, %145 : vector<128x1024xf32>
      %cst_69 = arith.constant 9.99999974E-6 : f32
      %147 = vector.broadcast %cst_69 : f32 to vector<1x1024xf32>
      %148 = arith.addf %144, %147 : vector<1x1024xf32>
      %149 = math.rsqrt %148 : vector<1x1024xf32>
      %150 = vector.broadcast %149 : vector<1x1024xf32> to vector<128x1024xf32>
      %151 = arith.mulf %146, %150 : vector<128x1024xf32>
      %cst_70 = arith.constant 0.000000e+00 : f32
      %152 = vector.broadcast %cst_70 : f32 to vector<128x1024xf32>
      %153 = arith.maximumf %151, %152 : vector<128x1024xf32>
      %cst_71 = arith.constant dense<0xFF800000> : vector<1024xf32>
      %154 = vector.multi_reduction <maximumf>, %153, %cst_71 [0] : vector<128x1024xf32> to vector<1024xf32>
      %155 = vector.shape_cast %154 : vector<1024xf32> to vector<1x1024xf32>
      %156 = arith.index_cast %arg16 : i32 to index
      %c0_72 = arith.constant 0 : index
      %157 = vector.load %arg15[%156, %c0_72] : memref<2x1024xf32, #tpu.memory_space<vmem>>, vector<1x1024xf32>
      tpu.vector_store %arg15[%156, %c0_72], %155 {strides = array<i32>} : memref<2x1024xf32, #tpu.memory_space<vmem>>, vector<1x1024xf32>,
    }
    %c2_i32_0 = arith.constant 2 : i32
    %c0 = arith.constant 0 : index
    %c0_1 = arith.constant 0 : index
    %1 = vector.load %arg15[%c0, %c0_1] : memref<2x1024xf32, #tpu.memory_space<vmem>>, vector<2x1024xf32>
    %2 = arith.truncf %1 : vector<2x1024xf32> to vector<2x1024xbf16>
    %c0_2 = arith.constant 0 : index
    %c0_3 = arith.constant 0 : index
    %3 = vector.load %arg8[%c0_2, %c0_3] : memref<1024x512xbf16, #tpu.memory_space<vmem>>, vector<1024x512xbf16>
    %cst = arith.constant dense<0.000000e+00> : vector<2x512xf32>
    %4 = tpu.matmul %2, %3, %cst {dimension_numbers = #tpu.dot_dimension_numbers<[1], [0], [0], [1], [0, 0, 1, 1], [], []>} : vector<2x1024xbf16>, vector<1024x512xbf16>, vector<2x512xf32> -> vector<2x512xf32>
    %c0_4 = arith.constant 0 : index
    %c0_5 = arith.constant 0 : index
    %5 = vector.load %arg9[%c0_4, %c0_5] : memref<1x512xf32, #tpu.memory_space<vmem>>, vector<1x512xf32>
    %6 = vector.broadcast %5 : vector<1x512xf32> to vector<2x512xf32>
    %7 = arith.addf %4, %6 : vector<2x512xf32>
    %cst_6 = arith.constant dense<0.000000e+00> : vector<2xf32>
    %8 = vector.multi_reduction <add>, %7, %cst_6 [1] : vector<2x512xf32> to vector<2xf32>
    %9 = vector.shape_cast %8 : vector<2xf32> to vector<2x1xf32>
    %10 = arith.mulf %7, %7 : vector<2x512xf32>
    %cst_7 = arith.constant dense<0.000000e+00> : vector<2xf32>
    %11 = vector.multi_reduction <add>, %10, %cst_7 [1] : vector<2x512xf32> to vector<2xf32>
    %12 = vector.shape_cast %11 : vector<2xf32> to vector<2x1xf32>
    %cst_8 = arith.constant 0.001953125 : f32
    %13 = vector.broadcast %cst_8 : f32 to vector<2x1xf32>
    %14 = arith.mulf %9, %13 : vector<2x1xf32>
    %cst_9 = arith.constant 0.001953125 : f32
    %15 = vector.broadcast %cst_9 : f32 to vector<2x1xf32>
    %16 = arith.mulf %12, %15 : vector<2x1xf32>
    %17 = arith.mulf %14, %14 : vector<2x1xf32>
    %18 = arith.subf %16, %17 : vector<2x1xf32>
    %cst_10 = arith.constant 0.000000e+00 : f32
    %19 = vector.broadcast %cst_10 : f32 to vector<2x1xf32>
    %20 = arith.maximumf %18, %19 : vector<2x1xf32>
    %21 = vector.broadcast %14 : vector<2x1xf32> to vector<2x512xf32>
    %22 = arith.subf %7, %21 : vector<2x512xf32>
    %cst_11 = arith.constant 9.99999974E-6 : f32
    %23 = vector.broadcast %cst_11 : f32 to vector<2x1xf32>
    %24 = arith.addf %20, %23 : vector<2x1xf32>
    %25 = math.rsqrt %24 : vector<2x1xf32>
    %26 = vector.broadcast %25 : vector<2x1xf32> to vector<2x512xf32>
    %27 = arith.mulf %22, %26 : vector<2x512xf32>
    %cst_12 = arith.constant 0.000000e+00 : f32
    %28 = vector.broadcast %cst_12 : f32 to vector<2x512xf32>
    %29 = arith.maximumf %27, %28 : vector<2x512xf32>
    %30 = arith.truncf %29 : vector<2x512xf32> to vector<2x512xbf16>
    %c0_13 = arith.constant 0 : index
    %c0_14 = arith.constant 0 : index
    %31 = vector.load %arg10[%c0_13, %c0_14] : memref<512x256xbf16, #tpu.memory_space<vmem>>, vector<512x256xbf16>
    %cst_15 = arith.constant dense<0.000000e+00> : vector<2x256xf32>
    %32 = tpu.matmul %30, %31, %cst_15 {dimension_numbers = #tpu.dot_dimension_numbers<[1], [0], [0], [1], [0, 0, 1, 1], [], []>} : vector<2x512xbf16>, vector<512x256xbf16>, vector<2x256xf32> -> vector<2x256xf32>
    %c0_16 = arith.constant 0 : index
    %c0_17 = arith.constant 0 : index
    %33 = vector.load %arg11[%c0_16, %c0_17] : memref<1x256xf32, #tpu.memory_space<vmem>>, vector<1x256xf32>
    %34 = vector.broadcast %33 : vector<1x256xf32> to vector<2x256xf32>
    %35 = arith.addf %32, %34 : vector<2x256xf32>
    %cst_18 = arith.constant dense<0.000000e+00> : vector<2xf32>
    %36 = vector.multi_reduction <add>, %35, %cst_18 [1] : vector<2x256xf32> to vector<2xf32>
    %37 = vector.shape_cast %36 : vector<2xf32> to vector<2x1xf32>
    %38 = arith.mulf %35, %35 : vector<2x256xf32>
    %cst_19 = arith.constant dense<0.000000e+00> : vector<2xf32>
    %39 = vector.multi_reduction <add>, %38, %cst_19 [1] : vector<2x256xf32> to vector<2xf32>
    %40 = vector.shape_cast %39 : vector<2xf32> to vector<2x1xf32>
    %cst_20 = arith.constant 3.906250e-03 : f32
    %41 = vector.broadcast %cst_20 : f32 to vector<2x1xf32>
    %42 = arith.mulf %37, %41 : vector<2x1xf32>
    %cst_21 = arith.constant 3.906250e-03 : f32
    %43 = vector.broadcast %cst_21 : f32 to vector<2x1xf32>
    %44 = arith.mulf %40, %43 : vector<2x1xf32>
    %45 = arith.mulf %42, %42 : vector<2x1xf32>
    %46 = arith.subf %44, %45 : vector<2x1xf32>
    %cst_22 = arith.constant 0.000000e+00 : f32
    %47 = vector.broadcast %cst_22 : f32 to vector<2x1xf32>
    %48 = arith.maximumf %46, %47 : vector<2x1xf32>
    %49 = vector.broadcast %42 : vector<2x1xf32> to vector<2x256xf32>
    %50 = arith.subf %35, %49 : vector<2x256xf32>
    %cst_23 = arith.constant 9.99999974E-6 : f32
    %51 = vector.broadcast %cst_23 : f32 to vector<2x1xf32>
    %52 = arith.addf %48, %51 : vector<2x1xf32>
    %53 = math.rsqrt %52 : vector<2x1xf32>
    %54 = vector.broadcast %53 : vector<2x1xf32> to vector<2x256xf32>
    %55 = arith.mulf %50, %54 : vector<2x256xf32>
    %cst_24 = arith.constant 0.000000e+00 : f32
    %56 = vector.broadcast %cst_24 : f32 to vector<2x256xf32>
    %57 = arith.maximumf %55, %56 : vector<2x256xf32>
    %58 = arith.truncf %57 : vector<2x256xf32> to vector<2x256xbf16>
    %c0_25 = arith.constant 0 : index
    %c0_26 = arith.constant 0 : index
    %59 = vector.load %arg12[%c0_25, %c0_26] : memref<256x4096xbf16, #tpu.memory_space<vmem>>, vector<256x4096xbf16>
    %cst_27 = arith.constant dense<0.000000e+00> : vector<2x4096xf32>
    %60 = tpu.matmul %58, %59, %cst_27 {dimension_numbers = #tpu.dot_dimension_numbers<[1], [0], [0], [1], [0, 0, 1, 1], [], []>} : vector<2x256xbf16>, vector<256x4096xbf16>, vector<2x4096xf32> -> vector<2x4096xf32>
    %c0_28 = arith.constant 0 : index
    %c0_29 = arith.constant 0 : index
    %61 = vector.load %arg13[%c0_28, %c0_29] : memref<1x4096xf32, #tpu.memory_space<vmem>>, vector<1x4096xf32>
    %62 = vector.broadcast %61 : vector<1x4096xf32> to vector<2x4096xf32>
    %63 = arith.addf %60, %62 : vector<2x4096xf32>
    %c0_30 = arith.constant 0 : index
    %c0_31 = arith.constant 0 : index
    %c0_32 = arith.constant 0 : index
    %64 = vector.load %arg14[%c0_30, %c0_31, %c0_32] : memref<1x2x4096xf32, #tpu.memory_space<vmem>>, vector<1x2x4096xf32>
    %65 = vector.shape_cast %64 : vector<1x2x4096xf32> to vector<2x4096xf32>
    %66 = vector.shape_cast %63 : vector<2x4096xf32> to vector<1x2x4096xf32>
    tpu.vector_store %arg14[%c0_30, %c0_31, %c0_32], %66 {strides = array<i32>} : memref<1x2x4096xf32, #tpu.memory_space<vmem>>, vector<1x2x4096xf32>,
    return
  }
  func.func @transform_0(%arg0: i32) -> (i32, i32, i32) {
    %c0_i32 = arith.constant 0 : i32
    %c0_i32_0 = arith.constant 0 : i32
    %c0_i32_1 = arith.constant 0 : i32
    return %arg0, %c0_i32, %c0_i32_0 : i32, i32, i32
  }
  func.func @transform_1(%arg0: i32) -> (i32, i32) {
    %c0_i32 = arith.constant 0 : i32
    %c0_i32_0 = arith.constant 0 : i32
    %c0_i32_1 = arith.constant 0 : i32
    return %c0_i32, %c0_i32_0 : i32, i32
  }
  func.func @transform_2(%arg0: i32) -> (i32, i32) {
    %c0_i32 = arith.constant 0 : i32
    %c0_i32_0 = arith.constant 0 : i32
    %c0_i32_1 = arith.constant 0 : i32
    return %c0_i32, %c0_i32_0 : i32, i32
  }
  func.func @transform_3(%arg0: i32) -> (i32, i32) {
    %c0_i32 = arith.constant 0 : i32
    %c0_i32_0 = arith.constant 0 : i32
    %c0_i32_1 = arith.constant 0 : i32
    return %c0_i32, %c0_i32_0 : i32, i32
  }
  func.func @transform_4(%arg0: i32) -> (i32, i32) {
    %c0_i32 = arith.constant 0 : i32
    %c0_i32_0 = arith.constant 0 : i32
    %c0_i32_1 = arith.constant 0 : i32
    return %c0_i32, %c0_i32_0 : i32, i32
  }
  func.func @transform_5(%arg0: i32) -> (i32, i32) {
    %c0_i32 = arith.constant 0 : i32
    %c0_i32_0 = arith.constant 0 : i32
    %c0_i32_1 = arith.constant 0 : i32
    return %c0_i32, %c0_i32_0 : i32, i32
  }
  func.func @transform_6(%arg0: i32) -> (i32, i32) {
    %c0_i32 = arith.constant 0 : i32
    %c0_i32_0 = arith.constant 0 : i32
    %c0_i32_1 = arith.constant 0 : i32
    return %c0_i32, %c0_i32_0 : i32, i32
  }
  func.func @transform_7(%arg0: i32) -> (i32, i32) {
    %c0_i32 = arith.constant 0 : i32
    %c0_i32_0 = arith.constant 0 : i32
    %c0_i32_1 = arith.constant 0 : i32
    return %c0_i32, %c0_i32_0 : i32, i32
  }
  func.func @transform_8(%arg0: i32) -> (i32, i32) {
    %c0_i32 = arith.constant 0 : i32
    %c0_i32_0 = arith.constant 0 : i32
    %c0_i32_1 = arith.constant 0 : i32
    return %c0_i32, %c0_i32_0 : i32, i32
  }
  func.func @transform_9(%arg0: i32) -> (i32, i32) {
    %c0_i32 = arith.constant 0 : i32
    %c0_i32_0 = arith.constant 0 : i32
    %c0_i32_1 = arith.constant 0 : i32
    return %c0_i32, %c0_i32_0 : i32, i32
  }
  func.func @transform_10(%arg0: i32) -> (i32, i32) {
    %c0_i32 = arith.constant 0 : i32
    %c0_i32_0 = arith.constant 0 : i32
    %c0_i32_1 = arith.constant 0 : i32
    return %c0_i32, %c0_i32_0 : i32, i32
  }
  func.func @transform_11(%arg0: i32) -> (i32, i32) {
    %c0_i32 = arith.constant 0 : i32
    %c0_i32_0 = arith.constant 0 : i32
    %c0_i32_1 = arith.constant 0 : i32
    return %c0_i32, %c0_i32_0 : i32, i32
  }
  func.func @transform_12(%arg0: i32) -> (i32, i32) {
    %c0_i32 = arith.constant 0 : i32
    %c0_i32_0 = arith.constant 0 : i32
    %c0_i32_1 = arith.constant 0 : i32
    return %c0_i32, %c0_i32_0 : i32, i32
  }
  func.func @transform_13(%arg0: i32) -> (i32, i32, i32) {
    %c0_i32 = arith.constant 0 : i32
    %c0_i32_0 = arith.constant 0 : i32
    %c0_i32_1 = arith.constant 0 : i32
    return %arg0, %c0_i32, %c0_i32_0 : i32, i32, i32
  }
}

</mosaic_0001>

<bundles_post_ra>
// kernel: tpu_custom_call.1
= control target key start
LH: loop header
LB: loop body
LE: loop exit
PB: predicated region body
PF: predicated region fallthrough
CT: control target
= control target key end

     0   :  { %s15477_s0 = inlined_call_operand.vmem [shape: f32[4,128,64], index: 0, kind: input, shape index: {}]   ;;  %s15478_s1 = inlined_call_operand.hbm [shape: bf16[64,64], index: 1, kind: input, shape index: {}]   ;;  %s15479_s2 = inlined_call_operand.hbm [shape: f32[1,64], index: 2, kind: input, shape index: {}]   ;;  %s15480_s3 = inlined_call_operand.hbm [shape: bf16[64,128], index: 3, kind: input, shape index: {}]   ;;  %s15481_s4 = inlined_call_operand.hbm [shape: f32[1,128], index: 4, kind: input, shape index: {}]   ;;  %s15482_s5 = inlined_call_operand.hbm [shape: bf16[128,1024], index: 5, kind: input, shape index: {}]   ;;  %s15483_s6 = inlined_call_operand.hbm [shape: f32[1,1024], index: 6, kind: input, shape index: {}]   ;;  %s15484_s7 = inlined_call_operand.hbm [shape: bf16[1024,512], index: 7, kind: input, shape index: {}]   ;;  %s15485_s8 = inlined_call_operand.hbm [shape: f32[1,512], index: 8, kind: input, shape index: {}]   ;;  %s15486_s9 = inlined_call_operand.hbm [shape: bf16[512,256], index: 9, kind: input, shape index: {}]   ;;  %s15487_s10 = inlined_call_operand.hbm [shape: f32[1,256], index: 10, kind: input, shape index: {}]   ;;  %s15488_s11 = inlined_call_operand.hbm [shape: bf16[256,4096], index: 11, kind: input, shape index: {}]   ;;  %s15489_s12 = inlined_call_operand.hbm [shape: f32[1,4096], index: 12, kind: input, shape index: {}]   ;;  %s15490_s13 = inlined_call_operand.hbm [shape: f32[2,2,4096], index: 13, kind: output, shape index: {}]  }
   0x1   :  { %15641 = sst [smem:[#allocation126_spill]] %s15478_s1 }
   0x2   :  { %15642 = sst [smem:[#allocation127_spill]] %s15479_s2 }
   0x3   :  { %15643 = sst [smem:[#allocation128_spill]] %s15480_s3 }
   0x4   :  { %15644 = sst [smem:[#allocation129_spill]] %s15481_s4 }
   0x5   :  { %15645 = sst [smem:[#allocation130_spill]] %s15490_s13 }
   0x6   :  { %18 = vsyncpa [#allocation4], 0 }
   0x7   :  { %19 = vsyncpa [#allocation7], 0 }
   0x8   :  { %20 = vsyncpa [#allocation10], 0 }
   0x9   :  { %21 = vsyncpa [#allocation13], 0 }
   0xa   :  { %22 = vsyncpa [#allocation16], 0 }
   0xb   :  { %23 = vsyncpa [#allocation19], 0 }
   0xc   :  { %24 = vsyncpa [#allocation22], 0 }
   0xd   :  { %25 = vsyncpa [#allocation5], 0 }
   0xe   :  { %27 = vsyncpa [#allocation5 + $0x1], 0  ;;  %s12321_s25 = smov 0   ;;  %s12323_s26 = smov 0  }
   0xf   :  { %s12325_s27 = smov 0   ;;  %s12327_s28 = smov 0  }
  0x10 LB: > { %15646 = sst [smem:[#allocation32_spill]] %s12208_s25  ;;  %s12342_s29 = sadd.s32 4294967295, %s12220_s28   ;;  %s12220_s28 = sphi %s12327_s28, %s16132_s28   ;;  %s12216_s27 = sphi %s12325_s27, %s16134_s27   ;;  %s12212_s26 = sphi %s12323_s26, %s16136_s26   ;;  %s12208_s25 = sphi %s12321_s25, %s16135_s25  }
  0x11   : > { %15647 = sst [smem:[#allocation33_spill]] %s12216_s27  ;;  %s10024_s30 = sadd.s32 4294967294, %s12220_s28  }
  0x12   : > { %15648 = sst [smem:[#allocation34_spill]] %s12220_s28  ;;  %s12346_s14 = sadd.s32 1, %s12220_s28  }
  0x13   : > { %15649 = sst [smem:[#allocation35_spill]] %s12346_s14  ;;  %s318_s15 = sadd.s32 1, %s12216_s27 }
  0x14   : > { %s315_s16 = ssub.s32 %s12220_s28, %s12346_s14  ;;  %p328_p0 = scmp.ne.s32.totalorder %s12216_s27, %s12212_s26 }
  0x15   : > { %p316_p1 = scmp.eq.s32.totalorder %s315_s16, 0  ;;  %p329_p2 = scmp.eq.s32.totalorder %s12342_s29, 1 }
  0x16   : > { %p334_p3 = scmp.ne.s32.totalorder %s12212_s26, %s12208_s25  ;;  %p335_p4 = scmp.eq.s32.totalorder %s10024_s30, 1 }
  0x17   : > { %s12357_s17 = scalar_select %p316_p1, %s12216_s27, %s318_s15  }
  0x18   : > { %p12359_p5 = por %p329_p2, %p328_p0  ;;  %p12363_p6 = por %p335_p4, %p334_p3 }
  0x19   : > { %15650 = sst [smem:[#allocation36_spill]] %s12357_s17  ;;  %p10025_p7 = scmp.ge.s32.totalorder %s12220_s28, 1 }
  0x1a   : > { %s15651_s18 = scalar_select %p12359_p5, 1, 0 }
  0x1b   : > { %s15652_s19 = scalar_select %p12363_p6, 1, 0 }
  0x1c   : > { %p342_p8 = scmp.lt.s32.totalorder %s12220_s28, 3  ;;  %p15496_p9 = scmp.eq.s32.totalorder %s12342_s29, 0 }
  0x1d   : > { %15653 = sst [smem:[#allocation37_spill]] %s15652_s19  ;;  %s12226_s21 = smov [#allocation6]  }
  0x1e   : > { %p12370_p10 = pnand %p10025_p7, %p342_p8  ;;  %s368_s22 = sshll.u32 %s12226_s21, 4  ;;  %s369_s22 = int_to_ptr.vmem [resolvable:$true] %s368_s22 }
  0x1f   : > { %s12227_s23 = smov [#allocation9]   ;;  %s12228_s15 = smov [#allocation12]  }
  0x20   : > { %s15654_s20 = scalar_select %p12370_p10, 1, 0 }
  0x21   : > { %p11145_p11 = pneg %p12370_p10  ;;  %s392_s24 = sshll.u32 %s12227_s23, 4  ;;  %s12382_s24 = int_to_ptr.vmem [resolvable:$true] %s392_s24 }
  0x22   : > { %s416_s16 = sshll.u32 %s12228_s15, 4  ;;  %s15656_s2 = sld [smem:[#allocation127_spill]]  ;;  %s12384_s16 = int_to_ptr.vmem [resolvable:$true] %s416_s16 }
  0x23   : > { %p12378_p12 = pnand %p15496_p9, %p11145_p11 }
  0x25   : > { %p12394_p0 = pneg %p12378_p12 }
  0x28   : > { %s11790_s21 = scalar_lea.hbm %s15656_s2, 16 }
  0x29   : > { %p11791_p13 = scmp.ne.s32.totalorder %s15656_s2, %s11790_s21  ;;  %p11797_p3 = scmp.lt.u32.totalorder %s11790_s21, %s15656_s2 }
  0x2b   : > { %p11793_p1 = pnand %p12394_p0, %p11791_p13 }
  0x2d   : > { %p11794_p2 = pneg %p11793_p1 }
  0x2f   : > { %p11799_p4 = pnand %p11797_p3, %p11794_p2 }
  0x31   : > { %11802 = shalt.err (!%p11799_p4)
}
  0x32   : > { %s11803_s27 = scalar_lea.vmem %s369_s22, 16  ;;  %s11810_s14 = scalar_lea.vmem %s369_s22, 32 }
  0x33   : > { %p11804_p7 = scmp.ne.s32.totalorder %s369_s22, %s11803_s27  ;;  %p11811_p9 = scmp.lt.s32.totalorder %s369_s22, %s369_s22 }
  0x34   : > { %p11812_p6 = scmp.lt.s32.totalorder %s11810_s14, %s11803_s27 }
  0x35   : > { %p11806_p8 = pnand %p11804_p7, %p12394_p0 }
  0x36   : > { %p11813_p5 = por %p11812_p6, %p11811_p9 }
  0x37   : > { %p11807_p11 = pneg %p11806_p8 }
  0x39   : > { %p11814_p10 = pnand %p11813_p5, %p11807_p11 }
  0x3b   : > { %11817 = shalt.err (!%p11814_p10)
}
  0x3c   : > { %11151 = dma.hbm_to_vmem [thread:$0]  (!%p12378_p12), %s15656_s2, 16, %s369_s22, [#allocation7]  }
  0x3d   : > { %s15658_s4 = sld [smem:[#allocation129_spill]] }
  0x43   : > { %s11818_s15 = scalar_lea.hbm %s15658_s4, 16 }
  0x44   : > { %p11819_p13 = scmp.ne.s32.totalorder %s15658_s4, %s11818_s15  ;;  %p11825_p5 = scmp.lt.u32.totalorder %s11818_s15, %s15658_s4 }
  0x46   : > { %p11821_p1 = pnand %p11819_p13, %p12394_p0 }
  0x48   : > { %p11822_p6 = pneg %p11821_p1 }
  0x4a   : > { %p11827_p9 = pnand %p11825_p5, %p11822_p6 }
  0x4c   : > { %11830 = shalt.err (!%p11827_p9)
}
  0x4d   : > { %s11831_s22 = scalar_lea.vmem %s12382_s24, 16  ;;  %s11838_s13 = scalar_lea.vmem %s12382_s24, 32 }
  0x4e   : > { %p11832_p10 = scmp.ne.s32.totalorder %s12382_s24, %s11831_s22  ;;  %p11839_p4 = scmp.lt.s32.totalorder %s12382_s24, %s12382_s24 }
  0x4f   : > { %p11840_p7 = scmp.lt.s32.totalorder %s11838_s13, %s11831_s22 }
  0x50   : > { %p11834_p2 = pnand %p11832_p10, %p12394_p0 }
  0x51   : > { %p11841_p8 = por %p11840_p7, %p11839_p4 }
  0x52   : > { %p11835_p3 = pneg %p11834_p2 }
  0x54   : > { %p11842_p11 = pnand %p11841_p8, %p11835_p3 }
  0x56   : > { %11845 = shalt.err (!%p11842_p11)
}
  0x57   : > { %11157 = dma.hbm_to_vmem [thread:$0]  (!%p12378_p12), %s15658_s4, 16, %s12382_s24, [#allocation10]  }
  0x58   : > { %s11846_s21 = scalar_lea.hbm %s15483_s6, 128 }
  0x59   : > { %p11847_p13 = scmp.ne.s32.totalorder %s15483_s6, %s11846_s21  ;;  %p11853_p5 = scmp.lt.u32.totalorder %s11846_s21, %s15483_s6 }
  0x5b   : > { %p11849_p1 = pnand %p11847_p13, %p12394_p0 }
  0x5d   : > { %p11850_p6 = pneg %p11849_p1 }
  0x5f   : > { %p11855_p9 = pnand %p11853_p5, %p11850_p6 }
  0x61   : > { %11858 = shalt.err (!%p11855_p9)
}
  0x62   : > { %s11859_s24 = scalar_lea.vmem %s12384_s16, 128  ;;  %p11867_p4 = scmp.lt.s32.totalorder %s12384_s16, %s12384_s16 }
  0x63   : > { %p11860_p10 = scmp.ne.s32.totalorder %s12384_s16, %s11859_s24  ;;  %p11868_p7 = scmp.lt.s32.totalorder %s11859_s24, %s11859_s24 }
  0x65   : > { %p11862_p2 = pnand %p11860_p10, %p12394_p0  ;;  %p11869_p8 = por %p11868_p7, %p11867_p4 }
  0x67   : > { %p11863_p3 = pneg %p11862_p2 }
  0x69   : > { %p11870_p11 = pnand %p11869_p8, %p11863_p3 }
  0x6b   : > { %11873 = shalt.err (!%p11870_p11)
}
  0x6c   : > { %11163 = dma.hbm_to_vmem [thread:$0]  (!%p12378_p12), %s15483_s6, 128, %s12384_s16, [#allocation13]  }
  0x6d   : > { %s12229_s17 = smov [#allocation15]   ;;  %s12230_s25 = smov [#allocation18]  }
  0x6e   : > { %s440_s19 = sshll.u32 %s12229_s17, 4  ;;  %s464_s21 = sshll.u32 %s12230_s25, 4  ;;  %s441_s19 = int_to_ptr.vmem [resolvable:$true] %s440_s19  ;;  %s465_s21 = int_to_ptr.vmem [resolvable:$true] %s464_s21 }
  0x6f   : > { %s11874_s14 = scalar_lea.hbm %s15485_s8, 64 }
  0x70   : > { %p11875_p13 = scmp.ne.s32.totalorder %s15485_s8, %s11874_s14  ;;  %p11881_p5 = scmp.lt.u32.totalorder %s11874_s14, %s15485_s8 }
  0x72   : > { %p11877_p1 = pnand %p11875_p13, %p12394_p0 }
  0x74   : > { %p11878_p6 = pneg %p11877_p1 }
  0x76   : > { %p11883_p9 = pnand %p11881_p5, %p11878_p6 }
  0x78   : > { %11886 = shalt.err (!%p11883_p9)
}
  0x79   : > { %s11887_s16 = scalar_lea.vmem %s441_s19, 64  ;;  %p11895_p4 = scmp.lt.s32.totalorder %s441_s19, %s441_s19 }
  0x7a   : > { %p11888_p10 = scmp.ne.s32.totalorder %s441_s19, %s11887_s16  ;;  %p11896_p7 = scmp.lt.s32.totalorder %s11887_s16, %s11887_s16 }
  0x7c   : > { %p11890_p2 = pnand %p11888_p10, %p12394_p0  ;;  %p11897_p8 = por %p11896_p7, %p11895_p4 }
  0x7e   : > { %p11891_p3 = pneg %p11890_p2 }
  0x80   : > { %p11898_p11 = pnand %p11897_p8, %p11891_p3 }
  0x82   : > { %11901 = shalt.err (!%p11898_p11)
}
  0x83   : > { %11169 = dma.hbm_to_vmem [thread:$0]  (!%p12378_p12), %s15485_s8, 64, %s441_s19, [#allocation16]  }
  0x84   : > { %s11902_s15 = scalar_lea.hbm %s15487_s10, 32 }
  0x85   : > { %p11903_p13 = scmp.ne.s32.totalorder %s15487_s10, %s11902_s15  ;;  %p11909_p5 = scmp.lt.u32.totalorder %s11902_s15, %s15487_s10 }
  0x87   : > { %p11905_p1 = pnand %p11903_p13, %p12394_p0 }
  0x89   : > { %p11906_p6 = pneg %p11905_p1 }
  0x8b   : > { %p11911_p9 = pnand %p11909_p5, %p11906_p6 }
  0x8d   : > { %11914 = shalt.err (!%p11911_p9)
}
  0x8e   : > { %s11915_s13 = scalar_lea.vmem %s465_s21, 32  ;;  %p11923_p4 = scmp.lt.s32.totalorder %s465_s21, %s465_s21 }
  0x8f   : > { %p11916_p10 = scmp.ne.s32.totalorder %s465_s21, %s11915_s13  ;;  %p11924_p7 = scmp.lt.s32.totalorder %s11915_s13, %s11915_s13 }
  0x91   : > { %p11918_p2 = pnand %p11916_p10, %p12394_p0  ;;  %p11925_p8 = por %p11924_p7, %p11923_p4 }
  0x93   : > { %p11919_p3 = pneg %p11918_p2 }
  0x95   : > { %p11926_p11 = pnand %p11925_p8, %p11919_p3 }
  0x97   : > { %11929 = shalt.err (!%p11926_p11)
}
  0x98   : > { %11175 = dma.hbm_to_vmem [thread:$0]  (!%p12378_p12), %s15487_s10, 32, %s465_s21, [#allocation19]  }
  0x99   : > { %s12231_s28 = smov [#allocation3]   ;;  %s15659_s1 = sld [smem:[#allocation126_spill]] }
  0x9a   : > { %s354_s17 = sshll.u32 %s12231_s28, 4  ;;  %s355_s17 = int_to_ptr.vmem [resolvable:$true] %s354_s17 }
  0x9f   : > { %s11930_s15 = scalar_lea.hbm %s15659_s1, 512 }
  0xa0   : > { %p11931_p13 = scmp.ne.s32.totalorder %s15659_s1, %s11930_s15  ;;  %p11937_p5 = scmp.lt.u32.totalorder %s11930_s15, %s15659_s1 }
  0xa2   : > { %p11933_p1 = pnand %p11931_p13, %p12394_p0 }
  0xa4   : > { %p11934_p6 = pneg %p11933_p1 }
  0xa6   : > { %p11939_p9 = pnand %p11937_p5, %p11934_p6 }
  0xa8   : > { %11942 = shalt.err (!%p11939_p9)
}
  0xa9   : > { %s11943_s21 = scalar_lea.vmem %s355_s17, 512  ;;  %p11951_p4 = scmp.lt.s32.totalorder %s355_s17, %s355_s17 }
  0xaa   : > { %p11944_p10 = scmp.ne.s32.totalorder %s355_s17, %s11943_s21  ;;  %p11952_p7 = scmp.lt.s32.totalorder %s11943_s21, %s11943_s21 }
  0xac   : > { %p11946_p2 = pnand %p11944_p10, %p12394_p0  ;;  %p11953_p8 = por %p11952_p7, %p11951_p4 }
  0xae   : > { %p11947_p3 = pneg %p11946_p2 }
  0xb0   : > { %p11954_p11 = pnand %p11953_p8, %p11947_p3 }
  0xb2   : > { %11957 = shalt.err (!%p11954_p11)
}
  0xb3   : > { %s12232_s13 = smov 64   ;;  %s12233_s19 = smov 4  }
  0xb4   : > { %11148 = dma.hbm_to_vmem [thread:$0]  (!%p12378_p12), %s15659_s1, 512, %s355_s17, [#allocation4], %s12232_s13, %s12232_s13, %s12233_s19  }
  0xb5   : > { %s12234_s2 = smov [#allocation8]   ;;  %s12235_s15 = smov [#allocation11]  }
  0xb6   : > { %s378_s25 = sshll.u32 %s12234_s2, 4  ;;  %s402_s27 = sshll.u32 %s12235_s15, 4  ;;  %s379_s25 = int_to_ptr.vmem [resolvable:$true] %s378_s25  ;;  %s12511_s27 = int_to_ptr.vmem [resolvable:$true] %s402_s27 }
  0xb7   : > { %s15660_s3 = sld [smem:[#allocation128_spill]] }
  0xbd   : > { %s11958_s24 = scalar_lea.hbm %s15660_s3, 512 }
  0xbe   : > { %p11959_p13 = scmp.ne.s32.totalorder %s15660_s3, %s11958_s24  ;;  %p11965_p5 = scmp.lt.u32.totalorder %s11958_s24, %s15660_s3 }
  0xc0   : > { %p11961_p1 = pnand %p11959_p13, %p12394_p0 }
  0xc2   : > { %p11962_p6 = pneg %p11961_p1 }
  0xc4   : > { %p11967_p9 = pnand %p11965_p5, %p11962_p6 }
  0xc6   : > { %11970 = shalt.err (!%p11967_p9)
}
  0xc7   : > { %s11971_s28 = scalar_lea.vmem %s379_s25, 512  ;;  %p11979_p4 = scmp.lt.s32.totalorder %s379_s25, %s379_s25 }
  0xc8   : > { %p11972_p10 = scmp.ne.s32.totalorder %s379_s25, %s11971_s28  ;;  %p11980_p7 = scmp.lt.s32.totalorder %s11971_s28, %s11971_s28 }
  0xca   : > { %p11974_p2 = pnand %p11972_p10, %p12394_p0  ;;  %p11981_p8 = por %p11980_p7, %p11979_p4 }
  0xcc   : > { %p11975_p3 = pneg %p11974_p2 }
  0xce   : > { %p11982_p11 = pnand %p11981_p8, %p11975_p3 }
  0xd0   : > { %11985 = shalt.err (!%p11982_p11)
}
  0xd1   : > { %11154 = dma.hbm_to_vmem [thread:$0]  (!%p12378_p12), %s15660_s3, 512, %s379_s25, [#allocation7], %s12232_s13, %s12232_s13, %s12233_s19  }
  0xd2   : > { %s11986_s22 = scalar_lea.hbm %s15482_s5, 8192 }
  0xd3   : > { %p11987_p13 = scmp.ne.s32.totalorder %s15482_s5, %s11986_s22  ;;  %p11993_p5 = scmp.lt.u32.totalorder %s11986_s22, %s15482_s5 }
  0xd5   : > { %p11989_p1 = pnand %p11987_p13, %p12394_p0 }
  0xd7   : > { %p11990_p6 = pneg %p11989_p1 }
  0xd9   : > { %p11995_p9 = pnand %p11993_p5, %p11990_p6 }
  0xdb   : > { %11998 = shalt.err (!%p11995_p9)
}
  0xdc   : > { %s11999_s13 = scalar_lea.vmem %s12511_s27, 8192  ;;  %p12007_p4 = scmp.lt.s32.totalorder %s12511_s27, %s12511_s27 }
  0xdd   : > { %p12000_p10 = scmp.ne.s32.totalorder %s12511_s27, %s11999_s13  ;;  %p12008_p7 = scmp.lt.s32.totalorder %s11999_s13, %s11999_s13 }
  0xdf   : > { %p12002_p2 = pnand %p12000_p10, %p12394_p0  ;;  %p12009_p8 = por %p12008_p7, %p12007_p4 }
  0xe1   : > { %p12003_p3 = pneg %p12002_p2 }
  0xe3   : > { %p12010_p11 = pnand %p12009_p8, %p12003_p3 }
  0xe5   : > { %12013 = shalt.err (!%p12010_p11)
}
  0xe6   : > { %s12236_s19 = smov 512   ;;  %s12237_s25 = smov 32  }
  0xe7   : > { %11160 = dma.hbm_to_vmem [thread:$0]  (!%p12378_p12), %s15482_s5, 8192, %s12511_s27, [#allocation10], %s12236_s19, %s12236_s19, %s12237_s25  }
  0xe8   : > { %s12238_s2 = smov [#allocation14]   ;;  %s12014_s24 = scalar_lea.hbm %s15484_s7, 32768 }
  0xe9   : > { %s426_s15 = sshll.u32 %s12238_s2, 4  ;;  %p12015_p13 = scmp.ne.s32.totalorder %s15484_s7, %s12014_s24  ;;  %s427_s15 = int_to_ptr.vmem [resolvable:$true] %s426_s15 }
  0xea   : > { %p12021_p5 = scmp.lt.u32.totalorder %s12014_s24, %s15484_s7 }
  0xeb   : > { %p12017_p1 = pnand %p12015_p13, %p12394_p0 }
  0xed   : > { %p12018_p6 = pneg %p12017_p1 }
  0xef   : > { %p12023_p9 = pnand %p12021_p5, %p12018_p6 }
  0xf1   : > { %12026 = shalt.err (!%p12023_p9)
}
  0xf2   : > { %s12027_s27 = scalar_lea.vmem %s427_s15, 32768  ;;  %p12035_p4 = scmp.lt.s32.totalorder %s427_s15, %s427_s15 }
  0xf3   : > { %p12028_p10 = scmp.ne.s32.totalorder %s427_s15, %s12027_s27  ;;  %p12036_p7 = scmp.lt.s32.totalorder %s12027_s27, %s12027_s27 }
  0xf5   : > { %p12030_p2 = pnand %p12028_p10, %p12394_p0  ;;  %p12037_p8 = por %p12036_p7, %p12035_p4 }
  0xf7   : > { %p12031_p3 = pneg %p12030_p2 }
  0xf9   : > { %p12038_p11 = pnand %p12037_p8, %p12031_p3 }
  0xfb   : > { %12041 = shalt.err (!%p12038_p11)
}
  0xfc   : > { %s12239_s19 = smov 256   ;;  %s12240_s25 = smov 16  }
  0xfd   : > { %11166 = dma.hbm_to_vmem [thread:$0]  (!%p12378_p12), %s15484_s7, 32768, %s427_s15, [#allocation13], %s12239_s19, %s12239_s19, %s12240_s25  }
  0xfe   : > { %s12241_s2 = smov [#allocation17]   ;;  %s12042_s21 = scalar_lea.hbm %s15486_s9, 8192 }
  0xff   : > { %s450_s14 = sshll.u32 %s12241_s2, 4  ;;  %p12043_p13 = scmp.ne.s32.totalorder %s15486_s9, %s12042_s21  ;;  %s451_s14 = int_to_ptr.vmem [resolvable:$true] %s450_s14 }
 0x100   : > { %p12049_p5 = scmp.lt.u32.totalorder %s12042_s21, %s15486_s9 }
 0x101   : > { %p12045_p1 = pnand %p12043_p13, %p12394_p0 }
 0x103   : > { %p12046_p6 = pneg %p12045_p1 }
 0x105   : > { %p12051_p9 = pnand %p12049_p5, %p12046_p6 }
 0x107   : > { %12054 = shalt.err (!%p12051_p9)
}
 0x108   : > { %s12055_s15 = scalar_lea.vmem %s451_s14, 8192  ;;  %p12063_p4 = scmp.lt.s32.totalorder %s451_s14, %s451_s14 }
 0x109   : > { %p12056_p10 = scmp.ne.s32.totalorder %s451_s14, %s12055_s15  ;;  %p12064_p7 = scmp.lt.s32.totalorder %s12055_s15, %s12055_s15 }
 0x10b   : > { %p12058_p2 = pnand %p12056_p10, %p12394_p0  ;;  %p12065_p8 = por %p12064_p7, %p12063_p4 }
 0x10d   : > { %p12059_p3 = pneg %p12058_p2 }
 0x10f   : > { %p12066_p11 = pnand %p12065_p8, %p12059_p3 }
 0x111   : > { %12069 = shalt.err (!%p12066_p11)
}
 0x112   : > { %s12242_s19 = smov 128   ;;  %s12243_s25 = smov 8  }
 0x113   : > { %11172 = dma.hbm_to_vmem [thread:$0]  (!%p12378_p12), %s15486_s9, 8192, %s451_s14, [#allocation16], %s12242_s19, %s12242_s19, %s12243_s25  }
 0x114   : > { %s12244_s2 = smov [#allocation20]   ;;  %s12245_s24 = smov [#allocation21]  }
 0x115   : > { %s474_s22 = sshll.u32 %s12244_s2, 4  ;;  %s488_s21 = sshll.u32 %s12245_s24, 4  ;;  %s475_s22 = int_to_ptr.vmem [resolvable:$true] %s474_s22  ;;  %s489_s21 = int_to_ptr.vmem [resolvable:$true] %s488_s21 }
 0x116   : > { %s12070_s13 = scalar_lea.hbm %s15488_s11, 65536 }
 0x117   : > { %p12071_p13 = scmp.ne.s32.totalorder %s15488_s11, %s12070_s13  ;;  %p12077_p5 = scmp.lt.u32.totalorder %s12070_s13, %s15488_s11 }
 0x119   : > { %p12073_p1 = pnand %p12071_p13, %p12394_p0 }
 0x11b   : > { %p12074_p6 = pneg %p12073_p1 }
 0x11d   : > { %p12079_p9 = pnand %p12077_p5, %p12074_p6 }
 0x11f   : > { %12082 = shalt.err (!%p12079_p9)
}
 0x120   : > { %s12083_s14 = scalar_lea.vmem %s475_s22, 65536  ;;  %p12091_p4 = scmp.lt.s32.totalorder %s475_s22, %s475_s22 }
 0x121   : > { %p12084_p10 = scmp.ne.s32.totalorder %s475_s22, %s12083_s14  ;;  %p12092_p7 = scmp.lt.s32.totalorder %s12083_s14, %s12083_s14 }
 0x123   : > { %p12086_p2 = pnand %p12084_p10, %p12394_p0  ;;  %p12093_p8 = por %p12092_p7, %p12091_p4 }
 0x125   : > { %p12087_p3 = pneg %p12086_p2 }
 0x127   : > { %p12094_p11 = pnand %p12093_p8, %p12087_p3 }
 0x129   : > { %12097 = shalt.err (!%p12094_p11)
}
 0x12a   : > { %s12246_s25 = smov 2048   ;;  %s12098_s2 = scalar_lea.hbm %s15489_s12, 512 }
 0x12b   : > { %11178 = dma.hbm_to_vmem [thread:$0]  (!%p12378_p12), %s15488_s11, 65536, %s475_s22, [#allocation19], %s12246_s25, %s12246_s25, %s12242_s19  }
 0x12c   : > { %p12099_p13 = scmp.ne.s32.totalorder %s15489_s12, %s12098_s2  ;;  %p12105_p5 = scmp.lt.u32.totalorder %s12098_s2, %s15489_s12 }
 0x12e   : > { %p12101_p1 = pnand %p12099_p13, %p12394_p0 }
 0x130   : > { %p12102_p6 = pneg %p12101_p1 }
 0x132   : > { %p12107_p9 = pnand %p12105_p5, %p12102_p6 }
 0x134   : > { %12110 = shalt.err (!%p12107_p9)
}
 0x135   : > { %s12111_s27 = scalar_lea.vmem %s489_s21, 512  ;;  %p12119_p4 = scmp.lt.s32.totalorder %s489_s21, %s489_s21 }
 0x136   : > { %p12112_p10 = scmp.ne.s32.totalorder %s489_s21, %s12111_s27  ;;  %p12120_p7 = scmp.lt.s32.totalorder %s12111_s27, %s12111_s27 }
 0x138   : > { %p12114_p2 = pnand %p12112_p10, %p12394_p0  ;;  %p12121_p8 = por %p12120_p7, %p12119_p4 }
 0x13a   : > { %p12115_p3 = pneg %p12114_p2 }
 0x13c   : > { %p12122_p11 = pnand %p12121_p8, %p12115_p3 }
 0x13e   : > { %12125 = shalt.err (!%p12122_p11)
}
 0x13f   : > { %11181 = dma.hbm_to_vmem [thread:$0]  (!%p12378_p12), %s15489_s12, 512, %s489_s21, [#allocation22]  }
 0x140   : > { %p15661_p13 = scmp.ne.s32.totalorder %s15654_s20, 0 }
 0x142   : > { %511 = sbr.rel (%p15661_p13) target bundleno = 3341 (0xd0d), region = 72 }
 0x149   : > { %p15662_p1 = scmp.eq.s32.totalorder %s12342_s29, 0 }
 0x14b   : > { %12175 = dma.done.wait (%p15662_p1), [#allocation4], 512   ;;  %p15663_p0 = pmov %p15662_p1 }
 0x14d   : > { %12177 = vsyncadd (%p15663_p0), [#allocation4], 4294966784  ;;  %p15664_p6 = pmov %p15663_p0 }
 0x14e   : > { %p15665_p5 = pmov %p15663_p0 }
 0x14f   : > { %12179 = dma.done.wait (%p15664_p6), [#allocation7], 528  }
 0x150   : > { %12181 = vsyncadd (%p15665_p5), [#allocation7], 4294966768  ;;  %p15666_p9 = pmov %p15663_p0 }
 0x151   : > { %p15667_p12 = pmov %p15663_p0 }
 0x152   : > { %12183 = dma.done.wait (%p15666_p9), [#allocation10], 8208  }
 0x153   : > { %12185 = vsyncadd (%p15667_p12), [#allocation10], 4294959088  ;;  %p15668_p10 = pmov %p15663_p0 }
 0x154   : > { %p15669_p2 = pmov %p15663_p0 }
 0x155   : > { %12187 = dma.done.wait (%p15668_p10), [#allocation13], 32896  }
 0x156   : > { %12189 = vsyncadd (%p15669_p2), [#allocation13], 4294934400  ;;  %p15670_p3 = pmov %p15663_p0 }
 0x157   : > { %p15671_p4 = pmov %p15663_p0 }
 0x158   : > { %12191 = dma.done.wait (%p15670_p3), [#allocation16], 8256  }
 0x159   : > { %12193 = vsyncadd (%p15671_p4), [#allocation16], 4294959040  ;;  %p15672_p7 = pmov %p15663_p0 }
 0x15a   : > { %p15673_p8 = pmov %p15663_p0 }
 0x15b   : > { %12195 = dma.done.wait (%p15672_p7), [#allocation19], 65568  }
 0x15c   : > { %12197 = vsyncadd (%p15673_p8), [#allocation19], 4294901728  ;;  %p15674_p11 = pmov %p15663_p0 }
 0x15d   : > { %p15675_p13 = pmov %p15663_p0 }
 0x15e   : > { %12199 = dma.done.wait (%p15674_p11), [#allocation22], 512  }
 0x15f   : > { %12201 = vsyncadd (%p15675_p13), [#allocation22], 4294966784  ;;  %s597_s20 = sand.u32 1, %s12212_s26   ;;  %s10053_s30 = sshll.u32 %s12342_s29, 1 }
 0x160   : > { %s10052_s23 = sshll.u32 %s597_s20, 6  ;;  %p601_p1 = scmp.lt.s32.totalorder %s10053_s30, 3 }
 0x161   : > { %s12665_s28 = scalar_lea.vmem [#allocation23], %s10052_s23  ;;  %s12667_s4 = smov 0  }
 0x162   : > { %s16138_s30 = smov (!%p601_p1, %s10053_s30), 3 }
 0x163   : > { %s10986_s21 = sshll.u32 %s16138_s30, 7 }
 0x164   : > { %s12663_s25 = scalar_lea.vmem %s15477_s0, %s10986_s21 }
 0x165 LB: >> { %v11275_v0 = vld [vmem:[#allocation3] sm:$0xff]   ;;  %v11276_v1 = vld [vmem:[#allocation3 + $0x8] sm:$0xff]   ;;  %s10056_s1 = sshll.u32 %s12224_s4, 7  ;;  %v11277_v2 = vld [vmem:[#allocation3 + $0x10] sm:$0xff]   ;;  %vm679_vm0 = vcmask 523264   ;;  %s3243_s2 = sshra.s32 %s12224_s4, 1  ;;  %s12224_s4 = sphi %s12667_s4, %s613_s4  }
 0x166   : >> { %11013 = vmatprep.subr.bf16.mxu0 %v11275_v0  ;;  %s12674_s3 = scalar_lea.vmem %s12663_s25, %s10056_s1  ;;  %v11278_v6 = vld [vmem:[#allocation3 + $0x18] sm:$0xff]   ;;  %v11279_v28 = vld [vmem:[#allocation8] sm:$0xff]   ;;  %v11280_v29 = vld [vmem:[#allocation8 + $0x8] sm:$0xff]   ;;  %s3246_s24 = sand.u32 1, %s12224_s4 }
 0x167   : >> { %11014 = vmatpush3.bf16.msra.mxu0 %v11275_v0  ;;  %v616_v3 = vld [vmem:[%s12674_s3] sm:$0xff]  ;;  %v617_v4 = vld [vmem:[%s12674_s3 + $0x8] sm:$0xff]  ;;  %v618_v7 = vld [vmem:[%s12674_s3 + $0x10] sm:$0xff]  ;;  %11037 = vmatprep.subr.bf16.mxu1 %v11279_v28  ;;  %s10987_s16 = sshll.u32 %s3243_s2, 4  ;;  %s613_s4 = sadd.s32 1, %s12224_s4  }
 0x168   : >> { %11015 = vmatprep.subr.bf16.mxu0 %v11276_v1  ;;  %v632_v5 = vpack.c.bf16 %v617_v4, %v616_v3  ;;  %v619_v8 = vld [vmem:[%s12674_s3 + $0x18] sm:$0xff]  ;;  %v620_v9 = vld [vmem:[%s12674_s3 + $0x20] sm:$0xff]  ;;  %v621_v10 = vld [vmem:[%s12674_s3 + $0x28] sm:$0xff]  ;;  %11038 = vmatpush3.bf16.msra.mxu1 %v11279_v28  ;;  %s3249_s17 = sadd.s32 %s10987_s16, %s3246_s24  ;;  %p610_p0 = scmp.ge.s32.totalorder %s613_s4, 2  }
 0x169   : >> { %v633_v11 = vpack.c.bf16 %v619_v8, %v618_v7  ;;  %v634_v12 = vpack.c.bf16 %v621_v10, %v620_v9  ;;  %v622_v13 = vld [vmem:[%s12674_s3 + $0x30] sm:$0xff]  ;;  %v623_v14 = vld [vmem:[%s12674_s3 + $0x38] sm:$0xff]  ;;  %v624_v15 = vld [vmem:[%s12674_s3 + $0x40] sm:$0xff]  ;;  %11039 = vmatprep.subr.bf16.mxu1 %v11280_v29  ;;  %s3250_s13 = scalar_lea.vmem [#allocation2], %s3249_s17  ;;  %vm5192_vm1 = vcmask (%p610_p0), 1041408   ;;  %s10988_s27 = sshll.u32 (%p610_p0), %s12342_s29, 10 }
 0x16a   : >> { %11021 = vmatprep.mubr.msk.bf16.mxu0 %vm679_vm0, %v632_v5  ;;  %v625_v16 = vld [vmem:[%s12674_s3 + $0x48] sm:$0xff]  ;;  %v635_v17 = vpack.c.bf16 %v623_v14, %v622_v13  ;;  %v626_v19 = vld [vmem:[%s12674_s3 + $0x50] sm:$0xff]  ;;  %v627_v20 = vld [vmem:[%s12674_s3 + $0x58] sm:$0xff]  ;;  %s9838_s19 = sshll.u32 (%p610_p0), %s12665_s28, 4  ;;  %s16126_s23 = sld [smem:[#allocation130_spill]] (%p610_p0)  ;;  %s15434_s19 = int_to_ptr.vmem [resolvable:$true] %s9838_s19 }
 0x16b   : >> { %11016 = vmatpush3.bf16.msra.mxu0 %v11276_v1  ;;  %v636_v18 = vpack.c.bf16 %v625_v16, %v624_v15  ;;  %v628_v21 = vld [vmem:[%s12674_s3 + $0x60] sm:$0xff]  ;;  %v629_v22 = vld [vmem:[%s12674_s3 + $0x68] sm:$0xff]  ;;  %v637_v23 = vpack.c.bf16 %v627_v20, %v626_v19  ;;  %v630_v25 = vld [vmem:[%s12674_s3 + $0x70] sm:$0xff]  ;;  %s9824_s15 = scalar_lea.sflag (%p610_p0), [#allocation5], %s597_s20  ;;  %s12126_s29 = scalar_lea.vmem (%p610_p0), %s15434_s19, 1024 }
 0x16c   : >> { %11017 = vmatprep.subr.bf16.mxu0 %v11277_v2  ;;  %v638_v24 = vpack.c.bf16 %v629_v22, %v628_v21  ;;  %v631_v26 = vld [vmem:[%s12674_s3 + $0x78] sm:$0xff]  ;;  %11040 = vmatpush3.bf16.msra.mxu1 %v11280_v29  ;;  %v11281_v30 = vld [vmem:[#allocation8 + $0x10] sm:$0xff]   ;;  %v11282_v31 = vld [vmem:[#allocation8 + $0x18] sm:$0xff]   ;;  %p12127_p6 = scmp.ne.s32.totalorder (%p610_p0), %s15434_s19, %s12126_s29  ;;  %p16127_p5 = scmp.ne.s32.totalorder (%p610_p0), %s15651_s18, 0 }
 0x16d   : >> { %v639_v27 = vpack.c.bf16 %v631_v26, %v630_v25  ;;  %11041 = vmatprep.subr.bf16.mxu1 %v11281_v30  ;;  %v12700_v32 = vld [vmem:[#allocation6] ss:$0 sm:$0xff]  ;;  %s12250_s14 = smov (%p610_p0), [#allocation23]  }
 0x16e   : > { %p12128_p9 = pnand (%p610_p0), %p12127_p6, %p16127_p5  ;;  %s12130_s25 = sshll.u32 (%p610_p0), %s12250_s14, 4  ;;  %s12131_s25 = int_to_ptr.vmem [resolvable:$false] %s12130_s25 }
 0x16f   : >> { %11018 = vmatpush3.bf16.msra.mxu0 %v11277_v2  ;;  %s12132_s4 = scalar_lea.vmem (%p610_p0), %s12131_s25, 2048  ;;  %p12133_p10 = scmp.lt.s32.totalorder (%p610_p0), %s15434_s19, %s12131_s25 }
 0x170   : >> { %11019 = vmatprep.subr.bf16.mxu0 %v11278_v6  ;;  %11042 = vmatpush3.bf16.msra.mxu1 %v11281_v30  ;;  %s15432_s21 = scalar_lea.hbm (%p610_p0), %s16126_s23, %s10988_s27  ;;  %p12129_p12 = pneg (%p610_p0), %p12128_p9 }
 0x171   : >> { %11043 = vmatprep.subr.bf16.mxu1 %v11282_v31  ;;  %p12134_p2 = scmp.lt.s32.totalorder (%p610_p0), %s12132_s4, %s12126_s29 }
 0x173   : >> { %11020 = vmatpush3.bf16.msra.mxu0 %v11278_v6  ;;  %p12135_p3 = por (%p610_p0), %p12134_p2, %p12133_p10 }
 0x174   : >> { %11044 = vmatpush3.bf16.msra.mxu1 %v11282_v31 }
 0x175   : > { %p12136_p4 = pnand (%p610_p0), %p12135_p3, %p12129_p12 }
 0x176   : >> { %11022 = vmatmul.mubr.msk.bf16.vlgmr.msra.gmra.mrb[0].mxu0 %vm679_vm0, %v633_v11 }
 0x177   : >> { %11025 = vmatprep.mubr.msk.bf16.mxu0 %vm679_vm0, %v634_v12 }
 0x17e   : >> { %11026 = vmatmul.mubr.msk.bf16.gmra.mrb[4].mxu0 %vm679_vm0, %v635_v17 }
 0x17f   : >> { %11029 = vmatprep.mubr.msk.bf16.mxu0 %vm679_vm0, %v636_v18 }
 0x186   : >> { %11030 = vmatmul.mubr.msk.bf16.gmra.mrb[8].mxu0 %vm679_vm0, %v637_v23 }
 0x187   : >> { %11033 = vmatprep.mubr.msk.bf16.mxu0 %vm679_vm0, %v638_v24 }
 0x18e   : >> { %11034 = vmatmul.mubr.msk.bf16.gmra.mrb[12].mxu0 %vm679_vm0, %v639_v27 }
 0x249   : >> { %v11023_v33 = vpop.f32.mrb[0].mxu0 }
 0x24a   : >> { %v738_v34 = vpop.f32.mrb[1].mxu0  ;;  %v12703_v35 = vadd.f32 %v11023_v33, %v12700_v32 }
 0x24b   : >> { %v12706_v36 = vadd.f32 %v12700_v32, %v738_v34  ;;  %v11024_v37 = vpop.f32.mrb[2].mxu0 }
 0x24c   : >> { %v741_v38 = vpop.f32.mrb[3].mxu0  ;;  %v12711_v40 = vadd.f32 %v11024_v37, %v12700_v32  ;;  %v840_v42 = vmul.f32 %v12703_v35, %v12703_v35  ;;  %v804_v47 = vsel %vm679_vm0, %v12703_v35, 0.0 }
 0x24d   : >> { %v838_v39 = vmul.f32 %v12706_v36, %v12706_v36  ;;  %v12714_v41 = vadd.f32 %v12700_v32, %v741_v38  ;;  %v801_v43 = vsel %vm679_vm0, %v12706_v36, 0.0 }
 0x24e   : >> { %v841_v49 = vmul.f32 %v12711_v40, %v12711_v40  ;;  %v857_v55 = vsel %vm679_vm0, %v840_v42, 0.0  ;;  %v806_v56 = vsel %vm679_vm0, %v12711_v40, 0.0 }
 0x24f   : >> { %v802_v44 = vsel %vm679_vm0, %v12714_v41, 0.0  ;;  %v839_v45 = vmul.f32 %v12714_v41, %v12714_v41  ;;  %v854_v48 = vsel %vm679_vm0, %v838_v39, 0.0 }
 0x250   : >> { %v803_v46 = vadd.f32 %v802_v44, %v801_v43  ;;  %v859_v63 = vsel %vm679_vm0, %v841_v49, 0.0 }
 0x251   : >> { %v855_v50 = vsel %vm679_vm0, %v839_v45, 0.0  ;;  %v11027_v51 = vpop.f32.mrb[4].mxu0 }
 0x252   : >> { %v805_v52 = vadd.f32 %v804_v47, %v803_v46  ;;  %v856_v53 = vadd.f32 %v855_v50, %v854_v48  ;;  %v754_v54 = vpop.f32.mrb[5].mxu0  ;;  %v12737_v60 = vadd.f32 %v11027_v51, %v12700_v32 }
 0x253   : >> { %v12734_v57 = vadd.f32 %v12700_v32, %v754_v54  ;;  %v11028_v58 = vpop.f32.mrb[6].mxu0 }
 0x254   : >> { %v858_v59 = vadd.f32 %v857_v55, %v856_v53  ;;  %v807_v61 = vadd.f32 %v806_v56, %v805_v52  ;;  %v757_v62 = vpop.f32.mrb[7].mxu0  ;;  %v12748_v5 = vadd.f32 %v11028_v58, %v12700_v32  ;;  %v844_v8 = vmul.f32 %v12737_v60, %v12737_v60 }
 0x255   : >> { %v808_v0 = vsel %vm679_vm0, %v12734_v57, 0.0  ;;  %v842_v1 = vmul.f32 %v12734_v57, %v12734_v57  ;;  %v12745_v2 = vadd.f32 %v12700_v32, %v757_v62  ;;  %v812_v12 = vsel %vm679_vm0, %v12737_v60, 0.0 }
 0x256   : >> { %v809_v3 = vadd.f32 %v808_v0, %v807_v61  ;;  %v860_v4 = vadd.f32 %v859_v63, %v858_v59  ;;  %v845_v14 = vmul.f32 %v12748_v5, %v12748_v5  ;;  %v814_v18 = vsel %vm679_vm0, %v12748_v5, 0.0 }
 0x257   : >> { %v861_v6 = vsel %vm679_vm0, %v842_v1, 0.0  ;;  %v810_v7 = vsel %vm679_vm0, %v12745_v2, 0.0  ;;  %v843_v11 = vmul.f32 %v12745_v2, %v12745_v2  ;;  %v865_v22 = vsel %vm679_vm0, %v844_v8, 0.0 }
 0x258   : >> { %v862_v9 = vadd.f32 %v861_v6, %v860_v4  ;;  %v811_v10 = vadd.f32 %v810_v7, %v809_v3  ;;  %v867_v30 = vsel %vm679_vm0, %v845_v14, 0.0 }
 0x259   : >> { %v11031_v13 = vpop.f32.mrb[8].mxu0  ;;  %v863_v16 = vsel %vm679_vm0, %v843_v11, 0.0 }
 0x25a   : >> { %v813_v15 = vadd.f32 %v812_v12, %v811_v10  ;;  %v770_v17 = vpop.f32.mrb[9].mxu0  ;;  %v864_v19 = vadd.f32 %v863_v16, %v862_v9  ;;  %v12769_v23 = vadd.f32 %v11031_v13, %v12700_v32 }
 0x25b   : >> { %v12765_v20 = vadd.f32 %v12700_v32, %v770_v17  ;;  %v11032_v21 = vpop.f32.mrb[10].mxu0 }
 0x25c   : >> { %v815_v24 = vadd.f32 %v814_v18, %v813_v15  ;;  %v773_v25 = vpop.f32.mrb[11].mxu0  ;;  %v866_v26 = vadd.f32 %v865_v22, %v864_v19  ;;  %v12780_v33 = vadd.f32 %v11032_v21, %v12700_v32  ;;  %v848_v42 = vmul.f32 %v12769_v23, %v12769_v23 }
 0x25d   : >> { %v816_v27 = vsel %vm679_vm0, %v12765_v20, 0.0  ;;  %v846_v28 = vmul.f32 %v12765_v20, %v12765_v20  ;;  %v12776_v29 = vadd.f32 %v12700_v32, %v773_v25  ;;  %v820_v44 = vsel %vm679_vm0, %v12769_v23, 0.0 }
 0x25e   : >> { %v817_v31 = vadd.f32 %v816_v27, %v815_v24  ;;  %v868_v34 = vadd.f32 %v867_v30, %v866_v26  ;;  %v849_v48 = vmul.f32 %v12780_v33, %v12780_v33  ;;  %v822_v51 = vsel %vm679_vm0, %v12780_v33, 0.0 }
 0x25f   : >> { %v869_v37 = vsel %vm679_vm0, %v846_v28, 0.0  ;;  %v818_v38 = vsel %vm679_vm0, %v12776_v29, 0.0  ;;  %v847_v39 = vmul.f32 %v12776_v29, %v12776_v29  ;;  %v873_v55 = vsel %vm679_vm0, %v848_v42, 0.0 }
 0x260   : >> { %v819_v43 = vadd.f32 %v818_v38, %v817_v31  ;;  %v870_v45 = vadd.f32 %v869_v37, %v868_v34  ;;  %v875_v1 = vsel %vm679_vm0, %v849_v48, 0.0 }
 0x261   : >> { %v871_v46 = vsel %vm679_vm0, %v847_v39, 0.0  ;;  %v11035_v47 = vpop.f32.mrb[12].mxu0 }
 0x262   : >> { %v821_v49 = vadd.f32 %v820_v44, %v819_v43  ;;  %v786_v50 = vpop.f32.mrb[13].mxu0  ;;  %v872_v52 = vadd.f32 %v871_v46, %v870_v45  ;;  %v12801_v56 = vadd.f32 %v11035_v47, %v12700_v32 }
 0x263   : >> { %v12797_v53 = vadd.f32 %v12700_v32, %v786_v50  ;;  %v11036_v54 = vpop.f32.mrb[14].mxu0 }
 0x264   : >> { %v823_v58 = vadd.f32 %v822_v51, %v821_v49  ;;  %v789_v59 = vpop.f32.mrb[15].mxu0  ;;  %v874_v61 = vadd.f32 %v873_v55, %v872_v52  ;;  %v12810_v4 = vadd.f32 %v11036_v54, %v12700_v32  ;;  %v852_v10 = vmul.f32 %v12801_v56, %v12801_v56 }
 0x265   : >> { %v824_v62 = vsel %vm679_vm0, %v12797_v53, 0.0  ;;  %v850_v63 = vmul.f32 %v12797_v53, %v12797_v53  ;;  %v790_v0 = vadd.f32 %v12700_v32, %v789_v59  ;;  %v828_v12 = vsel %vm679_vm0, %v12801_v56, 0.0 }
 0x266   : >> { %v825_v3 = vadd.f32 %v824_v62, %v823_v58  ;;  %v876_v6 = vadd.f32 %v875_v1, %v874_v61  ;;  %v853_v32 = vmul.f32 %v12810_v4, %v12810_v4  ;;  %v830_v16 = vsel %vm679_vm0, %v12810_v4, 0.0 }
 0x267   : >> { %v877_v7 = vsel %vm679_vm0, %v850_v63, 0.0  ;;  %v826_v8 = vsel %vm679_vm0, %v790_v0, 0.0  ;;  %v851_v9 = vmul.f32 %v790_v0, %v790_v0  ;;  %v881_v18 = vsel %vm679_vm0, %v852_v10, 0.0 }
 0x268   : >> { %v827_v11 = vadd.f32 %v826_v8, %v825_v3  ;;  %v878_v13 = vadd.f32 %v877_v7, %v876_v6  ;;  %v883_v22 = vsel %vm679_vm0, %v853_v32, 0.0 }
 0x269   : >> { %v879_v14 = vsel %vm679_vm0, %v851_v9, 0.0 }
 0x26a   : >> { %v829_v15 = vadd.f32 %v828_v12, %v827_v11  ;;  %v880_v17 = vadd.f32 %v879_v14, %v878_v13 }
 0x26c   : >> { %v831_v19 = vadd.f32 %v830_v16, %v829_v15  ;;  %v882_v21 = vadd.f32 %v881_v18, %v880_v17 }
 0x26e   : >> { %v832_v24 = vrot.slane %v831_v19, 4  ;;  %v884_v25 = vadd.f32 %v883_v22, %v882_v21 }
 0x270   : >> { %v833_v26 = vadd.f32 %v832_v24, %v831_v19  ;;  %v885_v27 = vrot.slane %v884_v25, 4 }
 0x272   : >> { %v834_v28 = vrot.slane %v833_v26, 2  ;;  %v886_v30 = vadd.f32 %v885_v27, %v884_v25 }
 0x274   : >> { %v835_v31 = vadd.f32 %v834_v28, %v833_v26  ;;  %v887_v34 = vrot.slane %v886_v30, 2 }
 0x276   : >> { %v836_v37 = vrot.slane %v835_v31, 1  ;;  %v888_v38 = vadd.f32 %v887_v34, %v886_v30 }
 0x278   : >> { %v837_v39 = vadd.f32 %v836_v37, %v835_v31  ;;  %v889_v42 = vrot.slane %v888_v38, 1 }
 0x27a   : >> { %v891_v43 = vmul.f32 0.0078125, %v837_v39  ;;  %v890_v44 = vadd.f32 %v889_v42, %v888_v38 }
 0x27c   : >> { %v893_v45 = vmul.f32 %v891_v43, %v891_v43  ;;  %v909_v46 = vsub.f32 %v790_v0, %v891_v43  ;;  %v896_v47 = vsub.f32 %v12706_v36, %v891_v43  ;;  %v897_v48 = vsub.f32 %v12714_v41, %v891_v43 }
 0x27d   : >> { %v892_v49 = vmul.f32 0.0078125, %v890_v44  ;;  %v898_v50 = vsub.f32 %v12703_v35, %v891_v43  ;;  %v899_v51 = vsub.f32 %v12711_v40, %v891_v43  ;;  %v900_v52 = vsub.f32 %v12734_v57, %v891_v43  ;;  %v1239_v44 = vld [vmem:[#allocation11 + $0x20] sm:$0xff] }
 0x27e   : >> { %v901_v54 = vsub.f32 %v12745_v2, %v891_v43  ;;  %v902_v55 = vsub.f32 %v12737_v60, %v891_v43  ;;  %v903_v58 = vsub.f32 %v12748_v5, %v891_v43  ;;  %v904_v59 = vsub.f32 %v12765_v20, %v891_v43 }
 0x27f   : >> { %v894_v61 = vsub.f32 %v892_v49, %v893_v45  ;;  %v905_v36 = vsub.f32 %v12776_v29, %v891_v43  ;;  %v906_v41 = vsub.f32 %v12769_v23, %v891_v43  ;;  %v907_v62 = vsub.f32 %v12780_v33, %v891_v43  ;;  %v1236_v45 = vld [vmem:[#allocation11 + $0x8] sm:$0xff] }
 0x280   : >> { %v908_v35 = vsub.f32 %v12797_v53, %v891_v43  ;;  %v910_v40 = vsub.f32 %v12801_v56, %v891_v43  ;;  %v911_v57 = vsub.f32 %v12810_v4, %v891_v43  ;;  %v1235_v43 = vld [vmem:[#allocation11] sm:$0xff] }
 0x281   : >> { %v895_v2 = vmax.f32 %v894_v61, 0.0 }
 0x283   : >> { %v912_v63 = vadd.f32 1e-05, %v895_v2 }
 0x285   : >> { %11283 = vrsqrt.f32 %v912_v63 }
 0x28f   : >> { %v11284_v60 = vpop.eup %11283 }
 0x290   : >> { %v927_v5 = vmul.f32 %v11284_v60, %v909_v46  ;;  %v914_v0 = vmul.f32 %v11284_v60, %v896_v47  ;;  %v915_v20 = vmul.f32 %v11284_v60, %v897_v48  ;;  %v916_v1 = vmul.f32 %v11284_v60, %v898_v50  ;;  %v1240_v47 = vld [vmem:[#allocation11 + $0x28] sm:$0xff] }
 0x291   : >> { %v917_v3 = vmul.f32 %v11284_v60, %v899_v51  ;;  %v918_v29 = vmul.f32 %v11284_v60, %v900_v52  ;;  %v919_v6 = vmul.f32 %v11284_v60, %v901_v54  ;;  %v920_v23 = vmul.f32 %v11284_v60, %v902_v55  ;;  %v1243_v51 = vld [vmem:[#allocation11 + $0x40] sm:$0xff]  ;;  %v1244_v54 = vld [vmem:[#allocation11 + $0x48] sm:$0xff] }
 0x292   : >> { %v943_v7 = vmax.f32 %v927_v5, 0.0  ;;  %v930_v33 = vmax.f32 %v914_v0, 0.0  ;;  %v931_v8 = vmax.f32 %v915_v20, 0.0  ;;  %v932_v53 = vmax.f32 %v916_v1, 0.0  ;;  %v1247_v52 = vld [vmem:[#allocation11 + $0x60] sm:$0xff]  ;;  %v1260_v20 = vld [vmem:[#allocation11 + $0xc8] sm:$0xff] }
 0x293   : >> { %v933_v9 = vmax.f32 %v917_v3, 0.0  ;;  %v934_v56 = vmax.f32 %v918_v29, 0.0  ;;  %v935_v10 = vmax.f32 %v919_v6, 0.0  ;;  %v921_v4 = vmul.f32 %v11284_v60, %v903_v58  ;;  %v1248_v58 = vld [vmem:[#allocation11 + $0x68] sm:$0xff]  ;;  %v1259_v5 = vld [vmem:[#allocation11 + $0xc0] sm:$0xff] }
 0x294   : >> { %v946_v11 = vpack.c.bf16 %v931_v8, %v930_v33  ;;  %v936_v12 = vmax.f32 %v920_v23, 0.0  ;;  %v922_v13 = vmul.f32 %v11284_v60, %v904_v59  ;;  %v923_v14 = vmul.f32 %v11284_v60, %v905_v36  ;;  %v1263_v0 = vld [vmem:[#allocation11 + $0xe0] sm:$0xff]  ;;  %v1264_v3 = vld [vmem:[#allocation11 + $0xe8] sm:$0xff] }
 0x295   : >> { %v947_v32 = vpack.c.bf16 %v933_v9, %v932_v53  ;;  %v948_v15 = vpack.c.bf16 %v935_v10, %v934_v56  ;;  %v937_v16 = vmax.f32 %v921_v4, 0.0  ;;  %v924_v17 = vmul.f32 %v11284_v60, %v906_v41  ;;  %v1251_v41 = vld [vmem:[#allocation11 + $0x80] sm:$0xff]  ;;  %v1268_v8 = vld [vmem:[#allocation11 + $0x108] sm:$0xff] }
 0x296   : >> { %11045 = vmatprep.mubr.msk.bf16.mxu1 %vm679_vm0, %v946_v11  ;;  %v938_v18 = vmax.f32 %v922_v13, 0.0  ;;  %v939_v19 = vmax.f32 %v923_v14, 0.0  ;;  %v925_v21 = vmul.f32 %v11284_v60, %v907_v62  ;;  %v926_v22 = vmul.f32 %v11284_v60, %v908_v35  ;;  %v1255_v62 = vld [vmem:[#allocation11 + $0xa0] sm:$0xff]  ;;  %v1252_v35 = vld [vmem:[#allocation11 + $0x88] sm:$0xff] }
 0x297   : >> { %11046 = vmatmul.mubr.msk.bf16.vlgmr.msra.gmra.mrb[0].mxu1 %vm679_vm0, %v947_v32  ;;  %v949_v24 = vpack.c.bf16 %v937_v16, %v936_v12  ;;  %v940_v25 = vmax.f32 %v924_v17, 0.0  ;;  %v928_v26 = vmul.f32 %v11284_v60, %v910_v40  ;;  %v929_v27 = vmul.f32 %v11284_v60, %v911_v57  ;;  %v1256_v57 = vld [vmem:[#allocation11 + $0xa8] sm:$0xff]  ;;  %v1271_v33 = vld [vmem:[#allocation11 + $0x120] sm:$0xff] }
 0x298   : >> { %11049 = vmatprep.mubr.msk.bf16.mxu1 %vm679_vm0, %v948_v15  ;;  %v950_v28 = vpack.c.bf16 %v939_v19, %v938_v18  ;;  %v941_v30 = vmax.f32 %v925_v21, 0.0  ;;  %v942_v31 = vmax.f32 %v926_v22, 0.0  ;;  %v10084_v46 = vcombine.high %v1235_v43, %v1239_v44  ;;  %v1272_v9 = vld [vmem:[#allocation11 + $0x128] sm:$0xff]  ;;  %v1275_v11 = vld [vmem:[#allocation11 + $0x140] sm:$0xff] }
 0x299   : >> { %v944_v34 = vmax.f32 %v928_v26, 0.0  ;;  %v945_v37 = vmax.f32 %v929_v27, 0.0  ;;  %v10083_v48 = vcombine.low %v1235_v43, %v1239_v44  ;;  %v10085_v49 = vcombine.low %v1236_v45, %v1240_v47  ;;  %v1279_v12 = vld [vmem:[#allocation11 + $0x160] sm:$0xff]  ;;  %v1276_v13 = vld [vmem:[#allocation11 + $0x148] sm:$0xff]  ;;  %v12852_v43 = vld [vmem:[#allocation11 + $0x30] sm:$0xff] }
 0x29a   : >> { %v951_v38 = vpack.c.bf16 %v941_v30, %v940_v25  ;;  %v952_v39 = vpack.c.bf16 %v943_v7, %v942_v31  ;;  %v10086_v50 = vcombine.high %v1236_v45, %v1240_v47  ;;  %1661 = vmatprep.subr.bf16.mxu0 %v10084_v46  ;;  %v10092_v55 = vcombine.high %v1243_v51, %v1247_v52  ;;  %v1267_v7 = vld [vmem:[#allocation11 + $0x100] sm:$0xff]  ;;  %v1280_v32 = vld [vmem:[#allocation11 + $0x168] sm:$0xff]  ;;  %v12854_v44 = vld [vmem:[#allocation11 + $0x18] sm:$0xff] }
 0x29b   : >> { %v953_v42 = vpack.c.bf16 %v945_v37, %v944_v34  ;;  %1662 = vmatpush1.bf16.msra.mxu0 %v10083_v48  ;;  %v10091_v59 = vcombine.low %v1243_v51, %v1247_v52  ;;  %v10093_v61 = vcombine.low %v1244_v54, %v1248_v58  ;;  %v10094_v36 = vcombine.high %v1244_v54, %v1248_v58  ;;  %v1283_v18 = vld [vmem:[#allocation11 + $0x180] sm:$0xff]  ;;  %v1284_v21 = vld [vmem:[#allocation11 + $0x188] sm:$0xff]  ;;  %v12856_v45 = vld [vmem:[#allocation11 + $0x38] sm:$0xff] }
 0x29c   : >> { %1774 = vmatprep.subr.bf16.mxu1 %v10086_v50  ;;  %1663 = vmatprep.subr.bf16.mxu0 %v10092_v55  ;;  %v10100_v40 = vcombine.high %v1251_v41, %v1255_v62  ;;  %v10099_v2 = vcombine.low %v1251_v41, %v1255_v62  ;;  %v10101_v63 = vcombine.low %v1252_v35, %v1256_v57  ;;  %v1287_v19 = vld [vmem:[#allocation11 + $0x1a0] sm:$0xff]  ;;  %v1288_v25 = vld [vmem:[#allocation11 + $0x1a8] sm:$0xff]  ;;  %v12866_v52 = vld [vmem:[#allocation9] ss:$0 sm:$0xff] }
 0x29d   : >> { %1775 = vmatpush1.bf16.msra.mxu1 %v10085_v49  ;;  %v10102_v60 = vcombine.high %v1252_v35, %v1256_v57  ;;  %v10108_v1 = vcombine.high %v1259_v5, %v1263_v0  ;;  %v10107_v29 = vcombine.low %v1259_v5, %v1263_v0  ;;  %v10109_v6 = vcombine.low %v1260_v20, %v1264_v3  ;;  %v1291_v26 = vld [vmem:[#allocation11 + $0x1c0] sm:$0xff]  ;;  %v1292_v37 = vld [vmem:[#allocation11 + $0x1c8] sm:$0xff] }
 0x29e   : >> { %1776 = vmatprep.subr.bf16.mxu1 %v10094_v36  ;;  %v10110_v23 = vcombine.high %v1260_v20, %v1264_v3  ;;  %v10116_v53 = vcombine.high %v1267_v7, %v1271_v33  ;;  %v10115_v56 = vcombine.low %v1267_v7, %v1271_v33  ;;  %v10117_v10 = vcombine.low %v1268_v8, %v1272_v9  ;;  %v1295_v27 = vld [vmem:[#allocation11 + $0x1e0] sm:$0xff] }
 0x29f   : >> { %11050 = vmatmul.mubr.msk.bf16.gmra.mrb[4].mxu1 %vm679_vm0, %v949_v24  ;;  %1664 = vmatpush1.bf16.msra.mxu0 %v10091_v59  ;;  %v10118_v4 = vcombine.high %v1268_v8, %v1272_v9  ;;  %v10124_v14 = vcombine.high %v1275_v11, %v1279_v12  ;;  %v10123_v15 = vcombine.low %v1275_v11, %v1279_v12 }
 0x2a0   : >> { %11053 = vmatprep.mubr.msk.bf16.mxu1 %vm679_vm0, %v950_v28  ;;  %1665 = vmatprep.subr.bf16.mxu0 %v10100_v40  ;;  %v10125_v16 = vcombine.low %v1276_v13, %v1280_v32  ;;  %v10126_v17 = vcombine.high %v1276_v13, %v1280_v32  ;;  %v10131_v22 = vcombine.low %v1283_v18, %v1287_v19  ;;  %v12247_v28 = vmov 0  }
 0x2a1   : >> { %1777 = vmatpush1.bf16.msra.mxu1 %v10093_v61  ;;  %v10132_v24 = vcombine.high %v1283_v18, %v1287_v19  ;;  %1693 = vmatprep.mubr.bf16.mxu0 %v12247_v28  ;;  %v10133_v30 = vcombine.low %v1284_v21, %v1288_v25  ;;  %v10134_v31 = vcombine.high %v1284_v21, %v1288_v25 }
 0x2a2   : >> { %1778 = vmatprep.subr.bf16.mxu1 %v10102_v60  ;;  %v10140_v34 = vcombine.high %v1291_v26, %v1295_v27  ;;  %v10139_v46 = vcombine.low %v1291_v26, %v1295_v27  ;;  %v10089_v48 = vcombine.low %v12854_v44, %v12856_v45  ;;  %v10090_v51 = vcombine.high %v12854_v44, %v12856_v45  ;;  %v1265_v45 = vld [vmem:[#allocation11 + $0xf0] sm:$0xff] }
 0x2a3   : >> { %1666 = vmatpush1.bf16.msra.mxu0 %v10099_v2 }
 0x2a4   : >> { %1667 = vmatprep.subr.bf16.mxu0 %v10108_v1 }
 0x2a5   : >> { %1779 = vmatpush1.bf16.msra.mxu1 %v10101_v63 }
 0x2a6   : >> { %1780 = vmatprep.subr.bf16.mxu1 %v10110_v23 }
 0x2a7   : >> { %11054 = vmatmul.mubr.msk.bf16.gmra.mrb[8].mxu1 %vm679_vm0, %v951_v38  ;;  %1668 = vmatpush1.bf16.msra.mxu0 %v10107_v29  ;;  %v1296_v38 = vld [vmem:[#allocation11 + $0x1e8] sm:$0xff] }
 0x2a8   : >> { %11057 = vmatprep.mubr.msk.bf16.mxu1 %vm679_vm0, %v952_v39  ;;  %1669 = vmatprep.subr.bf16.mxu0 %v10116_v53  ;;  %v12850_v39 = vld [vmem:[#allocation11 + $0x10] sm:$0xff]  ;;  %v10141_v49 = vcombine.low %v1292_v37, %v1296_v38 }
 0x2a9   : >> { %1781 = vmatpush1.bf16.msra.mxu1 %v10109_v6  ;;  %v10087_v47 = vcombine.low %v12850_v39, %v12852_v43  ;;  %v10088_v50 = vcombine.high %v12850_v39, %v12852_v43  ;;  %v1261_v39 = vld [vmem:[#allocation11 + $0xd0] sm:$0xff] }
 0x2aa   : >> { %1782 = vmatprep.subr.bf16.mxu1 %v10118_v4 }
 0x2ab   : >> { %1670 = vmatpush1.bf16.msra.mxu0 %v10115_v56 }
 0x2ac   : >> { %1671 = vmatprep.subr.bf16.mxu0 %v10124_v14 }
 0x2ad   : >> { %1783 = vmatpush1.bf16.msra.mxu1 %v10117_v10 }
 0x2ae   : >> { %1784 = vmatprep.subr.bf16.mxu1 %v10126_v17 }
 0x2af   : >> { %11058 = vmatmul.mubr.msk.bf16.gmra.mrb[12].mxu1 %vm679_vm0, %v953_v42  ;;  %1672 = vmatpush1.bf16.msra.mxu0 %v10123_v15  ;;  %v10142_v42 = vcombine.high %v1292_v37, %v1296_v38 }
 0x2b0   : >> { %1806 = vmatprep.mubr.bf16.mxu1 %v12247_v28  ;;  %1673 = vmatprep.subr.bf16.mxu0 %v10132_v24 }
 0x2b1   : >> { %1785 = vmatpush1.bf16.msra.mxu1 %v10125_v16 }
 0x2b2   : >> { %1786 = vmatprep.subr.bf16.mxu1 %v10134_v31 }
 0x2b3   : >> { %1674 = vmatpush1.bf16.msra.mxu0 %v10131_v22 }
 0x2b4   : >> { %1675 = vmatprep.subr.bf16.mxu0 %v10140_v34 }
 0x2b5   : >> { %1787 = vmatpush1.bf16.msra.mxu1 %v10133_v30 }
 0x2b6   : >> { %1788 = vmatprep.subr.bf16.mxu1 %v10142_v42 }
 0x2b7   : >> { %1676 = vmatpush1.bf16.msra.mxu0 %v10139_v46 }
 0x2b8   : >> { %1887 = vmatprep.subr.bf16.mxu0 %v10088_v50 }
 0x2b9   : >> { %1789 = vmatpush1.bf16.msra.mxu1 %v10141_v49 }
 0x2ba   : >> { %2000 = vmatprep.subr.bf16.mxu1 %v10090_v51 }
 0x36a   : >> { %v11047_v54 = vpop.f32.mrb[0].mxu1 }
 0x36b   : >> { %v1051_v55 = vpop.f32.mrb[1].mxu1  ;;  %v12872_v36 = vadd.f32 %v11047_v54, %v12866_v52 }
 0x36c   : >> { %v12869_v58 = vadd.f32 %v12866_v52, %v1051_v55  ;;  %v11048_v59 = vpop.f32.mrb[2].mxu1 }
 0x36d   : >> { %v1054_v61 = vpop.f32.mrb[3].mxu1  ;;  %v12880_v35 = vadd.f32 %v11048_v59, %v12866_v52  ;;  %v1137_v2 = vmul.f32 %v12872_v36, %v12872_v36 }
 0x36e   : >> { %v12875_v41 = vadd.f32 %v12866_v52, %v1054_v61  ;;  %v1135_v62 = vmul.f32 %v12869_v58, %v12869_v58 }
 0x36f   : >> { %v1138_v20 = vmul.f32 %v12880_v35, %v12880_v35 }
 0x370   : >> { %v1114_v40 = vadd.f32 %v12875_v41, %v12869_v58  ;;  %v1136_v57 = vmul.f32 %v12875_v41, %v12875_v41 }
 0x372   : >> { %v1115_v63 = vadd.f32 %v1114_v40, %v12872_v36  ;;  %v1151_v60 = vadd.f32 %v1136_v57, %v1135_v62  ;;  %v11051_v5 = vpop.f32.mrb[4].mxu1 }
 0x373   : >> { %v1067_v0 = vpop.f32.mrb[5].mxu1  ;;  %v12896_v23 = vadd.f32 %v11051_v5, %v12866_v52 }
 0x374   : >> { %v1152_v1 = vadd.f32 %v1151_v60, %v1137_v2  ;;  %v12892_v3 = vadd.f32 %v12866_v52, %v1067_v0  ;;  %v1116_v29 = vadd.f32 %v1115_v63, %v12880_v35  ;;  %v11052_v6 = vpop.f32.mrb[6].mxu1 }
 0x375   : >> { %v1070_v7 = vpop.f32.mrb[7].mxu1  ;;  %v12905_v10 = vadd.f32 %v11052_v6, %v12866_v52  ;;  %v1141_v12 = vmul.f32 %v12896_v23, %v12896_v23 }
 0x376   : >> { %v1117_v33 = vadd.f32 %v1116_v29, %v12892_v3  ;;  %v1139_v8 = vmul.f32 %v12892_v3, %v12892_v3  ;;  %v1153_v53 = vadd.f32 %v1152_v1, %v1138_v20  ;;  %v12902_v9 = vadd.f32 %v12866_v52, %v1070_v7 }
 0x377   : >> { %v1142_v16 = vmul.f32 %v12905_v10, %v12905_v10 }
 0x378   : >> { %v1154_v56 = vadd.f32 %v1153_v53, %v1139_v8  ;;  %v1118_v4 = vadd.f32 %v1117_v33, %v12902_v9  ;;  %v1140_v11 = vmul.f32 %v12902_v9, %v12902_v9 }
 0x37a   : >> { %v1119_v13 = vadd.f32 %v1118_v4, %v12896_v23  ;;  %v1155_v14 = vadd.f32 %v1154_v56, %v1140_v11  ;;  %v11055_v32 = vpop.f32.mrb[8].mxu1 }
 0x37b   : >> { %v1083_v15 = vpop.f32.mrb[9].mxu1  ;;  %v12920_v22 = vadd.f32 %v11055_v32, %v12866_v52 }
 0x37c   : >> { %v1156_v17 = vadd.f32 %v1155_v14, %v1141_v12  ;;  %v12916_v18 = vadd.f32 %v12866_v52, %v1083_v15  ;;  %v1120_v19 = vadd.f32 %v1119_v13, %v12905_v10  ;;  %v11056_v21 = vpop.f32.mrb[10].mxu1 }
 0x37d   : >> { %v1086_v24 = vpop.f32.mrb[11].mxu1  ;;  %v12929_v34 = vadd.f32 %v11056_v21, %v12866_v52  ;;  %v1145_v42 = vmul.f32 %v12920_v22, %v12920_v22 }
 0x37e   : >> { %v1121_v25 = vadd.f32 %v1120_v19, %v12916_v18  ;;  %v1143_v26 = vmul.f32 %v12916_v18, %v12916_v18  ;;  %v1157_v27 = vadd.f32 %v1156_v17, %v1142_v16  ;;  %v12926_v30 = vadd.f32 %v12866_v52, %v1086_v24 }
 0x37f   : >> { %v1146_v54 = vmul.f32 %v12929_v34, %v12929_v34 }
 0x380   : >> { %v1158_v31 = vadd.f32 %v1157_v27, %v1143_v26  ;;  %v1122_v37 = vadd.f32 %v1121_v25, %v12926_v30  ;;  %v1144_v38 = vmul.f32 %v12926_v30, %v12926_v30 }
 0x382   : >> { %v1123_v46 = vadd.f32 %v1122_v37, %v12920_v22  ;;  %v1159_v49 = vadd.f32 %v1158_v31, %v1144_v38  ;;  %v11059_v50 = vpop.f32.mrb[12].mxu1 }
 0x383   : >> { %v1099_v51 = vpop.f32.mrb[13].mxu1  ;;  %v12944_v40 = vadd.f32 %v11059_v50, %v12866_v52 }
 0x384   : >> { %v1160_v55 = vadd.f32 %v1159_v49, %v1145_v42  ;;  %v12940_v59 = vadd.f32 %v12866_v52, %v1099_v51  ;;  %v1124_v61 = vadd.f32 %v1123_v46, %v12929_v34  ;;  %v11060_v62 = vpop.f32.mrb[14].mxu1 }
 0x385   : >> { %v1102_v57 = vpop.f32.mrb[15].mxu1  ;;  %v12951_v20 = vadd.f32 %v11060_v62, %v12866_v52  ;;  %v1149_v6 = vmul.f32 %v12944_v40, %v12944_v40  ;;  %v13000_v62 = vld [vmem:[#allocation11 + $0x78] sm:$0xff] }
 0x386   : >> { %v1125_v2 = vadd.f32 %v1124_v61, %v12940_v59  ;;  %v1147_v63 = vmul.f32 %v12940_v59, %v12940_v59  ;;  %v1161_v60 = vadd.f32 %v1160_v55, %v1146_v54  ;;  %v1103_v5 = vadd.f32 %v12866_v52, %v1102_v57  ;;  %v12994_v61 = vld [vmem:[#allocation11 + $0x50] sm:$0xff] }
 0x387   : >> { %v1150_v8 = vmul.f32 %v12951_v20, %v12951_v20  ;;  %v13004_v57 = vld [vmem:[#allocation11 + $0xb0] sm:$0xff] }
 0x388   : >> { %v1162_v0 = vadd.f32 %v1161_v60, %v1147_v63  ;;  %v1126_v1 = vadd.f32 %v1125_v2, %v1103_v5  ;;  %v1148_v29 = vmul.f32 %v1103_v5, %v1103_v5 }
 0x38a   : >> { %v1127_v7 = vadd.f32 %v1126_v1, %v12944_v40  ;;  %v1163_v33 = vadd.f32 %v1162_v0, %v1148_v29 }
 0x38c   : >> { %v1128_v53 = vadd.f32 %v1127_v7, %v12951_v20  ;;  %v1164_v56 = vadd.f32 %v1163_v33, %v1149_v6 }
 0x38e   : >> { %v1129_v4 = vrot.slane %v1128_v53, 4  ;;  %v1165_v11 = vadd.f32 %v1164_v56, %v1150_v8 }
 0x390   : >> { %v1130_v12 = vadd.f32 %v1129_v4, %v1128_v53  ;;  %v1166_v13 = vrot.slane %v1165_v11, 4 }
 0x392   : >> { %v1131_v52 = vrot.slane %v1130_v12, 2  ;;  %v1167_v14 = vadd.f32 %v1166_v13, %v1165_v11 }
 0x394   : >> { %v1132_v32 = vadd.f32 %v1131_v52, %v1130_v12  ;;  %v1168_v15 = vrot.slane %v1167_v14, 2 }
 0x396   : >> { %v1133_v16 = vrot.slane %v1132_v32, 1  ;;  %v1169_v17 = vadd.f32 %v1168_v15, %v1167_v14 }
 0x398   : >> { %v1134_v19 = vadd.f32 %v1133_v16, %v1132_v32  ;;  %v1170_v21 = vrot.slane %v1169_v17, 1 }
 0x39a   : >> { %v1171_v24 = vadd.f32 %v1170_v21, %v1169_v17  ;;  %v12959_v25 = vmul.f32 0.0078125, %v1134_v19  ;;  %v1254_v21 = vld [vmem:[#allocation11 + $0x98] sm:$0xff] }
 0x39c   : >> { %v1173_v26 = vmul.f32 0.0078125, %v1171_v24  ;;  %v1174_v27 = vmul.f32 %v12959_v25, %v12959_v25  ;;  %v1190_v31 = vsub.f32 %v1103_v5, %v12959_v25  ;;  %v1177_v37 = vsub.f32 %v12869_v58, %v12959_v25  ;;  %v1258_v24 = vld [vmem:[#allocation11 + $0xb8] sm:$0xff] }
 0x39d   : >> { %v1178_v38 = vsub.f32 %v12875_v41, %v12959_v25  ;;  %v1179_v42 = vsub.f32 %v12872_v36, %v12959_v25  ;;  %v1180_v46 = vsub.f32 %v12880_v35, %v12959_v25  ;;  %v1181_v49 = vsub.f32 %v12892_v3, %v12959_v25 }
 0x39e   : >> { %v1175_v50 = vsub.f32 %v1173_v26, %v1174_v27  ;;  %v1182_v51 = vsub.f32 %v12902_v9, %v12959_v25  ;;  %v1183_v54 = vsub.f32 %v12896_v23, %v12959_v25  ;;  %v1184_v58 = vsub.f32 %v12905_v10, %v12959_v25 }
 0x39f   : >> { %v1185_v41 = vsub.f32 %v12916_v18, %v12959_v25  ;;  %v1186_v36 = vsub.f32 %v12926_v30, %v12959_v25  ;;  %v1187_v35 = vsub.f32 %v12920_v22, %v12959_v25  ;;  %v1188_v3 = vsub.f32 %v12929_v34, %v12959_v25  ;;  %v12996_v30 = vld [vmem:[#allocation11 + $0x70] sm:$0xff]  ;;  %v12998_v22 = vld [vmem:[#allocation11 + $0x58] sm:$0xff] }
 0x3a0   : >> { %v1176_v55 = vmax.f32 %v1175_v50, 0.0  ;;  %v1189_v9 = vsub.f32 %v12940_v59, %v12959_v25  ;;  %v1191_v23 = vsub.f32 %v12944_v40, %v12959_v25  ;;  %v1192_v10 = vsub.f32 %v12951_v20, %v12959_v25  ;;  %v13002_v34 = vld [vmem:[#allocation11 + $0x90] sm:$0xff] }
 0x3a1   : >> { %v10095_v59 = vcombine.low %v12994_v61, %v12996_v30  ;;  %v10096_v2 = vcombine.high %v12994_v61, %v12996_v30  ;;  %v10097_v63 = vcombine.low %v12998_v22, %v13000_v62  ;;  %v10098_v60 = vcombine.high %v12998_v22, %v13000_v62  ;;  %v1269_v61 = vld [vmem:[#allocation11 + $0x110] sm:$0xff]  ;;  %v1270_v22 = vld [vmem:[#allocation11 + $0x118] sm:$0xff] }
 0x3a2   : >> { %v1193_v18 = vadd.f32 1e-05, %v1176_v55  ;;  %v10104_v5 = vcombine.high %v13002_v34, %v13004_v57  ;;  %v1273_v30 = vld [vmem:[#allocation11 + $0x130] sm:$0xff]  ;;  %v1274_v62 = vld [vmem:[#allocation11 + $0x138] sm:$0xff] }
 0x3a4   : >> { %11285 = vrsqrt.f32 %v1193_v18 }
 0x3ae   : >> { %v11286_v40 = vpop.eup %11285 }
 0x3af   : >> { %v1208_v0 = vmul.f32 %v11286_v40, %v1190_v31  ;;  %v1195_v20 = vmul.f32 %v11286_v40, %v1177_v37  ;;  %v1196_v1 = vmul.f32 %v11286_v40, %v1178_v38  ;;  %v1197_v29 = vmul.f32 %v11286_v40, %v1179_v42 }
 0x3b0   : >> { %v1198_v6 = vmul.f32 %v11286_v40, %v1180_v46  ;;  %v1199_v7 = vmul.f32 %v11286_v40, %v1181_v49  ;;  %v1200_v33 = vmul.f32 %v11286_v40, %v1182_v51  ;;  %v1201_v8 = vmul.f32 %v11286_v40, %v1183_v54 }
 0x3b1   : >> { %v1224_v53 = vmax.f32 %v1208_v0, 0.0  ;;  %v1211_v56 = vmax.f32 %v1195_v20, 0.0  ;;  %v1212_v4 = vmax.f32 %v1196_v1, 0.0  ;;  %v1213_v11 = vmax.f32 %v1197_v29, 0.0 }
 0x3b2   : >> { %v1214_v12 = vmax.f32 %v1198_v6, 0.0  ;;  %v1215_v13 = vmax.f32 %v1199_v7, 0.0  ;;  %v1216_v52 = vmax.f32 %v1200_v33, 0.0  ;;  %v1202_v14 = vmul.f32 %v11286_v40, %v1184_v58  ;;  %v1285_v6 = vld [vmem:[#allocation11 + $0x190] sm:$0xff]  ;;  %v1286_v33 = vld [vmem:[#allocation11 + $0x198] sm:$0xff] }
 0x3b3   : >> { %v13016_v32 = vpack.c.bf16 %v1212_v4, %v1211_v56  ;;  %v1217_v15 = vmax.f32 %v1201_v8, 0.0  ;;  %v1203_v16 = vmul.f32 %v11286_v40, %v1185_v41  ;;  %v1204_v17 = vmul.f32 %v11286_v40, %v1186_v36  ;;  %v1289_v7 = vld [vmem:[#allocation11 + $0x1b0] sm:$0xff]  ;;  %v1290_v8 = vld [vmem:[#allocation11 + $0x1b8] sm:$0xff] }
 0x3b4   : >> { %v13018_v19 = vpack.c.bf16 %v1214_v12, %v1213_v11  ;;  %v13020_v25 = vpack.c.bf16 %v1216_v52, %v1215_v13  ;;  %v1218_v26 = vmax.f32 %v1202_v14, 0.0  ;;  %v1205_v27 = vmul.f32 %v11286_v40, %v1187_v35  ;;  %v1293_v12 = vld [vmem:[#allocation11 + $0x1d0] sm:$0xff]  ;;  %v1294_v52 = vld [vmem:[#allocation11 + $0x1d8] sm:$0xff] }
 0x3b5   : >> { %1694 = vmatmul.mubr.bf16.vlgmr.msra.gmra.mrb[16].mxu0 %v13016_v32  ;;  %1807 = vmatmul.mubr.bf16.vlgmr.msra.gmra.mrb[16].mxu1 %v13016_v32  ;;  %v1219_v31 = vmax.f32 %v1203_v16, 0.0  ;;  %v1220_v37 = vmax.f32 %v1204_v17, 0.0  ;;  %v1206_v38 = vmul.f32 %v11286_v40, %v1188_v3  ;;  %v1207_v42 = vmul.f32 %v11286_v40, %v1189_v9  ;;  %v1297_v13 = vld [vmem:[#allocation11 + $0x1f0] sm:$0xff]  ;;  %v1298_v14 = vld [vmem:[#allocation11 + $0x1f8] sm:$0xff] }
 0x3b6   : >> { %1888 = vmatpush1.bf16.msra.mxu0 %v10087_v47  ;;  %2001 = vmatpush1.bf16.msra.mxu1 %v10089_v48  ;;  %v13030_v46 = vpack.c.bf16 %v1218_v26, %v1217_v15  ;;  %v1221_v49 = vmax.f32 %v1205_v27, 0.0  ;;  %v1209_v50 = vmul.f32 %v11286_v40, %v1191_v23  ;;  %v1210_v51 = vmul.f32 %v11286_v40, %v1192_v10  ;;  %v1262_v47 = vld [vmem:[#allocation11 + $0xd8] sm:$0xff] }
 0x3b7   : >> { %1703 = vmatprep.mubr.bf16.mxu0 %v12247_v28  ;;  %1816 = vmatprep.mubr.bf16.mxu1 %v12247_v28  ;;  %v10106_v54 = vcombine.high %v1254_v21, %v1258_v24  ;;  %v13034_v58 = vpack.c.bf16 %v1220_v37, %v1219_v31  ;;  %v1222_v41 = vmax.f32 %v1206_v38, 0.0  ;;  %v1223_v36 = vmax.f32 %v1207_v42, 0.0  ;;  %v1266_v48 = vld [vmem:[#allocation11 + $0xf8] sm:$0xff]  ;;  %v1299_v31 = vld [vmem:[#allocation12] sm:$0xff] }
 0x3b8   : >> { %1889 = vmatprep.subr.bf16.mxu0 %v10096_v2  ;;  %2002 = vmatprep.subr.bf16.mxu1 %v10098_v60  ;;  %v1225_v43 = vmax.f32 %v1209_v50, 0.0  ;;  %v1226_v44 = vmax.f32 %v1210_v51, 0.0  ;;  %v10103_v9 = vcombine.low %v13002_v34, %v13004_v57  ;;  %v10105_v23 = vcombine.low %v1254_v21, %v1258_v24  ;;  %v1277_v2 = vld [vmem:[#allocation11 + $0x150] sm:$0xff]  ;;  %v1278_v60 = vld [vmem:[#allocation11 + $0x158] sm:$0xff] }
 0x3b9   : >> { %v13036_v35 = vpack.c.bf16 %v1222_v41, %v1221_v49  ;;  %v13038_v3 = vpack.c.bf16 %v1224_v53, %v1223_v36  ;;  %v10112_v10 = vcombine.high %v1261_v39, %v1265_v45  ;;  %v10114_v18 = vcombine.high %v1262_v47, %v1266_v48 }
 0x3ba   : >> { %1890 = vmatpush1.bf16.msra.mxu0 %v10095_v59  ;;  %2003 = vmatpush1.bf16.msra.mxu1 %v10097_v63  ;;  %v13040_v55 = vpack.c.bf16 %v1226_v44, %v1225_v43  ;;  %v10111_v34 = vcombine.low %v1261_v39, %v1265_v45  ;;  %v10113_v57 = vcombine.low %v1262_v47, %v1266_v48  ;;  %v1281_v63 = vld [vmem:[#allocation11 + $0x170] sm:$0xff] }
 0x3bb   : >> { %1891 = vmatprep.subr.bf16.mxu0 %v10104_v5  ;;  %2004 = vmatprep.subr.bf16.mxu1 %v10106_v54  ;;  %v10120_v59 = vcombine.high %v1269_v61, %v1273_v30  ;;  %v10122_v40 = vcombine.high %v1270_v22, %v1274_v62  ;;  %v1282_v5 = vld [vmem:[#allocation11 + $0x178] sm:$0xff]  ;;  %v10119_v0 = vcombine.low %v1269_v61, %v1273_v30 }
 0x3bc   : >> { %v10121_v20 = vcombine.low %v1270_v22, %v1274_v62  ;;  %v10128_v1 = vcombine.high %v1277_v2, %v1281_v63  ;;  %v10130_v29 = vcombine.high %v1278_v60, %v1282_v5  ;;  %v10127_v53 = vcombine.low %v1277_v2, %v1281_v63 }
 0x3bd   : >> { %1704 = vmatmul.mubr.bf16.gmra.mrb[20].mxu0 %v13018_v19  ;;  %1817 = vmatmul.mubr.bf16.gmra.mrb[20].mxu1 %v13018_v19  ;;  %v10129_v56 = vcombine.low %v1278_v60, %v1282_v5  ;;  %v10136_v4 = vcombine.high %v1285_v6, %v1289_v7  ;;  %v10138_v11 = vcombine.high %v1286_v33, %v1290_v8 }
 0x3be   : >> { %1713 = vmatprep.mubr.bf16.mxu0 %v12247_v28  ;;  %1826 = vmatprep.mubr.bf16.mxu1 %v12247_v28  ;;  %v10135_v15 = vcombine.low %v1285_v6, %v1289_v7  ;;  %v10137_v16 = vcombine.low %v1286_v33, %v1290_v8  ;;  %v10144_v17 = vcombine.high %v1293_v12, %v1297_v13 }
 0x3bf   : >> { %1892 = vmatpush1.bf16.msra.mxu0 %v10103_v9  ;;  %2005 = vmatpush1.bf16.msra.mxu1 %v10105_v23  ;;  %v10146_v21 = vcombine.high %v1294_v52, %v1298_v14  ;;  %v10143_v24 = vcombine.low %v1293_v12, %v1297_v13  ;;  %v10145_v26 = vcombine.low %v1294_v52, %v1298_v14 }
 0x3c0   : >> { %1893 = vmatprep.subr.bf16.mxu0 %v10112_v10  ;;  %2006 = vmatprep.subr.bf16.mxu1 %v10114_v18 }
 0x3c3   : >> { %1894 = vmatpush1.bf16.msra.mxu0 %v10111_v34  ;;  %2007 = vmatpush1.bf16.msra.mxu1 %v10113_v57 }
 0x3c4   : >> { %1895 = vmatprep.subr.bf16.mxu0 %v10120_v59  ;;  %2008 = vmatprep.subr.bf16.mxu1 %v10122_v40 }
 0x3c5   : >> { %1714 = vmatmul.mubr.bf16.gmra.mrb[24].mxu0 %v13020_v25  ;;  %1827 = vmatmul.mubr.bf16.gmra.mrb[24].mxu1 %v13020_v25 }
 0x3c6   : >> { %1723 = vmatprep.mubr.bf16.mxu0 %v12247_v28  ;;  %1836 = vmatprep.mubr.bf16.mxu1 %v12247_v28 }
 0x3c7   : >> { %1896 = vmatpush1.bf16.msra.mxu0 %v10119_v0  ;;  %2009 = vmatpush1.bf16.msra.mxu1 %v10121_v20 }
 0x3c8   : >> { %1897 = vmatprep.subr.bf16.mxu0 %v10128_v1  ;;  %2010 = vmatprep.subr.bf16.mxu1 %v10130_v29 }
 0x3cb   : >> { %1898 = vmatpush1.bf16.msra.mxu0 %v10127_v53  ;;  %2011 = vmatpush1.bf16.msra.mxu1 %v10129_v56 }
 0x3cc   : >> { %1899 = vmatprep.subr.bf16.mxu0 %v10136_v4  ;;  %2012 = vmatprep.subr.bf16.mxu1 %v10138_v11 }
 0x3cd   : >> { %1724 = vmatmul.mubr.bf16.gmra.mrb[28].mxu0 %v13030_v46  ;;  %1837 = vmatmul.mubr.bf16.gmra.mrb[28].mxu1 %v13030_v46 }
 0x3ce   : >> { %1733 = vmatprep.mubr.bf16.mxu0 %v12247_v28  ;;  %1846 = vmatprep.mubr.bf16.mxu1 %v12247_v28 }
 0x3cf   : >> { %1900 = vmatpush1.bf16.msra.mxu0 %v10135_v15  ;;  %2013 = vmatpush1.bf16.msra.mxu1 %v10137_v16 }
 0x3d0   : >> { %1901 = vmatprep.subr.bf16.mxu0 %v10144_v17  ;;  %2014 = vmatprep.subr.bf16.mxu1 %v10146_v21 }
 0x3d3   : >> { %1902 = vmatpush1.bf16.msra.mxu0 %v10143_v24  ;;  %2015 = vmatpush1.bf16.msra.mxu1 %v10145_v26 }
 0x3d5   : >> { %1734 = vmatmul.mubr.bf16.gmra.mrb[32].mxu0 %v13034_v58  ;;  %1847 = vmatmul.mubr.bf16.gmra.mrb[32].mxu1 %v13034_v58 }
 0x3d6   : >> { %1743 = vmatprep.mubr.bf16.mxu0 %v12247_v28  ;;  %1856 = vmatprep.mubr.bf16.mxu1 %v12247_v28 }
 0x3dd   : >> { %1744 = vmatmul.mubr.bf16.gmra.mrb[36].mxu0 %v13036_v35  ;;  %1857 = vmatmul.mubr.bf16.gmra.mrb[36].mxu1 %v13036_v35 }
 0x3de   : >> { %1753 = vmatprep.mubr.bf16.mxu0 %v12247_v28  ;;  %1866 = vmatprep.mubr.bf16.mxu1 %v12247_v28 }
 0x3e5   : >> { %1754 = vmatmul.mubr.bf16.gmra.mrb[40].mxu0 %v13038_v3  ;;  %1867 = vmatmul.mubr.bf16.gmra.mrb[40].mxu1 %v13038_v3 }
 0x3e6   : >> { %1763 = vmatprep.mubr.bf16.mxu0 %v12247_v28  ;;  %1876 = vmatprep.mubr.bf16.mxu1 %v12247_v28 }
 0x3ed   : >> { %1764 = vmatmul.mubr.bf16.gmra.mrb[44].mxu0 %v13040_v55  ;;  %1877 = vmatmul.mubr.bf16.gmra.mrb[44].mxu1 %v13040_v55 }
 0x3ee   : >> { %1919 = vmatprep.mubr.bf16.mxu0 %v12247_v28  ;;  %2032 = vmatprep.mubr.bf16.mxu1 %v12247_v28 }
 0x3f5   : >> { %1920 = vmatmul.mubr.bf16.vlgmr.msra.gmra.mrb[48].mxu0 %v13016_v32  ;;  %2033 = vmatmul.mubr.bf16.vlgmr.msra.gmra.mrb[48].mxu1 %v13016_v32  ;;  %v1301_v32 = vlaneseq }
 0x3f6   : >> { %1929 = vmatprep.mubr.bf16.mxu0 %v12247_v28  ;;  %2042 = vmatprep.mubr.bf16.mxu1 %v12247_v28 }
 0x3fd   : >> { %1930 = vmatmul.mubr.bf16.gmra.mrb[52].mxu0 %v13018_v19  ;;  %2043 = vmatmul.mubr.bf16.gmra.mrb[52].mxu1 %v13018_v19  ;;  %v13102_v19 = vshrl.u32 %v1301_v32, 7 }
 0x3fe   : >> { %1939 = vmatprep.mubr.bf16.mxu0 %v12247_v28  ;;  %2052 = vmatprep.mubr.bf16.mxu1 %v12247_v28 }
 0x3ff   : >> { %15676 = vst [vmem:[#allocation38_spill] sm:$0xff] %v13102_v19  ;;  %v13108_v27 = vsub.s32 2, %v13102_v19  ;;  %v13111_v37 = vsub.s32 1, %v13102_v19  ;;  %v13114_v38 = vsub.s32 3, %v13102_v19  ;;  %v13135_v39 = vsub.s32 4, %v13102_v19 }
 0x400   : >> { %v13138_v43 = vsub.s32 6, %v13102_v19 }
 0x401   : >> { %15678 = vst [vmem:[#allocation40_spill] sm:$0xff] %v13108_v27  ;;  %15679 = vst [vmem:[#allocation41_spill] sm:$0xff] %v13111_v37  ;;  %v13120_v42 = vrot.slane %v1299_v31, %v13108_v27  ;;  %v13126_v49 = vrot.slane %v1299_v31, %v13114_v38  ;;  %v13195_v11 = vrot.slane %v1299_v31, %v13135_v39 }
 0x402   : >> { %15680 = vst [vmem:[#allocation42_spill] sm:$0xff] %v13114_v38  ;;  %15681 = vst [vmem:[#allocation43_spill] sm:$0xff] %v13135_v39  ;;  %v13198_v12 = vrot.slane %v1299_v31, %v13138_v43 }
 0x403   : >> { %15682 = vst [vmem:[#allocation44_spill] sm:$0xff] %v13138_v43  ;;  %15688 = vst [vmem:[#allocation50_spill] sm:$0xff] %v13195_v11 }
 0x404   : >> { %15689 = vst [vmem:[#allocation51_spill] sm:$0xff] %v13198_v12 }
 0x405   : >> { %1940 = vmatmul.mubr.bf16.gmra.mrb[56].mxu0 %v13020_v25  ;;  %2053 = vmatmul.mubr.bf16.gmra.mrb[56].mxu1 %v13020_v25  ;;  %v13105_v25 = vsub.s32 0, %v13102_v19 }
 0x406   : >> { %1949 = vmatprep.mubr.bf16.mxu0 %v12247_v28  ;;  %2062 = vmatprep.mubr.bf16.mxu1 %v12247_v28 }
 0x407   : >> { %15677 = vst [vmem:[#allocation39_spill] sm:$0xff] %v13105_v25 }
 0x40d   : >> { %1950 = vmatmul.mubr.bf16.gmra.mrb[60].mxu0 %v13030_v46  ;;  %2063 = vmatmul.mubr.bf16.gmra.mrb[60].mxu1 %v13030_v46  ;;  %v13123_v46 = vrot.slane %v1299_v31, %v13111_v37 }
 0x40e   : >> { %1959 = vmatprep.mubr.bf16.mxu0 %v12247_v28  ;;  %2072 = vmatprep.mubr.bf16.mxu1 %v12247_v28 }
 0x415   : >> { %1960 = vmatmul.mubr.bf16.gmra.mrb[64].mxu0 %v13034_v58  ;;  %2073 = vmatmul.mubr.bf16.gmra.mrb[64].mxu1 %v13034_v58 }
 0x416   : >> { %1969 = vmatprep.mubr.bf16.mxu0 %v12247_v28  ;;  %2082 = vmatprep.mubr.bf16.mxu1 %v12247_v28 }
 0x41d   : >> { %1970 = vmatmul.mubr.bf16.gmra.mrb[68].mxu0 %v13036_v35  ;;  %2083 = vmatmul.mubr.bf16.gmra.mrb[68].mxu1 %v13036_v35  ;;  %v13147_v35 = vsub.s32 5, %v13102_v19 }
 0x41e   : >> { %1979 = vmatprep.mubr.bf16.mxu0 %v12247_v28  ;;  %2092 = vmatprep.mubr.bf16.mxu1 %v12247_v28 }
 0x41f   : >> { %15684 = vst [vmem:[#allocation46_spill] sm:$0xff] %v13147_v35  ;;  %v13207_v16 = vrot.slane %v1299_v31, %v13147_v35 }
 0x421   : >> { %15692 = vst [vmem:[#allocation54_spill] sm:$0xff] %v13207_v16 }
 0x425   : >> { %1980 = vmatmul.mubr.bf16.gmra.mrb[72].mxu0 %v13038_v3  ;;  %2093 = vmatmul.mubr.bf16.gmra.mrb[72].mxu1 %v13038_v3  ;;  %v13150_v3 = vsub.s32 7, %v13102_v19 }
 0x426   : >> { %1989 = vmatprep.mubr.bf16.mxu0 %v12247_v28  ;;  %2102 = vmatprep.mubr.bf16.mxu1 %v12247_v28  ;;  %v13117_v28 = vrot.slane %v1299_v31, %v13105_v25 }
 0x427   : >> { %15685 = vst [vmem:[#allocation47_spill] sm:$0xff] %v13150_v3  ;;  %v13210_v17 = vrot.slane %v1299_v31, %v13150_v3 }
 0x429   : >> { %15693 = vst [vmem:[#allocation55_spill] sm:$0xff] %v13210_v17 }
 0x42d   : >> { %1990 = vmatmul.mubr.bf16.gmra.mrb[76].mxu0 %v13040_v55  ;;  %2103 = vmatmul.mubr.bf16.gmra.mrb[76].mxu1 %v13040_v55 }
 0x488   : >> { %v1695_v50 = vpop.f32.mrb[16].mxu0  ;;  %v1808_v51 = vpop.f32.mrb[16].mxu1 }
 0x489   : >> { %v13129_v54 = vadd.f32 %v1695_v50, %v13117_v28  ;;  %v13132_v58 = vadd.f32 %v1808_v51, %v13120_v42  ;;  %v1697_v41 = vpop.f32.mrb[17].mxu0  ;;  %v1810_v36 = vpop.f32.mrb[17].mxu1 }
 0x48a   : >> { %v13141_v44 = vadd.f32 %v1697_v41, %v13123_v46  ;;  %v13144_v45 = vadd.f32 %v1810_v36, %v13126_v49  ;;  %v1699_v47 = vpop.f32.mrb[18].mxu0  ;;  %v1812_v48 = vpop.f32.mrb[18].mxu1 }
 0x48b   : >> { %v2281_v55 = vmul.f32 %v13129_v54, %v13129_v54  ;;  %v2283_v9 = vmul.f32 %v13132_v58, %v13132_v58  ;;  %v13157_v23 = vadd.f32 %v1699_v47, %v13117_v28  ;;  %v13160_v10 = vadd.f32 %v1812_v48, %v13120_v42  ;;  %v1701_v18 = vpop.f32.mrb[19].mxu0  ;;  %v1814_v61 = vpop.f32.mrb[19].mxu1 }
 0x48c   : >> { %15683 = vst [vmem:[#allocation45_spill] sm:$0xff] %v13144_v45  ;;  %v2282_v30 = vmul.f32 %v13141_v44, %v13141_v44  ;;  %v2284_v22 = vmul.f32 %v13144_v45, %v13144_v45  ;;  %v13167_v62 = vadd.f32 %v1701_v18, %v13123_v46  ;;  %v13170_v34 = vadd.f32 %v1814_v61, %v13126_v49 }
 0x48d   : >> { %v2113_v57 = vadd.f32 %v13157_v23, %v13129_v54  ;;  %v2289_v59 = vmul.f32 %v13157_v23, %v13157_v23  ;;  %v2155_v40 = vadd.f32 %v13160_v10, %v13132_v58  ;;  %v2291_v2 = vmul.f32 %v13160_v10, %v13160_v10 }
 0x48e   : >> { %15686 = vst [vmem:[#allocation48_spill] sm:$0xff] %v13167_v62  ;;  %15687 = vst [vmem:[#allocation49_spill] sm:$0xff] %v13170_v34  ;;  %v2134_v63 = vadd.f32 %v13167_v62, %v13141_v44  ;;  %v2290_v60 = vmul.f32 %v13167_v62, %v13167_v62  ;;  %v2176_v5 = vadd.f32 %v13170_v34, %v13144_v45 }
 0x48f   : >> { %v2292_v0 = vmul.f32 %v13170_v34, %v13170_v34  ;;  %v2409_v20 = vadd.f32 %v2289_v59, %v2281_v55  ;;  %v2451_v1 = vadd.f32 %v2291_v2, %v2283_v9 }
 0x490   : >> { %v2430_v29 = vadd.f32 %v2290_v60, %v2282_v30  ;;  %v1705_v7 = vpop.f32.mrb[20].mxu0  ;;  %v1818_v33 = vpop.f32.mrb[20].mxu1 }
 0x491   : >> { %v2472_v6 = vadd.f32 %v2292_v0, %v2284_v22  ;;  %v13189_v8 = vadd.f32 %v1705_v7, %v13117_v28  ;;  %v13192_v53 = vadd.f32 %v1818_v33, %v13120_v42  ;;  %v1707_v56 = vpop.f32.mrb[21].mxu0  ;;  %v1820_v4 = vpop.f32.mrb[21].mxu1 }
 0x492   : >> { %v13201_v13 = vadd.f32 %v1707_v56, %v13123_v46  ;;  %v13204_v52 = vadd.f32 %v1820_v4, %v13126_v49  ;;  %v1709_v14 = vpop.f32.mrb[22].mxu0  ;;  %v1822_v15 = vpop.f32.mrb[22].mxu1 }
 0x493   : >> { %v2114_v21 = vadd.f32 %v2113_v57, %v13189_v8  ;;  %v2297_v24 = vmul.f32 %v13189_v8, %v13189_v8  ;;  %v2156_v26 = vadd.f32 %v2155_v40, %v13192_v53  ;;  %v2299_v32 = vmul.f32 %v13192_v53, %v13192_v53  ;;  %v1711_v50 = vpop.f32.mrb[23].mxu0  ;;  %v1824_v51 = vpop.f32.mrb[23].mxu1 }
 0x494   : >> { %15690 = vst [vmem:[#allocation52_spill] sm:$0xff] %v13201_v13  ;;  %15691 = vst [vmem:[#allocation53_spill] sm:$0xff] %v13204_v52  ;;  %v2135_v41 = vadd.f32 %v2134_v63, %v13201_v13  ;;  %v2298_v36 = vmul.f32 %v13201_v13, %v13201_v13  ;;  %v2177_v31 = vadd.f32 %v2176_v5, %v13204_v52 }
 0x495   : >> { %v2300_v47 = vmul.f32 %v13204_v52, %v13204_v52  ;;  %v2410_v48 = vadd.f32 %v2409_v20, %v2297_v24  ;;  %v2452_v55 = vadd.f32 %v2451_v1, %v2299_v32  ;;  %v13225_v9 = vadd.f32 %v1709_v14, %v13117_v28 }
 0x496   : >> { %v13228_v18 = vadd.f32 %v1822_v15, %v13120_v42  ;;  %v2431_v61 = vadd.f32 %v2430_v29, %v2298_v36  ;;  %v13231_v22 = vadd.f32 %v1711_v50, %v13123_v46  ;;  %v13234_v57 = vadd.f32 %v1824_v51, %v13126_v49 }
 0x497   : >> { %v2473_v30 = vadd.f32 %v2472_v6, %v2300_v47  ;;  %v2115_v59 = vadd.f32 %v2114_v21, %v13225_v9  ;;  %v2305_v40 = vmul.f32 %v13225_v9, %v13225_v9 }
 0x498   : >> { %15694 = vst [vmem:[#allocation56_spill] sm:$0xff] %v13231_v22  ;;  %15695 = vst [vmem:[#allocation57_spill] sm:$0xff] %v13234_v57  ;;  %v2157_v2 = vadd.f32 %v2156_v26, %v13228_v18  ;;  %v2307_v63 = vmul.f32 %v13228_v18, %v13228_v18  ;;  %v2136_v60 = vadd.f32 %v2135_v41, %v13231_v22  ;;  %v1715_v1 = vpop.f32.mrb[24].mxu0  ;;  %v1828_v29 = vpop.f32.mrb[24].mxu1 }
 0x499   : >> { %v2306_v5 = vmul.f32 %v13231_v22, %v13231_v22  ;;  %v2178_v0 = vadd.f32 %v2177_v31, %v13234_v57  ;;  %v2308_v20 = vmul.f32 %v13234_v57, %v13234_v57  ;;  %v2411_v6 = vadd.f32 %v2410_v48, %v2305_v40  ;;  %v1717_v4 = vpop.f32.mrb[25].mxu0  ;;  %v1830_v14 = vpop.f32.mrb[25].mxu1 }
 0x49a   : >> { %v2453_v7 = vadd.f32 %v2452_v55, %v2307_v63  ;;  %v13249_v33 = vadd.f32 %v1715_v1, %v13117_v28  ;;  %v13252_v56 = vadd.f32 %v1828_v29, %v13120_v42  ;;  %v13255_v24 = vadd.f32 %v1717_v4, %v13123_v46  ;;  %v1719_v32 = vpop.f32.mrb[26].mxu0  ;;  %v1832_v50 = vpop.f32.mrb[26].mxu1 }
 0x49b   : >> { %v2432_v15 = vadd.f32 %v2431_v61, %v2306_v5  ;;  %v2474_v21 = vadd.f32 %v2473_v30, %v2308_v20  ;;  %v13258_v26 = vadd.f32 %v1830_v14, %v13126_v49  ;;  %v1721_v47 = vpop.f32.mrb[27].mxu0  ;;  %v1834_v48 = vpop.f32.mrb[27].mxu1  ;;  %v13273_v5 = vadd.f32 %v1719_v32, %v13117_v28 }
 0x49c   : >> { %15696 = vst [vmem:[#allocation58_spill] sm:$0xff] %v13255_v24  ;;  %v2116_v51 = vadd.f32 %v2115_v59, %v13249_v33  ;;  %v2313_v41 = vmul.f32 %v13249_v33, %v13249_v33  ;;  %v2158_v36 = vadd.f32 %v2157_v2, %v13252_v56  ;;  %v2315_v31 = vmul.f32 %v13252_v56, %v13252_v56 }
 0x49d   : >> { %15697 = vst [vmem:[#allocation59_spill] sm:$0xff] %v13258_v26  ;;  %v2137_v55 = vadd.f32 %v2136_v60, %v13255_v24  ;;  %v2314_v61 = vmul.f32 %v13255_v24, %v13255_v24  ;;  %v2179_v30 = vadd.f32 %v2178_v0, %v13258_v26  ;;  %v2316_v59 = vmul.f32 %v13258_v26, %v13258_v26 }
 0x49e   : >> { %v2412_v40 = vadd.f32 %v2411_v6, %v2313_v41  ;;  %v2454_v63 = vadd.f32 %v2453_v7, %v2315_v31  ;;  %v13276_v2 = vadd.f32 %v1832_v50, %v13120_v42  ;;  %v13279_v60 = vadd.f32 %v1721_v47, %v13123_v46 }
 0x49f   : >> { %v2433_v20 = vadd.f32 %v2432_v15, %v2314_v61  ;;  %v2475_v1 = vadd.f32 %v2474_v21, %v2316_v59  ;;  %v13282_v29 = vadd.f32 %v1834_v48, %v13126_v49  ;;  %v2117_v0 = vadd.f32 %v2116_v51, %v13273_v5 }
 0x4a0   : >> { %15698 = vst [vmem:[#allocation60_spill] sm:$0xff] %v13279_v60  ;;  %v2321_v6 = vmul.f32 %v13273_v5, %v13273_v5  ;;  %v2159_v7 = vadd.f32 %v2158_v36, %v13276_v2  ;;  %v2323_v4 = vmul.f32 %v13276_v2, %v13276_v2  ;;  %v2138_v14 = vadd.f32 %v2137_v55, %v13279_v60  ;;  %v1725_v50 = vpop.f32.mrb[28].mxu0  ;;  %v1838_v51 = vpop.f32.mrb[28].mxu1 }
 0x4a1   : >> { %15699 = vst [vmem:[#allocation61_spill] sm:$0xff] %v13282_v29  ;;  %v2322_v15 = vmul.f32 %v13279_v60, %v13279_v60  ;;  %v2180_v21 = vadd.f32 %v2179_v30, %v13282_v29  ;;  %v2324_v32 = vmul.f32 %v13282_v29, %v13282_v29  ;;  %v13297_v47 = vadd.f32 %v1725_v50, %v13117_v28  ;;  %v1727_v48 = vpop.f32.mrb[29].mxu0  ;;  %v1840_v55 = vpop.f32.mrb[29].mxu1 }
 0x4a2   : >> { %v2413_v41 = vadd.f32 %v2412_v40, %v2321_v6  ;;  %v2455_v31 = vadd.f32 %v2454_v63, %v2323_v4  ;;  %v13300_v36 = vadd.f32 %v1838_v51, %v13120_v42  ;;  %v13303_v3 = vadd.f32 %v1727_v48, %v13123_v46  ;;  %v1729_v43 = vpop.f32.mrb[30].mxu0  ;;  %v1842_v35 = vpop.f32.mrb[30].mxu1 }
 0x4a3   : >> { %v2434_v61 = vadd.f32 %v2433_v20, %v2322_v15  ;;  %v2476_v59 = vadd.f32 %v2475_v1, %v2324_v32  ;;  %v13306_v30 = vadd.f32 %v1840_v55, %v13126_v49  ;;  %v2118_v40 = vadd.f32 %v2117_v0, %v13297_v47  ;;  %v1731_v20 = vpop.f32.mrb[31].mxu0  ;;  %v1844_v1 = vpop.f32.mrb[31].mxu1 }
 0x4a4   : >> { %15700 = vst [vmem:[#allocation62_spill] sm:$0xff] %v13303_v3  ;;  %v2329_v63 = vmul.f32 %v13297_v47, %v13297_v47  ;;  %v2160_v6 = vadd.f32 %v2159_v7, %v13300_v36  ;;  %v2331_v4 = vmul.f32 %v13300_v36, %v13300_v36  ;;  %v2139_v15 = vadd.f32 %v2138_v14, %v13303_v3 }
 0x4a5   : >> { %15701 = vst [vmem:[#allocation63_spill] sm:$0xff] %v13306_v30  ;;  %v2330_v32 = vmul.f32 %v13303_v3, %v13303_v3  ;;  %v2181_v50 = vadd.f32 %v2180_v21, %v13306_v30  ;;  %v2332_v0 = vmul.f32 %v13306_v30, %v13306_v30  ;;  %v13321_v55 = vadd.f32 %v1729_v43, %v13117_v28 }
 0x4a6   : >> { %v2414_v51 = vadd.f32 %v2413_v41, %v2329_v63  ;;  %v2456_v48 = vadd.f32 %v2455_v31, %v2331_v4  ;;  %v13324_v7 = vadd.f32 %v1842_v35, %v13120_v42  ;;  %v13327_v14 = vadd.f32 %v1731_v20, %v13123_v46 }
 0x4a7   : >> { %v2435_v39 = vadd.f32 %v2434_v61, %v2330_v32  ;;  %v2477_v38 = vadd.f32 %v2476_v59, %v2332_v0  ;;  %v13330_v37 = vadd.f32 %v1844_v1, %v13126_v49  ;;  %v2119_v21 = vadd.f32 %v2118_v40, %v13321_v55 }
 0x4a8   : >> { %15702 = vst [vmem:[#allocation64_spill] sm:$0xff] %v13327_v14  ;;  %v2337_v41 = vmul.f32 %v13321_v55, %v13321_v55  ;;  %v2161_v31 = vadd.f32 %v2160_v6, %v13324_v7  ;;  %v2339_v43 = vmul.f32 %v13324_v7, %v13324_v7  ;;  %v2140_v35 = vadd.f32 %v2139_v15, %v13327_v14  ;;  %v1735_v4 = vpop.f32.mrb[32].mxu0  ;;  %v1848_v40 = vpop.f32.mrb[32].mxu1 }
 0x4a9   : >> { %15703 = vst [vmem:[#allocation65_spill] sm:$0xff] %v13330_v37  ;;  %v2338_v61 = vmul.f32 %v13327_v14, %v13327_v14  ;;  %v2182_v59 = vadd.f32 %v2181_v50, %v13330_v37  ;;  %v2340_v63 = vmul.f32 %v13330_v37, %v13330_v37  ;;  %v13345_v32 = vadd.f32 %v1735_v4, %v13117_v28  ;;  %v1737_v0 = vpop.f32.mrb[33].mxu0  ;;  %v1850_v15 = vpop.f32.mrb[33].mxu1 }
 0x4aa   : >> { %v2415_v20 = vadd.f32 %v2414_v51, %v2337_v41  ;;  %v2457_v1 = vadd.f32 %v2456_v48, %v2339_v43  ;;  %v13348_v6 = vadd.f32 %v1848_v40, %v13120_v42  ;;  %v13351_v30 = vadd.f32 %v1737_v0, %v13123_v46  ;;  %v1739_v37 = vpop.f32.mrb[34].mxu0  ;;  %v1852_v29 = vpop.f32.mrb[34].mxu1 }
 0x4ab   : >> { %v2436_v27 = vadd.f32 %v2435_v39, %v2338_v61  ;;  %v2478_v25 = vadd.f32 %v2477_v38, %v2340_v63  ;;  %v13354_v50 = vadd.f32 %v1850_v15, %v13126_v49  ;;  %v2120_v51 = vadd.f32 %v2119_v21, %v13345_v32  ;;  %v1741_v39 = vpop.f32.mrb[35].mxu0  ;;  %v1854_v38 = vpop.f32.mrb[35].mxu1 }
 0x4ac   : >> { %15704 = vst [vmem:[#allocation66_spill] sm:$0xff] %v13351_v30  ;;  %v2345_v48 = vmul.f32 %v13345_v32, %v13345_v32  ;;  %v2162_v41 = vadd.f32 %v2161_v31, %v13348_v6  ;;  %v2347_v43 = vmul.f32 %v13348_v6, %v13348_v6  ;;  %v2141_v61 = vadd.f32 %v2140_v35, %v13351_v30 }
 0x4ad   : >> { %15705 = vst [vmem:[#allocation67_spill] sm:$0xff] %v13354_v50  ;;  %v2346_v63 = vmul.f32 %v13351_v30, %v13351_v30  ;;  %v2183_v4 = vadd.f32 %v2182_v59, %v13354_v50  ;;  %v2348_v21 = vmul.f32 %v13354_v50, %v13354_v50  ;;  %v13369_v15 = vadd.f32 %v1739_v37, %v13117_v28 }
 0x4ae   : >> { %v2416_v40 = vadd.f32 %v2415_v20, %v2345_v48  ;;  %v2458_v0 = vadd.f32 %v2457_v1, %v2347_v43  ;;  %v13372_v31 = vadd.f32 %v1852_v29, %v13120_v42  ;;  %v13375_v35 = vadd.f32 %v1741_v39, %v13123_v46 }
 0x4af   : >> { %v2437_v26 = vadd.f32 %v2436_v27, %v2346_v63  ;;  %v2479_v57 = vadd.f32 %v2478_v25, %v2348_v21  ;;  %v13378_v52 = vadd.f32 %v1854_v38, %v13126_v49  ;;  %v2121_v59 = vadd.f32 %v2120_v51, %v13369_v15 }
 0x4b0   : >> { %15706 = vst [vmem:[#allocation68_spill] sm:$0xff] %v13375_v35  ;;  %v2353_v20 = vmul.f32 %v13369_v15, %v13369_v15  ;;  %v2163_v1 = vadd.f32 %v2162_v41, %v13372_v31  ;;  %v2355_v37 = vmul.f32 %v13372_v31, %v13372_v31  ;;  %v2142_v29 = vadd.f32 %v2141_v61, %v13375_v35  ;;  %v1745_v43 = vpop.f32.mrb[36].mxu0  ;;  %v1858_v51 = vpop.f32.mrb[36].mxu1 }
 0x4b1   : >> { %15707 = vst [vmem:[#allocation69_spill] sm:$0xff] %v13378_v52  ;;  %v2354_v25 = vmul.f32 %v13375_v35, %v13375_v35  ;;  %v2184_v27 = vadd.f32 %v2183_v4, %v13378_v52  ;;  %v2356_v48 = vmul.f32 %v13378_v52, %v13378_v52  ;;  %v13393_v63 = vadd.f32 %v1745_v43, %v13117_v28  ;;  %v1747_v21 = vpop.f32.mrb[37].mxu0  ;;  %v1860_v61 = vpop.f32.mrb[37].mxu1 }
 0x4b2   : >> { %v2417_v39 = vadd.f32 %v2416_v40, %v2353_v20  ;;  %v2459_v38 = vadd.f32 %v2458_v0, %v2355_v37  ;;  %v13396_v41 = vadd.f32 %v1858_v51, %v13120_v42  ;;  %v13399_v45 = vadd.f32 %v1747_v21, %v13123_v46  ;;  %v1749_v52 = vpop.f32.mrb[38].mxu0  ;;  %v1862_v17 = vpop.f32.mrb[38].mxu1 }
 0x4b3   : >> { %v2438_v50 = vadd.f32 %v2437_v26, %v2354_v25  ;;  %v2480_v34 = vadd.f32 %v2479_v57, %v2356_v48  ;;  %v13402_v4 = vadd.f32 %v1860_v61, %v13126_v49  ;;  %v2122_v40 = vadd.f32 %v2121_v59, %v13393_v63  ;;  %v1751_v26 = vpop.f32.mrb[39].mxu0  ;;  %v1864_v57 = vpop.f32.mrb[39].mxu1 }
 0x4b4   : >> { %15708 = vst [vmem:[#allocation70_spill] sm:$0xff] %v13399_v45  ;;  %v2361_v0 = vmul.f32 %v13393_v63, %v13393_v63  ;;  %v2164_v20 = vadd.f32 %v2163_v1, %v13396_v41  ;;  %v2363_v37 = vmul.f32 %v13396_v41, %v13396_v41  ;;  %v2143_v25 = vadd.f32 %v2142_v29, %v13399_v45 }
 0x4b5   : >> { %15709 = vst [vmem:[#allocation71_spill] sm:$0xff] %v13402_v4  ;;  %v2362_v48 = vmul.f32 %v13399_v45, %v13399_v45  ;;  %v2185_v43 = vadd.f32 %v2184_v27, %v13402_v4  ;;  %v2364_v59 = vmul.f32 %v13402_v4, %v13402_v4  ;;  %v13417_v61 = vadd.f32 %v1749_v52, %v13117_v28 }
 0x4b6   : >> { %v2418_v51 = vadd.f32 %v2417_v39, %v2361_v0  ;;  %v2460_v21 = vadd.f32 %v2459_v38, %v2363_v37  ;;  %v13420_v1 = vadd.f32 %v1862_v17, %v13120_v42  ;;  %v13423_v29 = vadd.f32 %v1751_v26, %v13123_v46 }
 0x4b7   : >> { %v2439_v16 = vadd.f32 %v2438_v50, %v2362_v48  ;;  %v2481_v12 = vadd.f32 %v2480_v34, %v2364_v59  ;;  %v13426_v11 = vadd.f32 %v1864_v57, %v13126_v49  ;;  %v2123_v27 = vadd.f32 %v2122_v40, %v13417_v61 }
 0x4b8   : >> { %15710 = vst [vmem:[#allocation72_spill] sm:$0xff] %v13423_v29  ;;  %v2369_v39 = vmul.f32 %v13417_v61, %v13417_v61  ;;  %v2165_v38 = vadd.f32 %v2164_v20, %v13420_v1  ;;  %v2371_v52 = vmul.f32 %v13420_v1, %v13420_v1  ;;  %v2144_v17 = vadd.f32 %v2143_v25, %v13423_v29  ;;  %v1755_v37 = vpop.f32.mrb[40].mxu0  ;;  %v1868_v40 = vpop.f32.mrb[40].mxu1 }
 0x4b9   : >> { %15711 = vst [vmem:[#allocation73_spill] sm:$0xff] %v13426_v11  ;;  %v2370_v34 = vmul.f32 %v13423_v29, %v13423_v29  ;;  %v2186_v50 = vadd.f32 %v2185_v43, %v13426_v11  ;;  %v2372_v0 = vmul.f32 %v13426_v11, %v13426_v11  ;;  %v13441_v48 = vadd.f32 %v1755_v37, %v13117_v28  ;;  %v1757_v59 = vpop.f32.mrb[41].mxu0  ;;  %v1870_v25 = vpop.f32.mrb[41].mxu1 }
 0x4ba   : >> { %v2419_v26 = vadd.f32 %v2418_v51, %v2369_v39  ;;  %v2461_v57 = vadd.f32 %v2460_v21, %v2371_v52  ;;  %v13444_v20 = vadd.f32 %v1868_v40, %v13120_v42  ;;  %v13447_v29 = vadd.f32 %v1757_v59, %v13123_v46  ;;  %v1759_v11 = vpop.f32.mrb[42].mxu0  ;;  %v1872_v35 = vpop.f32.mrb[42].mxu1 }
 0x4bb   : >> { %v2440_v4 = vadd.f32 %v2439_v16, %v2370_v34  ;;  %v2482_v45 = vadd.f32 %v2481_v12, %v2372_v0  ;;  %v13450_v43 = vadd.f32 %v1870_v25, %v13126_v49  ;;  %v2124_v51 = vadd.f32 %v2123_v27, %v13441_v48  ;;  %v1761_v16 = vpop.f32.mrb[43].mxu0  ;;  %v1874_v12 = vpop.f32.mrb[43].mxu1 }
 0x4bc   : >> { %15712 = vst [vmem:[#allocation74_spill] sm:$0xff] %v13447_v29  ;;  %v2377_v21 = vmul.f32 %v13441_v48, %v13441_v48  ;;  %v2166_v39 = vadd.f32 %v2165_v38, %v13444_v20  ;;  %v2379_v52 = vmul.f32 %v13444_v20, %v13444_v20  ;;  %v2145_v34 = vadd.f32 %v2144_v17, %v13447_v29 }
 0x4bd   : >> { %15713 = vst [vmem:[#allocation75_spill] sm:$0xff] %v13450_v43  ;;  %v2378_v0 = vmul.f32 %v13447_v29, %v13447_v29  ;;  %v2187_v37 = vadd.f32 %v2186_v50, %v13450_v43  ;;  %v2380_v27 = vmul.f32 %v13450_v43, %v13450_v43  ;;  %v13465_v25 = vadd.f32 %v1759_v11, %v13117_v28 }
 0x4be   : >> { %v2420_v40 = vadd.f32 %v2419_v26, %v2377_v21  ;;  %v2462_v59 = vadd.f32 %v2461_v57, %v2379_v52  ;;  %v13468_v38 = vadd.f32 %v1872_v35, %v13120_v42  ;;  %v13471_v17 = vadd.f32 %v1761_v16, %v13123_v46 }
 0x4bf   : >> { %v2441_v30 = vadd.f32 %v2440_v4, %v2378_v0  ;;  %v2483_v14 = vadd.f32 %v2482_v45, %v2380_v27  ;;  %v13474_v29 = vadd.f32 %v1874_v12, %v13126_v49  ;;  %v2125_v50 = vadd.f32 %v2124_v51, %v13465_v25 }
 0x4c0   : >> { %15714 = vst [vmem:[#allocation76_spill] sm:$0xff] %v13471_v17  ;;  %v2385_v26 = vmul.f32 %v13465_v25, %v13465_v25  ;;  %v2167_v57 = vadd.f32 %v2166_v39, %v13468_v38  ;;  %v2387_v11 = vmul.f32 %v13468_v38, %v13468_v38  ;;  %v2146_v35 = vadd.f32 %v2145_v34, %v13471_v17  ;;  %v1765_v52 = vpop.f32.mrb[44].mxu0  ;;  %v1878_v51 = vpop.f32.mrb[44].mxu1 }
 0x4c1   : >> { %15715 = vst [vmem:[#allocation77_spill] sm:$0xff] %v13474_v29  ;;  %v2386_v45 = vmul.f32 %v13471_v17, %v13471_v17  ;;  %v2188_v4 = vadd.f32 %v2187_v37, %v13474_v29  ;;  %v2388_v21 = vmul.f32 %v13474_v29, %v13474_v29  ;;  %v13489_v0 = vadd.f32 %v1765_v52, %v13117_v28  ;;  %v1767_v27 = vpop.f32.mrb[45].mxu0  ;;  %v1880_v34 = vpop.f32.mrb[45].mxu1 }
 0x4c2   : >> { %v2421_v16 = vadd.f32 %v2420_v40, %v2385_v26  ;;  %v2463_v12 = vadd.f32 %v2462_v59, %v2387_v11  ;;  %v13492_v39 = vadd.f32 %v1878_v51, %v13120_v42  ;;  %v13495_v17 = vadd.f32 %v1767_v27, %v13123_v46  ;;  %v1769_v29 = vpop.f32.mrb[46].mxu0  ;;  %v1882_v60 = vpop.f32.mrb[46].mxu1 }
 0x4c3   : >> { %v2442_v43 = vadd.f32 %v2441_v30, %v2386_v45  ;;  %v2484_v3 = vadd.f32 %v2483_v14, %v2388_v21  ;;  %v13498_v37 = vadd.f32 %v1880_v34, %v13126_v49  ;;  %v2126_v40 = vadd.f32 %v2125_v50, %v13489_v0  ;;  %v1771_v30 = vpop.f32.mrb[47].mxu0  ;;  %v1884_v14 = vpop.f32.mrb[47].mxu1 }
 0x4c4   : >> { %15716 = vst [vmem:[#allocation78_spill] sm:$0xff] %v13495_v17  ;;  %v2393_v59 = vmul.f32 %v13489_v0, %v13489_v0  ;;  %v2168_v26 = vadd.f32 %v2167_v57, %v13492_v39  ;;  %v2395_v11 = vmul.f32 %v13492_v39, %v13492_v39  ;;  %v2147_v45 = vadd.f32 %v2146_v35, %v13495_v17 }
 0x4c5   : >> { %15717 = vst [vmem:[#allocation79_spill] sm:$0xff] %v13498_v37  ;;  %v2394_v21 = vmul.f32 %v13495_v17, %v13495_v17  ;;  %v2189_v52 = vadd.f32 %v2188_v4, %v13498_v37  ;;  %v2396_v50 = vmul.f32 %v13498_v37, %v13498_v37  ;;  %v13513_v34 = vadd.f32 %v1769_v29, %v13117_v28 }
 0x4c6   : >> { %v2422_v51 = vadd.f32 %v2421_v16, %v2393_v59  ;;  %v2464_v27 = vadd.f32 %v2463_v12, %v2395_v11  ;;  %v13516_v57 = vadd.f32 %v1882_v60, %v13120_v42  ;;  %v13519_v35 = vadd.f32 %v1771_v30, %v13123_v46 }
 0x4c7   : >> { %v2443_v24 = vadd.f32 %v2442_v43, %v2394_v21  ;;  %v2485_v22 = vadd.f32 %v2484_v3, %v2396_v50  ;;  %v2127_v17 = vadd.f32 %v2126_v40, %v13513_v34  ;;  %v2401_v4 = vmul.f32 %v13513_v34, %v13513_v34 }
 0x4c8   : >> { %15718 = vst [vmem:[#allocation80_spill] sm:$0xff] %v13519_v35  ;;  %v2169_v37 = vadd.f32 %v2168_v26, %v13516_v57  ;;  %v2403_v16 = vmul.f32 %v13516_v57, %v13516_v57  ;;  %v2148_v28 = vadd.f32 %v2147_v45, %v13519_v35  ;;  %v2402_v42 = vmul.f32 %v13519_v35, %v13519_v35  ;;  %v13533_v29 = vpop.f32.mrb[48].mxu0  ;;  %v13535_v43 = vpop.f32.mrb[48].mxu1 }
 0x4c9   : >> { %v12248_v60 = vmov 1966171168   ;;  %v13531_v46 = vadd.f32 %v1884_v14, %v13126_v49  ;;  %15720 = vst [vmem:[#allocation82_spill] sm:$0xff] %v13533_v29  ;;  %15721 = vst [vmem:[#allocation83_spill] sm:$0xff] %v13535_v43  ;;  %v2128_v12 = vrot.slane %v2127_v17, 4  ;;  %v2423_v40 = vadd.f32 %v2422_v51, %v2401_v4  ;;  %v13537_v11 = vpop.f32.mrb[49].mxu0 }
 0x4ca   : >> { %v3198_v3 = vunpack.c.l.s4 %v12248_v60  ;;  %v2170_v59 = vrot.slane %v2169_v37, 4  ;;  %v2465_v26 = vadd.f32 %v2464_v27, %v2403_v16  ;;  %15722 = vst [vmem:[#allocation84_spill] sm:$0xff] %v13537_v11  ;;  %v13539_v30 = vpop.f32.mrb[49].mxu1  ;;  %v2149_v45 = vrot.slane %v2148_v28, 4  ;;  %v13542_v35 = vpop.f32.mrb[50].mxu0 }
 0x4cb   : >> { %15719 = vst [vmem:[#allocation81_spill] sm:$0xff] %v13531_v46  ;;  %15723 = vst [vmem:[#allocation85_spill] sm:$0xff] %v13539_v30  ;;  %v2444_v21 = vadd.f32 %v2443_v24, %v2402_v42  ;;  %v2190_v60 = vadd.f32 %v2189_v52, %v13531_v46  ;;  %v13544_v49 = vpop.f32.mrb[50].mxu1  ;;  %v2129_v14 = vadd.f32 %v2128_v12, %v2127_v17  ;;  %v2424_v29 = vrot.slane %v2423_v40, 4  ;;  %v13546_v51 = vpop.f32.mrb[51].mxu0 }
 0x4cc   : >> { %v3199_v50 = vunpack.c.0.s8 %v3198_v3  ;;  %15724 = vst [vmem:[#allocation86_spill] sm:$0xff] %v13542_v35  ;;  %15725 = vst [vmem:[#allocation87_spill] sm:$0xff] %v13544_v49  ;;  %v2171_v43 = vadd.f32 %v2170_v59, %v2169_v37  ;;  %v2466_v13 = vrot.slane %v2465_v26, 4  ;;  %v13548_v27 = vpop.f32.mrb[51].mxu1  ;;  %v2150_v4 = vadd.f32 %v2149_v45, %v2148_v28 }
 0x4cd   : >> { %15726 = vst [vmem:[#allocation88_spill] sm:$0xff] %v13546_v51  ;;  %15727 = vst [vmem:[#allocation89_spill] sm:$0xff] %v13548_v27  ;;  %v2445_v16 = vrot.slane %v2444_v21, 4  ;;  %v2191_v24 = vrot.slane %v2190_v60, 4  ;;  %v2130_v42 = vrot.slane %v2129_v14, 2  ;;  %v2425_v52 = vadd.f32 %v2424_v29, %v2423_v40 }
 0x4ce   : >> { %v13551_v30 = vsub.s32 %v3199_v50, %v13102_v19  ;;  %v2172_v3 = vrot.slane %v2171_v43, 2  ;;  %v2467_v35 = vadd.f32 %v2466_v13, %v2465_v26  ;;  %v2151_v11 = vrot.slane %v2150_v4, 2 }
 0x4cf   : >> { %v2446_v49 = vadd.f32 %v2445_v16, %v2444_v21  ;;  %v2192_v17 = vadd.f32 %v2191_v24, %v2190_v60  ;;  %v2404_v37 = vmul.f32 %v13531_v46, %v13531_v46  ;;  %v2131_v12 = vadd.f32 %v2130_v42, %v2129_v14 }
 0x4d0   : >> { %15728 = vst [vmem:[#allocation90_spill] sm:$0xff] %v13551_v30  ;;  %v2426_v59 = vrot.slane %v2425_v52, 2  ;;  %v2173_v51 = vadd.f32 %v2172_v3, %v2171_v43  ;;  %v2468_v27 = vrot.slane %v2467_v35, 2  ;;  %v2152_v28 = vadd.f32 %v2151_v11, %v2150_v4  ;;  %v13555_v19 = vpop.f32.mrb[52].mxu0  ;;  %v13557_v30 = vpop.f32.mrb[52].mxu1 }
 0x4d1   : >> { %v2447_v45 = vrot.slane %v2446_v49, 2  ;;  %v2193_v62 = vrot.slane %v2192_v17, 2  ;;  %v2486_v50 = vadd.f32 %v2485_v22, %v2404_v37  ;;  %15729 = vst [vmem:[#allocation91_spill] sm:$0xff] %v13555_v19  ;;  %15730 = vst [vmem:[#allocation92_spill] sm:$0xff] %v13557_v30  ;;  %v2132_v29 = vrot.slane %v2131_v12, 1  ;;  %v13559_v21 = vpop.f32.mrb[53].mxu0 }
 0x4d2   : >> { %v2427_v13 = vadd.f32 %v2426_v59, %v2425_v52  ;;  %v2174_v40 = vrot.slane %v2173_v51, 1  ;;  %v2469_v26 = vadd.f32 %v2468_v27, %v2467_v35  ;;  %15731 = vst [vmem:[#allocation93_spill] sm:$0xff] %v13559_v21  ;;  %v13561_v60 = vpop.f32.mrb[53].mxu1  ;;  %v2153_v14 = vrot.slane %v2152_v28, 1  ;;  %v13563_v11 = vpop.f32.mrb[54].mxu0  ;;  %v15769_v19 = vld [vmem:[#allocation50_spill] sm:$0xff] }
 0x4d3   : >> { %15732 = vst [vmem:[#allocation94_spill] sm:$0xff] %v13561_v60  ;;  %v2448_v16 = vadd.f32 %v2447_v45, %v2446_v49  ;;  %v2194_v43 = vadd.f32 %v2193_v62, %v2192_v17  ;;  %v2487_v24 = vrot.slane %v2486_v50, 4  ;;  %15733 = vst [vmem:[#allocation95_spill] sm:$0xff] %v13563_v11  ;;  %v13565_v4 = vpop.f32.mrb[54].mxu1  ;;  %v2133_v22 = vadd.f32 %v2132_v29, %v2131_v12  ;;  %v13567_v30 = vpop.f32.mrb[55].mxu0  ;;  %v15774_v11 = vld [vmem:[#allocation54_spill] sm:$0xff] }
 0x4d4   : >> { %15734 = vst [vmem:[#allocation96_spill] sm:$0xff] %v13565_v4  ;;  %v2428_v42 = vrot.slane %v2427_v13, 1  ;;  %v2175_v3 = vadd.f32 %v2174_v40, %v2173_v51  ;;  %v2470_v37 = vrot.slane %v2469_v26, 1  ;;  %15735 = vst [vmem:[#allocation97_spill] sm:$0xff] %v13567_v30  ;;  %v13569_v52 = vpop.f32.mrb[55].mxu1  ;;  %v2154_v35 = vadd.f32 %v2153_v14, %v2152_v28  ;;  %v15772_v30 = vld [vmem:[#allocation51_spill] sm:$0xff] }
 0x4d5   : >> { %15736 = vst [vmem:[#allocation98_spill] sm:$0xff] %v13569_v52  ;;  %v2449_v27 = vrot.slane %v2448_v16, 1  ;;  %v2195_v59 = vrot.slane %v2194_v43, 1  ;;  %v13571_v60 = vadd.f32 %v2487_v24, %v2486_v50  ;;  %v13573_v62 = vmul.f32 0.0078125, %v2133_v22  ;;  %v15770_v52 = vld [vmem:[#allocation82_spill] sm:$0xff] }
 0x4d6   : >> { %v2429_v49 = vadd.f32 %v2428_v42, %v2427_v13  ;;  %v2471_v17 = vadd.f32 %v2470_v37, %v2469_v26  ;;  %v13575_v45 = vmul.f32 0.0078125, %v2175_v3  ;;  %v13577_v12 = vmul.f32 0.0078125, %v2154_v35 }
 0x4d7   : >> { %v2450_v4 = vadd.f32 %v2449_v27, %v2448_v16  ;;  %v13579_v51 = vadd.f32 %v2195_v59, %v2194_v43  ;;  %v2593_v28 = vmul.f32 %v13573_v62, %v13573_v62  ;;  %v15750_v43 = vld [vmem:[#allocation52_spill] sm:$0xff]  ;;  %v15762_v16 = vld [vmem:[#allocation70_spill] sm:$0xff]  ;;  %v13726_v46 = vadd.f32 %v15770_v52, %v15769_v19 }
 0x4d8   : >> { %v2585_v40 = vmul.f32 0.0078125, %v2429_v49  ;;  %v13596_v24 = vpop.f32.mrb[56].mxu0  ;;  %v13598_v22 = vpop.f32.mrb[56].mxu1  ;;  %v2587_v26 = vmul.f32 0.0078125, %v2471_v17 }
 0x4d9   : >> { %15737 = vst [vmem:[#allocation99_spill] sm:$0xff] %v13596_v24  ;;  %15738 = vst [vmem:[#allocation100_spill] sm:$0xff] %v13598_v22  ;;  %v13606_v27 = vpop.f32.mrb[57].mxu0  ;;  %v13608_v59 = vpop.f32.mrb[57].mxu1  ;;  %v15768_v22 = vrot.slane %v13571_v60, 2 }
 0x4da   : >> { %v2601_v42 = vsub.f32 %v2585_v40, %v2593_v28  ;;  %15739 = vst [vmem:[#allocation101_spill] sm:$0xff] %v13606_v27  ;;  %15740 = vst [vmem:[#allocation102_spill] sm:$0xff] %v13608_v59  ;;  %v13618_v37 = vpop.f32.mrb[58].mxu0  ;;  %v13620_v3 = vpop.f32.mrb[58].mxu1  ;;  %v2595_v28 = vmul.f32 %v13575_v45, %v13575_v45 }
 0x4db   : >> { %15741 = vst [vmem:[#allocation103_spill] sm:$0xff] %v13618_v37  ;;  %15742 = vst [vmem:[#allocation104_spill] sm:$0xff] %v13620_v3  ;;  %v13628_v14 = vpop.f32.mrb[59].mxu0  ;;  %v13630_v40 = vpop.f32.mrb[59].mxu1  ;;  %v15753_v3 = vld [vmem:[#allocation56_spill] sm:$0xff]  ;;  %v13719_v24 = vadd.f32 %v15768_v22, %v13571_v60  ;;  %v15780_v60 = vld [vmem:[#allocation86_spill] sm:$0xff] }
 0x4dc   : >> { %v2609_v35 = vmax.f32 %v2601_v42, 0.0  ;;  %15743 = vst [vmem:[#allocation105_spill] sm:$0xff] %v13628_v14  ;;  %15744 = vst [vmem:[#allocation106_spill] sm:$0xff] %v13630_v40  ;;  %v2603_v17 = vsub.f32 %v2587_v26, %v2595_v28  ;;  %v2594_v28 = vmul.f32 %v13577_v12, %v13577_v12  ;;  %v15755_v37 = vld [vmem:[#allocation60_spill] sm:$0xff]  ;;  %v15758_v40 = vld [vmem:[#allocation62_spill] sm:$0xff] }
 0x4dd   : >> { %15771 = vst [vmem:[#allocation60_spill] sm:$0xff] %v13726_v46 }
 0x4de   : >> { %v2745_v13 = vadd.f32 1e-05, %v2609_v35  ;;  %v2611_v26 = vmax.f32 %v2603_v17, 0.0  ;;  %v2586_v17 = vmul.f32 0.0078125, %v2450_v4 }
 0x4e0   : >> { %11287 = vrsqrt.f32 %v2745_v13  ;;  %v13662_v13 = vpop.f32.mrb[60].mxu0  ;;  %v13664_v29 = vpop.f32.mrb[60].mxu1  ;;  %v2747_v49 = vadd.f32 1e-05, %v2611_v26  ;;  %v2602_v50 = vsub.f32 %v2586_v17, %v2594_v28  ;;  %v15760_v17 = vld [vmem:[#allocation66_spill] sm:$0xff]  ;;  %v15761_v26 = vld [vmem:[#allocation68_spill] sm:$0xff] }
 0x4e1   : >> { %15745 = vst [vmem:[#allocation107_spill] sm:$0xff] %v13662_v13  ;;  %15746 = vst [vmem:[#allocation108_spill] sm:$0xff] %v13664_v29  ;;  %v13672_v35 = vpop.f32.mrb[61].mxu0  ;;  %v13674_v42 = vpop.f32.mrb[61].mxu1  ;;  %v15749_v29 = vld [vmem:[#allocation48_spill] sm:$0xff] }
 0x4e2   : >> { %15747 = vst [vmem:[#allocation109_spill] sm:$0xff] %v13672_v35  ;;  %15748 = vst [vmem:[#allocation110_spill] sm:$0xff] %v13674_v42  ;;  %v13682_v14 = vpop.f32.mrb[62].mxu0  ;;  %v13684_v4 = vpop.f32.mrb[62].mxu1  ;;  %v15754_v42 = vld [vmem:[#allocation58_spill] sm:$0xff]  ;;  %11289 = vrsqrt.f32 %v2747_v49  ;;  %v2610_v27 = vmax.f32 %v2602_v50, 0.0 }
 0x4e3   : >> { %15751 = vst [vmem:[#allocation48_spill] sm:$0xff] %v13682_v14  ;;  %15752 = vst [vmem:[#allocation52_spill] sm:$0xff] %v13684_v4  ;;  %v13692_v59 = vpop.f32.mrb[63].mxu0  ;;  %v13694_v13 = vpop.f32.mrb[63].mxu1  ;;  %v15759_v4 = vld [vmem:[#allocation64_spill] sm:$0xff]  ;;  %v15773_v14 = vld [vmem:[#allocation83_spill] sm:$0xff] }
 0x4e4   : >> { %15756 = vst [vmem:[#allocation56_spill] sm:$0xff] %v13692_v59  ;;  %15757 = vst [vmem:[#allocation58_spill] sm:$0xff] %v13694_v13  ;;  %v2746_v21 = vadd.f32 1e-05, %v2610_v27  ;;  %v13722_v13 = vmul.f32 0.0078125, %v13579_v51  ;;  %v13730_v49 = vadd.f32 %v15773_v14, %v15772_v30  ;;  %v15775_v28 = vld [vmem:[#allocation84_spill] sm:$0xff]  ;;  %v13742_v51 = vadd.f32 %v15780_v60, %v15769_v19 }
 0x4e5   : >> { %v13734_v35 = vadd.f32 %v15775_v28, %v15774_v11  ;;  %v15777_v27 = vld [vmem:[#allocation55_spill] sm:$0xff]  ;;  %v15778_v50 = vld [vmem:[#allocation85_spill] sm:$0xff]  ;;  %v15787_v60 = vsub.f32 %v13129_v54, %v13573_v62  ;;  %v15789_v14 = vsub.f32 %v13189_v8, %v13573_v62  ;;  %v15793_v54 = vsub.f32 %v13249_v33, %v13573_v62 }
 0x4e6   : >> { %v13738_v59 = vadd.f32 %v15778_v50, %v15777_v27  ;;  %15781 = vst [vmem:[#allocation66_spill] sm:$0xff] %v13742_v51  ;;  %11291 = vrsqrt.f32 %v2746_v21  ;;  %v13751_v28 = vmul.f32 %v13722_v13, %v13722_v13  ;;  %v15788_v21 = vsub.f32 %v13157_v23, %v13573_v62 }
 0x4e7   : >> { %15776 = vst [vmem:[#allocation62_spill] sm:$0xff] %v13734_v35  ;;  %v15790_v51 = vsub.f32 %v13225_v9, %v13573_v62  ;;  %v15794_v23 = vsub.f32 %v13273_v5, %v13573_v62  ;;  %v15795_v8 = vsub.f32 %v13297_v47, %v13573_v62  ;;  %v15796_v9 = vsub.f32 %v13321_v55, %v13573_v62 }
 0x4e8   : >> { %15779 = vst [vmem:[#allocation64_spill] sm:$0xff] %v13738_v59  ;;  %v13744_v22 = vpop.f32.mrb[64].mxu0  ;;  %v13746_v52 = vpop.f32.mrb[64].mxu1 }
 0x4e9   : >> { %15782 = vst [vmem:[#allocation68_spill] sm:$0xff] %v13744_v22  ;;  %15783 = vst [vmem:[#allocation70_spill] sm:$0xff] %v13746_v52  ;;  %v13755_v27 = vpop.f32.mrb[65].mxu0  ;;  %v13757_v30 = vpop.f32.mrb[65].mxu1 }
 0x4ea   : >> { %v11288_v46 = vpop.eup %11287  ;;  %15785 = vst [vmem:[#allocation82_spill] sm:$0xff] %v13755_v27  ;;  %15786 = vst [vmem:[#allocation83_spill] sm:$0xff] %v13757_v30  ;;  %v13771_v11 = vpop.f32.mrb[66].mxu0 }
 0x4eb   : >> { %v2761_v22 = vmul.f32 %v11288_v46, %v15787_v60  ;;  %v2769_v52 = vmul.f32 %v11288_v46, %v15788_v21  ;;  %v2777_v19 = vmul.f32 %v11288_v46, %v15789_v14  ;;  %v2785_v50 = vmul.f32 %v11288_v46, %v15790_v51  ;;  %15791 = vst [vmem:[#allocation84_spill] sm:$0xff] %v13771_v11  ;;  %v13773_v27 = vpop.f32.mrb[66].mxu1 }
 0x4ec   : >> { %15792 = vst [vmem:[#allocation85_spill] sm:$0xff] %v13773_v27  ;;  %v13778_v60 = vmul.f32 %v11288_v46, %v15793_v54  ;;  %v13783_v21 = vmul.f32 %v11288_v46, %v15794_v23  ;;  %v13788_v14 = vmul.f32 %v11288_v46, %v15795_v8  ;;  %v13793_v51 = vmul.f32 %v11288_v46, %v15796_v9  ;;  %v13795_v27 = vpop.f32.mrb[67].mxu0  ;;  %v13797_v33 = vpop.f32.mrb[67].mxu1 }
 0x4ed   : >> { %15797 = vst [vmem:[#allocation86_spill] sm:$0xff] %v13795_v27  ;;  %15798 = vst [vmem:[#allocation111_spill] sm:$0xff] %v13797_v33  ;;  %v15799_v54 = vsub.f32 %v13345_v32, %v13573_v62  ;;  %v15800_v23 = vsub.f32 %v13369_v15, %v13573_v62  ;;  %v15801_v8 = vsub.f32 %v13393_v63, %v13573_v62  ;;  %v11290_v33 = vpop.eup %11289  ;;  %v2889_v11 = vmax.f32 %v2761_v22, 0.0 }
 0x4ee   : >> { %v15802_v9 = vsub.f32 %v13417_v61, %v13573_v62  ;;  %v15803_v32 = vsub.f32 %v13441_v48, %v13573_v62  ;;  %v15804_v15 = vsub.f32 %v13465_v25, %v13573_v62  ;;  %v15805_v63 = vsub.f32 %v13489_v0, %v13573_v62 }
 0x4ef   : >> { %v13802_v5 = vmul.f32 %v11288_v46, %v15799_v54  ;;  %v13807_v47 = vmul.f32 %v11288_v46, %v15800_v23  ;;  %v13812_v55 = vmul.f32 %v11288_v46, %v15801_v8  ;;  %v15806_v61 = vsub.f32 %v13513_v34, %v13573_v62 }
 0x4f0   : >> { %v13817_v27 = vmul.f32 %v11288_v46, %v15802_v9  ;;  %v13822_v54 = vmul.f32 %v11288_v46, %v15803_v32  ;;  %v13827_v23 = vmul.f32 %v11288_v46, %v15804_v15  ;;  %v13832_v8 = vmul.f32 %v11288_v46, %v15805_v63  ;;  %v13847_v62 = vpop.f32.mrb[68].mxu0  ;;  %v13872_v15 = vpop.eup %11291 }
 0x4f1   : >> { %v13837_v9 = vmul.f32 %v11288_v46, %v15806_v61  ;;  %v2897_v48 = vmax.f32 %v2769_v52, 0.0  ;;  %v2905_v32 = vmax.f32 %v2777_v19, 0.0  ;;  %v2913_v30 = vmax.f32 %v2785_v50, 0.0  ;;  %v13849_v19 = vpop.f32.mrb[68].mxu1 }
 0x4f2   : >> { %v2921_v59 = vmax.f32 %v13778_v60, 0.0  ;;  %v2929_v25 = vmax.f32 %v13783_v21, 0.0  ;;  %v13855_v21 = vpop.f32.mrb[69].mxu0  ;;  %v13857_v61 = vpop.f32.mrb[69].mxu1  ;;  %v15808_v46 = vsub.f32 %v13132_v58, %v13575_v45  ;;  %v15809_v63 = vsub.f32 %v13160_v10, %v13575_v45 }
 0x4f3   : >> { %15807 = vst [vmem:[#allocation112_spill] sm:$0xff] %v13857_v61  ;;  %v3017_v35 = vmax.f32 %v2889_v11, %v2897_v48  ;;  %v15810_v52 = vsub.f32 %v13192_v53, %v13575_v45  ;;  %v13868_v50 = vpop.f32.mrb[70].mxu0  ;;  %v13870_v60 = vpop.f32.mrb[70].mxu1  ;;  %v15813_v11 = vsub.f32 %v13228_v18, %v13575_v45  ;;  %v15814_v58 = vsub.f32 %v13252_v56, %v13575_v45 }
 0x4f4   : >> { %v2763_v34 = vmul.f32 %v11290_v33, %v15808_v46  ;;  %v2771_v0 = vmul.f32 %v11290_v33, %v15809_v63  ;;  %15811 = vst [vmem:[#allocation113_spill] sm:$0xff] %v13868_v50  ;;  %15812 = vst [vmem:[#allocation114_spill] sm:$0xff] %v13870_v60  ;;  %v15815_v10 = vsub.f32 %v13276_v2, %v13575_v45  ;;  %v13892_v60 = vpop.f32.mrb[71].mxu0  ;;  %v13894_v50 = vpop.f32.mrb[71].mxu1 }
 0x4f5   : >> { %v2779_v22 = vmul.f32 %v11290_v33, %v15810_v52  ;;  %v2787_v48 = vmul.f32 %v11290_v33, %v15813_v11  ;;  %v13880_v46 = vmul.f32 %v11290_v33, %v15814_v58  ;;  %v15816_v63 = vsub.f32 %v13300_v36, %v13575_v45  ;;  %15817 = vst [vmem:[#allocation115_spill] sm:$0xff] %v13892_v60 }
 0x4f6   : >> { %v13885_v53 = vmul.f32 %v11290_v33, %v15815_v10  ;;  %15818 = vst [vmem:[#allocation116_spill] sm:$0xff] %v13894_v50  ;;  %v3018_v18 = vmax.f32 %v3017_v35, %v2905_v32  ;;  %v15819_v56 = vsub.f32 %v13324_v7, %v13575_v45  ;;  %v15820_v2 = vsub.f32 %v13348_v6, %v13575_v45 }
 0x4f7   : >> { %v13890_v52 = vmul.f32 %v11290_v33, %v15816_v63  ;;  %v15821_v36 = vsub.f32 %v13372_v31, %v13575_v45  ;;  %v15822_v63 = vsub.f32 %v13396_v41, %v13575_v45  ;;  %v15823_v7 = vsub.f32 %v13420_v1, %v13575_v45 }
 0x4f8   : >> { %v13899_v11 = vmul.f32 %v11290_v33, %v15819_v56  ;;  %v13904_v58 = vmul.f32 %v11290_v33, %v15820_v2  ;;  %v15824_v6 = vsub.f32 %v13444_v20, %v13575_v45  ;;  %v15825_v31 = vsub.f32 %v13468_v38, %v13575_v45 }
 0x4f9   : >> { %v13909_v10 = vmul.f32 %v11290_v33, %v15821_v36  ;;  %v13914_v50 = vmul.f32 %v11290_v33, %v15822_v63  ;;  %v13919_v35 = vmul.f32 %v11290_v33, %v15823_v7  ;;  %v3019_v2 = vmax.f32 %v3018_v18, %v2913_v30  ;;  %v13945_v18 = vpop.f32.mrb[72].mxu0 }
 0x4fa   : >> { %v13924_v32 = vmul.f32 %v11290_v33, %v15824_v6  ;;  %v13929_v56 = vmul.f32 %v11290_v33, %v15825_v31  ;;  %v15826_v41 = vsub.f32 %v13492_v39, %v13575_v45  ;;  %v15827_v1 = vsub.f32 %v13516_v57, %v13575_v45 }
 0x4fb   : >> { %v2891_v7 = vmax.f32 %v2763_v34, 0.0  ;;  %v2899_v20 = vmax.f32 %v2771_v0, 0.0  ;;  %v2907_v6 = vmax.f32 %v2779_v22, 0.0  ;;  %v2915_v60 = vmax.f32 %v2787_v48, 0.0  ;;  %v13953_v34 = vpop.f32.mrb[73].mxu0 }
 0x4fc   : >> { %v13934_v36 = vmul.f32 %v11290_v33, %v15826_v41  ;;  %v13939_v63 = vmul.f32 %v11290_v33, %v15827_v1  ;;  %v2923_v61 = vmax.f32 %v13880_v46, 0.0  ;;  %v3020_v38 = vmax.f32 %v3019_v2, %v2921_v59  ;;  %v13947_v41 = vpop.f32.mrb[72].mxu1  ;;  %15828 = vst [vmem:[#allocation117_spill] sm:$0xff] %v13953_v34  ;;  %v13960_v2 = vpop.f32.mrb[74].mxu0 }
 0x4fd   : >> { %v2931_v31 = vmax.f32 %v13885_v53, 0.0  ;;  %v13955_v59 = vpop.f32.mrb[73].mxu1  ;;  %15830 = vst [vmem:[#allocation119_spill] sm:$0xff] %v13960_v2  ;;  %v3059_v33 = vmax.f32 %v2891_v7, %v2899_v20  ;;  %v15832_v0 = vsub.f32 %v13141_v44, %v13577_v12  ;;  %v13973_v46 = vpop.f32.mrb[75].mxu0  ;;  %v15836_v48 = vmax.f32 %v13788_v14, 0.0  ;;  %v15906_v2 = vld [vmem:[#allocation89_spill] sm:$0xff] }
 0x4fe   : >> { %15829 = vst [vmem:[#allocation118_spill] sm:$0xff] %v13955_v59  ;;  %v3021_v22 = vmax.f32 %v3020_v38, %v2929_v25  ;;  %v13962_v1 = vpop.f32.mrb[74].mxu1  ;;  %v15833_v25 = vsub.f32 %v15749_v29, %v13577_v12  ;;  %15834 = vst [vmem:[#allocation121_spill] sm:$0xff] %v13973_v46  ;;  %v15837_v7 = vsub.f32 %v15750_v43, %v13577_v12  ;;  %v15862_v46 = vmax.f32 %v13807_v47, 0.0  ;;  %v15908_v59 = vld [vmem:[#allocation50_spill] sm:$0xff] }
 0x4ff   : >> { %15831 = vst [vmem:[#allocation120_spill] sm:$0xff] %v13962_v1  ;;  %v2762_v57 = vmul.f32 %v13872_v15, %v15832_v0  ;;  %v13975_v53 = vpop.f32.mrb[75].mxu1  ;;  %v15838_v44 = vsub.f32 %v15753_v3, %v13577_v12  ;;  %v15839_v29 = vsub.f32 %v15754_v42, %v13577_v12  ;;  %v3060_v45 = vmax.f32 %v3059_v33, %v2907_v6  ;;  %v15905_v1 = vld [vmem:[#allocation55_spill] sm:$0xff] }
 0x500   : >> { %v2770_v38 = vmul.f32 %v13872_v15, %v15833_v25  ;;  %15835 = vst [vmem:[#allocation122_spill] sm:$0xff] %v13975_v53  ;;  %v3022_v39 = vmax.f32 %v3021_v22, %v15836_v48  ;;  %v2778_v20 = vmul.f32 %v13872_v15, %v15837_v7  ;;  %v15840_v14 = vsub.f32 %v15755_v37, %v13577_v12 }
 0x501   : >> { %v13987_v0 = vmul.f32 %v13872_v15, %v15838_v44  ;;  %v13993_v25 = vmul.f32 %v13872_v15, %v15839_v29  ;;  %v15841_v22 = vsub.f32 %v15758_v40, %v13577_v12  ;;  %v15842_v48 = vsub.f32 %v15759_v4, %v13577_v12 }
 0x502   : >> { %v13999_v43 = vmul.f32 %v13872_v15, %v15840_v14  ;;  %v15843_v6 = vmax.f32 %v13793_v51, 0.0  ;;  %v15844_v37 = vsub.f32 %v15760_v17, %v13577_v12  ;;  %v15845_v40 = vsub.f32 %v15761_v26, %v13577_v12 }
 0x503   : >> { %v14005_v3 = vmul.f32 %v13872_v15, %v15841_v22  ;;  %v14011_v42 = vmul.f32 %v13872_v15, %v15842_v48  ;;  %v15846_v4 = vsub.f32 %v15762_v16, %v13577_v12  ;;  %v3061_v51 = vmax.f32 %v3060_v45, %v2915_v60  ;;  %v15849_v22 = vld [vmem:[#allocation74_spill] sm:$0xff] }
 0x504   : >> { %v3023_v33 = vmax.f32 %v3022_v39, %v15843_v6  ;;  %v14019_v7 = vmul.f32 %v13872_v15, %v15844_v37  ;;  %v14025_v44 = vmul.f32 %v13872_v15, %v15845_v40  ;;  %v15847_v39 = vld [vmem:[#allocation72_spill] sm:$0xff]  ;;  %v15850_v48 = vsub.f32 %v15849_v22, %v13577_v12  ;;  %v15854_v40 = vld [vmem:[#allocation78_spill] sm:$0xff] }
 0x505   : >> { %v14031_v29 = vmul.f32 %v13872_v15, %v15846_v4  ;;  %v15848_v14 = vsub.f32 %v15847_v39, %v13577_v12  ;;  %v15851_v6 = vld [vmem:[#allocation76_spill] sm:$0xff]  ;;  %v15853_v60 = vmax.f32 %v13802_v5, 0.0  ;;  %v15855_v4 = vsub.f32 %v15854_v40, %v13577_v12 }
 0x506   : >> { %v14043_v26 = vmul.f32 %v13872_v15, %v15850_v48  ;;  %v15852_v37 = vsub.f32 %v15851_v6, %v13577_v12  ;;  %v2890_v30 = vmax.f32 %v2762_v57, 0.0  ;;  %v14065_v6 = vpop.f32.mrb[76].mxu0  ;;  %v3062_v53 = vmax.f32 %v3061_v51, %v2923_v61  ;;  %v15874_v51 = vld [vmem:[#allocation57_spill] sm:$0xff] }
 0x507   : >> { %v14037_v17 = vmul.f32 %v13872_v15, %v15848_v14  ;;  %v3024_v45 = vmax.f32 %v3023_v33, %v15853_v60  ;;  %v14057_v39 = vmul.f32 %v13872_v15, %v15855_v4  ;;  %v15856_v14 = vld [vmem:[#allocation80_spill] sm:$0xff]  ;;  %15858 = vst [vmem:[#allocation72_spill] sm:$0xff] %v14065_v6  ;;  %v2898_v5 = vmax.f32 %v2770_v38, 0.0  ;;  %v14070_v40 = vpop.f32.mrb[77].mxu0 }
 0x508   : >> { %v14049_v16 = vmul.f32 %v13872_v15, %v15852_v37  ;;  %v15857_v22 = vsub.f32 %v15856_v14, %v13577_v12  ;;  %v14067_v37 = vpop.f32.mrb[76].mxu1  ;;  %v2906_v33 = vmax.f32 %v2778_v20, 0.0  ;;  %v2914_v60 = vmax.f32 %v13987_v0, 0.0  ;;  %15860 = vst [vmem:[#allocation76_spill] sm:$0xff] %v14070_v40  ;;  %v15886_v0 = vld [vmem:[#allocation73_spill] sm:$0xff] }
 0x509   : >> { %15859 = vst [vmem:[#allocation74_spill] sm:$0xff] %v14067_v37  ;;  %v14072_v4 = vpop.f32.mrb[77].mxu1  ;;  %v3025_v12 = vmax.f32 %v3024_v45, %v15862_v46  ;;  %v2930_v57 = vmax.f32 %v13999_v43, 0.0  ;;  %v2938_v14 = vmax.f32 %v14005_v3, 0.0  ;;  %v3063_v38 = vmax.f32 %v3062_v53, %v2931_v31  ;;  %v15871_v3 = vld [vmem:[#allocation49_spill] sm:$0xff] }
 0x50a   : >> { %v14063_v48 = vmul.f32 %v13872_v15, %v15857_v22  ;;  %15861 = vst [vmem:[#allocation78_spill] sm:$0xff] %v14072_v4  ;;  %v2922_v15 = vmax.f32 %v13993_v25, 0.0  ;;  %v14079_v22 = vpop.f32.mrb[78].mxu0  ;;  %v14081_v61 = vpop.f32.mrb[78].mxu1  ;;  %v2946_v20 = vmax.f32 %v14011_v42, 0.0  ;;  %v15867_v46 = vmax.f32 %v13812_v55, 0.0 }
 0x50b   : >> { %15863 = vst [vmem:[#allocation80_spill] sm:$0xff] %v14079_v22  ;;  %15864 = vst [vmem:[#allocation123_spill] sm:$0xff] %v14081_v61  ;;  %v14086_v4 = vpop.f32.mrb[79].mxu0  ;;  %v14088_v47 = vpop.f32.mrb[79].mxu1  ;;  %v15868_v31 = vmax.f32 %v13890_v52, 0.0  ;;  %v3038_v55 = vmax.f32 %v2890_v30, %v2898_v5  ;;  %v15872_v52 = vmax.f32 %v13899_v11, 0.0 }
 0x50c   : >> { %15865 = vst [vmem:[#allocation124_spill] sm:$0xff] %v14086_v4  ;;  %15866 = vst [vmem:[#allocation125_spill] sm:$0xff] %v14088_v47  ;;  %v3026_v25 = vmax.f32 %v3025_v12, %v15867_v46  ;;  %v15869_v47 = vmax.f32 %v13817_v27, 0.0  ;;  %v15870_v12 = vrot.slane %v13719_v24, 1  ;;  %v15875_v27 = vld [vmem:[#allocation59_spill] sm:$0xff]  ;;  %v15876_v30 = vmax.f32 %v13822_v54, 0.0 }
 0x50d   : >> { %v3064_v53 = vmax.f32 %v3063_v38, %v15868_v31  ;;  %v15873_v31 = vld [vmem:[#allocation53_spill] sm:$0xff]  ;;  %v15878_v11 = vmax.f32 %v13904_v58, 0.0  ;;  %v15881_v61 = vld [vmem:[#allocation67_spill] sm:$0xff]  ;;  %v15882_v54 = vmax.f32 %v13827_v23, 0.0  ;;  %v15884_v58 = vmax.f32 %v13909_v10, 0.0 }
 0x50e   : >> { %v3027_v4 = vmax.f32 %v3026_v25, %v15869_v47  ;;  %v2492_v46 = vadd.f32 %v15870_v12, %v13719_v24  ;;  %v3039_v25 = vmax.f32 %v3038_v55, %v2906_v33  ;;  %v15877_v12 = vld [vmem:[#allocation61_spill] sm:$0xff]  ;;  %v15887_v47 = vld [vmem:[#allocation75_spill] sm:$0xff]  ;;  %v15888_v23 = vmax.f32 %v13832_v8, 0.0 }
 0x50f   : >> { %v3065_v38 = vmax.f32 %v3064_v53, %v15872_v52  ;;  %v15879_v52 = vld [vmem:[#allocation63_spill] sm:$0xff]  ;;  %v15880_v43 = vld [vmem:[#allocation65_spill] sm:$0xff]  ;;  %v15890_v10 = vmax.f32 %v13914_v50, 0.0  ;;  %v15894_v8 = vmax.f32 %v13837_v9, 0.0  ;;  %v15895_v50 = vmax.f32 %v13919_v35, 0.0 }
 0x510   : >> { %v3028_v5 = vmax.f32 %v3027_v4, %v15876_v30  ;;  %v2588_v24 = vmul.f32 0.0078125, %v2492_v46  ;;  %v3040_v33 = vmax.f32 %v3039_v25, %v2914_v60  ;;  %v15883_v46 = vld [vmem:[#allocation69_spill] sm:$0xff]  ;;  %v15893_v30 = vld [vmem:[#allocation60_spill] sm:$0xff]  ;;  %v15900_v35 = vld [vmem:[#allocation51_spill] sm:$0xff] }
 0x511   : >> { %v3066_v53 = vmax.f32 %v3065_v38, %v15878_v11  ;;  %v15885_v11 = vld [vmem:[#allocation71_spill] sm:$0xff]  ;;  %v15889_v25 = vld [vmem:[#allocation77_spill] sm:$0xff]  ;;  %v2285_v22 = vmul.f32 %v15893_v30, %v15893_v30 }
 0x512   : >> { %v3029_v4 = vmax.f32 %v3028_v5, %v15882_v54  ;;  %v2604_v55 = vsub.f32 %v2588_v24, %v13751_v28  ;;  %v3041_v5 = vmax.f32 %v3040_v33, %v2922_v15  ;;  %v15891_v54 = vld [vmem:[#allocation79_spill] sm:$0xff]  ;;  %v15892_v42 = vld [vmem:[#allocation81_spill] sm:$0xff]  ;;  %v15898_v24 = vld [vmem:[#allocation66_spill] sm:$0xff] }
 0x513   : >> { %v3067_v38 = vmax.f32 %v3066_v53, %v15884_v58  ;;  %v15897_v58 = vld [vmem:[#allocation64_spill] sm:$0xff]  ;;  %v2197_v40 = vadd.f32 %v15898_v24, %v15893_v30  ;;  %v14178_v30 = vadd.f32 %v15906_v2, %v15905_v1 }
 0x514   : >> { %v3030_v60 = vmax.f32 %v3029_v4, %v15888_v23  ;;  %v2612_v28 = vmax.f32 %v2604_v55, 0.0  ;;  %v3042_v15 = vmax.f32 %v3041_v5, %v2930_v57  ;;  %v2287_v55 = vmul.f32 %v13730_v49, %v13730_v49  ;;  %v15896_v23 = vld [vmem:[#allocation62_spill] sm:$0xff] }
 0x515   : >> { %v3068_v53 = vmax.f32 %v3067_v38, %v15890_v10  ;;  %v2286_v10 = vmul.f32 %v15896_v23, %v15896_v23  ;;  %v2288_v45 = vmul.f32 %v15897_v58, %v15897_v58  ;;  %v2293_v57 = vmul.f32 %v15898_v24, %v15898_v24  ;;  %15907 = vst [vmem:[#allocation53_spill] sm:$0xff] %v14178_v30  ;;  %v15909_v24 = vld [vmem:[#allocation91_spill] sm:$0xff] }
 0x516   : >> { %v3031_v4 = vmax.f32 %v3030_v60, %v15894_v8  ;;  %v2748_v33 = vadd.f32 1e-05, %v2612_v28  ;;  %v3043_v9 = vmax.f32 %v3042_v15, %v2938_v14  ;;  %v15899_v60 = vmax.f32 %v13924_v32, 0.0  ;;  %v15901_v28 = vld [vmem:[#allocation87_spill] sm:$0xff]  ;;  %v15902_v8 = vld [vmem:[#allocation54_spill] sm:$0xff] }
 0x517   : >> { %v3069_v38 = vmax.f32 %v3068_v53, %v15895_v50  ;;  %v14170_v53 = vadd.f32 %v15901_v28, %v15900_v35  ;;  %v15903_v50 = vld [vmem:[#allocation88_spill] sm:$0xff]  ;;  %v14182_v34 = vadd.f32 %v15909_v24, %v15908_v59  ;;  %v15910_v32 = vmax.f32 %v13929_v56, 0.0 }
 0x518   : >> { %v3032_v37 = vrot.slane %v3031_v4, 4  ;;  %11293 = vrsqrt.f32 %v2748_v33  ;;  %v14174_v6 = vadd.f32 %v15903_v50, %v15902_v8  ;;  %v3044_v15 = vmax.f32 %v3043_v9, %v2946_v20 }
 0x519   : >> { %v3070_v5 = vmax.f32 %v3069_v38, %v15899_v60  ;;  %v2493_v33 = vadd.f32 %v2293_v57, %v2285_v22  ;;  %v2239_v60 = vadd.f32 %v14170_v53, %v13730_v49  ;;  %v2295_v28 = vmul.f32 %v14170_v53, %v14170_v53 }
 0x51a   : >> { %15904 = vst [vmem:[#allocation49_spill] sm:$0xff] %v14174_v6  ;;  %v3033_v14 = vmax.f32 %v3031_v4, %v3032_v37  ;;  %v2218_v2 = vadd.f32 %v14174_v6, %v15896_v23  ;;  %v15911_v37 = vmax.f32 %v14019_v7, 0.0  ;;  %v2294_v20 = vmul.f32 %v14174_v6, %v14174_v6 }
 0x51b   : >> { %v3071_v38 = vmax.f32 %v3070_v5, %v15910_v32  ;;  %v2260_v56 = vadd.f32 %v14178_v30, %v15897_v58  ;;  %v15912_v24 = vmax.f32 %v13934_v36, 0.0  ;;  %v14200_v9 = vadd.f32 %v2295_v28, %v2287_v55  ;;  %v15915_v28 = vld [vmem:[#allocation92_spill] sm:$0xff] }
 0x51c   : >> { %v3034_v50 = vrot.slane %v3033_v14, 2  ;;  %v3045_v22 = vmax.f32 %v3044_v15, %v15911_v37  ;;  %v2296_v57 = vmul.f32 %v14178_v30, %v14178_v30  ;;  %v14205_v5 = vadd.f32 %v2197_v40, %v14182_v34  ;;  %v15916_v40 = vld [vmem:[#allocation93_spill] sm:$0xff] }
 0x51d   : >> { %v3072_v4 = vmax.f32 %v3071_v38, %v15912_v24  ;;  %v15913_v7 = vmax.f32 %v14025_v44, 0.0  ;;  %v14209_v37 = vadd.f32 %v2294_v20, %v2286_v10  ;;  %v2301_v58 = vmul.f32 %v14182_v34, %v14182_v34  ;;  %v15919_v20 = vld [vmem:[#allocation94_spill] sm:$0xff] }
 0x51e   : >> { %v3035_v32 = vmax.f32 %v3033_v14, %v3034_v50  ;;  %v15914_v36 = vmax.f32 %v13939_v63, 0.0  ;;  %v14215_v55 = vadd.f32 %v2296_v57, %v2288_v45  ;;  %v14219_v24 = vadd.f32 %v15915_v28, %v15900_v35 }
 0x51f   : >> { %v3046_v15 = vmax.f32 %v3045_v22, %v15913_v7  ;;  %v14223_v14 = vadd.f32 %v15916_v40, %v15902_v8  ;;  %v15918_v10 = vmax.f32 %v14031_v29, 0.0  ;;  %v14227_v22 = vadd.f32 %v2493_v33, %v2301_v58  ;;  %v15922_v40 = vld [vmem:[#allocation45_spill] sm:$0xff] }
 0x520   : >> { %v3073_v38 = vmax.f32 %v3072_v4, %v15914_v36  ;;  %v3036_v44 = vrot.slane %v3035_v32, 1  ;;  %v14231_v63 = vadd.f32 %v15919_v20, %v15905_v1  ;;  %v14234_v4 = vadd.f32 %v2239_v60, %v14219_v24 }
 0x521   : >> { %15917 = vst [vmem:[#allocation57_spill] sm:$0xff] %v14223_v14  ;;  %v3047_v50 = vmax.f32 %v3046_v15, %v15918_v10  ;;  %v2303_v57 = vmul.f32 %v14219_v24, %v14219_v24  ;;  %v14239_v7 = vadd.f32 %v2218_v2, %v14223_v14  ;;  %v15921_v29 = vmax.f32 %v14037_v17, 0.0 }
 0x522   : >> { %15920 = vst [vmem:[#allocation59_spill] sm:$0xff] %v14231_v63  ;;  %v3074_v45 = vrot.slane %v3073_v38, 4  ;;  %v11294_v36 = vpop.eup %11293  ;;  %v14241_v28 = vmax.f32 %v3035_v32, %v3036_v44  ;;  %v2302_v33 = vmul.f32 %v14223_v14, %v14223_v14  ;;  %v14248_v15 = vadd.f32 %v2260_v56, %v14231_v63 }
 0x523   : >> { %v3048_v58 = vmax.f32 %v3047_v50, %v15921_v29  ;;  %v15923_v10 = vsub.f32 %v15922_v40, %v13722_v13  ;;  %v15924_v2 = vsub.f32 %v15871_v3, %v13722_v13  ;;  %v15925_v32 = vsub.f32 %v15873_v31, %v13722_v13 }
 0x524   : >> { %v3075_v60 = vmax.f32 %v3073_v38, %v3074_v45  ;;  %v15926_v44 = vmax.f32 %v14043_v26, 0.0  ;;  %v15927_v56 = vsub.f32 %v15874_v51, %v13722_v13  ;;  %v15928_v38 = vsub.f32 %v15875_v27, %v13722_v13 }
 0x525   : >> { %v2764_v20 = vmul.f32 %v11294_v36, %v15923_v10  ;;  %v2772_v30 = vmul.f32 %v11294_v36, %v15924_v2  ;;  %v2780_v17 = vmul.f32 %v11294_v36, %v15925_v32  ;;  %v15929_v40 = vsub.f32 %v15877_v12, %v13722_v13 }
 0x526   : >> { %v3049_v50 = vmax.f32 %v3048_v58, %v15926_v44  ;;  %v2788_v29 = vmul.f32 %v11294_v36, %v15927_v56  ;;  %v2796_v45 = vmul.f32 %v11294_v36, %v15928_v38  ;;  %v3076_v10 = vrot.slane %v3075_v60, 2 }
 0x527   : >> { %v14270_v3 = vmul.f32 %v11294_v36, %v15929_v40  ;;  %v15930_v31 = vsub.f32 %v15879_v52, %v13722_v13  ;;  %v15931_v26 = vsub.f32 %v15880_v43, %v13722_v13  ;;  %v15932_v27 = vsub.f32 %v15881_v61, %v13722_v13 }
 0x528   : >> { %v15933_v12 = vmax.f32 %v14049_v16, 0.0  ;;  %v15934_v44 = vsub.f32 %v15883_v46, %v13722_v13  ;;  %v15935_v52 = vsub.f32 %v15885_v11, %v13722_v13  ;;  %v15936_v43 = vsub.f32 %v15886_v0, %v13722_v13 }
 0x529   : >> { %v14275_v2 = vmul.f32 %v11294_v36, %v15930_v31  ;;  %v14280_v51 = vmul.f32 %v11294_v36, %v15931_v26  ;;  %v14285_v58 = vmul.f32 %v11294_v36, %v15932_v27  ;;  %v3077_v61 = vmax.f32 %v3075_v60, %v3076_v10 }
 0x52a   : >> { %v3050_v32 = vmax.f32 %v3049_v50, %v15933_v12  ;;  %v14292_v56 = vmul.f32 %v11294_v36, %v15934_v44  ;;  %v14297_v38 = vmul.f32 %v11294_v36, %v15935_v52  ;;  %v14302_v40 = vmul.f32 %v11294_v36, %v15936_v43 }
 0x52b   : >> { %v15937_v16 = vsub.f32 %v15887_v47, %v13722_v13  ;;  %v15938_v46 = vsub.f32 %v15889_v25, %v13722_v13  ;;  %v15939_v11 = vsub.f32 %v15891_v54, %v13722_v13  ;;  %v15940_v0 = vmax.f32 %v14057_v39, 0.0 }
 0x52c   : >> { %v15941_v60 = vsub.f32 %v15892_v42, %v13722_v13  ;;  %v2892_v47 = vmax.f32 %v2764_v20, 0.0  ;;  %v2900_v12 = vmax.f32 %v2772_v30, 0.0  ;;  %v3078_v44 = vrot.slane %v3077_v61, 1 }
 0x52d   : >> { %v14307_v50 = vmul.f32 %v11294_v36, %v15937_v16  ;;  %v14312_v31 = vmul.f32 %v11294_v36, %v15938_v46  ;;  %v14317_v26 = vmul.f32 %v11294_v36, %v15939_v11  ;;  %v3051_v27 = vmax.f32 %v3050_v32, %v15940_v0 }
 0x52e   : >> { %v14324_v10 = vmul.f32 %v11294_v36, %v15941_v60  ;;  %v2908_v52 = vmax.f32 %v2780_v17, 0.0  ;;  %v2916_v25 = vmax.f32 %v2788_v29, 0.0  ;;  %v2924_v43 = vmax.f32 %v2796_v45, 0.0  ;;  %v15945_v45 = vld [vmem:[#allocation97_spill] sm:$0xff] }
 0x52f   : >> { %v15942_v16 = vmax.f32 %v14063_v48, 0.0  ;;  %v2932_v54 = vmax.f32 %v14270_v3, 0.0  ;;  %v2940_v11 = vmax.f32 %v14275_v2, 0.0  ;;  %v2948_v39 = vmax.f32 %v14280_v51, 0.0 }
 0x530   : >> { %v14331_v32 = vmax.f32 %v3077_v61, %v3078_v44  ;;  %v2956_v13 = vmax.f32 %v14285_v58, 0.0  ;;  %v2964_v42 = vmax.f32 %v14292_v56, 0.0  ;;  %v2972_v30 = vmax.f32 %v14297_v38, 0.0  ;;  %v15964_v58 = vld [vmem:[#allocation108_spill] sm:$0xff] }
 0x531   : >> { %v3052_v46 = vmax.f32 %v3051_v27, %v15942_v16  ;;  %v2980_v20 = vmax.f32 %v14302_v40, 0.0  ;;  %v3080_v3 = vmax.f32 %v2892_v47, %v2900_v12  ;;  %v2536_v2 = vadd.f32 %v14200_v9, %v2303_v57  ;;  %v15943_v27 = vld [vmem:[#allocation95_spill] sm:$0xff]  ;;  %v15944_v16 = vld [vmem:[#allocation96_spill] sm:$0xff]  ;;  %v15947_v9 = vld [vmem:[#allocation98_spill] sm:$0xff] }
 0x532   : >> { %v2515_v61 = vadd.f32 %v14209_v37, %v2302_v33  ;;  %v2304_v0 = vmul.f32 %v14231_v63, %v14231_v63  ;;  %v14347_v60 = vadd.f32 %v15943_v27, %v15908_v59  ;;  %v14351_v17 = vadd.f32 %v15944_v16, %v15900_v35 }
 0x533   : >> { %v3053_v36 = vrot.slane %v3052_v46, 4  ;;  %v3081_v44 = vmax.f32 %v3080_v3, %v2908_v52  ;;  %v14355_v47 = vadd.f32 %v15945_v45, %v15902_v8  ;;  %v14359_v57 = vadd.f32 %v15947_v9, %v15905_v1 }
 0x534   : >> { %v2557_v33 = vadd.f32 %v14215_v55, %v2304_v0  ;;  %v2199_v12 = vadd.f32 %v14205_v5, %v14347_v60  ;;  %v2309_v52 = vmul.f32 %v14347_v60, %v14347_v60  ;;  %v2311_v45 = vmul.f32 %v14351_v17, %v14351_v17 }
 0x535   : >> { %v3054_v51 = vmax.f32 %v3052_v46, %v3053_v36  ;;  %15946 = vst [vmem:[#allocation61_spill] sm:$0xff] %v14355_v47  ;;  %15948 = vst [vmem:[#allocation63_spill] sm:$0xff] %v14359_v57  ;;  %v3082_v46 = vmax.f32 %v3081_v44, %v2916_v25  ;;  %v2241_v36 = vadd.f32 %v14234_v4, %v14351_v17  ;;  %v15949_v44 = vld [vmem:[#allocation99_spill] sm:$0xff] }
 0x536   : >> { %v2220_v3 = vadd.f32 %v14239_v7, %v14355_v47  ;;  %v2495_v16 = vadd.f32 %v14227_v22, %v2309_v52  ;;  %v2310_v55 = vmul.f32 %v14355_v47, %v14355_v47  ;;  %v2262_v5 = vadd.f32 %v14248_v15, %v14359_v57 }
 0x537   : >> { %v3055_v37 = vrot.slane %v3054_v51, 2  ;;  %v3083_v0 = vmax.f32 %v3082_v46, %v2924_v43  ;;  %v2537_v25 = vadd.f32 %v2536_v2, %v2311_v45  ;;  %v2312_v4 = vmul.f32 %v14359_v57, %v14359_v57 }
 0x538   : >> { %v14381_v9 = vadd.f32 %v15949_v44, %v15908_v59  ;;  %v2516_v7 = vadd.f32 %v2515_v61, %v2310_v55 }
 0x539   : >> { %v3056_v27 = vmax.f32 %v3054_v51, %v3055_v37  ;;  %v15950_v51 = vld [vmem:[#allocation100_spill] sm:$0xff]  ;;  %v15951_v37 = vld [vmem:[#allocation101_spill] sm:$0xff]  ;;  %v3084_v15 = vmax.f32 %v3083_v0, %v2932_v54  ;;  %v2558_v43 = vadd.f32 %v2557_v33, %v2312_v4  ;;  %v15953_v54 = vld [vmem:[#allocation102_spill] sm:$0xff] }
 0x53a   : >> { %v14385_v22 = vadd.f32 %v15950_v51, %v15900_v35  ;;  %v14389_v52 = vadd.f32 %v15951_v37, %v15902_v8  ;;  %v2200_v2 = vadd.f32 %v2199_v12, %v14381_v9  ;;  %v2317_v46 = vmul.f32 %v14381_v9, %v14381_v9 }
 0x53b   : >> { %v3057_v29 = vrot.slane %v3056_v27, 1  ;;  %v3085_v51 = vmax.f32 %v3084_v15, %v2940_v11  ;;  %v14402_v33 = vadd.f32 %v15953_v54, %v15905_v1 }
 0x53c   : >> { %15952 = vst [vmem:[#allocation65_spill] sm:$0xff] %v14389_v52  ;;  %v2242_v44 = vadd.f32 %v2241_v36, %v14385_v22  ;;  %v2319_v61 = vmul.f32 %v14385_v22, %v14385_v22  ;;  %v2221_v55 = vadd.f32 %v2220_v3, %v14389_v52  ;;  %v2496_v48 = vadd.f32 %v2495_v16, %v2317_v46  ;;  %v15957_v46 = vld [vmem:[#allocation90_spill] sm:$0xff] }
 0x53d   : >> { %v3058_v45 = vmax.f32 %v3056_v27, %v3057_v29  ;;  %v2318_v37 = vmul.f32 %v14389_v52, %v14389_v52  ;;  %15954 = vst [vmem:[#allocation67_spill] sm:$0xff] %v14402_v33  ;;  %v15955_v29 = vld [vmem:[#allocation103_spill] sm:$0xff]  ;;  %v15956_v27 = vld [vmem:[#allocation104_spill] sm:$0xff]  ;;  %v3086_v11 = vmax.f32 %v3085_v51, %v2948_v39  ;;  %v2263_v16 = vadd.f32 %v2262_v5, %v14402_v33 }
 0x53e   : >> { %v2538_v0 = vadd.f32 %v2537_v25, %v2319_v61  ;;  %v14407_v36 = vadd.f32 %v15955_v29, %v15908_v59  ;;  %v14411_v4 = vadd.f32 %v15956_v27, %v15900_v35  ;;  %v2320_v15 = vmul.f32 %v14402_v33, %v14402_v33  ;;  %v15963_v29 = vld [vmem:[#allocation107_spill] sm:$0xff] }
 0x53f   : >> { %v3193_v12 = vcombine.low %v14241_v28, %v3058_v45  ;;  %v2517_v3 = vadd.f32 %v2516_v7, %v2318_v37  ;;  %v3087_v61 = vmax.f32 %v3086_v11, %v2956_v13  ;;  %v15959_v7 = vld [vmem:[#allocation105_spill] sm:$0xff]  ;;  %v14437_v27 = vadd.f32 %v15963_v29, %v15908_v59 }
 0x540   : >> { %v2201_v28 = vadd.f32 %v2200_v2, %v14407_v36  ;;  %v2325_v25 = vmul.f32 %v14407_v36, %v14407_v36  ;;  %v2243_v45 = vadd.f32 %v2242_v44, %v14411_v4  ;;  %v2559_v39 = vadd.f32 %v2558_v43, %v2320_v15 }
 0x541   : >> { %v14417_v54 = vrot.slane %v3193_v12, %v15957_v46  ;;  %v2327_v5 = vmul.f32 %v14411_v4, %v14411_v4  ;;  %v14429_v51 = vadd.f32 %v15959_v7, %v15902_v8  ;;  %v15961_v12 = vld [vmem:[#allocation106_spill] sm:$0xff]  ;;  %v14441_v13 = vadd.f32 %v15964_v58, %v15900_v35 }
 0x542   : >> { %v2497_v37 = vadd.f32 %v2496_v48, %v2325_v25  ;;  %v14433_v2 = vadd.f32 %v15961_v12, %v15905_v1  ;;  %v3088_v43 = vmax.f32 %v3087_v61, %v2964_v42  ;;  %v2202_v7 = vadd.f32 %v2201_v28, %v14437_v27  ;;  %v15967_v28 = vld [vmem:[#allocation110_spill] sm:$0xff] }
 0x543   : >> { %15958 = vst [vmem:[#allocation69_spill] sm:$0xff] %v14417_v54  ;;  %15960 = vst [vmem:[#allocation71_spill] sm:$0xff] %v14429_v51  ;;  %v2539_v44 = vadd.f32 %v2538_v0, %v2327_v5  ;;  %v2222_v11 = vadd.f32 %v2221_v55, %v14429_v51  ;;  %v2326_v48 = vmul.f32 %v14429_v51, %v14429_v51 }
 0x544   : >> { %15962 = vst [vmem:[#allocation73_spill] sm:$0xff] %v14433_v2  ;;  %v2264_v15 = vadd.f32 %v2263_v16, %v14433_v2  ;;  %v2328_v25 = vmul.f32 %v14433_v2, %v14433_v2  ;;  %v2333_v12 = vmul.f32 %v14437_v27, %v14437_v27  ;;  %v3089_v56 = vmax.f32 %v3088_v43, %v2972_v30  ;;  %v15965_v16 = vld [vmem:[#allocation109_spill] sm:$0xff]  ;;  %v15970_v43 = vld [vmem:[#allocation52_spill] sm:$0xff] }
 0x545   : >> { %v2518_v42 = vadd.f32 %v2517_v3, %v2326_v48  ;;  %v2244_v0 = vadd.f32 %v2243_v45, %v14441_v13  ;;  %v2335_v55 = vmul.f32 %v14441_v13, %v14441_v13  ;;  %v14461_v29 = vadd.f32 %v15965_v16, %v15902_v8  ;;  %v15969_v3 = vld [vmem:[#allocation48_spill] sm:$0xff]  ;;  %v15986_v2 = vld [vmem:[#allocation85_spill] sm:$0xff] }
 0x546   : >> { %v2560_v61 = vadd.f32 %v2559_v39, %v2328_v25  ;;  %v2498_v5 = vadd.f32 %v2497_v37, %v2333_v12  ;;  %v14465_v58 = vadd.f32 %v15967_v28, %v15905_v1  ;;  %v3090_v38 = vmax.f32 %v3089_v56, %v2980_v20 }
 0x547   : >> { %15966 = vst [vmem:[#allocation75_spill] sm:$0xff] %v14461_v29  ;;  %v2540_v30 = vadd.f32 %v2539_v44, %v2335_v55  ;;  %v14471_v45 = vadd.f32 %v15969_v3, %v15908_v59  ;;  %v14475_v39 = vadd.f32 %v15970_v43, %v15900_v35  ;;  %v2223_v37 = vadd.f32 %v2222_v11, %v14461_v29 }
 0x548   : >> { %15968 = vst [vmem:[#allocation77_spill] sm:$0xff] %v14465_v58  ;;  %v2334_v48 = vmul.f32 %v14461_v29, %v14461_v29  ;;  %v2265_v25 = vadd.f32 %v2264_v15, %v14465_v58  ;;  %v2336_v40 = vmul.f32 %v14465_v58, %v14465_v58  ;;  %v15971_v20 = vmax.f32 %v14307_v50, 0.0  ;;  %v15972_v15 = vld [vmem:[#allocation56_spill] sm:$0xff] }
 0x549   : >> { %v2203_v12 = vadd.f32 %v2202_v7, %v14471_v45  ;;  %v2341_v56 = vmul.f32 %v14471_v45, %v14471_v45  ;;  %v2245_v55 = vadd.f32 %v2244_v0, %v14475_v39  ;;  %v2343_v28 = vmul.f32 %v14475_v39, %v14475_v39  ;;  %v15975_v7 = vld [vmem:[#allocation58_spill] sm:$0xff]  ;;  %v15977_v58 = vld [vmem:[#allocation68_spill] sm:$0xff] }
 0x54a   : >> { %v3091_v44 = vmax.f32 %v3090_v38, %v15971_v20  ;;  %v2519_v16 = vadd.f32 %v2518_v42, %v2334_v48  ;;  %v2561_v11 = vadd.f32 %v2560_v61, %v2336_v40  ;;  %v14493_v3 = vadd.f32 %v15972_v15, %v15902_v8  ;;  %v15978_v40 = vld [vmem:[#allocation70_spill] sm:$0xff] }
 0x54b   : >> { %v15974_v43 = vmax.f32 %v14312_v31, 0.0  ;;  %v2499_v38 = vadd.f32 %v2498_v5, %v2341_v56  ;;  %v14499_v20 = vadd.f32 %v15975_v7, %v15905_v1  ;;  %v14503_v0 = vadd.f32 %v15977_v58, %v15908_v59 }
 0x54c   : >> { %15973 = vst [vmem:[#allocation79_spill] sm:$0xff] %v14493_v3  ;;  %v2541_v42 = vadd.f32 %v2540_v30, %v2343_v28  ;;  %v2224_v61 = vadd.f32 %v2223_v37, %v14493_v3  ;;  %v2342_v48 = vmul.f32 %v14493_v3, %v14493_v3  ;;  %v14510_v15 = vadd.f32 %v15978_v40, %v15900_v35 }
 0x54d   : >> { %v3092_v50 = vmax.f32 %v3091_v44, %v15974_v43  ;;  %15976 = vst [vmem:[#allocation81_spill] sm:$0xff] %v14499_v20  ;;  %v15979_v31 = vmax.f32 %v14317_v26, 0.0  ;;  %v2266_v44 = vadd.f32 %v2265_v25, %v14499_v20  ;;  %v2344_v56 = vmul.f32 %v14499_v20, %v14499_v20  ;;  %v15981_v25 = vld [vmem:[#allocation82_spill] sm:$0xff]  ;;  %v15985_v20 = vld [vmem:[#allocation84_spill] sm:$0xff] }
 0x54e   : >> { %v2204_v58 = vadd.f32 %v2203_v12, %v14503_v0  ;;  %v2520_v30 = vadd.f32 %v2519_v16, %v2342_v48  ;;  %v2349_v37 = vmul.f32 %v14503_v0, %v14503_v0  ;;  %v2246_v28 = vadd.f32 %v2245_v55, %v14510_v15 }
 0x54f   : >> { %v3093_v5 = vmax.f32 %v3092_v50, %v15979_v31  ;;  %v2351_v43 = vmul.f32 %v14510_v15, %v14510_v15  ;;  %v15980_v7 = vmax.f32 %v14324_v10, 0.0  ;;  %v2562_v50 = vadd.f32 %v2561_v11, %v2344_v56  ;;  %v15983_v31 = vld [vmem:[#allocation83_spill] sm:$0xff] }
 0x550   : >> { %v14527_v40 = vadd.f32 %v15981_v25, %v15902_v8  ;;  %v14531_v12 = vadd.f32 %v15983_v31, %v15905_v1  ;;  %v2500_v16 = vadd.f32 %v2499_v38, %v2349_v37  ;;  %v14535_v55 = vadd.f32 %v15985_v20, %v15908_v59 }
 0x551   : >> { %v3094_v26 = vmax.f32 %v3093_v5, %v15980_v7  ;;  %v2542_v48 = vadd.f32 %v2541_v42, %v2351_v43  ;;  %v14539_v33 = vadd.f32 %v15986_v2, %v15900_v35  ;;  %v15987_v7 = vld [vmem:[#allocation86_spill] sm:$0xff] }
 0x552   : >> { %15982 = vst [vmem:[#allocation62_spill] sm:$0xff] %v14527_v40  ;;  %15984 = vst [vmem:[#allocation51_spill] sm:$0xff] %v14531_v12  ;;  %v2225_v11 = vadd.f32 %v2224_v61, %v14527_v40  ;;  %v2350_v5 = vmul.f32 %v14527_v40, %v14527_v40  ;;  %v2267_v56 = vadd.f32 %v2266_v44, %v14531_v12 }
 0x553   : >> { %v3095_v10 = vrot.slane %v3094_v26, 4  ;;  %v2352_v38 = vmul.f32 %v14531_v12, %v14531_v12  ;;  %v2205_v42 = vadd.f32 %v2204_v58, %v14535_v55  ;;  %v2357_v20 = vmul.f32 %v14535_v55, %v14535_v55  ;;  %v15989_v12 = vld [vmem:[#allocation111_spill] sm:$0xff] }
 0x554   : >> { %v2247_v37 = vadd.f32 %v2246_v28, %v14539_v33  ;;  %v2521_v43 = vadd.f32 %v2520_v30, %v2350_v5  ;;  %v2359_v61 = vmul.f32 %v14539_v33, %v14539_v33  ;;  %v14555_v25 = vadd.f32 %v15987_v7, %v15902_v8 }
 0x555   : >> { %v3096_v2 = vmax.f32 %v3094_v26, %v3095_v10  ;;  %v2563_v44 = vadd.f32 %v2562_v50, %v2352_v38  ;;  %v2501_v31 = vadd.f32 %v2500_v16, %v2357_v20  ;;  %v14559_v57 = vadd.f32 %v15989_v12, %v15905_v1 }
 0x556   : >> { %15988 = vst [vmem:[#allocation87_spill] sm:$0xff] %v14555_v25  ;;  %v14563_v58 = vadd.f32 %v13847_v62, %v15908_v59  ;;  %v2543_v26 = vadd.f32 %v2542_v48, %v2359_v61  ;;  %v2226_v30 = vadd.f32 %v2225_v11, %v14555_v25  ;;  %v2358_v10 = vmul.f32 %v14555_v25, %v14555_v25  ;;  %v15992_v61 = vld [vmem:[#allocation112_spill] sm:$0xff] }
 0x557   : >> { %15990 = vst [vmem:[#allocation54_spill] sm:$0xff] %v14559_v57  ;;  %v3097_v28 = vrot.slane %v3096_v2, 2  ;;  %v2268_v5 = vadd.f32 %v2267_v56, %v14559_v57  ;;  %v2360_v50 = vmul.f32 %v14559_v57, %v14559_v57  ;;  %v14576_v48 = vadd.f32 %v13849_v19, %v15900_v35 }
 0x558   : >> { %v2206_v16 = vadd.f32 %v2205_v42, %v14563_v58  ;;  %v2365_v12 = vmul.f32 %v14563_v58, %v14563_v58  ;;  %v2522_v62 = vadd.f32 %v2521_v43, %v2358_v10  ;;  %v14580_v11 = vadd.f32 %v13855_v21, %v15902_v8  ;;  %v15994_v42 = vld [vmem:[#allocation113_spill] sm:$0xff] }
 0x559   : >> { %v3098_v38 = vmax.f32 %v3096_v2, %v3097_v28  ;;  %v2564_v20 = vadd.f32 %v2563_v44, %v2360_v50  ;;  %v14584_v7 = vadd.f32 %v15992_v61, %v15905_v1  ;;  %v14588_v57 = vadd.f32 %v15994_v42, %v15908_v59  ;;  %v15995_v61 = vld [vmem:[#allocation114_spill] sm:$0xff] }
 0x55a   : >> { %15991 = vst [vmem:[#allocation88_spill] sm:$0xff] %v14580_v11  ;;  %v2502_v56 = vadd.f32 %v2501_v31, %v2365_v12  ;;  %v2248_v43 = vadd.f32 %v2247_v37, %v14576_v48  ;;  %v2367_v19 = vmul.f32 %v14576_v48, %v14576_v48  ;;  %v2227_v28 = vadd.f32 %v2226_v30, %v14580_v11 }
 0x55b   : >> { %15993 = vst [vmem:[#allocation55_spill] sm:$0xff] %v14584_v7  ;;  %v3099_v2 = vrot.slane %v3098_v38, 1  ;;  %v2366_v21 = vmul.f32 %v14580_v11, %v14580_v11  ;;  %v2269_v44 = vadd.f32 %v2268_v5, %v14584_v7  ;;  %v2368_v31 = vmul.f32 %v14584_v7, %v14584_v7  ;;  %v15996_v11 = vld [vmem:[#allocation115_spill] sm:$0xff]  ;;  %v15998_v5 = vld [vmem:[#allocation116_spill] sm:$0xff] }
 0x55c   : >> { %v2207_v10 = vadd.f32 %v2206_v16, %v14588_v57  ;;  %v2544_v12 = vadd.f32 %v2543_v26, %v2367_v19  ;;  %v2373_v37 = vmul.f32 %v14588_v57, %v14588_v57  ;;  %v14604_v42 = vadd.f32 %v15995_v61, %v15900_v35 }
 0x55d   : >> { %v3100_v50 = vmax.f32 %v3098_v38, %v3099_v2  ;;  %v2523_v30 = vadd.f32 %v2522_v62, %v2366_v21  ;;  %v2565_v63 = vadd.f32 %v2564_v20, %v2368_v31  ;;  %v14608_v25 = vadd.f32 %v15996_v11, %v15902_v8 }
 0x55e   : >> { %v14612_v7 = vadd.f32 %v15998_v5, %v15905_v1  ;;  %v2503_v26 = vadd.f32 %v2502_v56, %v2373_v37  ;;  %v2249_v38 = vadd.f32 %v2248_v43, %v14604_v42  ;;  %v2375_v2 = vmul.f32 %v14604_v42, %v14604_v42  ;;  %v16003_v37 = vld [vmem:[#allocation118_spill] sm:$0xff] }
 0x55f   : >> { %15997 = vst [vmem:[#allocation89_spill] sm:$0xff] %v14608_v25  ;;  %v3194_v16 = vcombine.low %v14331_v32, %v3100_v50  ;;  %v2228_v19 = vadd.f32 %v2227_v28, %v14608_v25  ;;  %v2374_v62 = vmul.f32 %v14608_v25, %v14608_v25  ;;  %v14629_v56 = vadd.f32 %v13945_v18, %v15908_v59  ;;  %v16001_v50 = vld [vmem:[#allocation117_spill] sm:$0xff] }
 0x560   : >> { %15999 = vst [vmem:[#allocation50_spill] sm:$0xff] %v14612_v7  ;;  %v2270_v11 = vadd.f32 %v2269_v44, %v14612_v7  ;;  %v2376_v20 = vmul.f32 %v14612_v7, %v14612_v7  ;;  %v2545_v32 = vadd.f32 %v2544_v12, %v2375_v2  ;;  %v14633_v43 = vadd.f32 %v13947_v41, %v15900_v35  ;;  %v16006_v12 = vld [vmem:[#allocation120_spill] sm:$0xff] }
 0x561   : >> { %v14625_v21 = vrot.slane %v3194_v16, %v15957_v46  ;;  %v2524_v28 = vadd.f32 %v2523_v30, %v2374_v62  ;;  %v14637_v44 = vadd.f32 %v16001_v50, %v15902_v8  ;;  %v14641_v61 = vadd.f32 %v16003_v37, %v15905_v1 }
 0x562   : >> { %v2566_v31 = vadd.f32 %v2565_v63, %v2376_v20  ;;  %v2208_v18 = vadd.f32 %v2207_v10, %v14629_v56  ;;  %v2381_v5 = vmul.f32 %v14629_v56, %v14629_v56  ;;  %v2250_v41 = vadd.f32 %v2249_v38, %v14633_v43  ;;  %v16005_v10 = vld [vmem:[#allocation119_spill] sm:$0xff] }
 0x563   : >> { %16000 = vst [vmem:[#allocation91_spill] sm:$0xff] %v14625_v21  ;;  %16002 = vst [vmem:[#allocation92_spill] sm:$0xff] %v14637_v44  ;;  %v2383_v63 = vmul.f32 %v14633_v43, %v14633_v43  ;;  %v2229_v30 = vadd.f32 %v2228_v19, %v14637_v44  ;;  %v2382_v16 = vmul.f32 %v14637_v44, %v14637_v44  ;;  %v16007_v19 = vld [vmem:[#allocation121_spill] sm:$0xff] }
 0x564   : >> { %16004 = vst [vmem:[#allocation93_spill] sm:$0xff] %v14641_v61  ;;  %v2271_v2 = vadd.f32 %v2270_v11, %v14641_v61  ;;  %v2504_v62 = vadd.f32 %v2503_v26, %v2381_v5  ;;  %v2384_v20 = vmul.f32 %v14641_v61, %v14641_v61  ;;  %v14659_v50 = vadd.f32 %v16005_v10, %v15908_v59  ;;  %v16009_v5 = vld [vmem:[#allocation122_spill] sm:$0xff] }
 0x565   : >> { %v2546_v37 = vadd.f32 %v2545_v32, %v2383_v63  ;;  %v2525_v38 = vadd.f32 %v2524_v28, %v2382_v16  ;;  %v14663_v21 = vadd.f32 %v16006_v12, %v15900_v35  ;;  %v14667_v54 = vadd.f32 %v16007_v19, %v15902_v8  ;;  %v16012_v61 = vld [vmem:[#allocation74_spill] sm:$0xff] }
 0x566   : >> { %v2567_v46 = vadd.f32 %v2566_v31, %v2384_v20  ;;  %v2209_v26 = vadd.f32 %v2208_v18, %v14659_v50  ;;  %v2389_v11 = vmul.f32 %v14659_v50, %v14659_v50  ;;  %v14674_v10 = vadd.f32 %v16009_v5, %v15905_v1  ;;  %v16011_v20 = vld [vmem:[#allocation72_spill] sm:$0xff] }
 0x567   : >> { %16008 = vst [vmem:[#allocation94_spill] sm:$0xff] %v14667_v54  ;;  %v2251_v32 = vadd.f32 %v2250_v41, %v14663_v21  ;;  %v2391_v28 = vmul.f32 %v14663_v21, %v14663_v21  ;;  %v2230_v12 = vadd.f32 %v2229_v30, %v14667_v54  ;;  %v2390_v63 = vmul.f32 %v14667_v54, %v14667_v54  ;;  %v16013_v30 = vld [vmem:[#allocation76_spill] sm:$0xff]  ;;  %v16018_v54 = vld [vmem:[#allocation123_spill] sm:$0xff] }
 0x568   : >> { %16010 = vst [vmem:[#allocation45_spill] sm:$0xff] %v14674_v10  ;;  %v2505_v31 = vadd.f32 %v2504_v62, %v2389_v11  ;;  %v2272_v18 = vadd.f32 %v2271_v2, %v14674_v10  ;;  %v2392_v16 = vmul.f32 %v14674_v10, %v14674_v10  ;;  %v14687_v19 = vadd.f32 %v16011_v20, %v15908_v59  ;;  %v16015_v10 = vld [vmem:[#allocation78_spill] sm:$0xff] }
 0x569   : >> { %v2547_v5 = vadd.f32 %v2546_v37, %v2391_v28  ;;  %v2526_v41 = vadd.f32 %v2525_v38, %v2390_v63  ;;  %v14691_v7 = vadd.f32 %v16012_v61, %v15900_v35  ;;  %v14695_v44 = vadd.f32 %v16013_v30, %v15902_v8 }
 0x56a   : >> { %v2568_v62 = vadd.f32 %v2567_v46, %v2392_v16  ;;  %v2210_v2 = vadd.f32 %v2209_v26, %v14687_v19  ;;  %v2397_v11 = vmul.f32 %v14687_v19, %v14687_v19  ;;  %v14702_v20 = vadd.f32 %v16015_v10, %v15905_v1  ;;  %v16017_v16 = vld [vmem:[#allocation80_spill] sm:$0xff] }
 0x56b   : >> { %16014 = vst [vmem:[#allocation95_spill] sm:$0xff] %v14695_v44  ;;  %v2252_v37 = vadd.f32 %v2251_v32, %v14691_v7  ;;  %v2399_v61 = vmul.f32 %v14691_v7, %v14691_v7  ;;  %v2231_v38 = vadd.f32 %v2230_v12, %v14695_v44  ;;  %v2398_v28 = vmul.f32 %v14695_v44, %v14695_v44  ;;  %v16019_v12 = vld [vmem:[#allocation124_spill] sm:$0xff] }
 0x56c   : >> { %16016 = vst [vmem:[#allocation96_spill] sm:$0xff] %v14702_v20  ;;  %v2506_v46 = vadd.f32 %v2505_v31, %v2397_v11  ;;  %v2273_v26 = vadd.f32 %v2272_v18, %v14702_v20  ;;  %v2400_v63 = vmul.f32 %v14702_v20, %v14702_v20  ;;  %v14715_v10 = vadd.f32 %v16017_v16, %v15908_v59  ;;  %v16021_v20 = vld [vmem:[#allocation125_spill] sm:$0xff] }
 0x56d   : >> { %v2548_v30 = vadd.f32 %v2547_v5, %v2399_v61  ;;  %v2527_v32 = vadd.f32 %v2526_v41, %v2398_v28  ;;  %v14719_v25 = vadd.f32 %v16018_v54, %v15900_v35  ;;  %v14723_v40 = vadd.f32 %v16019_v12, %v15902_v8 }
 0x56e   : >> { %v2569_v31 = vadd.f32 %v2568_v62, %v2400_v63  ;;  %v2211_v18 = vadd.f32 %v2210_v2, %v14715_v10  ;;  %v2405_v11 = vmul.f32 %v14715_v10, %v14715_v10  ;;  %v14730_v59 = vadd.f32 %v16021_v20, %v15905_v1 }
 0x56f   : >> { %16020 = vst [vmem:[#allocation97_spill] sm:$0xff] %v14723_v40  ;;  %v2253_v5 = vadd.f32 %v2252_v37, %v14719_v25  ;;  %v2407_v35 = vmul.f32 %v14719_v25, %v14719_v25  ;;  %v2232_v54 = vadd.f32 %v2231_v38, %v14723_v40  ;;  %v2406_v8 = vmul.f32 %v14723_v40, %v14723_v40 }
 0x570   : >> { %16022 = vst [vmem:[#allocation98_spill] sm:$0xff] %v14730_v59  ;;  %v2212_v41 = vrot.slane %v2211_v18, 4  ;;  %v2507_v62 = vadd.f32 %v2506_v46, %v2405_v11  ;;  %v2274_v2 = vadd.f32 %v2273_v26, %v14730_v59  ;;  %v2408_v61 = vmul.f32 %v14730_v59, %v14730_v59 }
 0x571   : >> { %v2254_v28 = vrot.slane %v2253_v5, 4  ;;  %v2549_v1 = vadd.f32 %v2548_v30, %v2407_v35  ;;  %v2233_v20 = vrot.slane %v2232_v54, 4  ;;  %v2528_v63 = vadd.f32 %v2527_v32, %v2406_v8 }
 0x572   : >> { %v2213_v37 = vadd.f32 %v2212_v41, %v2211_v18  ;;  %v2508_v16 = vrot.slane %v2507_v62, 4  ;;  %v2275_v12 = vrot.slane %v2274_v2, 4  ;;  %v2570_v44 = vadd.f32 %v2569_v31, %v2408_v61 }
 0x573   : >> { %v2255_v3 = vadd.f32 %v2254_v28, %v2253_v5  ;;  %v2550_v38 = vrot.slane %v2549_v1, 4  ;;  %v2234_v29 = vadd.f32 %v2233_v20, %v2232_v54  ;;  %v2529_v51 = vrot.slane %v2528_v63, 4 }
 0x574   : >> { %v2214_v40 = vrot.slane %v2213_v37, 2  ;;  %v2509_v52 = vadd.f32 %v2508_v16, %v2507_v62  ;;  %v2276_v46 = vadd.f32 %v2275_v12, %v2274_v2  ;;  %v2571_v11 = vrot.slane %v2570_v44, 4 }
 0x575   : >> { %v2256_v26 = vrot.slane %v2255_v3, 2  ;;  %v2551_v47 = vadd.f32 %v2550_v38, %v2549_v1  ;;  %v2235_v14 = vrot.slane %v2234_v29, 2  ;;  %v2530_v59 = vadd.f32 %v2529_v51, %v2528_v63 }
 0x576   : >> { %v2215_v6 = vadd.f32 %v2214_v40, %v2213_v37  ;;  %v2510_v30 = vrot.slane %v2509_v52, 2  ;;  %v2277_v35 = vrot.slane %v2276_v46, 2  ;;  %v2572_v32 = vadd.f32 %v2571_v11, %v2570_v44 }
 0x577   : >> { %v2257_v18 = vadd.f32 %v2256_v26, %v2255_v3  ;;  %v2552_v8 = vrot.slane %v2551_v47, 2  ;;  %v2236_v41 = vadd.f32 %v2235_v14, %v2234_v29  ;;  %v2531_v31 = vrot.slane %v2530_v59, 2  ;;  %v16023_v26 = vld [vmem:[#allocation60_spill] sm:$0xff] }
 0x578   : >> { %v2216_v5 = vrot.slane %v2215_v6, 1  ;;  %v2511_v61 = vadd.f32 %v2510_v30, %v2509_v52  ;;  %v2278_v54 = vadd.f32 %v2277_v35, %v2276_v46  ;;  %v2573_v28 = vrot.slane %v2572_v32, 2  ;;  %v16024_v35 = vld [vmem:[#allocation66_spill] sm:$0xff] }
 0x579   : >> { %v2258_v20 = vrot.slane %v2257_v18, 1  ;;  %v2553_v62 = vadd.f32 %v2552_v8, %v2551_v47  ;;  %v2237_v2 = vrot.slane %v2236_v41, 1  ;;  %v2532_v16 = vadd.f32 %v2531_v31, %v2530_v59 }
 0x57a   : >> { %v2217_v12 = vadd.f32 %v2216_v5, %v2215_v6  ;;  %v2512_v1 = vrot.slane %v2511_v61, 1  ;;  %v2279_v38 = vrot.slane %v2278_v54, 1  ;;  %v14745_v29 = vadd.f32 %v2573_v28, %v2572_v32  ;;  %v16032_v28 = vld [vmem:[#allocation62_spill] sm:$0xff] }
 0x57b   : >> { %v2259_v51 = vadd.f32 %v2258_v20, %v2257_v18  ;;  %v2554_v40 = vrot.slane %v2553_v62, 1  ;;  %v2238_v63 = vadd.f32 %v2237_v2, %v2236_v41  ;;  %v2533_v37 = vrot.slane %v2532_v16, 1  ;;  %v16029_v2 = vld [vmem:[#allocation71_spill] sm:$0xff] }
 0x57c   : >> { %v2513_v44 = vadd.f32 %v2512_v1, %v2511_v61  ;;  %v14741_v3 = vmul.f32 0.0078125, %v2217_v12  ;;  %v14743_v14 = vadd.f32 %v2279_v38, %v2278_v54  ;;  %v16025_v38 = vld [vmem:[#allocation49_spill] sm:$0xff]  ;;  %v16031_v20 = vld [vmem:[#allocation79_spill] sm:$0xff]  ;;  %v16034_v54 = vld [vmem:[#allocation88_spill] sm:$0xff]  ;;  %v2575_v18 = vrot.slane %v14745_v29, 1 }
 0x57d   : >> { %v2555_v52 = vadd.f32 %v2554_v40, %v2553_v62  ;;  %v14747_v46 = vmul.f32 0.0078125, %v2259_v51  ;;  %v2534_v47 = vadd.f32 %v2533_v37, %v2532_v16  ;;  %v14749_v11 = vmul.f32 0.0078125, %v2238_v63  ;;  %v16035_v61 = vld [vmem:[#allocation89_spill] sm:$0xff] }
 0x57e   : >> { %v2589_v6 = vmul.f32 0.0078125, %v2513_v44  ;;  %v2597_v59 = vmul.f32 %v14741_v3, %v14741_v3  ;;  %v14854_v16 = vmul.f32 0.0078125, %v14743_v14  ;;  %v16041_v31 = vsub.f32 %v16023_v26, %v14741_v3 }
 0x57f   : >> { %v2591_v40 = vmul.f32 0.0078125, %v2555_v52  ;;  %v2599_v63 = vmul.f32 %v14747_v46, %v14747_v46  ;;  %v2598_v51 = vmul.f32 %v14749_v11, %v14749_v11  ;;  %v16042_v8 = vsub.f32 %v16024_v35, %v14741_v3 }
 0x580   : >> { %v2605_v5 = vsub.f32 %v2589_v6, %v2597_v59  ;;  %v16026_v59 = vld [vmem:[#allocation57_spill] sm:$0xff]  ;;  %v16043_v44 = vsub.f32 %v14182_v34, %v14741_v3  ;;  %v16046_v26 = vsub.f32 %v14407_v36, %v14741_v3  ;;  %v16047_v35 = vsub.f32 %v14437_v27, %v14741_v3 }
 0x581   : >> { %v2607_v52 = vsub.f32 %v2591_v40, %v2599_v63  ;;  %v16045_v63 = vsub.f32 %v14381_v9, %v14741_v3  ;;  %v16048_v34 = vsub.f32 %v14471_v45, %v14741_v3  ;;  %v16050_v9 = vsub.f32 %v14535_v55, %v14741_v3 }
 0x582   : >> { %v2613_v12 = vmax.f32 %v2605_v5, 0.0  ;;  %v2590_v5 = vmul.f32 0.0078125, %v2534_v47  ;;  %v16051_v36 = vsub.f32 %v14563_v58, %v14741_v3  ;;  %v16052_v45 = vsub.f32 %v14588_v57, %v14741_v3 }
 0x583   : >> { %v2615_v40 = vmax.f32 %v2607_v52, 0.0  ;;  %v16054_v55 = vsub.f32 %v14659_v50, %v14741_v3  ;;  %v16056_v58 = vsub.f32 %v14687_v19, %v14741_v3  ;;  %v16058_v57 = vsub.f32 %v14715_v10, %v14741_v3 }
 0x584   : >> { %v2749_v6 = vadd.f32 1e-05, %v2613_v12  ;;  %v2606_v1 = vsub.f32 %v2590_v5, %v2598_v51  ;;  %v16028_v12 = vld [vmem:[#allocation65_spill] sm:$0xff]  ;;  %v16033_v5 = vld [vmem:[#allocation87_spill] sm:$0xff]  ;;  %v2576_v50 = vadd.f32 %v2575_v18, %v14745_v29  ;;  %v16061_v10 = vsub.f32 %v14219_v24, %v14747_v46 }
 0x585   : >> { %v2751_v52 = vadd.f32 1e-05, %v2615_v40  ;;  %v16030_v40 = vld [vmem:[#allocation75_spill] sm:$0xff]  ;;  %v16063_v29 = vsub.f32 %v14385_v22, %v14747_v46  ;;  %v16067_v22 = vsub.f32 %v14510_v15, %v14747_v46  ;;  %v16071_v15 = vsub.f32 %v14633_v43, %v14747_v46 }
 0x586   : >> { %11295 = vrsqrt.f32 %v2749_v6  ;;  %v16027_v6 = vld [vmem:[#allocation61_spill] sm:$0xff]  ;;  %v2614_v51 = vmax.f32 %v2606_v1, 0.0 }
 0x587   : >> { %11297 = vrsqrt.f32 %v2751_v52  ;;  %v16036_v52 = vld [vmem:[#allocation92_spill] sm:$0xff] }
 0x588   : >> { %v2750_v47 = vadd.f32 1e-05, %v2614_v51  ;;  %v16044_v51 = vsub.f32 %v14347_v60, %v14741_v3  ;;  %v16049_v60 = vsub.f32 %v14503_v0, %v14741_v3  ;;  %v16053_v0 = vsub.f32 %v14629_v56, %v14741_v3 }
 0x58a   : >> { %11299 = vrsqrt.f32 %v2750_v47 }
 0x590   : >> { %v11296_v32 = vpop.eup %11295 }
 0x591   : >> { %v2765_v41 = vmul.f32 %v11296_v32, %v16041_v31  ;;  %v2773_v37 = vmul.f32 %v11296_v32, %v16042_v8  ;;  %v2781_v14 = vmul.f32 %v11296_v32, %v16043_v44  ;;  %v2789_v1 = vmul.f32 %v11296_v32, %v16044_v51 }
 0x592   : >> { %v2797_v30 = vmul.f32 %v11296_v32, %v16045_v63  ;;  %v2805_v31 = vmul.f32 %v11296_v32, %v16046_v26  ;;  %v2813_v8 = vmul.f32 %v11296_v32, %v16047_v35  ;;  %v14883_v44 = vmul.f32 %v11296_v32, %v16048_v34 }
 0x593   : >> { %v14888_v51 = vmul.f32 %v11296_v32, %v16049_v60  ;;  %v14893_v63 = vmul.f32 %v11296_v32, %v16050_v9  ;;  %v14898_v27 = vmul.f32 %v11296_v32, %v16051_v36  ;;  %v14903_v26 = vmul.f32 %v11296_v32, %v16052_v45  ;;  %v11298_v36 = vpop.eup %11297 }
 0x594   : >> { %v14908_v35 = vmul.f32 %v11296_v32, %v16053_v0  ;;  %v14913_v34 = vmul.f32 %v11296_v32, %v16054_v55  ;;  %v14918_v60 = vmul.f32 %v11296_v32, %v16056_v58  ;;  %v14923_v9 = vmul.f32 %v11296_v32, %v16058_v57 }
 0x595   : >> { %v2893_v45 = vmax.f32 %v2765_v41, 0.0  ;;  %v2901_v56 = vmax.f32 %v2773_v37, 0.0  ;;  %v2909_v0 = vmax.f32 %v2781_v14, 0.0  ;;  %v2917_v62 = vmax.f32 %v2789_v1, 0.0 }
 0x596   : >> { %16055 = vst [vmem:[#allocation99_spill] sm:$0xff] %v14913_v34  ;;  %16057 = vst [vmem:[#allocation100_spill] sm:$0xff] %v14918_v60  ;;  %v16059_v34 = vsub.f32 %v13730_v49, %v14747_v46  ;;  %v16060_v58 = vsub.f32 %v14170_v53, %v14747_v46  ;;  %v2783_v3 = vmul.f32 %v11298_v36, %v16061_v10 }
 0x597   : >> { %v3101_v55 = vmax.f32 %v2893_v45, %v2901_v56  ;;  %v16062_v32 = vsub.f32 %v14351_v17, %v14747_v46  ;;  %v2799_v18 = vmul.f32 %v11298_v36, %v16063_v29  ;;  %v16064_v49 = vsub.f32 %v14411_v4, %v14747_v46 }
 0x598   : >> { %v2767_v19 = vmul.f32 %v11298_v36, %v16059_v34  ;;  %v2775_v60 = vmul.f32 %v11298_v36, %v16060_v58  ;;  %v16065_v53 = vsub.f32 %v14441_v13, %v14747_v46  ;;  %v16066_v1 = vsub.f32 %v14475_v39, %v14747_v46 }
 0x599   : >> { %v2791_v41 = vmul.f32 %v11298_v36, %v16062_v32  ;;  %v14944_v37 = vmul.f32 %v11298_v36, %v16064_v49  ;;  %v3102_v24 = vmax.f32 %v3101_v55, %v2909_v0  ;;  %v14959_v14 = vmul.f32 %v11298_v36, %v16067_v22 }
 0x59a   : >> { %v14949_v47 = vmul.f32 %v11298_v36, %v16065_v53  ;;  %v14954_v17 = vmul.f32 %v11298_v36, %v16066_v1  ;;  %v16068_v4 = vsub.f32 %v14539_v33, %v14747_v46  ;;  %v16069_v13 = vsub.f32 %v14576_v48, %v14747_v46  ;;  %v11300_v53 = vpop.eup %11299 }
 0x59b   : >> { %v16070_v39 = vsub.f32 %v14604_v42, %v14747_v46  ;;  %v14979_v56 = vmul.f32 %v11298_v36, %v16071_v15  ;;  %v16072_v33 = vsub.f32 %v14663_v21, %v14747_v46  ;;  %v2925_v55 = vmax.f32 %v2797_v30, 0.0 }
 0x59c   : >> { %v14964_v34 = vmul.f32 %v11298_v36, %v16068_v4  ;;  %v14969_v57 = vmul.f32 %v11298_v36, %v16069_v13  ;;  %v3103_v58 = vmax.f32 %v3102_v24, %v2917_v62  ;;  %v16073_v48 = vsub.f32 %v14691_v7, %v14747_v46 }
 0x59d   : >> { %v14974_v45 = vmul.f32 %v11298_v36, %v16070_v39  ;;  %v14984_v0 = vmul.f32 %v11298_v36, %v16072_v33  ;;  %v16074_v42 = vsub.f32 %v14719_v25, %v14747_v46  ;;  %v2895_v43 = vmax.f32 %v2767_v19, 0.0 }
 0x59e   : >> { %v14989_v10 = vmul.f32 %v11298_v36, %v16073_v48  ;;  %v2903_v29 = vmax.f32 %v2775_v60, 0.0  ;;  %v14996_v49 = vmul.f32 0.0078125, %v2576_v50  ;;  %v2933_v21 = vmax.f32 %v2805_v31, 0.0 }
 0x59f   : >> { %v14994_v32 = vmul.f32 %v11298_v36, %v16074_v42  ;;  %v2941_v1 = vmax.f32 %v2813_v8, 0.0  ;;  %v3104_v22 = vmax.f32 %v3103_v58, %v2925_v55  ;;  %v15000_v30 = vmul.f32 %v14854_v16, %v14854_v16 }
 0x5a0   : >> { %v2949_v7 = vmax.f32 %v14883_v44, 0.0  ;;  %v2957_v62 = vmax.f32 %v14888_v51, 0.0  ;;  %v2965_v25 = vmax.f32 %v14893_v63, 0.0  ;;  %v2973_v46 = vmax.f32 %v14898_v27, 0.0 }
 0x5a1   : >> { %v2981_v60 = vmax.f32 %v14903_v26, 0.0  ;;  %v3105_v36 = vmax.f32 %v3104_v22, %v2933_v21  ;;  %v2911_v50 = vmax.f32 %v2783_v3, 0.0  ;;  %v2919_v19 = vmax.f32 %v2791_v41, 0.0 }
 0x5a2   : >> { %v2927_v31 = vmax.f32 %v2799_v18, 0.0  ;;  %v3143_v8 = vmax.f32 %v2895_v43, %v2903_v29  ;;  %v16075_v24 = vsub.f32 %v15896_v23, %v14749_v11  ;;  %v16076_v44 = vsub.f32 %v16025_v38, %v14749_v11 }
 0x5a3   : >> { %v3106_v51 = vmax.f32 %v3105_v36, %v2941_v1  ;;  %v16077_v63 = vsub.f32 %v16026_v59, %v14749_v11  ;;  %v16078_v26 = vsub.f32 %v16027_v6, %v14749_v11  ;;  %v16079_v41 = vsub.f32 %v16028_v12, %v14749_v11  ;;  %v16088_v1 = vld [vmem:[#allocation94_spill] sm:$0xff]  ;;  %v16090_v36 = vld [vmem:[#allocation95_spill] sm:$0xff] }
 0x5a4   : >> { %v2766_v4 = vmul.f32 %v11300_v53, %v16075_v24  ;;  %v2774_v13 = vmul.f32 %v11300_v53, %v16076_v44  ;;  %v3144_v23 = vmax.f32 %v3143_v8, %v2911_v50  ;;  %v16080_v39 = vsub.f32 %v16029_v2, %v14749_v11 }
 0x5a5   : >> { %v2782_v27 = vmul.f32 %v11300_v53, %v16077_v63  ;;  %v2790_v3 = vmul.f32 %v11300_v53, %v16078_v26  ;;  %v15022_v18 = vmul.f32 %v11300_v53, %v16079_v41  ;;  %v16081_v15 = vsub.f32 %v16030_v40, %v14749_v11 }
 0x5a6   : >> { %v15027_v38 = vmul.f32 %v11300_v53, %v16080_v39  ;;  %v16082_v6 = vsub.f32 %v16031_v20, %v14749_v11  ;;  %v3107_v55 = vmax.f32 %v3106_v51, %v2949_v7  ;;  %v16083_v12 = vsub.f32 %v16032_v28, %v14749_v11  ;;  %v16095_v51 = vld [vmem:[#allocation100_spill] sm:$0xff] }
 0x5a7   : >> { %v15032_v59 = vmul.f32 %v11300_v53, %v16081_v15  ;;  %v16084_v2 = vsub.f32 %v16033_v5, %v14749_v11  ;;  %v16085_v40 = vsub.f32 %v16034_v54, %v14749_v11  ;;  %v3145_v43 = vmax.f32 %v3144_v23, %v2919_v19 }
 0x5a8   : >> { %v15037_v33 = vmul.f32 %v11300_v53, %v16082_v6  ;;  %v15042_v58 = vmul.f32 %v11300_v53, %v16083_v12  ;;  %v16086_v20 = vsub.f32 %v16035_v61, %v14749_v11  ;;  %v16087_v28 = vsub.f32 %v16036_v52, %v14749_v11  ;;  %v16092_v61 = vld [vmem:[#allocation97_spill] sm:$0xff]  ;;  %v16094_v52 = vld [vmem:[#allocation99_spill] sm:$0xff] }
 0x5a9   : >> { %v15047_v48 = vmul.f32 %v11300_v53, %v16084_v2  ;;  %v15052_v42 = vmul.f32 %v11300_v53, %v16085_v40  ;;  %v16089_v5 = vsub.f32 %v16088_v1, %v14749_v11  ;;  %v2989_v54 = vmax.f32 %v14908_v35, 0.0 }
 0x5aa   : >> { %v15057_v29 = vmul.f32 %v11300_v53, %v16086_v20  ;;  %v15062_v21 = vmul.f32 %v11300_v53, %v16087_v28  ;;  %v3108_v7 = vmax.f32 %v3107_v55, %v2957_v62  ;;  %v16091_v50 = vsub.f32 %v16090_v36, %v14749_v11  ;;  %v16100_v28 = vld [vmem:[#allocation73_spill] sm:$0xff] }
 0x5ab   : >> { %v15067_v22 = vmul.f32 %v11300_v53, %v16089_v5  ;;  %v16093_v8 = vsub.f32 %v16092_v61, %v14749_v11  ;;  %v2997_v44 = vmax.f32 %v16094_v52, 0.0  ;;  %v3005_v63 = vmax.f32 %v16095_v51, 0.0  ;;  %v16104_v51 = vld [vmem:[#allocation54_spill] sm:$0xff] }
 0x5ac   : >> { %v15073_v19 = vmul.f32 %v11300_v53, %v16091_v50  ;;  %v2935_v26 = vmax.f32 %v14944_v37, 0.0  ;;  %v3146_v41 = vmax.f32 %v3145_v43, %v2927_v31  ;;  %v3013_v35 = vmax.f32 %v14923_v9, 0.0  ;;  %v16103_v50 = vld [vmem:[#allocation51_spill] sm:$0xff] }
 0x5ad   : >> { %v15078_v24 = vmul.f32 %v11300_v53, %v16093_v8  ;;  %v3109_v62 = vmax.f32 %v3108_v7, %v2965_v25  ;;  %v2894_v23 = vmax.f32 %v2766_v4, 0.0  ;;  %v2902_v39 = vmax.f32 %v2774_v13, 0.0  ;;  %v16102_v7 = vld [vmem:[#allocation81_spill] sm:$0xff] }
 0x5ae   : >> { %v2943_v15 = vmax.f32 %v14949_v47, 0.0  ;;  %v2951_v6 = vmax.f32 %v14954_v17, 0.0  ;;  %v2959_v11 = vmax.f32 %v14959_v14, 0.0  ;;  %v3147_v53 = vmax.f32 %v3146_v41, %v2935_v26  ;;  %v16096_v17 = vld [vmem:[#allocation53_spill] sm:$0xff]  ;;  %v16105_v26 = vld [vmem:[#allocation55_spill] sm:$0xff] }
 0x5af   : >> { %v3110_v55 = vmax.f32 %v3109_v62, %v2973_v46  ;;  %v2967_v12 = vmax.f32 %v14964_v34, 0.0  ;;  %v2975_v2 = vmax.f32 %v14969_v57, 0.0  ;;  %v2910_v40 = vmax.f32 %v2782_v27, 0.0  ;;  %v16097_v34 = vld [vmem:[#allocation59_spill] sm:$0xff] }
 0x5b0   : >> { %v3148_v37 = vmax.f32 %v3147_v53, %v2943_v15  ;;  %v2918_v31 = vmax.f32 %v2790_v3, 0.0  ;;  %v2926_v9 = vmax.f32 %v15022_v18, 0.0  ;;  %v2934_v25 = vmax.f32 %v15027_v38, 0.0  ;;  %v16098_v57 = vld [vmem:[#allocation63_spill] sm:$0xff]  ;;  %v16107_v15 = vld [vmem:[#allocation93_spill] sm:$0xff] }
 0x5b1   : >> { %v3111_v4 = vmax.f32 %v3110_v55, %v2981_v60  ;;  %v3122_v13 = vmax.f32 %v2894_v23, %v2902_v39  ;;  %v2608_v47 = vsub.f32 %v14996_v49, %v15000_v30  ;;  %v2632_v14 = vsub.f32 %v16096_v17, %v14854_v16  ;;  %v16099_v3 = vld [vmem:[#allocation67_spill] sm:$0xff]  ;;  %v16101_v30 = vld [vmem:[#allocation77_spill] sm:$0xff]  ;;  %v16106_v23 = vld [vmem:[#allocation50_spill] sm:$0xff] }
 0x5b2   : >> { %v3149_v46 = vmax.f32 %v3148_v37, %v2951_v6  ;;  %v2640_v43 = vsub.f32 %v16097_v34, %v14854_v16  ;;  %v2648_v27 = vsub.f32 %v16098_v57, %v14854_v16  ;;  %v2656_v18 = vsub.f32 %v16099_v3, %v14854_v16 }
 0x5b3   : >> { %v3112_v20 = vmax.f32 %v3111_v4, %v2989_v54  ;;  %v3123_v38 = vmax.f32 %v3122_v13, %v2910_v40  ;;  %v2616_v60 = vmax.f32 %v2608_v47, 0.0  ;;  %v2664_v1 = vsub.f32 %v16100_v28, %v14854_v16 }
 0x5b4   : >> { %v3150_v49 = vmax.f32 %v3149_v46, %v2959_v11  ;;  %v2672_v5 = vsub.f32 %v16101_v30, %v14854_v16  ;;  %v2680_v36 = vsub.f32 %v16102_v7, %v14854_v16  ;;  %v2688_v61 = vsub.f32 %v16103_v50, %v14854_v16  ;;  %v16108_v11 = vld [vmem:[#allocation45_spill] sm:$0xff] }
 0x5b5   : >> { %v3113_v8 = vmax.f32 %v3112_v20, %v2997_v44  ;;  %v3124_v52 = vmax.f32 %v3123_v38, %v2918_v31  ;;  %v2696_v54 = vsub.f32 %v16104_v51, %v14854_v16  ;;  %v2704_v41 = vsub.f32 %v16105_v26, %v14854_v16  ;;  %v16109_v44 = vld [vmem:[#allocation96_spill] sm:$0xff]  ;;  %v16110_v31 = vld [vmem:[#allocation98_spill] sm:$0xff] }
 0x5b6   : >> { %v3151_v62 = vmax.f32 %v3150_v49, %v2967_v12  ;;  %v2712_v39 = vsub.f32 %v16106_v23, %v14854_v16  ;;  %v2720_v6 = vsub.f32 %v16107_v15, %v14854_v16  ;;  %v2728_v53 = vsub.f32 %v16108_v11, %v14854_v16 }
 0x5b7   : >> { %v3114_v55 = vmax.f32 %v3113_v8, %v3005_v63  ;;  %v3125_v40 = vmax.f32 %v3124_v52, %v2926_v9  ;;  %v2736_v37 = vsub.f32 %v16109_v44, %v14854_v16  ;;  %v2744_v4 = vsub.f32 %v16110_v31, %v14854_v16 }
 0x5b8   : >> { %v2983_v13 = vmax.f32 %v14974_v45, 0.0  ;;  %v3152_v12 = vmax.f32 %v3151_v62, %v2975_v2  ;;  %v2752_v47 = vadd.f32 1e-05, %v2616_v60  ;;  %v2942_v46 = vmax.f32 %v15032_v59, 0.0 }
 0x5b9   : >> { %v3115_v17 = vmax.f32 %v3114_v55, %v3013_v35  ;;  %v3126_v34 = vmax.f32 %v3125_v40, %v2934_v25  ;;  %v2991_v57 = vmax.f32 %v14979_v56, 0.0  ;;  %v2950_v63 = vmax.f32 %v15037_v33, 0.0 }
 0x5ba   : >> { %v3153_v3 = vmax.f32 %v3152_v12, %v2983_v13  ;;  %11301 = vrsqrt.f32 %v2752_v47  ;;  %v2999_v20 = vmax.f32 %v14984_v0, 0.0  ;;  %v2958_v28 = vmax.f32 %v15042_v58, 0.0 }
 0x5bb   : >> { %v3127_v9 = vmax.f32 %v3126_v34, %v2942_v46  ;;  %v3007_v45 = vmax.f32 %v14989_v10, 0.0  ;;  %v2966_v35 = vmax.f32 %v15047_v48, 0.0  ;;  %v3015_v25 = vmax.f32 %v14994_v32, 0.0  ;;  %v16111_v48 = vld [vmem:[#allocation64_spill] sm:$0xff] }
 0x5bc   : >> { %v3154_v38 = vmax.f32 %v3153_v3, %v2991_v57  ;;  %v2974_v60 = vmax.f32 %v15052_v42, 0.0  ;;  %v3116_v33 = vrot.slane %v3115_v17, 4  ;;  %v2982_v0 = vmax.f32 %v15057_v29, 0.0 }
 0x5bd   : >> { %v3128_v49 = vmax.f32 %v3127_v9, %v2950_v63  ;;  %v2990_v8 = vmax.f32 %v15062_v21, 0.0  ;;  %v2998_v10 = vmax.f32 %v15067_v22, 0.0  ;;  %v16112_v51 = vsub.f32 %v16111_v48, %v14854_v16 }
 0x5be   : >> { %v3155_v2 = vmax.f32 %v3154_v38, %v2999_v20  ;;  %v3117_v62 = vmax.f32 %v3115_v17, %v3116_v33  ;;  %v3006_v44 = vmax.f32 %v15073_v19, 0.0 }
 0x5bf   : >> { %v3129_v59 = vmax.f32 %v3128_v49, %v2958_v28 }
 0x5c0   : >> { %v3156_v56 = vmax.f32 %v3155_v2, %v3007_v45 }
 0x5c1   : >> { %v3130_v30 = vmax.f32 %v3129_v59, %v2966_v35 }
 0x5c2   : >> { %v15133_v7 = vmax.f32 %v3156_v56, %v3015_v25 }
 0x5c3   : >> { %v3131_v50 = vmax.f32 %v3130_v30, %v2974_v60 }
 0x5c4   : >> { %v11302_v58 = vpop.eup %11301  ;;  %v3158_v33 = vrot.slane %v15133_v7, 4 }
 0x5c5   : >> { %v3132_v52 = vmax.f32 %v3131_v50, %v2982_v0  ;;  %v2768_v32 = vmul.f32 %v11302_v58, %v16112_v51  ;;  %v2776_v26 = vmul.f32 %v11302_v58, %v2632_v14  ;;  %v2784_v42 = vmul.f32 %v11302_v58, %v2640_v43 }
 0x5c6   : >> { %v2792_v23 = vmul.f32 %v11302_v58, %v2648_v27  ;;  %v2800_v15 = vmul.f32 %v11302_v58, %v2656_v18  ;;  %v2808_v55 = vmul.f32 %v11302_v58, %v2664_v1  ;;  %v2816_v40 = vmul.f32 %v11302_v58, %v2672_v5 }
 0x5c7   : >> { %v3133_v11 = vmax.f32 %v3132_v52, %v2990_v8  ;;  %v2824_v29 = vmul.f32 %v11302_v58, %v2680_v36  ;;  %v2832_v31 = vmul.f32 %v11302_v58, %v2688_v61  ;;  %v2840_v21 = vmul.f32 %v11302_v58, %v2696_v54 }
 0x5c8   : >> { %v2848_v13 = vmul.f32 %v11302_v58, %v2704_v41  ;;  %v2856_v12 = vmul.f32 %v11302_v58, %v2712_v39  ;;  %v2864_v47 = vmul.f32 %v11302_v58, %v2720_v6  ;;  %v2872_v46 = vmul.f32 %v11302_v58, %v2728_v53 }
 0x5c9   : >> { %v3134_v22 = vmax.f32 %v3133_v11, %v2998_v10  ;;  %v2880_v16 = vmul.f32 %v11302_v58, %v2736_v37  ;;  %v2888_v34 = vmul.f32 %v11302_v58, %v2744_v4  ;;  %v3118_v14 = vrot.slane %v3117_v62, 2 }
 0x5ca   : >> { %v3014_v43 = vmax.f32 %v15078_v24, 0.0  ;;  %v2896_v18 = vmax.f32 %v2768_v32, 0.0  ;;  %v2904_v17 = vmax.f32 %v2776_v26, 0.0  ;;  %v2912_v57 = vmax.f32 %v2784_v42, 0.0 }
 0x5cb   : >> { %v3135_v27 = vmax.f32 %v3134_v22, %v3006_v44  ;;  %v3119_v5 = vmax.f32 %v3117_v62, %v3118_v14  ;;  %v2920_v54 = vmax.f32 %v2792_v23, 0.0  ;;  %v2928_v6 = vmax.f32 %v2800_v15, 0.0 }
 0x5cc   : >> { %v3164_v19 = vmax.f32 %v2896_v18, %v2904_v17  ;;  %v2936_v4 = vmax.f32 %v2808_v55, 0.0  ;;  %v2944_v20 = vmax.f32 %v2816_v40, 0.0  ;;  %v2952_v49 = vmax.f32 %v2824_v29, 0.0  ;;  %v11303_v17 = vld [vmem:[#allocation14 + $0x4] ss:$16 sps:$4 sm:$0xff] (%p610_p0)  }
 0x5cd   : >> { %v3136_v1 = vmax.f32 %v3135_v27, %v3014_v43  ;;  %v3120_v3 = vrot.slane %v3119_v5, 1  ;;  %v2960_v35 = vmax.f32 %v2832_v31, 0.0  ;;  %v2968_v25 = vmax.f32 %v2840_v21, 0.0  ;;  %4864 = vmatprep.subr.bf16.mxu0 (%p610_p0), %v11303_v17  ;;  %v11386_v17 = vld [vmem:[#allocation14 + $0x1a8] ss:$16 sps:$4 sm:$0xff] (%p610_p0)  }
 0x5ce   : >> { %v3165_v41 = vmax.f32 %v3164_v19, %v2912_v57  ;;  %v2976_v60 = vmax.f32 %v2848_v13, 0.0  ;;  %v2984_v0 = vmax.f32 %v2856_v12, 0.0  ;;  %v2992_v58 = vmax.f32 %v2864_v47, 0.0  ;;  %v11309_v57 = vld [vmem:[#allocation14 + $0x24] ss:$16 sps:$4 sm:$0xff] (%p610_p0)  }
 0x5cf   : >> { %v3137_v36 = vrot.slane %v3136_v1, 4  ;;  %v3121_v9 = vmax.f32 %v3119_v5, %v3120_v3  ;;  %v3159_v10 = vmax.f32 %v15133_v7, %v3158_v33  ;;  %v3000_v52 = vmax.f32 %v2872_v46, 0.0  ;;  %v16113_v7 = vld [vmem:[#allocation90_spill] sm:$0xff]  ;;  %v11307_v5 = vld [vmem:[#allocation14] ss:$16 sps:$4 sm:$0xff] (%p610_p0)  }
 0x5d0   : >> { %v3166_v53 = vmax.f32 %v3165_v41, %v2920_v54  ;;  %v3008_v51 = vmax.f32 %v2880_v16, 0.0  ;;  %v3016_v62 = vmax.f32 %v2888_v34, 0.0  ;;  %v16114_v16 = vld [vmem:[#allocation69_spill] sm:$0xff]  ;;  %v16115_v34 = vld [vmem:[#allocation91_spill] sm:$0xff]  ;;  %4865 = vmatpush1.bf16.msra.mxu0 (%p610_p0), %v11307_v5  ;;  %v11314_v54 = vld [vmem:[#allocation14 + $0x28] ss:$16 sps:$4 sm:$0xff] (%p610_p0)  }
 0x5d1   : >> { %v3138_v61 = vmax.f32 %v3136_v1, %v3137_v36  ;;  %v3160_v26 = vrot.slane %v3159_v10, 2  ;;  %v16116_v14 = vcombine.low %v16114_v16, %v16115_v34  ;;  %v11305_v1 = vld [vmem:[#allocation14 + $0xc] ss:$16 sps:$4 sm:$0xff] (%p610_p0)   ;;  %v11308_v36 = vld [vmem:[#allocation14 + $0x8] ss:$16 sps:$4 sm:$0xff] (%p610_p0)   ;;  %4866 = vmatprep.subr.bf16.mxu0 (%p610_p0), %v11309_v57 }
 0x5d2   : >> { %v3167_v63 = vmax.f32 %v3166_v53, %v2928_v6  ;;  %5028 = vmatprep.subr.bf16.mxu1 (%p610_p0), %v11305_v1  ;;  %v11311_v19 = vld [vmem:[#allocation14 + $0x2c] ss:$16 sps:$4 sm:$0xff] (%p610_p0)   ;;  %v11315_v41 = vld [vmem:[#allocation14 + $0x44] ss:$16 sps:$4 sm:$0xff] (%p610_p0)   ;;  %v11320_v6 = vld [vmem:[#allocation14 + $0x48] ss:$16 sps:$4 sm:$0xff] (%p610_p0)  }
 0x5d3   : >> { %v3139_v39 = vrot.slane %v3138_v61, 2  ;;  %v3161_v15 = vmax.f32 %v3159_v10, %v3160_v26  ;;  %v3233_v43 = vrot.slane %v16116_v14, %v16113_v7  ;;  %5029 = vmatpush1.bf16.msra.mxu1 (%p610_p0), %v11308_v36  ;;  %v11317_v3 = vld [vmem:[#allocation14 + $0x4c] ss:$16 sps:$4 sm:$0xff] (%p610_p0)   ;;  %v11321_v53 = vld [vmem:[#allocation14 + $0x64] ss:$16 sps:$4 sm:$0xff] (%p610_p0)  }
 0x5d4   : >> { %v3168_v38 = vmax.f32 %v3167_v63, %v2936_v4  ;;  %5030 = vmatprep.subr.bf16.mxu1 (%p610_p0), %v11311_v19  ;;  %v11325_v4 = vld [vmem:[#allocation14 + $0x60] ss:$16 sps:$4 sm:$0xff] (%p610_p0)   ;;  %v11326_v63 = vld [vmem:[#allocation14 + $0x68] ss:$16 sps:$4 sm:$0xff] (%p610_p0)   ;;  %v11387_v1 = vld [vmem:[#allocation14 + $0x1c4] ss:$16 sps:$4 sm:$0xff] (%p610_p0)  }
 0x5d5   : >> { %v3140_v37 = vmax.f32 %v3138_v61, %v3139_v39  ;;  %v3162_v40 = vrot.slane %v3161_v15, 1  ;;  %v11313_v61 = vld [vmem:[#allocation14 + $0x20] ss:$16 sps:$4 sm:$0xff] (%p610_p0)   ;;  %v11356_v10 = vld [vmem:[#allocation14 + $0x108] ss:$16 sps:$4 sm:$0xff] (%p610_p0)  }
 0x5d6   : >> { %v3169_v45 = vmax.f32 %v3168_v38, %v2944_v20  ;;  %v11319_v39 = vld [vmem:[#allocation14 + $0x40] ss:$16 sps:$4 sm:$0xff] (%p610_p0)   ;;  %4867 = vmatpush1.bf16.msra.mxu0 (%p610_p0), %v11313_v61  ;;  %v11332_v38 = vld [vmem:[#allocation14 + $0x88] ss:$16 sps:$4 sm:$0xff] (%p610_p0)   ;;  %v11389_v5 = vld [vmem:[#allocation14 + $0x1cc] ss:$16 sps:$4 sm:$0xff] (%p610_p0)  }
 0x5d7   : >> { %v3141_v24 = vrot.slane %v3140_v37, 1  ;;  %v3163_v31 = vmax.f32 %v3161_v15, %v3162_v40  ;;  %5031 = vmatpush1.bf16.msra.mxu1 (%p610_p0), %v11314_v54  ;;  %4868 = vmatprep.subr.bf16.mxu0 (%p610_p0), %v11315_v41  ;;  %v11331_v20 = vld [vmem:[#allocation14 + $0x80] ss:$16 sps:$4 sm:$0xff] (%p610_p0)   ;;  %v11365_v15 = vld [vmem:[#allocation14 + $0x14c] ss:$16 sps:$4 sm:$0xff] (%p610_p0)  }
 0x5d8   : >> { %v3170_v59 = vmax.f32 %v3169_v45, %v2952_v49  ;;  %5032 = vmatprep.subr.bf16.mxu1 (%p610_p0), %v11317_v3  ;;  %v11335_v49 = vld [vmem:[#allocation14 + $0xac] ss:$16 sps:$4 sm:$0xff] (%p610_p0)   ;;  %v11337_v45 = vld [vmem:[#allocation14 + $0xa0] ss:$16 sps:$4 sm:$0xff] (%p610_p0)   ;;  %v11380_v14 = vld [vmem:[#allocation14 + $0x188] ss:$16 sps:$4 sm:$0xff] (%p610_p0)  }
 0x5d9   : >> { %v3142_v28 = vmax.f32 %v3140_v37, %v3141_v24  ;;  %v11323_v37 = vld [vmem:[#allocation14 + $0x6c] ss:$16 sps:$4 sm:$0xff] (%p610_p0)   ;;  %v11349_v33 = vld [vmem:[#allocation14 + $0xe0] ss:$16 sps:$4 sm:$0xff] (%p610_p0)   ;;  %v11392_v19 = vld [vmem:[#allocation14 + $0x1c8] ss:$16 sps:$4 sm:$0xff] (%p610_p0)  }
 0x5da   : >> { %v3171_v56 = vmax.f32 %v3170_v59, %v2960_v35  ;;  %4869 = vmatpush1.bf16.msra.mxu0 (%p610_p0), %v11319_v39  ;;  %v11329_v24 = vld [vmem:[#allocation14 + $0x8c] ss:$16 sps:$4 sm:$0xff] (%p610_p0)   ;;  %v11339_v35 = vld [vmem:[#allocation14 + $0xc4] ss:$16 sps:$4 sm:$0xff] (%p610_p0)   ;;  %v11361_v26 = vld [vmem:[#allocation14 + $0x120] ss:$16 sps:$4 sm:$0xff] (%p610_p0)  }
 0x5db   : >> { %v3195_v2 = vcombine.low %v3121_v9, %v3142_v28  ;;  %5033 = vmatpush1.bf16.msra.mxu1 (%p610_p0), %v11320_v6  ;;  %v11327_v9 = vld [vmem:[#allocation14 + $0x84] ss:$16 sps:$4 sm:$0xff] (%p610_p0)   ;;  %4870 = vmatprep.subr.bf16.mxu0 (%p610_p0), %v11321_v53  ;;  %v11341_v59 = vld [vmem:[#allocation14 + $0xcc] ss:$16 sps:$4 sm:$0xff] (%p610_p0)   ;;  %v11379_v16 = vld [vmem:[#allocation14 + $0x180] ss:$16 sps:$4 sm:$0xff] (%p610_p0)  }
 0x5dc   : >> { %v3172_v30 = vmax.f32 %v3171_v56, %v2968_v25  ;;  %5034 = vmatprep.subr.bf16.mxu1 (%p610_p0), %v11323_v37  ;;  %v11333_v28 = vld [vmem:[#allocation14 + $0xa4] ss:$16 sps:$4 sm:$0xff] (%p610_p0)   ;;  %v11343_v25 = vld [vmem:[#allocation14 + $0xc0] ss:$16 sps:$4 sm:$0xff] (%p610_p0)   ;;  %v11344_v56 = vld [vmem:[#allocation14 + $0xc8] ss:$16 sps:$4 sm:$0xff] (%p610_p0)  }
 0x5dd   : >> { %v3217_v22 = vrot.slane %v3195_v2, %v16113_v7  ;;  %v11338_v2 = vld [vmem:[#allocation14 + $0xa8] ss:$16 sps:$4 sm:$0xff] (%p610_p0)   ;;  %v11391_v57 = vld [vmem:[#allocation14 + $0x1c0] ss:$16 sps:$4 sm:$0xff] (%p610_p0)   ;;  %v11393_v61 = vld [vmem:[#allocation14 + $0x1e4] ss:$16 sps:$4 sm:$0xff] (%p610_p0)  }
 0x5de   : >> { %v3173_v50 = vmax.f32 %v3172_v30, %v2976_v60  ;;  %4871 = vmatpush1.bf16.msra.mxu0 (%p610_p0), %v11325_v4  ;;  %v11345_v60 = vld [vmem:[#allocation14 + $0xe4] ss:$16 sps:$4 sm:$0xff] (%p610_p0)   ;;  %v11347_v30 = vld [vmem:[#allocation14 + $0xec] ss:$16 sps:$4 sm:$0xff] (%p610_p0)   ;;  %v11397_v3 = vld [vmem:[#allocation14 + $0x1e0] ss:$16 sps:$4 sm:$0xff] (%p610_p0)  }
 0x5df   : > { %5035 = vmatpush1.bf16.msra.mxu1 (%p610_p0), %v11326_v63  ;;  %4872 = vmatprep.subr.bf16.mxu0 (%p610_p0), %v11327_v9  ;;  %v16117_v40 = vld [vmem:[#allocation38_spill] sm:$0xff] (%p610_p0)  ;;  %v11400_v4 = vld [vmem:[#allocation14 + $0x200] ss:$16 sps:$4 sm:$0xff] (%p610_p0)  }
 0x5e0   : >> { %v3174_v8 = vmax.f32 %v3173_v50, %v2984_v0  ;;  %5036 = vmatprep.subr.bf16.mxu1 (%p610_p0), %v11329_v24  ;;  %v11350_v0 = vld [vmem:[#allocation14 + $0xe8] ss:$16 sps:$4 sm:$0xff] (%p610_p0)   ;;  %v11351_v50 = vld [vmem:[#allocation14 + $0x104] ss:$16 sps:$4 sm:$0xff] (%p610_p0)   ;;  %v11395_v54 = vld [vmem:[#allocation14 + $0x1ec] ss:$16 sps:$4 sm:$0xff] (%p610_p0)  }
 0x5e1   : > { %v11398_v39 = vld [vmem:[#allocation14 + $0x1e8] ss:$16 sps:$4 sm:$0xff] (%p610_p0)   ;;  %v11402_v6 = vld [vmem:[#allocation14 + $0x204] ss:$16 sps:$4 sm:$0xff] (%p610_p0)   ;;  %v11405_v53 = vld [vmem:[#allocation14 + $0x20c] ss:$16 sps:$4 sm:$0xff] (%p610_p0)  }
 0x5e2   : >> { %v3175_v48 = vmax.f32 %v3174_v8, %v2992_v58  ;;  %4873 = vmatpush1.bf16.msra.mxu0 (%p610_p0), %v11331_v20  ;;  %v11353_v58 = vld [vmem:[#allocation14 + $0x10c] ss:$16 sps:$4 sm:$0xff] (%p610_p0)   ;;  %v11355_v8 = vld [vmem:[#allocation14 + $0x100] ss:$16 sps:$4 sm:$0xff] (%p610_p0)   ;;  %v11403_v9 = vld [vmem:[#allocation14 + $0x208] ss:$16 sps:$4 sm:$0xff] (%p610_p0)  }
 0x5e3   : > { %5037 = vmatpush1.bf16.msra.mxu1 (%p610_p0), %v11332_v38  ;;  %4874 = vmatprep.subr.bf16.mxu0 (%p610_p0), %v11333_v28  ;;  %v11408_v24 = vld [vmem:[#allocation14 + $0x224] ss:$16 sps:$4 sm:$0xff] (%p610_p0)   ;;  %v11411_v20 = vld [vmem:[#allocation14 + $0x22c] ss:$16 sps:$4 sm:$0xff] (%p610_p0)   ;;  %v11406_v28 = vld [vmem:[#allocation14 + $0x220] ss:$16 sps:$4 sm:$0xff] (%p610_p0)  }
 0x5e4   : >> { %v3176_v32 = vmax.f32 %v3175_v48, %v3000_v52  ;;  %5038 = vmatprep.subr.bf16.mxu1 (%p610_p0), %v11335_v49  ;;  %v12249_v52 = vmov (%p610_p0), 1983009808   ;;  %v11409_v49 = vld [vmem:[#allocation14 + $0x228] ss:$16 sps:$4 sm:$0xff] (%p610_p0)  }
 0x5e5   : > { %v3258_v48 = vunpack.c.l.s4 (%p610_p0), %v12249_v52  ;;  %v11430_v52 = vld [vmem:[#allocation14 + $0x2a0] ss:$16 sps:$4 sm:$0xff] (%p610_p0)  }
 0x5e6   : >> { %v3177_v42 = vmax.f32 %v3176_v32, %v3008_v51  ;;  %4875 = vmatpush1.bf16.msra.mxu0 (%p610_p0), %v11337_v45  ;;  %v11357_v51 = vld [vmem:[#allocation14 + $0x124] ss:$16 sps:$4 sm:$0xff] (%p610_p0)   ;;  %v11359_v32 = vld [vmem:[#allocation14 + $0x12c] ss:$16 sps:$4 sm:$0xff] (%p610_p0)  }
 0x5e7   : > { %5039 = vmatpush1.bf16.msra.mxu1 (%p610_p0), %v11338_v2  ;;  %4876 = vmatprep.subr.bf16.mxu0 (%p610_p0), %v11339_v35  ;;  %v11414_v45 = vld [vmem:[#allocation14 + $0x244] ss:$16 sps:$4 sm:$0xff] (%p610_p0)   ;;  %v11417_v2 = vld [vmem:[#allocation14 + $0x24c] ss:$16 sps:$4 sm:$0xff] (%p610_p0)   ;;  %v11412_v35 = vld [vmem:[#allocation14 + $0x240] ss:$16 sps:$4 sm:$0xff] (%p610_p0)  }
 0x5e8   : >> { %v3178_v23 = vmax.f32 %v3177_v42, %v3016_v62  ;;  %5040 = vmatprep.subr.bf16.mxu1 (%p610_p0), %v11341_v59  ;;  %v3259_v62 = vunpack.c.0.s8 (%p610_p0), %v3258_v48  ;;  %v11362_v42 = vld [vmem:[#allocation14 + $0x128] ss:$16 sps:$4 sm:$0xff] (%p610_p0)  }
 0x5e9   : > { %v11415_v59 = vld [vmem:[#allocation14 + $0x248] ss:$16 sps:$4 sm:$0xff] (%p610_p0)  }
 0x5ea   : >> { %v3179_v11 = vrot.slane %v3178_v23, 4  ;;  %4877 = vmatpush1.bf16.msra.mxu0 (%p610_p0), %v11343_v25  ;;  %v11420_v25 = vld [vmem:[#allocation14 + $0x264] ss:$16 sps:$4 sm:$0xff] (%p610_p0)   ;;  %v11433_v48 = vld [vmem:[#allocation14 + $0x2a8] ss:$16 sps:$4 sm:$0xff] (%p610_p0)  }
 0x5eb   : > { %5041 = vmatpush1.bf16.msra.mxu1 (%p610_p0), %v11344_v56  ;;  %4878 = vmatprep.subr.bf16.mxu0 (%p610_p0), %v11345_v60  ;;  %v11423_v56 = vld [vmem:[#allocation14 + $0x26c] ss:$16 sps:$4 sm:$0xff] (%p610_p0)   ;;  %v11418_v60 = vld [vmem:[#allocation14 + $0x260] ss:$16 sps:$4 sm:$0xff] (%p610_p0)  }
 0x5ec   : >> { %v3180_v55 = vmax.f32 %v3178_v23, %v3179_v11  ;;  %5042 = vmatprep.subr.bf16.mxu1 (%p610_p0), %v11347_v30  ;;  %v11363_v23 = vld [vmem:[#allocation14 + $0x144] ss:$16 sps:$4 sm:$0xff] (%p610_p0)   ;;  %v11367_v11 = vld [vmem:[#allocation14 + $0x140] ss:$16 sps:$4 sm:$0xff] (%p610_p0)   ;;  %v11421_v30 = vld [vmem:[#allocation14 + $0x268] ss:$16 sps:$4 sm:$0xff] (%p610_p0)  }
 0x5ee   : >> { %v3181_v29 = vrot.slane %v3180_v55, 2  ;;  %4879 = vmatpush1.bf16.msra.mxu0 (%p610_p0), %v11349_v33  ;;  %v11426_v33 = vld [vmem:[#allocation14 + $0x284] ss:$16 sps:$4 sm:$0xff] (%p610_p0)  }
 0x5ef   : > { %5043 = vmatpush1.bf16.msra.mxu1 (%p610_p0), %v11350_v0  ;;  %4880 = vmatprep.subr.bf16.mxu0 (%p610_p0), %v11351_v50  ;;  %v11429_v0 = vld [vmem:[#allocation14 + $0x28c] ss:$16 sps:$4 sm:$0xff] (%p610_p0)   ;;  %v11424_v50 = vld [vmem:[#allocation14 + $0x280] ss:$16 sps:$4 sm:$0xff] (%p610_p0)  }
 0x5f0   : >> { %v3182_v44 = vmax.f32 %v3180_v55, %v3181_v29  ;;  %5044 = vmatprep.subr.bf16.mxu1 (%p610_p0), %v11353_v58  ;;  %v11368_v55 = vld [vmem:[#allocation14 + $0x148] ss:$16 sps:$4 sm:$0xff] (%p610_p0)   ;;  %v15158_v29 = vsub.s32 (%p610_p0), %v3259_v62, %v16117_v40  ;;  %v11453_v40 = vld [vmem:[#allocation14 + $0x30c] ss:$16 sps:$4 sm:$0xff] (%p610_p0)  }
 0x5f1   : > { %v11427_v58 = vld [vmem:[#allocation14 + $0x288] ss:$16 sps:$4 sm:$0xff] (%p610_p0)  }
 0x5f2   : >> { %v3183_v21 = vrot.slane %v3182_v44, 1  ;;  %4881 = vmatpush1.bf16.msra.mxu0 (%p610_p0), %v11355_v8  ;;  %v11432_v8 = vld [vmem:[#allocation14 + $0x2a4] ss:$16 sps:$4 sm:$0xff] (%p610_p0)   ;;  %v11439_v62 = vld [vmem:[#allocation14 + $0x2c8] ss:$16 sps:$4 sm:$0xff] (%p610_p0)  }
 0x5f3   : > { %5045 = vmatpush1.bf16.msra.mxu1 (%p610_p0), %v11356_v10  ;;  %4882 = vmatprep.subr.bf16.mxu0 (%p610_p0), %v11357_v51  ;;  %v11435_v10 = vld [vmem:[#allocation14 + $0x2ac] ss:$16 sps:$4 sm:$0xff] (%p610_p0)   ;;  %v11438_v51 = vld [vmem:[#allocation14 + $0x2c4] ss:$16 sps:$4 sm:$0xff] (%p610_p0)  }
 0x5f4   : >> { %v3184_v13 = vmax.f32 %v3182_v44, %v3183_v21  ;;  %5046 = vmatprep.subr.bf16.mxu1 (%p610_p0), %v11359_v32  ;;  %v11369_v44 = vld [vmem:[#allocation14 + $0x164] ss:$16 sps:$4 sm:$0xff] (%p610_p0)   ;;  %v11441_v32 = vld [vmem:[#allocation14 + $0x2cc] ss:$16 sps:$4 sm:$0xff] (%p610_p0)  }
 0x5f6   : >> { %v3196_v12 = vcombine.low %v3163_v31, %v3184_v13  ;;  %4883 = vmatpush1.bf16.msra.mxu0 (%p610_p0), %v11361_v26  ;;  %v11371_v31 = vld [vmem:[#allocation14 + $0x16c] ss:$16 sps:$4 sm:$0xff] (%p610_p0)   ;;  %v11373_v13 = vld [vmem:[#allocation14 + $0x160] ss:$16 sps:$4 sm:$0xff] (%p610_p0)  }
 0x5f7   : > { %5047 = vmatpush1.bf16.msra.mxu1 (%p610_p0), %v11362_v42  ;;  %4884 = vmatprep.subr.bf16.mxu0 (%p610_p0), %v11363_v23  ;;  %v11436_v26 = vld [vmem:[#allocation14 + $0x2c0] ss:$16 sps:$4 sm:$0xff] (%p610_p0)   ;;  %v11444_v42 = vld [vmem:[#allocation14 + $0x2e4] ss:$16 sps:$4 sm:$0xff] (%p610_p0)   ;;  %v11447_v23 = vld [vmem:[#allocation14 + $0x2ec] ss:$16 sps:$4 sm:$0xff] (%p610_p0)  }
 0x5f8   : >> { %v3224_v47 = vrot.slane %v3196_v12, %v16113_v7  ;;  %5048 = vmatprep.subr.bf16.mxu1 (%p610_p0), %v11365_v15  ;;  %v11375_v12 = vld [vmem:[#allocation14 + $0x184] ss:$16 sps:$4 sm:$0xff] (%p610_p0)   ;;  %v11442_v15 = vld [vmem:[#allocation14 + $0x2e0] ss:$16 sps:$4 sm:$0xff] (%p610_p0)  }
 0x5fa   : >> { %v3226_v46 = vcombine.low %v3217_v22, %v3224_v47  ;;  %612 = sbr.rel (!%p610_p0) target bundleno = 357 (0x165), region = 165  ;;  %4885 = vmatpush1.bf16.msra.mxu0 (%p610_p0), %v11367_v11  ;;  %v11374_v22 = vld [vmem:[#allocation14 + $0x168] ss:$16 sps:$4 sm:$0xff] (%p610_p0)   ;;  %v11377_v47 = vld [vmem:[#allocation14 + $0x18c] ss:$16 sps:$4 sm:$0xff] (%p610_p0)  }
 0x5fb   : > { %5049 = vmatpush1.bf16.msra.mxu1 (%p610_p0), %v11368_v55  ;;  %4886 = vmatprep.subr.bf16.mxu0 (%p610_p0), %v11369_v44  ;;  %v11445_v11 = vld [vmem:[#allocation14 + $0x2e8] ss:$16 sps:$4 sm:$0xff] (%p610_p0)   ;;  %v11450_v55 = vld [vmem:[#allocation14 + $0x304] ss:$16 sps:$4 sm:$0xff] (%p610_p0)   ;;  %v11448_v44 = vld [vmem:[#allocation14 + $0x300] ss:$16 sps:$4 sm:$0xff] (%p610_p0)  }
 0x5fc   : >> { %v3240_v27 = vrot.slane %v3226_v46, %v16113_v7  ;;  %5050 = vmatprep.subr.bf16.mxu1 (%p610_p0), %v11371_v31  ;;  %v11451_v31 = vld [vmem:[#allocation14 + $0x308] ss:$16 sps:$4 sm:$0xff] (%p610_p0)  }
 0x5fe   : >> { %v3241_v18 = vcombine.low %v3233_v43, %v3240_v27  ;;  %4887 = vmatpush1.bf16.msra.mxu0 (%p610_p0), %v11373_v13  ;;  %v11381_v43 = vld [vmem:[#allocation14 + $0x1a4] ss:$16 sps:$4 sm:$0xff] (%p610_p0)   ;;  %v11383_v27 = vld [vmem:[#allocation14 + $0x1ac] ss:$16 sps:$4 sm:$0xff] (%p610_p0)  }
 0x5ff   : > { %5051 = vmatpush1.bf16.msra.mxu1 (%p610_p0), %v11374_v22  ;;  %4888 = vmatprep.subr.bf16.mxu0 (%p610_p0), %v11375_v12  ;;  %v11459_v13 = vld [vmem:[#allocation14 + $0x32c] ss:$16 sps:$4 sm:$0xff] (%p610_p0)   ;;  %v11457_v22 = vld [vmem:[#allocation14 + $0x328] ss:$16 sps:$4 sm:$0xff] (%p610_p0)   ;;  %v11462_v12 = vld [vmem:[#allocation14 + $0x344] ss:$16 sps:$4 sm:$0xff] (%p610_p0)  }
 0x600   : >> { %3251 = vst [vmem:[%s3250_s13] ss:$2 sm:$0xff] %v3241_v18  ;;  %5052 = vmatprep.subr.bf16.mxu1 (%p610_p0), %v11377_v47  ;;  %v11385_v18 = vld [vmem:[#allocation14 + $0x1a0] ss:$16 sps:$4 sm:$0xff] (%p610_p0)   ;;  %v11465_v47 = vld [vmem:[#allocation14 + $0x34c] ss:$16 sps:$4 sm:$0xff] (%p610_p0)  }
 0x602   : > { %4889 = vmatpush1.bf16.msra.mxu0 %v11379_v16  ;;  %v11463_v16 = vld [vmem:[#allocation14 + $0x348] ss:$16 sps:$4 sm:$0xff]  }
 0x603   : > { %5053 = vmatpush1.bf16.msra.mxu1 %v11380_v14  ;;  %4890 = vmatprep.subr.bf16.mxu0 %v11381_v43  ;;  %v11471_v14 = vld [vmem:[#allocation14 + $0x36c] ss:$16 sps:$4 sm:$0xff]   ;;  %v11466_v43 = vld [vmem:[#allocation14 + $0x360] ss:$16 sps:$4 sm:$0xff]  }
 0x604   : > { %5054 = vmatprep.subr.bf16.mxu1 %v11383_v27  ;;  %v11469_v27 = vld [vmem:[#allocation14 + $0x368] ss:$16 sps:$4 sm:$0xff]  }
 0x606   : > { %4891 = vmatpush1.bf16.msra.mxu0 %v11385_v18  ;;  %v11474_v18 = vld [vmem:[#allocation14 + $0x384] ss:$16 sps:$4 sm:$0xff]  }
 0x607   : > { %v3252_v21 = vld [vmem:[#allocation2] sm:$0xff]  ;;  %5055 = vmatpush1.bf16.msra.mxu1 %v11386_v17  ;;  %4892 = vmatprep.subr.bf16.mxu0 %v11387_v1  ;;  %v11477_v17 = vld [vmem:[#allocation14 + $0x38c] ss:$16 sps:$4 sm:$0xff]   ;;  %v11472_v1 = vld [vmem:[#allocation14 + $0x380] ss:$16 sps:$4 sm:$0xff]  }
 0x608   : > { %v3263_v7 = vrot.slane %v3252_v21, %v15158_v29  ;;  %v3256_v36 = vcombine.high %v3252_v21, %v3252_v21  ;;  %5056 = vmatprep.subr.bf16.mxu1 %v11389_v5  ;;  %v11456_v21 = vld [vmem:[#allocation14 + $0x324] ss:$16 sps:$4 sm:$0xff]   ;;  %v11475_v5 = vld [vmem:[#allocation14 + $0x388] ss:$16 sps:$4 sm:$0xff]  }
 0x60a   : > { %v3271_v46 = vcombine.high %v3263_v7, %v3263_v7  ;;  %v15162_v41 = vrot.slane %v3256_v36, %v15158_v29  ;;  %4893 = vmatpush1.bf16.msra.mxu0 %v11391_v57  ;;  %v3298_v63 = vpack.c.bf16 %v3263_v7, %v3263_v7  ;;  %v11454_v7 = vld [vmem:[#allocation14 + $0x320] ss:$16 sps:$4 sm:$0xff]   ;;  %v11480_v36 = vld [vmem:[#allocation14 + $0x3a4] ss:$16 sps:$4 sm:$0xff]   ;;  %v11483_v57 = vld [vmem:[#allocation14 + $0x3ac] ss:$16 sps:$4 sm:$0xff]  }
 0x60b   : > { %5057 = vmatpush1.bf16.msra.mxu1 %v11392_v19  ;;  %4894 = vmatprep.subr.bf16.mxu0 %v11393_v61  ;;  %v11478_v19 = vld [vmem:[#allocation14 + $0x3a0] ss:$16 sps:$4 sm:$0xff]   ;;  %v11481_v61 = vld [vmem:[#allocation14 + $0x3a8] ss:$16 sps:$4 sm:$0xff]  }
 0x60c   : > { %v3299_v34 = vpack.c.bf16 %v3271_v46, %v3271_v46  ;;  %5058 = vmatprep.subr.bf16.mxu1 %v11395_v54  ;;  %v3272_v37 = vcombine.high %v15162_v41, %v15162_v41  ;;  %v11460_v46 = vld [vmem:[#allocation14 + $0x340] ss:$16 sps:$4 sm:$0xff]   ;;  %v11486_v54 = vld [vmem:[#allocation14 + $0x3c4] ss:$16 sps:$4 sm:$0xff]  }
 0x60e   : > { %4896 = vmatprep.mubr.bf16.mxu0 %v3299_v34  ;;  %5060 = vmatprep.mubr.bf16.mxu1 %v3299_v34  ;;  %v3301_v38 = vpack.c.bf16 %v3272_v37, %v3272_v37  ;;  %v11468_v34 = vld [vmem:[#allocation14 + $0x364] ss:$16 sps:$4 sm:$0xff]   ;;  %v11495_v37 = vld [vmem:[#allocation14 + $0x3ec] ss:$16 sps:$4 sm:$0xff]  }
 0x60f   : > { %4895 = vmatpush1.bf16.msra.mxu0 %v11397_v3  ;;  %5059 = vmatpush1.bf16.msra.mxu1 %v11398_v39  ;;  %v11489_v3 = vld [vmem:[#allocation14 + $0x3cc] ss:$16 sps:$4 sm:$0xff]   ;;  %v11484_v39 = vld [vmem:[#allocation14 + $0x3c0] ss:$16 sps:$4 sm:$0xff]  }
 0x610   : > { %4905 = vmatprep.subr.bf16.mxu0 %v11402_v6  ;;  %5069 = vmatprep.subr.bf16.mxu1 %v11405_v53  ;;  %v11487_v6 = vld [vmem:[#allocation14 + $0x3c8] ss:$16 sps:$4 sm:$0xff]   ;;  %v11492_v53 = vld [vmem:[#allocation14 + $0x3e4] ss:$16 sps:$4 sm:$0xff]  }
 0x612   : > { %4897 = vmatmul.mubr.bf16.vlgmr.msra.gmra.mrb[0].mxu0 %v3298_v63  ;;  %5061 = vmatmul.mubr.bf16.vlgmr.msra.gmra.mrb[0].mxu1 %v3298_v63  ;;  %v11493_v63 = vld [vmem:[#allocation14 + $0x3e8] ss:$16 sps:$4 sm:$0xff]  }
 0x613   : > { %4906 = vmatpush1.bf16.msra.mxu0 %v11400_v4  ;;  %5070 = vmatpush1.bf16.msra.mxu1 %v11403_v9  ;;  %v11490_v4 = vld [vmem:[#allocation14 + $0x3e0] ss:$16 sps:$4 sm:$0xff]   ;;  %v11498_v9 = vld [vmem:[#allocation14 + $0x404] ss:$16 sps:$4 sm:$0xff]  }
 0x614   : > { %4907 = vmatprep.subr.bf16.mxu0 %v11408_v24  ;;  %5071 = vmatprep.subr.bf16.mxu1 %v11411_v20  ;;  %v11501_v24 = vld [vmem:[#allocation14 + $0x40c] ss:$16 sps:$4 sm:$0xff]   ;;  %v11496_v20 = vld [vmem:[#allocation14 + $0x400] ss:$16 sps:$4 sm:$0xff]  }
 0x615   : > { %4937 = vmatprep.mubr.bf16.mxu0 %v3301_v38  ;;  %5101 = vmatprep.mubr.bf16.mxu1 %v3301_v38  ;;  %v3300_v38 = vpack.c.bf16 %v15162_v41, %v15162_v41  ;;  %v11502_v41 = vld [vmem:[#allocation14 + $0x420] ss:$16 sps:$4 sm:$0xff]  }
 0x617   : > { %4908 = vmatpush1.bf16.msra.mxu0 %v11406_v28  ;;  %5072 = vmatpush1.bf16.msra.mxu1 %v11409_v49  ;;  %v11499_v28 = vld [vmem:[#allocation14 + $0x408] ss:$16 sps:$4 sm:$0xff]   ;;  %v15168_v49 = vld [vmem:[#allocation2 + $0x8] sm:$0xff] }
 0x618   : > { %4909 = vmatprep.subr.bf16.mxu0 %v11414_v45  ;;  %5073 = vmatprep.subr.bf16.mxu1 %v11417_v2  ;;  %v11504_v45 = vld [vmem:[#allocation14 + $0x424] ss:$16 sps:$4 sm:$0xff]   ;;  %v11507_v2 = vld [vmem:[#allocation14 + $0x42c] ss:$16 sps:$4 sm:$0xff]  }
 0x61b   : > { %4910 = vmatpush1.bf16.msra.mxu0 %v11412_v35  ;;  %5074 = vmatpush1.bf16.msra.mxu1 %v11415_v59  ;;  %v15172_v35 = vrot.slane %v15168_v49, %v15158_v29 }
 0x61c   : > { %4911 = vmatprep.subr.bf16.mxu0 %v11420_v25  ;;  %5075 = vmatprep.subr.bf16.mxu1 %v11423_v56  ;;  %v11505_v25 = vld [vmem:[#allocation14 + $0x428] ss:$16 sps:$4 sm:$0xff]   ;;  %v11510_v56 = vld [vmem:[#allocation14 + $0x444] ss:$16 sps:$4 sm:$0xff]  }
 0x61d   : > { %v3288_v59 = vcombine.high %v15172_v35, %v15172_v35 }
 0x61f   : > { %4912 = vmatpush1.bf16.msra.mxu0 %v11418_v60  ;;  %5076 = vmatpush1.bf16.msra.mxu1 %v11421_v30  ;;  %v11513_v60 = vld [vmem:[#allocation14 + $0x44c] ss:$16 sps:$4 sm:$0xff]   ;;  %v3303_v30 = vpack.c.bf16 %v3288_v59, %v3288_v59 }
 0x620   : > { %4913 = vmatprep.subr.bf16.mxu0 %v11426_v33  ;;  %5077 = vmatprep.subr.bf16.mxu1 %v11429_v0  ;;  %v11508_v33 = vld [vmem:[#allocation14 + $0x440] ss:$16 sps:$4 sm:$0xff]   ;;  %v11511_v0 = vld [vmem:[#allocation14 + $0x448] ss:$16 sps:$4 sm:$0xff]  }
 0x623   : > { %4914 = vmatpush1.bf16.msra.mxu0 %v11424_v50  ;;  %5078 = vmatpush1.bf16.msra.mxu1 %v11427_v58  ;;  %v11516_v50 = vld [vmem:[#allocation14 + $0x464] ss:$16 sps:$4 sm:$0xff]   ;;  %v11519_v58 = vld [vmem:[#allocation14 + $0x46c] ss:$16 sps:$4 sm:$0xff]  }
 0x624   : > { %4915 = vmatprep.subr.bf16.mxu0 %v11432_v8  ;;  %5079 = vmatprep.subr.bf16.mxu1 %v11435_v10  ;;  %v11514_v8 = vld [vmem:[#allocation14 + $0x460] ss:$16 sps:$4 sm:$0xff]   ;;  %v11517_v10 = vld [vmem:[#allocation14 + $0x468] ss:$16 sps:$4 sm:$0xff]  }
 0x627   : > { %4916 = vmatpush1.bf16.msra.mxu0 %v11430_v52  ;;  %5080 = vmatpush1.bf16.msra.mxu1 %v11433_v48  ;;  %v11522_v52 = vld [vmem:[#allocation14 + $0x484] ss:$16 sps:$4 sm:$0xff]   ;;  %v11525_v48 = vld [vmem:[#allocation14 + $0x48c] ss:$16 sps:$4 sm:$0xff]  }
 0x628   : > { %4917 = vmatprep.subr.bf16.mxu0 %v11438_v51  ;;  %5081 = vmatprep.subr.bf16.mxu1 %v11441_v32  ;;  %v11520_v51 = vld [vmem:[#allocation14 + $0x480] ss:$16 sps:$4 sm:$0xff]   ;;  %v11523_v32 = vld [vmem:[#allocation14 + $0x488] ss:$16 sps:$4 sm:$0xff]  }
 0x62b   : > { %4918 = vmatpush1.bf16.msra.mxu0 %v11436_v26  ;;  %5082 = vmatpush1.bf16.msra.mxu1 %v11439_v62  ;;  %v11528_v26 = vld [vmem:[#allocation14 + $0x4a4] ss:$16 sps:$4 sm:$0xff]   ;;  %v11531_v62 = vld [vmem:[#allocation14 + $0x4ac] ss:$16 sps:$4 sm:$0xff]  }
 0x62c   : > { %4919 = vmatprep.subr.bf16.mxu0 %v11444_v42  ;;  %5083 = vmatprep.subr.bf16.mxu1 %v11447_v23  ;;  %v11526_v42 = vld [vmem:[#allocation14 + $0x4a0] ss:$16 sps:$4 sm:$0xff]   ;;  %v11529_v23 = vld [vmem:[#allocation14 + $0x4a8] ss:$16 sps:$4 sm:$0xff]  }
 0x62f   : > { %4920 = vmatpush1.bf16.msra.mxu0 %v11442_v15  ;;  %5084 = vmatpush1.bf16.msra.mxu1 %v11445_v11  ;;  %v11534_v15 = vld [vmem:[#allocation14 + $0x4c4] ss:$16 sps:$4 sm:$0xff]   ;;  %v11537_v11 = vld [vmem:[#allocation14 + $0x4cc] ss:$16 sps:$4 sm:$0xff]  }
 0x630   : > { %4921 = vmatprep.subr.bf16.mxu0 %v11450_v55  ;;  %5085 = vmatprep.subr.bf16.mxu1 %v11453_v40  ;;  %v11532_v55 = vld [vmem:[#allocation14 + $0x4c0] ss:$16 sps:$4 sm:$0xff]   ;;  %v11535_v40 = vld [vmem:[#allocation14 + $0x4c8] ss:$16 sps:$4 sm:$0xff]  }
 0x633   : > { %4922 = vmatpush1.bf16.msra.mxu0 %v11448_v44  ;;  %5086 = vmatpush1.bf16.msra.mxu1 %v11451_v31  ;;  %v11540_v44 = vld [vmem:[#allocation14 + $0x4e4] ss:$16 sps:$4 sm:$0xff]   ;;  %v11543_v31 = vld [vmem:[#allocation14 + $0x4ec] ss:$16 sps:$4 sm:$0xff]  }
 0x634   : > { %4923 = vmatprep.subr.bf16.mxu0 %v11456_v21  ;;  %5087 = vmatprep.subr.bf16.mxu1 %v11459_v13  ;;  %v11538_v21 = vld [vmem:[#allocation14 + $0x4e0] ss:$16 sps:$4 sm:$0xff]   ;;  %v11541_v13 = vld [vmem:[#allocation14 + $0x4e8] ss:$16 sps:$4 sm:$0xff]  }
 0x637   : > { %4924 = vmatpush1.bf16.msra.mxu0 %v11454_v7  ;;  %5088 = vmatpush1.bf16.msra.mxu1 %v11457_v22  ;;  %v11546_v7 = vld [vmem:[#allocation14 + $0x504] ss:$16 sps:$4 sm:$0xff]   ;;  %v11549_v22 = vld [vmem:[#allocation14 + $0x50c] ss:$16 sps:$4 sm:$0xff]  }
 0x638   : > { %4925 = vmatprep.subr.bf16.mxu0 %v11462_v12  ;;  %5089 = vmatprep.subr.bf16.mxu1 %v11465_v47  ;;  %v11544_v12 = vld [vmem:[#allocation14 + $0x500] ss:$16 sps:$4 sm:$0xff]   ;;  %v11547_v47 = vld [vmem:[#allocation14 + $0x508] ss:$16 sps:$4 sm:$0xff]  }
 0x63b   : > { %4926 = vmatpush1.bf16.msra.mxu0 %v11460_v46  ;;  %5090 = vmatpush1.bf16.msra.mxu1 %v11463_v16  ;;  %v11552_v46 = vld [vmem:[#allocation14 + $0x524] ss:$16 sps:$4 sm:$0xff]   ;;  %v11555_v16 = vld [vmem:[#allocation14 + $0x52c] ss:$16 sps:$4 sm:$0xff]  }
 0x63c   : > { %4927 = vmatprep.subr.bf16.mxu0 %v11468_v34  ;;  %5091 = vmatprep.subr.bf16.mxu1 %v11471_v14  ;;  %v11550_v34 = vld [vmem:[#allocation14 + $0x520] ss:$16 sps:$4 sm:$0xff]   ;;  %v11553_v14 = vld [vmem:[#allocation14 + $0x528] ss:$16 sps:$4 sm:$0xff]  }
 0x63f   : > { %4928 = vmatpush1.bf16.msra.mxu0 %v11466_v43  ;;  %5092 = vmatpush1.bf16.msra.mxu1 %v11469_v27  ;;  %v11558_v43 = vld [vmem:[#allocation14 + $0x544] ss:$16 sps:$4 sm:$0xff]   ;;  %v11561_v27 = vld [vmem:[#allocation14 + $0x54c] ss:$16 sps:$4 sm:$0xff]  }
 0x640   : > { %4929 = vmatprep.subr.bf16.mxu0 %v11474_v18  ;;  %5093 = vmatprep.subr.bf16.mxu1 %v11477_v17  ;;  %v11556_v18 = vld [vmem:[#allocation14 + $0x540] ss:$16 sps:$4 sm:$0xff]   ;;  %v11559_v17 = vld [vmem:[#allocation14 + $0x548] ss:$16 sps:$4 sm:$0xff]  }
 0x643   : > { %4930 = vmatpush1.bf16.msra.mxu0 %v11472_v1  ;;  %5094 = vmatpush1.bf16.msra.mxu1 %v11475_v5  ;;  %v11564_v1 = vld [vmem:[#allocation14 + $0x564] ss:$16 sps:$4 sm:$0xff]   ;;  %v11567_v5 = vld [vmem:[#allocation14 + $0x56c] ss:$16 sps:$4 sm:$0xff]  }
 0x644   : > { %4931 = vmatprep.subr.bf16.mxu0 %v11480_v36  ;;  %5095 = vmatprep.subr.bf16.mxu1 %v11483_v57  ;;  %v11562_v36 = vld [vmem:[#allocation14 + $0x560] ss:$16 sps:$4 sm:$0xff]   ;;  %v11565_v57 = vld [vmem:[#allocation14 + $0x568] ss:$16 sps:$4 sm:$0xff]  }
 0x647   : > { %4932 = vmatpush1.bf16.msra.mxu0 %v11478_v19  ;;  %5096 = vmatpush1.bf16.msra.mxu1 %v11481_v61  ;;  %v11570_v19 = vld [vmem:[#allocation14 + $0x584] ss:$16 sps:$4 sm:$0xff]   ;;  %v11573_v61 = vld [vmem:[#allocation14 + $0x58c] ss:$16 sps:$4 sm:$0xff]  }
 0x648   : > { %4933 = vmatprep.subr.bf16.mxu0 %v11486_v54  ;;  %5097 = vmatprep.subr.bf16.mxu1 %v11489_v3  ;;  %v11568_v54 = vld [vmem:[#allocation14 + $0x580] ss:$16 sps:$4 sm:$0xff]   ;;  %v11571_v3 = vld [vmem:[#allocation14 + $0x588] ss:$16 sps:$4 sm:$0xff]  }
 0x64b   : > { %4934 = vmatpush1.bf16.msra.mxu0 %v11484_v39  ;;  %5098 = vmatpush1.bf16.msra.mxu1 %v11487_v6  ;;  %v11576_v39 = vld [vmem:[#allocation14 + $0x5a4] ss:$16 sps:$4 sm:$0xff]   ;;  %v11579_v6 = vld [vmem:[#allocation14 + $0x5ac] ss:$16 sps:$4 sm:$0xff]  }
 0x64c   : > { %4935 = vmatprep.subr.bf16.mxu0 %v11492_v53  ;;  %5099 = vmatprep.subr.bf16.mxu1 %v11495_v37  ;;  %v11574_v53 = vld [vmem:[#allocation14 + $0x5a0] ss:$16 sps:$4 sm:$0xff]   ;;  %v11577_v37 = vld [vmem:[#allocation14 + $0x5a8] ss:$16 sps:$4 sm:$0xff]  }
 0x64f   : > { %4936 = vmatpush1.bf16.msra.mxu0 %v11490_v4  ;;  %5100 = vmatpush1.bf16.msra.mxu1 %v11493_v63  ;;  %v11582_v4 = vld [vmem:[#allocation14 + $0x5c4] ss:$16 sps:$4 sm:$0xff]   ;;  %v11585_v63 = vld [vmem:[#allocation14 + $0x5cc] ss:$16 sps:$4 sm:$0xff]  }
 0x650   : > { %4946 = vmatprep.subr.bf16.mxu0 %v11498_v9  ;;  %5110 = vmatprep.subr.bf16.mxu1 %v11501_v24  ;;  %v11580_v9 = vld [vmem:[#allocation14 + $0x5c0] ss:$16 sps:$4 sm:$0xff]   ;;  %v11583_v24 = vld [vmem:[#allocation14 + $0x5c8] ss:$16 sps:$4 sm:$0xff]  }
 0x652   : > { %4938 = vmatmul.mubr.bf16.vlgmr.msra.gmra.mrb[0].mxu0 %v3300_v38  ;;  %5102 = vmatmul.mubr.bf16.vlgmr.msra.gmra.mrb[0].mxu1 %v3300_v38  ;;  %v11588_v38 = vld [vmem:[#allocation14 + $0x5e4] ss:$16 sps:$4 sm:$0xff]  }
 0x653   : > { %4947 = vmatpush1.bf16.msra.mxu0 %v11496_v20  ;;  %5111 = vmatpush1.bf16.msra.mxu1 %v11499_v28  ;;  %v3273_v20 = vcombine.high %v15168_v49, %v15168_v49  ;;  %v11591_v28 = vld [vmem:[#allocation14 + $0x5ec] ss:$16 sps:$4 sm:$0xff]  }
 0x654   : > { %4948 = vmatprep.subr.bf16.mxu0 %v11504_v45  ;;  %5112 = vmatprep.subr.bf16.mxu1 %v11507_v2  ;;  %v11586_v45 = vld [vmem:[#allocation14 + $0x5e0] ss:$16 sps:$4 sm:$0xff]   ;;  %v11589_v2 = vld [vmem:[#allocation14 + $0x5e8] ss:$16 sps:$4 sm:$0xff]  }
 0x655   : > { %4978 = vmatprep.mubr.bf16.mxu0 %v3303_v30  ;;  %5142 = vmatprep.mubr.bf16.mxu1 %v3303_v30  ;;  %v15179_v59 = vrot.slane %v3273_v20, %v15158_v29  ;;  %v3302_v30 = vpack.c.bf16 %v15172_v35, %v15172_v35  ;;  %v11604_v35 = vld [vmem:[#allocation14 + $0x640] ss:$16 sps:$4 sm:$0xff]  }
 0x656   : > { %v11670_v20 = vld [vmem:[#allocation14 + $0x7a0] ss:$16 sps:$4 sm:$0xff]  }
 0x657   : > { %4949 = vmatpush1.bf16.msra.mxu0 %v11502_v41  ;;  %5113 = vmatpush1.bf16.msra.mxu1 %v11505_v25  ;;  %v11594_v41 = vld [vmem:[#allocation14 + $0x604] ss:$16 sps:$4 sm:$0xff]   ;;  %v11597_v25 = vld [vmem:[#allocation14 + $0x60c] ss:$16 sps:$4 sm:$0xff]   ;;  %v3289_v49 = vcombine.high %v15179_v59, %v15179_v59 }
 0x658   : > { %4950 = vmatprep.subr.bf16.mxu0 %v11510_v56  ;;  %5114 = vmatprep.subr.bf16.mxu1 %v11513_v60  ;;  %v11592_v56 = vld [vmem:[#allocation14 + $0x600] ss:$16 sps:$4 sm:$0xff]   ;;  %v11595_v60 = vld [vmem:[#allocation14 + $0x608] ss:$16 sps:$4 sm:$0xff]  }
 0x65b   : > { %4951 = vmatpush1.bf16.msra.mxu0 %v11508_v33  ;;  %5115 = vmatpush1.bf16.msra.mxu1 %v11511_v0  ;;  %v11600_v33 = vld [vmem:[#allocation14 + $0x624] ss:$16 sps:$4 sm:$0xff]   ;;  %v11603_v0 = vld [vmem:[#allocation14 + $0x62c] ss:$16 sps:$4 sm:$0xff]  }
 0x65c   : > { %4952 = vmatprep.subr.bf16.mxu0 %v11516_v50  ;;  %5116 = vmatprep.subr.bf16.mxu1 %v11519_v58  ;;  %v3305_v50 = vpack.c.bf16 %v3289_v49, %v3289_v49  ;;  %v11598_v58 = vld [vmem:[#allocation14 + $0x620] ss:$16 sps:$4 sm:$0xff]   ;;  %v11685_v49 = vld [vmem:[#allocation14 + $0x7e8] ss:$16 sps:$4 sm:$0xff]  }
 0x65f   : > { %4953 = vmatpush1.bf16.msra.mxu0 %v11514_v8  ;;  %5117 = vmatpush1.bf16.msra.mxu1 %v11517_v10  ;;  %v11601_v8 = vld [vmem:[#allocation14 + $0x628] ss:$16 sps:$4 sm:$0xff]   ;;  %v11606_v10 = vld [vmem:[#allocation14 + $0x644] ss:$16 sps:$4 sm:$0xff]  }
 0x660   : > { %4954 = vmatprep.subr.bf16.mxu0 %v11522_v52  ;;  %5118 = vmatprep.subr.bf16.mxu1 %v11525_v48  ;;  %v11609_v52 = vld [vmem:[#allocation14 + $0x64c] ss:$16 sps:$4 sm:$0xff]   ;;  %v11607_v48 = vld [vmem:[#allocation14 + $0x648] ss:$16 sps:$4 sm:$0xff]  }
 0x663   : > { %4955 = vmatpush1.bf16.msra.mxu0 %v11520_v51  ;;  %5119 = vmatpush1.bf16.msra.mxu1 %v11523_v32  ;;  %v11612_v51 = vld [vmem:[#allocation14 + $0x664] ss:$16 sps:$4 sm:$0xff]   ;;  %v11615_v32 = vld [vmem:[#allocation14 + $0x66c] ss:$16 sps:$4 sm:$0xff]  }
 0x664   : > { %4956 = vmatprep.subr.bf16.mxu0 %v11528_v26  ;;  %5120 = vmatprep.subr.bf16.mxu1 %v11531_v62  ;;  %v11610_v26 = vld [vmem:[#allocation14 + $0x660] ss:$16 sps:$4 sm:$0xff]   ;;  %v11613_v62 = vld [vmem:[#allocation14 + $0x668] ss:$16 sps:$4 sm:$0xff]  }
 0x667   : > { %4957 = vmatpush1.bf16.msra.mxu0 %v11526_v42  ;;  %5121 = vmatpush1.bf16.msra.mxu1 %v11529_v23  ;;  %v11618_v42 = vld [vmem:[#allocation14 + $0x684] ss:$16 sps:$4 sm:$0xff]   ;;  %v11621_v23 = vld [vmem:[#allocation14 + $0x68c] ss:$16 sps:$4 sm:$0xff]  }
 0x668   : > { %4958 = vmatprep.subr.bf16.mxu0 %v11534_v15  ;;  %5122 = vmatprep.subr.bf16.mxu1 %v11537_v11  ;;  %v11616_v15 = vld [vmem:[#allocation14 + $0x680] ss:$16 sps:$4 sm:$0xff]   ;;  %v11619_v11 = vld [vmem:[#allocation14 + $0x688] ss:$16 sps:$4 sm:$0xff]  }
 0x66b   : > { %4959 = vmatpush1.bf16.msra.mxu0 %v11532_v55  ;;  %5123 = vmatpush1.bf16.msra.mxu1 %v11535_v40  ;;  %v11624_v55 = vld [vmem:[#allocation14 + $0x6a4] ss:$16 sps:$4 sm:$0xff]   ;;  %v11627_v40 = vld [vmem:[#allocation14 + $0x6ac] ss:$16 sps:$4 sm:$0xff]  }
 0x66c   : > { %4960 = vmatprep.subr.bf16.mxu0 %v11540_v44  ;;  %5124 = vmatprep.subr.bf16.mxu1 %v11543_v31  ;;  %v11622_v44 = vld [vmem:[#allocation14 + $0x6a0] ss:$16 sps:$4 sm:$0xff]   ;;  %v11625_v31 = vld [vmem:[#allocation14 + $0x6a8] ss:$16 sps:$4 sm:$0xff]  }
 0x66f   : > { %4961 = vmatpush1.bf16.msra.mxu0 %v11538_v21  ;;  %5125 = vmatpush1.bf16.msra.mxu1 %v11541_v13  ;;  %v11630_v21 = vld [vmem:[#allocation14 + $0x6c4] ss:$16 sps:$4 sm:$0xff]   ;;  %v11633_v13 = vld [vmem:[#allocation14 + $0x6cc] ss:$16 sps:$4 sm:$0xff]  }
 0x670   : > { %4962 = vmatprep.subr.bf16.mxu0 %v11546_v7  ;;  %5126 = vmatprep.subr.bf16.mxu1 %v11549_v22  ;;  %v11628_v7 = vld [vmem:[#allocation14 + $0x6c0] ss:$16 sps:$4 sm:$0xff]   ;;  %v11631_v22 = vld [vmem:[#allocation14 + $0x6c8] ss:$16 sps:$4 sm:$0xff]  }
 0x673   : > { %4963 = vmatpush1.bf16.msra.mxu0 %v11544_v12  ;;  %5127 = vmatpush1.bf16.msra.mxu1 %v11547_v47  ;;  %v11636_v12 = vld [vmem:[#allocation14 + $0x6e4] ss:$16 sps:$4 sm:$0xff]   ;;  %v11639_v47 = vld [vmem:[#allocation14 + $0x6ec] ss:$16 sps:$4 sm:$0xff]  }
 0x674   : > { %4964 = vmatprep.subr.bf16.mxu0 %v11552_v46  ;;  %5128 = vmatprep.subr.bf16.mxu1 %v11555_v16  ;;  %v11634_v46 = vld [vmem:[#allocation14 + $0x6e0] ss:$16 sps:$4 sm:$0xff]   ;;  %v11637_v16 = vld [vmem:[#allocation14 + $0x6e8] ss:$16 sps:$4 sm:$0xff]  }
 0x677   : > { %4965 = vmatpush1.bf16.msra.mxu0 %v11550_v34  ;;  %5129 = vmatpush1.bf16.msra.mxu1 %v11553_v14  ;;  %v11642_v34 = vld [vmem:[#allocation14 + $0x704] ss:$16 sps:$4 sm:$0xff]   ;;  %v11645_v14 = vld [vmem:[#allocation14 + $0x70c] ss:$16 sps:$4 sm:$0xff]  }
 0x678   : > { %4966 = vmatprep.subr.bf16.mxu0 %v11558_v43  ;;  %5130 = vmatprep.subr.bf16.mxu1 %v11561_v27  ;;  %v11640_v43 = vld [vmem:[#allocation14 + $0x700] ss:$16 sps:$4 sm:$0xff]   ;;  %v11643_v27 = vld [vmem:[#allocation14 + $0x708] ss:$16 sps:$4 sm:$0xff]  }
 0x67b   : > { %4967 = vmatpush1.bf16.msra.mxu0 %v11556_v18  ;;  %5131 = vmatpush1.bf16.msra.mxu1 %v11559_v17  ;;  %v11648_v18 = vld [vmem:[#allocation14 + $0x724] ss:$16 sps:$4 sm:$0xff]   ;;  %v11651_v17 = vld [vmem:[#allocation14 + $0x72c] ss:$16 sps:$4 sm:$0xff]  }
 0x67c   : > { %4968 = vmatprep.subr.bf16.mxu0 %v11564_v1  ;;  %5132 = vmatprep.subr.bf16.mxu1 %v11567_v5  ;;  %v11646_v1 = vld [vmem:[#allocation14 + $0x720] ss:$16 sps:$4 sm:$0xff]   ;;  %v11649_v5 = vld [vmem:[#allocation14 + $0x728] ss:$16 sps:$4 sm:$0xff]  }
 0x67f   : > { %4969 = vmatpush1.bf16.msra.mxu0 %v11562_v36  ;;  %5133 = vmatpush1.bf16.msra.mxu1 %v11565_v57  ;;  %v11654_v36 = vld [vmem:[#allocation14 + $0x744] ss:$16 sps:$4 sm:$0xff]   ;;  %v11657_v57 = vld [vmem:[#allocation14 + $0x74c] ss:$16 sps:$4 sm:$0xff]  }
 0x680   : > { %4970 = vmatprep.subr.bf16.mxu0 %v11570_v19  ;;  %5134 = vmatprep.subr.bf16.mxu1 %v11573_v61  ;;  %v11652_v19 = vld [vmem:[#allocation14 + $0x740] ss:$16 sps:$4 sm:$0xff]   ;;  %v11655_v61 = vld [vmem:[#allocation14 + $0x748] ss:$16 sps:$4 sm:$0xff]  }
 0x683   : > { %4971 = vmatpush1.bf16.msra.mxu0 %v11568_v54  ;;  %5135 = vmatpush1.bf16.msra.mxu1 %v11571_v3  ;;  %v11660_v54 = vld [vmem:[#allocation14 + $0x764] ss:$16 sps:$4 sm:$0xff]   ;;  %v11663_v3 = vld [vmem:[#allocation14 + $0x76c] ss:$16 sps:$4 sm:$0xff]  }
 0x684   : > { %4972 = vmatprep.subr.bf16.mxu0 %v11576_v39  ;;  %5136 = vmatprep.subr.bf16.mxu1 %v11579_v6  ;;  %v11658_v39 = vld [vmem:[#allocation14 + $0x760] ss:$16 sps:$4 sm:$0xff]   ;;  %v11661_v6 = vld [vmem:[#allocation14 + $0x768] ss:$16 sps:$4 sm:$0xff]  }
 0x687   : > { %4973 = vmatpush1.bf16.msra.mxu0 %v11574_v53  ;;  %5137 = vmatpush1.bf16.msra.mxu1 %v11577_v37  ;;  %v11666_v53 = vld [vmem:[#allocation14 + $0x784] ss:$16 sps:$4 sm:$0xff]   ;;  %v11669_v37 = vld [vmem:[#allocation14 + $0x78c] ss:$16 sps:$4 sm:$0xff]  }
 0x688   : > { %4974 = vmatprep.subr.bf16.mxu0 %v11582_v4  ;;  %5138 = vmatprep.subr.bf16.mxu1 %v11585_v63  ;;  %v11664_v4 = vld [vmem:[#allocation14 + $0x780] ss:$16 sps:$4 sm:$0xff]   ;;  %v11667_v63 = vld [vmem:[#allocation14 + $0x788] ss:$16 sps:$4 sm:$0xff]  }
 0x68b   : > { %4975 = vmatpush1.bf16.msra.mxu0 %v11580_v9  ;;  %5139 = vmatpush1.bf16.msra.mxu1 %v11583_v24  ;;  %v11672_v9 = vld [vmem:[#allocation14 + $0x7a4] ss:$16 sps:$4 sm:$0xff]   ;;  %v11675_v24 = vld [vmem:[#allocation14 + $0x7ac] ss:$16 sps:$4 sm:$0xff]  }
 0x68c   : > { %4976 = vmatprep.subr.bf16.mxu0 %v11588_v38  ;;  %5140 = vmatprep.subr.bf16.mxu1 %v11591_v28  ;;  %v11673_v38 = vld [vmem:[#allocation14 + $0x7a8] ss:$16 sps:$4 sm:$0xff]   ;;  %v11678_v28 = vld [vmem:[#allocation14 + $0x7c4] ss:$16 sps:$4 sm:$0xff]  }
 0x68f   : > { %4977 = vmatpush1.bf16.msra.mxu0 %v11586_v45  ;;  %5141 = vmatpush1.bf16.msra.mxu1 %v11589_v2  ;;  %v11681_v45 = vld [vmem:[#allocation14 + $0x7cc] ss:$16 sps:$4 sm:$0xff]   ;;  %v11676_v2 = vld [vmem:[#allocation14 + $0x7c0] ss:$16 sps:$4 sm:$0xff]  }
 0x690   : > { %4987 = vmatprep.subr.bf16.mxu0 %v11594_v41  ;;  %5151 = vmatprep.subr.bf16.mxu1 %v11597_v25  ;;  %v11679_v41 = vld [vmem:[#allocation14 + $0x7c8] ss:$16 sps:$4 sm:$0xff]   ;;  %v11684_v25 = vld [vmem:[#allocation14 + $0x7e4] ss:$16 sps:$4 sm:$0xff]  }
 0x692   : > { %4979 = vmatmul.mubr.bf16.vlgmr.msra.gmra.mrb[0].mxu0 %v3302_v30  ;;  %5143 = vmatmul.mubr.bf16.vlgmr.msra.gmra.mrb[0].mxu1 %v3302_v30  ;;  %v3304_v30 = vpack.c.bf16 %v15179_v59, %v15179_v59  ;;  %v11703_v59 = vld [vmem:[#allocation17 + $0x44] ss:$8 sps:$4 sm:$0xff]  }
 0x693   : > { %4988 = vmatpush1.bf16.msra.mxu0 %v11592_v56  ;;  %5152 = vmatpush1.bf16.msra.mxu1 %v11595_v60  ;;  %v11687_v56 = vld [vmem:[#allocation14 + $0x7ec] ss:$16 sps:$4 sm:$0xff]   ;;  %v11682_v60 = vld [vmem:[#allocation14 + $0x7e0] ss:$16 sps:$4 sm:$0xff]  }
 0x694   : > { %4989 = vmatprep.subr.bf16.mxu0 %v11600_v33  ;;  %5153 = vmatprep.subr.bf16.mxu1 %v11603_v0  ;;  %v11689_v33 = vld [vmem:[#allocation17] ss:$8 sps:$4 sm:$0xff]   ;;  %v11691_v0 = vld [vmem:[#allocation17 + $0x4] ss:$8 sps:$4 sm:$0xff]  }
 0x695   : > { %5019 = vmatprep.mubr.bf16.mxu0 %v3305_v50  ;;  %5183 = vmatprep.mubr.bf16.mxu1 %v3305_v50  ;;  %v11694_v50 = vld [vmem:[#allocation17 + $0x14] ss:$8 sps:$4 sm:$0xff]  }
 0x697   : > { %4990 = vmatpush1.bf16.msra.mxu0 %v11598_v58  ;;  %5154 = vmatpush1.bf16.msra.mxu1 %v11601_v8  ;;  %v11692_v58 = vld [vmem:[#allocation17 + $0x10] ss:$8 sps:$4 sm:$0xff]   ;;  %v11697_v8 = vld [vmem:[#allocation17 + $0x24] ss:$8 sps:$4 sm:$0xff]  }
 0x698   : > { %4991 = vmatprep.subr.bf16.mxu0 %v11606_v10  ;;  %5155 = vmatprep.subr.bf16.mxu1 %v11609_v52  ;;  %v11695_v10 = vld [vmem:[#allocation17 + $0x20] ss:$8 sps:$4 sm:$0xff]   ;;  %v11700_v52 = vld [vmem:[#allocation17 + $0x34] ss:$8 sps:$4 sm:$0xff]  }
 0x69b   : > { %4992 = vmatpush1.bf16.msra.mxu0 %v11604_v35  ;;  %5156 = vmatpush1.bf16.msra.mxu1 %v11607_v48  ;;  %v11698_v35 = vld [vmem:[#allocation17 + $0x30] ss:$8 sps:$4 sm:$0xff]   ;;  %v11701_v48 = vld [vmem:[#allocation17 + $0x40] ss:$8 sps:$4 sm:$0xff]  }
 0x69c   : > { %4993 = vmatprep.subr.bf16.mxu0 %v11612_v51  ;;  %5157 = vmatprep.subr.bf16.mxu1 %v11615_v32  ;;  %v11706_v51 = vld [vmem:[#allocation17 + $0x54] ss:$8 sps:$4 sm:$0xff]   ;;  %v11704_v32 = vld [vmem:[#allocation17 + $0x50] ss:$8 sps:$4 sm:$0xff]  }
 0x69f   : > { %4994 = vmatpush1.bf16.msra.mxu0 %v11610_v26  ;;  %5158 = vmatpush1.bf16.msra.mxu1 %v11613_v62  ;;  %v11709_v26 = vld [vmem:[#allocation17 + $0x64] ss:$8 sps:$4 sm:$0xff]   ;;  %v11707_v62 = vld [vmem:[#allocation17 + $0x60] ss:$8 sps:$4 sm:$0xff]  }
 0x6a0   : > { %4995 = vmatprep.subr.bf16.mxu0 %v11618_v42  ;;  %5159 = vmatprep.subr.bf16.mxu1 %v11621_v23  ;;  %v11712_v42 = vld [vmem:[#allocation17 + $0x74] ss:$8 sps:$4 sm:$0xff]   ;;  %v11710_v23 = vld [vmem:[#allocation17 + $0x70] ss:$8 sps:$4 sm:$0xff]  }
 0x6a3   : > { %4996 = vmatpush1.bf16.msra.mxu0 %v11616_v15  ;;  %5160 = vmatpush1.bf16.msra.mxu1 %v11619_v11  ;;  %v11715_v15 = vld [vmem:[#allocation17 + $0x84] ss:$8 sps:$4 sm:$0xff]   ;;  %v11713_v11 = vld [vmem:[#allocation17 + $0x80] ss:$8 sps:$4 sm:$0xff]  }
 0x6a4   : > { %4997 = vmatprep.subr.bf16.mxu0 %v11624_v55  ;;  %5161 = vmatprep.subr.bf16.mxu1 %v11627_v40  ;;  %v3562_v55 = vld [vmem:[#allocation15] sm:$0xf]  ;;  %v16118_v40 = vld [vmem:[#allocation39_spill] sm:$0xff] }
 0x6a7   : > { %4998 = vmatpush1.bf16.msra.mxu0 %v11622_v44  ;;  %5162 = vmatpush1.bf16.msra.mxu1 %v11625_v31  ;;  %v3567_v44 = vrot.slane %v3562_v55, %v16118_v40  ;;  %v16119_v31 = vld [vmem:[#allocation40_spill] sm:$0xff] }
 0x6a8   : > { %4999 = vmatprep.subr.bf16.mxu0 %v11630_v21  ;;  %5163 = vmatprep.subr.bf16.mxu1 %v11633_v13  ;;  %v3575_v21 = vrot.slane %v3562_v55, %v16119_v31  ;;  %v16120_v13 = vld [vmem:[#allocation41_spill] sm:$0xff] }
 0x6ab   : > { %5000 = vmatpush1.bf16.msra.mxu0 %v11628_v7  ;;  %5164 = vmatpush1.bf16.msra.mxu1 %v11631_v22  ;;  %v3571_v7 = vrot.slane %v3562_v55, %v16120_v13 }
 0x6ac   : > { %5001 = vmatprep.subr.bf16.mxu0 %v11636_v12  ;;  %5165 = vmatprep.subr.bf16.mxu1 %v11639_v47  ;;  %v16121_v47 = vld [vmem:[#allocation42_spill] sm:$0xff] }
 0x6af   : > { %5002 = vmatpush1.bf16.msra.mxu0 %v11634_v46  ;;  %5166 = vmatpush1.bf16.msra.mxu1 %v11637_v16  ;;  %v3579_v46 = vrot.slane %v3562_v55, %v16121_v47 }
 0x6b0   : > { %5003 = vmatprep.subr.bf16.mxu0 %v11642_v34  ;;  %5167 = vmatprep.subr.bf16.mxu1 %v11645_v14 }
 0x6b3   : > { %5004 = vmatpush1.bf16.msra.mxu0 %v11640_v43  ;;  %5168 = vmatpush1.bf16.msra.mxu1 %v11643_v27 }
 0x6b4   : > { %5005 = vmatprep.subr.bf16.mxu0 %v11648_v18  ;;  %5169 = vmatprep.subr.bf16.mxu1 %v11651_v17 }
 0x6b7   : > { %5006 = vmatpush1.bf16.msra.mxu0 %v11646_v1  ;;  %5170 = vmatpush1.bf16.msra.mxu1 %v11649_v5 }
 0x6b8   : > { %5007 = vmatprep.subr.bf16.mxu0 %v11654_v36  ;;  %5171 = vmatprep.subr.bf16.mxu1 %v11657_v57 }
 0x6bb   : > { %5008 = vmatpush1.bf16.msra.mxu0 %v11652_v19  ;;  %5172 = vmatpush1.bf16.msra.mxu1 %v11655_v61 }
 0x6bc   : > { %5009 = vmatprep.subr.bf16.mxu0 %v11660_v54  ;;  %5173 = vmatprep.subr.bf16.mxu1 %v11663_v3 }
 0x6bf   : > { %5010 = vmatpush1.bf16.msra.mxu0 %v11658_v39  ;;  %5174 = vmatpush1.bf16.msra.mxu1 %v11661_v6 }
 0x6c0   : > { %5011 = vmatprep.subr.bf16.mxu0 %v11666_v53  ;;  %5175 = vmatprep.subr.bf16.mxu1 %v11669_v37 }
 0x6c3   : > { %5012 = vmatpush1.bf16.msra.mxu0 %v11664_v4  ;;  %5176 = vmatpush1.bf16.msra.mxu1 %v11667_v63 }
 0x6c4   : > { %5013 = vmatprep.subr.bf16.mxu0 %v11672_v9  ;;  %5177 = vmatprep.subr.bf16.mxu1 %v11675_v24 }
 0x6c7   : > { %5014 = vmatpush1.bf16.msra.mxu0 %v11670_v20  ;;  %5178 = vmatpush1.bf16.msra.mxu1 %v11673_v38 }
 0x6c8   : > { %5015 = vmatprep.subr.bf16.mxu0 %v11678_v28  ;;  %5179 = vmatprep.subr.bf16.mxu1 %v11681_v45 }
 0x6cb   : > { %5016 = vmatpush1.bf16.msra.mxu0 %v11676_v2  ;;  %5180 = vmatpush1.bf16.msra.mxu1 %v11679_v41  ;;  %v11718_v41 = vld [vmem:[#allocation17 + $0x94] ss:$8 sps:$4 sm:$0xff]  }
 0x6cc   : > { %5017 = vmatprep.subr.bf16.mxu0 %v11684_v25  ;;  %5181 = vmatprep.subr.bf16.mxu1 %v11687_v56  ;;  %v11716_v25 = vld [vmem:[#allocation17 + $0x90] ss:$8 sps:$4 sm:$0xff]   ;;  %v11721_v56 = vld [vmem:[#allocation17 + $0xa4] ss:$8 sps:$4 sm:$0xff]  }
 0x6cf   : > { %5018 = vmatpush1.bf16.msra.mxu0 %v11682_v60  ;;  %5182 = vmatpush1.bf16.msra.mxu1 %v11685_v49  ;;  %v11719_v60 = vld [vmem:[#allocation17 + $0xa0] ss:$8 sps:$4 sm:$0xff]   ;;  %v11724_v49 = vld [vmem:[#allocation17 + $0xb4] ss:$8 sps:$4 sm:$0xff]  }
 0x6d0   : > { %5634 = vmatprep.subr.bf16.mxu0 %v11691_v0  ;;  %v11725_v0 = vld [vmem:[#allocation17 + $0xc0] ss:$8 sps:$4 sm:$0xff]  }
 0x6d2   : > { %5020 = vmatmul.mubr.bf16.vlgmr.msra.gmra.mrb[0].mxu0 %v3304_v30  ;;  %5184 = vmatmul.mubr.bf16.vlgmr.msra.gmra.mrb[0].mxu1 %v3304_v30  ;;  %v11722_v30 = vld [vmem:[#allocation17 + $0xb0] ss:$8 sps:$4 sm:$0xff]  }
 0x6d3   : > { %5635 = vmatpush1.bf16.msra.mxu0 %v11689_v33  ;;  %v11727_v33 = vld [vmem:[#allocation17 + $0xc4] ss:$8 sps:$4 sm:$0xff]  }
 0x6d4   : > { %5636 = vmatprep.subr.bf16.mxu0 %v11694_v50  ;;  %v11730_v50 = vld [vmem:[#allocation17 + $0xd4] ss:$8 sps:$4 sm:$0xff]  }
 0x6d7   : > { %5637 = vmatpush1.bf16.msra.mxu0 %v11692_v58  ;;  %v11728_v58 = vld [vmem:[#allocation17 + $0xd0] ss:$8 sps:$4 sm:$0xff]  }
 0x6d8   : > { %5638 = vmatprep.subr.bf16.mxu0 %v11697_v8  ;;  %v11733_v8 = vld [vmem:[#allocation17 + $0xe4] ss:$8 sps:$4 sm:$0xff]  }
 0x6db   : > { %5639 = vmatpush1.bf16.msra.mxu0 %v11695_v10  ;;  %v11731_v10 = vld [vmem:[#allocation17 + $0xe0] ss:$8 sps:$4 sm:$0xff]  }
 0x6dc   : > { %5640 = vmatprep.subr.bf16.mxu0 %v11700_v52  ;;  %v11736_v52 = vld [vmem:[#allocation17 + $0xf4] ss:$8 sps:$4 sm:$0xff]  }
 0x6df   : > { %5641 = vmatpush1.bf16.msra.mxu0 %v11698_v35  ;;  %v11734_v35 = vld [vmem:[#allocation17 + $0xf0] ss:$8 sps:$4 sm:$0xff]  }
 0x6e0   : > { %5642 = vmatprep.subr.bf16.mxu0 %v11703_v59  ;;  %v11739_v59 = vld [vmem:[#allocation17 + $0x104] ss:$8 sps:$4 sm:$0xff]  }
 0x6e3   : > { %5643 = vmatpush1.bf16.msra.mxu0 %v11701_v48 }
 0x6e4   : > { %5644 = vmatprep.subr.bf16.mxu0 %v11706_v51 }
 0x6e7   : > { %5645 = vmatpush1.bf16.msra.mxu0 %v11704_v32 }
 0x6e8   : > { %5646 = vmatprep.subr.bf16.mxu0 %v11709_v26 }
 0x6eb   : > { %5647 = vmatpush1.bf16.msra.mxu0 %v11707_v62 }
 0x6ec   : > { %5648 = vmatprep.subr.bf16.mxu0 %v11712_v42 }
 0x6ef   : > { %5649 = vmatpush1.bf16.msra.mxu0 %v11710_v23 }
 0x6f0   : > { %5650 = vmatprep.subr.bf16.mxu0 %v11715_v15 }
 0x6f3   : > { %5651 = vmatpush1.bf16.msra.mxu0 %v11713_v11 }
 0x6f4   : > { %5652 = vmatprep.subr.bf16.mxu0 %v11718_v41  ;;  %v11772_v41 = vld [vmem:[#allocation17 + $0x1b4] ss:$8 sps:$4 sm:$0xff]  }
 0x6f7   : > { %5653 = vmatpush1.bf16.msra.mxu0 %v11716_v25  ;;  %v11770_v25 = vld [vmem:[#allocation17 + $0x1b0] ss:$8 sps:$4 sm:$0xff]  }
 0x6f8   : > { %5654 = vmatprep.subr.bf16.mxu0 %v11721_v56  ;;  %v11775_v56 = vld [vmem:[#allocation17 + $0x1c4] ss:$8 sps:$4 sm:$0xff]  }
 0x6fb   : > { %5655 = vmatpush1.bf16.msra.mxu0 %v11719_v60  ;;  %v11773_v60 = vld [vmem:[#allocation17 + $0x1c0] ss:$8 sps:$4 sm:$0xff]  }
 0x6fc   : > { %5656 = vmatprep.subr.bf16.mxu0 %v11724_v49  ;;  %v11778_v49 = vld [vmem:[#allocation17 + $0x1d4] ss:$8 sps:$4 sm:$0xff]  }
 0x6ff   : > { %5657 = vmatpush1.bf16.msra.mxu0 %v11722_v30  ;;  %v11776_v30 = vld [vmem:[#allocation17 + $0x1d0] ss:$8 sps:$4 sm:$0xff]  }
 0x700   : > { %5658 = vmatprep.subr.bf16.mxu0 %v11727_v33  ;;  %v11781_v33 = vld [vmem:[#allocation17 + $0x1e4] ss:$8 sps:$4 sm:$0xff]  }
 0x703   : > { %5659 = vmatpush1.bf16.msra.mxu0 %v11725_v0  ;;  %v11779_v0 = vld [vmem:[#allocation17 + $0x1e0] ss:$8 sps:$4 sm:$0xff]  }
 0x704   : > { %5660 = vmatprep.subr.bf16.mxu0 %v11730_v50  ;;  %v11784_v50 = vld [vmem:[#allocation17 + $0x1f4] ss:$8 sps:$4 sm:$0xff]  }
 0x707   : > { %5661 = vmatpush1.bf16.msra.mxu0 %v11728_v58  ;;  %v11782_v58 = vld [vmem:[#allocation17 + $0x1f0] ss:$8 sps:$4 sm:$0xff]  }
 0x708   : > { %5662 = vmatprep.subr.bf16.mxu0 %v11733_v8 }
 0x70b   : > { %5663 = vmatpush1.bf16.msra.mxu0 %v11731_v10 }
 0x70c   : > { %5664 = vmatprep.subr.bf16.mxu0 %v11736_v52  ;;  %v5743_v52 = vld [vmem:[#allocation20] sm:$0xff] }
 0x70f   : > { %5665 = vmatpush1.bf16.msra.mxu0 %v11734_v35  ;;  %v5759_v35 = vld [vmem:[#allocation20 + $0x80] sm:$0xff] }
 0x710   : > { %5675 = vmatprep.subr.bf16.mxu0 %v11739_v59  ;;  %v5745_v59 = vld [vmem:[#allocation20 + $0x10] sm:$0xff] }
 0x7a5   : > { %v5021_v22 = vpop.f32.mrb[0].mxu0  ;;  %v5185_v12 = vpop.f32.mrb[0].mxu1 }
 0x7a6   : > { %v15191_v16 = vadd.f32 %v5021_v22, %v3567_v44  ;;  %v15193_v34 = vadd.f32 %v5185_v12, %v3575_v21  ;;  %v5023_v14 = vpop.f32.mrb[1].mxu0  ;;  %v5187_v43 = vpop.f32.mrb[1].mxu1 }
 0x7a7   : > { %v15195_v27 = vadd.f32 %v5023_v14, %v3571_v7  ;;  %v5025_v18 = vpop.f32.mrb[2].mxu0  ;;  %v5189_v17 = vpop.f32.mrb[2].mxu1  ;;  %v15205_v54 = vadd.f32 %v5187_v43, %v3579_v46 }
 0x7a8   : > { %v5202_v1 = vmul.f32 %v15191_v16, %v15191_v16  ;;  %v5026_v5 = vpop.f32.mrb[3].mxu0  ;;  %v5190_v36 = vpop.f32.mrb[3].mxu1  ;;  %v5193_v57 = vsel %vm5192_vm1, %v15191_v16, 0.0  ;;  %v5204_v19 = vmul.f32 %v15193_v34, %v15193_v34  ;;  %v5196_v53 = vsel %vm5192_vm1, %v15193_v34, 0.0 }
 0x7a9   : > { %v5203_v61 = vmul.f32 %v15195_v27, %v15195_v27  ;;  %v5194_v3 = vsel %vm5192_vm1, %v15195_v27, 0.0  ;;  %v5198_v9 = vsel %vm5192_vm1, %v15205_v54, 0.0  ;;  %v5205_v24 = vmul.f32 %v15205_v54, %v15205_v54  ;;  %v11737_v5 = vld [vmem:[#allocation17 + $0x100] ss:$8 sps:$4 sm:$0xff]  }
 0x7aa   : > { %v5195_v39 = vadd.f32 %v5194_v3, %v5193_v57  ;;  %v5206_v6 = vsel %vm5192_vm1, %v5202_v1, 0.0  ;;  %v5209_v20 = vsel %vm5192_vm1, %v5204_v19, 0.0  ;;  %v11742_v57 = vld [vmem:[#allocation17 + $0x114] ss:$8 sps:$4 sm:$0xff]   ;;  %v11743_v19 = vld [vmem:[#allocation17 + $0x120] ss:$8 sps:$4 sm:$0xff]  }
 0x7ab   : > { %v5207_v37 = vsel %vm5192_vm1, %v5203_v61, 0.0  ;;  %v5211_v45 = vsel %vm5192_vm1, %v5205_v24, 0.0  ;;  %v11748_v61 = vld [vmem:[#allocation17 + $0x134] ss:$8 sps:$4 sm:$0xff]   ;;  %v11751_v3 = vld [vmem:[#allocation17 + $0x144] ss:$8 sps:$4 sm:$0xff]  }
 0x7ac   : > { %v5197_v4 = vadd.f32 %v5196_v53, %v5195_v39  ;;  %v5208_v63 = vadd.f32 %v5207_v37, %v5206_v6  ;;  %v11749_v39 = vld [vmem:[#allocation17 + $0x140] ss:$8 sps:$4 sm:$0xff]   ;;  %v11754_v6 = vld [vmem:[#allocation17 + $0x154] ss:$8 sps:$4 sm:$0xff]   ;;  %v11752_v53 = vld [vmem:[#allocation17 + $0x150] ss:$8 sps:$4 sm:$0xff]  }
 0x7ad   : > { %v11757_v37 = vld [vmem:[#allocation17 + $0x164] ss:$8 sps:$4 sm:$0xff]  }
 0x7ae   : > { %v5199_v38 = vadd.f32 %v5198_v9, %v5197_v4  ;;  %v5210_v28 = vadd.f32 %v5209_v20, %v5208_v63  ;;  %v11755_v4 = vld [vmem:[#allocation17 + $0x160] ss:$8 sps:$4 sm:$0xff]   ;;  %v11760_v63 = vld [vmem:[#allocation17 + $0x174] ss:$8 sps:$4 sm:$0xff]   ;;  %v11758_v9 = vld [vmem:[#allocation17 + $0x170] ss:$8 sps:$4 sm:$0xff]  }
 0x7af   : > { %v11763_v24 = vld [vmem:[#allocation17 + $0x184] ss:$8 sps:$4 sm:$0xff]   ;;  %v11761_v20 = vld [vmem:[#allocation17 + $0x180] ss:$8 sps:$4 sm:$0xff]  }
 0x7b0   : > { %5200 = vadd.xlane.f32.xlu0 %v5199_v38  ;;  %v5212_v2 = vadd.f32 %v5211_v45, %v5210_v28  ;;  %v11766_v38 = vld [vmem:[#allocation17 + $0x194] ss:$8 sps:$4 sm:$0xff]   ;;  %v11764_v28 = vld [vmem:[#allocation17 + $0x190] ss:$8 sps:$4 sm:$0xff]   ;;  %v11769_v45 = vld [vmem:[#allocation17 + $0x1a4] ss:$8 sps:$4 sm:$0xff]  }
 0x7b4   : > { %5213 = vadd.xlane.f32.xlu0 %v5212_v2  ;;  %v11767_v2 = vld [vmem:[#allocation17 + $0x1a0] ss:$8 sps:$4 sm:$0xff]  }
 0x83d   : > { %v5201_v48 = vpop.xlane.xlu0 %5200 }
 0x83e   : > { %v5215_v51 = vmul.f32 0.001953125, %v5201_v48  ;;  %v10469_v48 = vcombine.low %v5743_v52, %v5759_v35 }
 0x840   : > { %v5217_v26 = vmul.f32 %v5215_v51, %v5215_v51  ;;  %v5221_v11 = vsub.f32 %v15195_v27, %v5215_v51  ;;  %v5220_v55 = vsub.f32 %v15191_v16, %v5215_v51  ;;  %v5223_v44 = vsub.f32 %v15205_v54, %v5215_v51  ;;  %v11740_v16 = vld [vmem:[#allocation17 + $0x110] ss:$8 sps:$4 sm:$0xff]  }
 0x841   : > { %v5214_v32 = vpop.xlane.xlu0 %5213  ;;  %v5222_v21 = vsub.f32 %v15193_v34, %v5215_v51  ;;  %v11745_v34 = vld [vmem:[#allocation17 + $0x124] ss:$8 sps:$4 sm:$0xff]   ;;  %v11746_v54 = vld [vmem:[#allocation17 + $0x130] ss:$8 sps:$4 sm:$0xff]   ;;  %v10470_v51 = vcombine.high %v5743_v52, %v5759_v35 }
 0x842   : > { %v5216_v62 = vmul.f32 0.001953125, %v5214_v32  ;;  %v5761_v32 = vld [vmem:[#allocation20 + $0x90] sm:$0xff] }
 0x843   : > { %8983 = vmatprep.subr.bf16.mxu1 %v10470_v51  ;;  %v6015_v51 = vld [vmem:[#allocation20 + $0x880] sm:$0xff] }
 0x844   : > { %v5218_v42 = vsub.f32 %v5216_v62, %v5217_v26  ;;  %v5775_v26 = vld [vmem:[#allocation20 + $0x100] sm:$0xff]  ;;  %8984 = vmatpush1.bf16.msra.mxu1 %v10469_v48 }
 0x845   : > { %v5791_v62 = vld [vmem:[#allocation20 + $0x180] sm:$0xff] }
 0x846   : > { %v5219_v23 = vmax.f32 %v5218_v42, 0.0  ;;  %v10473_v42 = vcombine.low %v5745_v59, %v5761_v32  ;;  %v5999_v48 = vld [vmem:[#allocation20 + $0x800] sm:$0xff] }
 0x848   : > { %v5224_v15 = vadd.f32 1e-05, %v5219_v23  ;;  %v10474_v23 = vcombine.high %v5745_v59, %v5761_v32  ;;  %v6001_v32 = vld [vmem:[#allocation20 + $0x810] sm:$0xff] }
 0x84a   : > { %11785 = vrsqrt.f32 %v5224_v15  ;;  %v10502_v15 = vcombine.high %v5775_v26, %v5791_v62 }
 0x84c   : > { %8985 = vmatprep.subr.bf16.mxu1 %v10502_v15 }
 0x854   : > { %v11786_v7 = vpop.eup %11785 }
 0x855   : > { %v5227_v22 = vmul.f32 %v11786_v7, %v5221_v11  ;;  %v5226_v12 = vmul.f32 %v11786_v7, %v5220_v55  ;;  %v5229_v46 = vmul.f32 %v11786_v7, %v5223_v44  ;;  %v15223_v14 = vmul.f32 %v11786_v7, %v5222_v21  ;;  %v5777_v11 = vld [vmem:[#allocation20 + $0x110] sm:$0xff]  ;;  %v5807_v44 = vld [vmem:[#allocation20 + $0x200] sm:$0xff] }
 0x856   : > { %v5793_v55 = vld [vmem:[#allocation20 + $0x190] sm:$0xff]  ;;  %v5823_v7 = vld [vmem:[#allocation20 + $0x280] sm:$0xff] }
 0x857   : > { %v5231_v43 = vmax.f32 %v5227_v22, 0.0  ;;  %v5230_v18 = vmax.f32 %v5226_v12, 0.0  ;;  %v5233_v17 = vmax.f32 %v5229_v46, 0.0  ;;  %v5232_v8 = vmax.f32 %v15223_v14, 0.0  ;;  %v5809_v22 = vld [vmem:[#allocation20 + $0x210] sm:$0xff] }
 0x858   : > { %v10506_v21 = vcombine.high %v5777_v11, %v5793_v55  ;;  %v5825_v12 = vld [vmem:[#allocation20 + $0x290] sm:$0xff]  ;;  %v10501_v46 = vcombine.low %v5775_v26, %v5791_v62  ;;  %v10505_v14 = vcombine.low %v5777_v11, %v5793_v55  ;;  %v10725_v11 = vcombine.low %v5999_v48, %v6015_v51 }
 0x859   : > { %v5235_v1 = vpack.c.bf16 %v5231_v43, %v5231_v43  ;;  %v5234_v36 = vpack.c.bf16 %v5230_v18, %v5230_v18  ;;  %v5237_v27 = vpack.c.bf16 %v5233_v17, %v5233_v17  ;;  %v5236_v10 = vpack.c.bf16 %v5232_v8, %v5232_v8  ;;  %v5839_v17 = vld [vmem:[#allocation20 + $0x300] sm:$0xff]  ;;  %v5985_v8 = vld [vmem:[#allocation20 + $0x790] sm:$0xff] }
 0x85a   : > { %v10534_v43 = vcombine.high %v5807_v44, %v5823_v7  ;;  %v10538_v18 = vcombine.high %v5809_v22, %v5825_v12  ;;  %8986 = vmatpush1.bf16.msra.mxu1 %v10501_v46  ;;  %v6017_v26 = vld [vmem:[#allocation20 + $0x890] sm:$0xff] }
 0x85b   : > { %5666 = vmatprep.mubr.bf16.mxu0 %v5235_v1  ;;  %v5855_v1 = vld [vmem:[#allocation20 + $0x380] sm:$0xff]  ;;  %v10730_v15 = vcombine.high %v6001_v32, %v6017_v26  ;;  %v10729_v55 = vcombine.low %v6001_v32, %v6017_v26  ;;  %v6161_v32 = vld [vmem:[#allocation20 + $0xd10] sm:$0xff] }
 0x85c   : > { %5667 = vmatmul.mubr.bf16.vlgmr.msra.gmra.mrb[4].mxu0 %v5234_v36  ;;  %v5857_v36 = vld [vmem:[#allocation20 + $0x390] sm:$0xff]  ;;  %8987 = vmatprep.subr.bf16.mxu1 %v10534_v43 }
 0x85d   : > { %5676 = vmatpush1.bf16.msra.mxu0 %v11737_v5  ;;  %5707 = vmatprep.mubr.bf16.mxu0 %v5237_v27  ;;  %v5841_v5 = vld [vmem:[#allocation20 + $0x310] sm:$0xff]  ;;  %v10537_v27 = vcombine.low %v5809_v22, %v5825_v12 }
 0x85e   : > { %5677 = vmatprep.subr.bf16.mxu0 %v11742_v57  ;;  %v10533_v57 = vcombine.low %v5807_v44, %v5823_v7  ;;  %v5302_v44 = vld [vmem:[#allocation18] sm:$0x3] }
 0x85f   : > { %v5311_v7 = vrot.slane %v5302_v44, %v16120_v13 }
 0x860   : > { %8988 = vmatpush1.bf16.msra.mxu1 %v10533_v57 }
 0x861   : > { %5678 = vmatpush1.bf16.msra.mxu0 %v11740_v16  ;;  %v10566_v16 = vcombine.high %v5839_v17, %v5855_v1 }
 0x862   : > { %5679 = vmatprep.subr.bf16.mxu0 %v11745_v34  ;;  %v10570_v34 = vcombine.high %v5841_v5, %v5857_v36 }
 0x863   : > { %8989 = vmatprep.subr.bf16.mxu1 %v10566_v16 }
 0x865   : > { %5680 = vmatpush1.bf16.msra.mxu0 %v11743_v19  ;;  %v5871_v19 = vld [vmem:[#allocation20 + $0x400] sm:$0xff] }
 0x866   : > { %5681 = vmatprep.subr.bf16.mxu0 %v11748_v61  ;;  %v5887_v61 = vld [vmem:[#allocation20 + $0x480] sm:$0xff] }
 0x869   : > { %5682 = vmatpush1.bf16.msra.mxu0 %v11746_v54  ;;  %v5873_v54 = vld [vmem:[#allocation20 + $0x410] sm:$0xff] }
 0x86a   : > { %5683 = vmatprep.subr.bf16.mxu0 %v11751_v3  ;;  %v5889_v3 = vld [vmem:[#allocation20 + $0x490] sm:$0xff] }
 0x86d   : > { %5684 = vmatpush1.bf16.msra.mxu0 %v11749_v39  ;;  %v10565_v39 = vcombine.low %v5839_v17, %v5855_v1 }
 0x86e   : > { %5685 = vmatprep.subr.bf16.mxu0 %v11754_v6  ;;  %v10569_v6 = vcombine.low %v5841_v5, %v5857_v36 }
 0x86f   : > { %8990 = vmatpush1.bf16.msra.mxu1 %v10565_v39  ;;  %v6049_v39 = vld [vmem:[#allocation20 + $0x990] sm:$0xff] }
 0x871   : > { %5686 = vmatpush1.bf16.msra.mxu0 %v11752_v53  ;;  %v10598_v53 = vcombine.high %v5871_v19, %v5887_v61 }
 0x872   : > { %5687 = vmatprep.subr.bf16.mxu0 %v11757_v37  ;;  %v10602_v37 = vcombine.high %v5873_v54, %v5889_v3 }
 0x873   : > { %8991 = vmatprep.subr.bf16.mxu1 %v10598_v53 }
 0x875   : > { %5688 = vmatpush1.bf16.msra.mxu0 %v11755_v4  ;;  %v5903_v4 = vld [vmem:[#allocation20 + $0x500] sm:$0xff] }
 0x876   : > { %5689 = vmatprep.subr.bf16.mxu0 %v11760_v63  ;;  %v5919_v63 = vld [vmem:[#allocation20 + $0x580] sm:$0xff] }
 0x879   : > { %5690 = vmatpush1.bf16.msra.mxu0 %v11758_v9  ;;  %v5905_v9 = vld [vmem:[#allocation20 + $0x510] sm:$0xff] }
 0x87a   : > { %5691 = vmatprep.subr.bf16.mxu0 %v11763_v24  ;;  %v5921_v24 = vld [vmem:[#allocation20 + $0x590] sm:$0xff] }
 0x87d   : > { %5692 = vmatpush1.bf16.msra.mxu0 %v11761_v20  ;;  %v10597_v20 = vcombine.low %v5871_v19, %v5887_v61  ;;  %v6031_v19 = vld [vmem:[#allocation20 + $0x900] sm:$0xff] }
 0x87e   : > { %5693 = vmatprep.subr.bf16.mxu0 %v11766_v38  ;;  %v10601_v38 = vcombine.low %v5873_v54, %v5889_v3  ;;  %v6047_v61 = vld [vmem:[#allocation20 + $0x980] sm:$0xff]  ;;  %v6033_v54 = vld [vmem:[#allocation20 + $0x910] sm:$0xff] }
 0x87f   : > { %8992 = vmatpush1.bf16.msra.mxu1 %v10597_v20  ;;  %v10758_v3 = vcombine.high %v6031_v19, %v6047_v61  ;;  %v10761_v53 = vcombine.low %v6033_v54, %v6049_v39  ;;  %v6081_v20 = vld [vmem:[#allocation20 + $0xa90] sm:$0xff] }
 0x881   : > { %5694 = vmatpush1.bf16.msra.mxu0 %v11764_v28  ;;  %v10630_v28 = vcombine.high %v5903_v4, %v5919_v63 }
 0x882   : > { %5695 = vmatprep.subr.bf16.mxu0 %v11769_v45  ;;  %v10634_v45 = vcombine.high %v5905_v9, %v5921_v24 }
 0x883   : > { %8993 = vmatprep.subr.bf16.mxu1 %v10630_v28 }
 0x885   : > { %5696 = vmatpush1.bf16.msra.mxu0 %v11767_v2  ;;  %v5935_v2 = vld [vmem:[#allocation20 + $0x600] sm:$0xff] }
 0x886   : > { %5697 = vmatprep.subr.bf16.mxu0 %v11772_v41  ;;  %v5951_v41 = vld [vmem:[#allocation20 + $0x680] sm:$0xff] }
 0x889   : > { %5698 = vmatpush1.bf16.msra.mxu0 %v11770_v25  ;;  %v5937_v25 = vld [vmem:[#allocation20 + $0x610] sm:$0xff] }
 0x88a   : > { %5699 = vmatprep.subr.bf16.mxu0 %v11775_v56  ;;  %v5953_v56 = vld [vmem:[#allocation20 + $0x690] sm:$0xff] }
 0x88b   : > { %v10665_v52 = vcombine.low %v5937_v25, %v5953_v56 }
 0x88d   : > { %5700 = vmatpush1.bf16.msra.mxu0 %v11773_v60  ;;  %v10629_v60 = vcombine.low %v5903_v4, %v5919_v63  ;;  %v6063_v4 = vld [vmem:[#allocation20 + $0xa00] sm:$0xff] }
 0x88e   : > { %5701 = vmatprep.subr.bf16.mxu0 %v11778_v49  ;;  %v10633_v49 = vcombine.low %v5905_v9, %v5921_v24  ;;  %v6079_v63 = vld [vmem:[#allocation20 + $0xa80] sm:$0xff]  ;;  %v6065_v9 = vld [vmem:[#allocation20 + $0xa10] sm:$0xff] }
 0x88f   : > { %8994 = vmatpush1.bf16.msra.mxu1 %v10629_v60  ;;  %v10790_v24 = vcombine.high %v6063_v4, %v6079_v63  ;;  %v10793_v28 = vcombine.low %v6065_v9, %v6081_v20  ;;  %v6113_v60 = vld [vmem:[#allocation20 + $0xb90] sm:$0xff] }
 0x891   : > { %5702 = vmatpush1.bf16.msra.mxu0 %v11776_v30  ;;  %v10662_v30 = vcombine.high %v5935_v2, %v5951_v41 }
 0x892   : > { %5703 = vmatprep.subr.bf16.mxu0 %v11781_v33  ;;  %v10666_v33 = vcombine.high %v5937_v25, %v5953_v56  ;;  %v6097_v25 = vld [vmem:[#allocation20 + $0xb10] sm:$0xff] }
 0x893   : > { %8995 = vmatprep.subr.bf16.mxu1 %v10662_v30  ;;  %v10825_v30 = vcombine.low %v6097_v25, %v6113_v60 }
 0x895   : > { %5704 = vmatpush1.bf16.msra.mxu0 %v11779_v0  ;;  %v5967_v0 = vld [vmem:[#allocation20 + $0x700] sm:$0xff] }
 0x896   : > { %5705 = vmatprep.subr.bf16.mxu0 %v11784_v50  ;;  %v5983_v50 = vld [vmem:[#allocation20 + $0x780] sm:$0xff] }
 0x897   : > { %v10694_v35 = vcombine.high %v5967_v0, %v5983_v50  ;;  %v10693_v62 = vcombine.low %v5967_v0, %v5983_v50  ;;  %v6127_v0 = vld [vmem:[#allocation20 + $0xc00] sm:$0xff] }
 0x898   : > { %v6143_v50 = vld [vmem:[#allocation20 + $0xc80] sm:$0xff] }
 0x899   : > { %5706 = vmatpush1.bf16.msra.mxu0 %v11782_v58  ;;  %v5969_v58 = vld [vmem:[#allocation20 + $0x710] sm:$0xff] }
 0x89a   : > { %9065 = vmatprep.subr.bf16.mxu0 %v10474_v23  ;;  %v10698_v59 = vcombine.high %v5969_v58, %v5985_v8  ;;  %v10726_v23 = vcombine.high %v5999_v48, %v6015_v51  ;;  %v6159_v48 = vld [vmem:[#allocation20 + $0xd00] sm:$0xff] }
 0x89b   : > { %v6175_v51 = vld [vmem:[#allocation20 + $0xd80] sm:$0xff] }
 0x89c   : > { %5708 = vmatmul.mubr.bf16.vlgmr.msra.gmra.mrb[4].mxu0 %v5236_v10  ;;  %v10661_v10 = vcombine.low %v5935_v2, %v5951_v41  ;;  %v6095_v2 = vld [vmem:[#allocation20 + $0xb00] sm:$0xff]  ;;  %v10886_v26 = vcombine.high %v6159_v48, %v6175_v51 }
 0x89d   : > { %9066 = vmatpush1.bf16.msra.mxu0 %v10473_v42  ;;  %v10697_v42 = vcombine.low %v5969_v58, %v5985_v8  ;;  %v6111_v41 = vld [vmem:[#allocation20 + $0xb80] sm:$0xff]  ;;  %v6129_v58 = vld [vmem:[#allocation20 + $0xc10] sm:$0xff]  ;;  %v10854_v8 = vcombine.high %v6127_v0, %v6143_v50 }
 0x89e   : > { %9067 = vmatprep.subr.bf16.mxu0 %v10506_v21  ;;  %8996 = vmatpush1.bf16.msra.mxu1 %v10661_v10  ;;  %v5307_v21 = vrot.slane %v5302_v44, %v16118_v40  ;;  %v10822_v56 = vcombine.high %v6095_v2, %v6111_v41  ;;  %v6145_v10 = vld [vmem:[#allocation20 + $0xc90] sm:$0xff] }
 0x89f   : > { %8997 = vmatprep.subr.bf16.mxu1 %v10694_v35  ;;  %v10857_v35 = vcombine.low %v6129_v58, %v6145_v10  ;;  %v6193_v44 = vld [vmem:[#allocation20 + $0xe10] sm:$0xff] }
 0x8a1   : > { %9068 = vmatpush1.bf16.msra.mxu0 %v10505_v14 }
 0x8a2   : > { %9069 = vmatprep.subr.bf16.mxu0 %v10538_v18  ;;  %8998 = vmatpush1.bf16.msra.mxu1 %v10693_v62  ;;  %v6177_v62 = vld [vmem:[#allocation20 + $0xd90] sm:$0xff] }
 0x8a3   : > { %8999 = vmatprep.subr.bf16.mxu1 %v10726_v23  ;;  %v10889_v23 = vcombine.low %v6161_v32, %v6177_v62 }
 0x8a5   : > { %9070 = vmatpush1.bf16.msra.mxu0 %v10537_v27 }
 0x8a6   : > { %9071 = vmatprep.subr.bf16.mxu0 %v10570_v34  ;;  %9000 = vmatpush1.bf16.msra.mxu1 %v10725_v11  ;;  %v6191_v11 = vld [vmem:[#allocation20 + $0xe00] sm:$0xff] }
 0x8a7   : > { %9001 = vmatprep.subr.bf16.mxu1 %v10758_v3  ;;  %v5763_v3 = vld [vmem:[#allocation20 + $0xa0] sm:$0xff] }
 0x8a9   : > { %9072 = vmatpush1.bf16.msra.mxu0 %v10569_v6  ;;  %v10757_v6 = vcombine.low %v6031_v19, %v6047_v61  ;;  %v5760_v19 = vld [vmem:[#allocation20 + $0x88] sm:$0xff]  ;;  %v5747_v61 = vld [vmem:[#allocation20 + $0x20] sm:$0xff] }
 0x8aa   : > { %9073 = vmatprep.subr.bf16.mxu0 %v10602_v37  ;;  %v10762_v37 = vcombine.high %v6033_v54, %v6049_v39 }
 0x8ab   : > { %9002 = vmatpush1.bf16.msra.mxu1 %v10757_v6  ;;  %v10477_v6 = vcombine.low %v5747_v61, %v5763_v3 }
 0x8ac   : > { %9003 = vmatprep.subr.bf16.mxu1 %v10790_v24 }
 0x8ad   : > { %9074 = vmatpush1.bf16.msra.mxu0 %v10601_v38  ;;  %v10789_v38 = vcombine.low %v6063_v4, %v6079_v63 }
 0x8ae   : > { %9075 = vmatprep.subr.bf16.mxu0 %v10634_v45  ;;  %v10794_v45 = vcombine.high %v6065_v9, %v6081_v20 }
 0x8af   : > { %9004 = vmatpush1.bf16.msra.mxu1 %v10789_v38 }
 0x8b0   : > { %9005 = vmatprep.subr.bf16.mxu1 %v10822_v56 }
 0x8b1   : > { %9076 = vmatpush1.bf16.msra.mxu0 %v10633_v49  ;;  %v10821_v49 = vcombine.low %v6095_v2, %v6111_v41 }
 0x8b2   : > { %9077 = vmatprep.subr.bf16.mxu0 %v10666_v33  ;;  %v10826_v33 = vcombine.high %v6097_v25, %v6113_v60 }
 0x8b3   : > { %9006 = vmatpush1.bf16.msra.mxu1 %v10821_v49 }
 0x8b4   : > { %9007 = vmatprep.subr.bf16.mxu1 %v10854_v8 }
 0x8b5   : > { %9078 = vmatpush1.bf16.msra.mxu0 %v10665_v52  ;;  %v10853_v52 = vcombine.low %v6127_v0, %v6143_v50  ;;  %v5779_v0 = vld [vmem:[#allocation20 + $0x120] sm:$0xff] }
 0x8b6   : > { %9079 = vmatprep.subr.bf16.mxu0 %v10698_v59  ;;  %v10858_v59 = vcombine.high %v6129_v58, %v6145_v10  ;;  %v5795_v50 = vld [vmem:[#allocation20 + $0x1a0] sm:$0xff]  ;;  %v5808_v10 = vld [vmem:[#allocation20 + $0x208] sm:$0xff] }
 0x8b7   : > { %9008 = vmatpush1.bf16.msra.mxu1 %v10853_v52  ;;  %v5824_v52 = vld [vmem:[#allocation20 + $0x288] sm:$0xff] }
 0x8b8   : > { %9009 = vmatprep.subr.bf16.mxu1 %v10886_v26 }
 0x8b9   : > { %9080 = vmatpush1.bf16.msra.mxu0 %v10697_v42  ;;  %v10885_v42 = vcombine.low %v6159_v48, %v6175_v51  ;;  %v10509_v51 = vcombine.low %v5779_v0, %v5795_v50 }
 0x8ba   : > { %9081 = vmatprep.subr.bf16.mxu0 %v10730_v15  ;;  %v10890_v15 = vcombine.high %v6161_v32, %v6177_v62  ;;  %v10536_v32 = vcombine.high %v5808_v10, %v5824_v52  ;;  %v5840_v62 = vld [vmem:[#allocation20 + $0x308] sm:$0xff] }
 0x8bb   : > { %9010 = vmatpush1.bf16.msra.mxu1 %v10885_v42  ;;  %v5856_v42 = vld [vmem:[#allocation20 + $0x388] sm:$0xff] }
 0x8bd   : > { %9082 = vmatpush1.bf16.msra.mxu0 %v10729_v55  ;;  %v6207_v55 = vld [vmem:[#allocation20 + $0xe80] sm:$0xff] }
 0x8be   : > { %9083 = vmatprep.subr.bf16.mxu0 %v10762_v37 }
 0x8c1   : > { %9084 = vmatpush1.bf16.msra.mxu0 %v10761_v53  ;;  %v10478_v53 = vcombine.high %v5747_v61, %v5763_v3  ;;  %v5936_v3 = vld [vmem:[#allocation20 + $0x608] sm:$0xff] }
 0x8c2   : > { %9085 = vmatprep.subr.bf16.mxu0 %v10794_v45 }
 0x8c5   : > { %9086 = vmatpush1.bf16.msra.mxu0 %v10793_v28 }
 0x8c6   : > { %9087 = vmatprep.subr.bf16.mxu0 %v10826_v33  ;;  %v5792_v33 = vld [vmem:[#allocation20 + $0x188] sm:$0xff] }
 0x8c9   : > { %9088 = vmatpush1.bf16.msra.mxu0 %v10825_v30  ;;  %v5776_v30 = vld [vmem:[#allocation20 + $0x108] sm:$0xff] }
 0x8ca   : > { %9089 = vmatprep.subr.bf16.mxu0 %v10858_v59  ;;  %v5827_v59 = vld [vmem:[#allocation20 + $0x2a0] sm:$0xff]  ;;  %v10503_v48 = vcombine.low %v5776_v30, %v5792_v33 }
 0x8cd   : > { %9090 = vmatpush1.bf16.msra.mxu0 %v10857_v35  ;;  %v5811_v35 = vld [vmem:[#allocation20 + $0x220] sm:$0xff] }
 0x8ce   : > { %9091 = vmatprep.subr.bf16.mxu0 %v10890_v15  ;;  %v10542_v26 = vcombine.high %v5811_v35, %v5827_v59  ;;  %v5859_v15 = vld [vmem:[#allocation20 + $0x3a0] sm:$0xff] }
 0x8d1   : > { %9092 = vmatpush1.bf16.msra.mxu0 %v10889_v23  ;;  %v5843_v23 = vld [vmem:[#allocation20 + $0x320] sm:$0xff] }
 0x96f   : > { %v5709_v22 = vpop.f32.mrb[4].mxu0 }
 0x970   : > { %v15228_v12 = vadd.f32 %v5709_v22, %v5307_v21  ;;  %v5711_v46 = vpop.f32.mrb[5].mxu0  ;;  %v10918_v21 = vcombine.high %v6191_v11, %v6207_v55  ;;  %v10917_v22 = vcombine.low %v6191_v11, %v6207_v55  ;;  %v10535_v11 = vcombine.low %v5808_v10, %v5824_v52  ;;  %v6035_v52 = vld [vmem:[#allocation20 + $0x920] sm:$0xff] }
 0x971   : > { %v15230_v14 = vadd.f32 %v5711_v46, %v5311_v7  ;;  %v5713_v43 = vpop.f32.mrb[6].mxu0  ;;  %v6209_v7 = vld [vmem:[#allocation20 + $0xe90] sm:$0xff]  ;;  %v10541_v55 = vcombine.low %v5811_v35, %v5827_v59  ;;  %v6051_v35 = vld [vmem:[#allocation20 + $0x9a0] sm:$0xff] }
 0x972   : > { %v5714_v18 = vpop.f32.mrb[7].mxu0  ;;  %v5716_v17 = vsel %vm5192_vm1, %v15228_v12, 0.0  ;;  %v5721_v1 = vmul.f32 %v15228_v12, %v15228_v12  ;;  %v10921_v46 = vcombine.low %v6193_v44, %v6209_v7  ;;  %v10922_v43 = vcombine.high %v6193_v44, %v6209_v7  ;;  %9011 = vmatprep.subr.bf16.mxu1 %v10918_v21  ;;  %v5872_v7 = vld [vmem:[#allocation20 + $0x408] sm:$0xff] }
 0x973   : > { %v5717_v5 = vsel %vm5192_vm1, %v15230_v14, 0.0  ;;  %v5722_v36 = vmul.f32 %v15230_v14, %v15230_v14  ;;  %9012 = vmatpush1.bf16.msra.mxu1 %v10917_v22  ;;  %v6223_v18 = vld [vmem:[#allocation20 + $0xf00] sm:$0xff]  ;;  %v10568_v44 = vcombine.high %v5840_v62, %v5856_v42  ;;  %v10574_v21 = vcombine.high %v5843_v23, %v5859_v15  ;;  %v5888_v22 = vld [vmem:[#allocation20 + $0x488] sm:$0xff] }
 0x974   : > { %v5718_v57 = vadd.f32 %v5717_v5, %v5716_v17  ;;  %v5723_v27 = vsel %vm5192_vm1, %v5721_v1, 0.0  ;;  %9093 = vmatprep.subr.bf16.mxu0 %v10922_v43  ;;  %v6239_v17 = vld [vmem:[#allocation20 + $0xf80] sm:$0xff]  ;;  %v6225_v1 = vld [vmem:[#allocation20 + $0xf10] sm:$0xff] }
 0x975   : > { %v5724_v16 = vsel %vm5192_vm1, %v5722_v36, 0.0  ;;  %9094 = vmatpush1.bf16.msra.mxu0 %v10921_v46  ;;  %v10950_v5 = vcombine.high %v6223_v18, %v6239_v17  ;;  %v6241_v36 = vld [vmem:[#allocation20 + $0xf90] sm:$0xff]  ;;  %v5875_v46 = vld [vmem:[#allocation20 + $0x420] sm:$0xff] }
 0x976   : > { %5719 = vadd.xlane.f32.xlu1 %v5718_v57  ;;  %v5725_v34 = vadd.f32 %v5724_v16, %v5723_v27  ;;  %v10949_v57 = vcombine.low %v6223_v18, %v6239_v17  ;;  %v10953_v27 = vcombine.low %v6225_v1, %v6241_v36  ;;  %v10954_v16 = vcombine.high %v6225_v1, %v6241_v36  ;;  %v5891_v43 = vld [vmem:[#allocation20 + $0x4a0] sm:$0xff]  ;;  %v5904_v36 = vld [vmem:[#allocation20 + $0x508] sm:$0xff] }
 0x977   : > { %9013 = vmatprep.subr.bf16.mxu1 %v10950_v5  ;;  %v10567_v18 = vcombine.low %v5840_v62, %v5856_v42  ;;  %v10573_v17 = vcombine.low %v5843_v23, %v5859_v15  ;;  %v10600_v1 = vcombine.high %v5872_v7, %v5888_v22  ;;  %v10606_v5 = vcombine.high %v5875_v46, %v5891_v43  ;;  %v6080_v62 = vld [vmem:[#allocation20 + $0xa88] sm:$0xff]  ;;  %v6067_v42 = vld [vmem:[#allocation20 + $0xa20] sm:$0xff] }
 0x978   : > { %9095 = vmatprep.subr.bf16.mxu0 %v10954_v16  ;;  %9014 = vmatpush1.bf16.msra.mxu1 %v10949_v57  ;;  %v5920_v57 = vld [vmem:[#allocation20 + $0x588] sm:$0xff]  ;;  %v5923_v16 = vld [vmem:[#allocation20 + $0x5a0] sm:$0xff] }
 0x979   : > { %9096 = vmatpush1.bf16.msra.mxu0 %v10953_v27  ;;  %v5907_v27 = vld [vmem:[#allocation20 + $0x520] sm:$0xff]  ;;  %v10632_v61 = vcombine.high %v5904_v36, %v5920_v57 }
 0x97a   : > { %5726 = vadd.xlane.f32.xlu1 %v5725_v34  ;;  %v5744_v34 = vld [vmem:[#allocation20 + $0x8] sm:$0xff]  ;;  %9147 = vmatprep.subr.bf16.mxu0 %v10478_v53  ;;  %v5955_v53 = vld [vmem:[#allocation20 + $0x6a0] sm:$0xff] }
 0x97b   : > { %v10472_v54 = vcombine.high %v5744_v34, %v5760_v19  ;;  %v10471_v39 = vcombine.low %v5744_v34, %v5760_v19  ;;  %v10599_v34 = vcombine.low %v5872_v7, %v5888_v22  ;;  %v10605_v19 = vcombine.low %v5875_v46, %v5891_v43  ;;  %v6083_v23 = vld [vmem:[#allocation20 + $0xaa0] sm:$0xff]  ;;  %v6112_v7 = vld [vmem:[#allocation20 + $0xb88] sm:$0xff] }
 0x97c   : > { %v6099_v22 = vld [vmem:[#allocation20 + $0xb20] sm:$0xff] }
 0x97d   : > { %9024 = vmatprep.subr.bf16.mxu1 %v10472_v54  ;;  %v10638_v54 = vcombine.high %v5907_v27, %v5923_v16  ;;  %v6115_v46 = vld [vmem:[#allocation20 + $0xba0] sm:$0xff] }
 0xa03   : > { %v5720_v37 = vpop.xlane.xlu1 %5719 }
 0xa04   : > { %v5728_v4 = vmul.f32 0.00390625, %v5720_v37  ;;  %v10631_v37 = vcombine.low %v5904_v36, %v5920_v57  ;;  %v6144_v36 = vld [vmem:[#allocation20 + $0xc88] sm:$0xff]  ;;  %v6131_v57 = vld [vmem:[#allocation20 + $0xc20] sm:$0xff] }
 0xa06   : > { %v5730_v9 = vmul.f32 %v5728_v4, %v5728_v4  ;;  %v5733_v45 = vsub.f32 %v15228_v12, %v5728_v4  ;;  %v5734_v2 = vsub.f32 %v15230_v14, %v5728_v4  ;;  %v10504_v12 = vcombine.high %v5776_v30, %v5792_v33  ;;  %v6019_v30 = vld [vmem:[#allocation20 + $0x8a0] sm:$0xff] }
 0xa07   : > { %v5727_v63 = vpop.xlane.xlu1 %5726  ;;  %v10510_v14 = vcombine.high %v5779_v0, %v5795_v50  ;;  %v10637_v4 = vcombine.low %v5907_v27, %v5923_v16  ;;  %v6147_v27 = vld [vmem:[#allocation20 + $0xca0] sm:$0xff] }
 0xa08   : > { %v5729_v24 = vmul.f32 0.00390625, %v5727_v63 }
 0xa0a   : > { %v5731_v20 = vsub.f32 %v5729_v24, %v5730_v9  ;;  %v5968_v24 = vld [vmem:[#allocation20 + $0x708] sm:$0xff] }
 0xa0c   : > { %v5732_v38 = vmax.f32 %v5731_v20, 0.0  ;;  %v5984_v20 = vld [vmem:[#allocation20 + $0x788] sm:$0xff] }
 0xa0d   : > { %v10695_v33 = vcombine.low %v5968_v24, %v5984_v20 }
 0xa0e   : > { %v5735_v28 = vadd.f32 1e-05, %v5732_v38  ;;  %v5971_v38 = vld [vmem:[#allocation20 + $0x720] sm:$0xff] }
 0xa10   : > { %11787 = vrsqrt.f32 %v5735_v28  ;;  %v5987_v28 = vld [vmem:[#allocation20 + $0x7a0] sm:$0xff] }
 0xa11   : > { %v10701_v0 = vcombine.low %v5971_v38, %v5987_v28 }
 0xa1a   : > { %v11788_v41 = vpop.eup %11787 }
 0xa1b   : > { %v5737_v25 = vmul.f32 %v11788_v41, %v5733_v45  ;;  %v5738_v56 = vmul.f32 %v11788_v41, %v5734_v2  ;;  %v10696_v41 = vcombine.high %v5968_v24, %v5984_v20  ;;  %v6208_v24 = vld [vmem:[#allocation20 + $0xe88] sm:$0xff]  ;;  %v6195_v20 = vld [vmem:[#allocation20 + $0xe20] sm:$0xff] }
 0xa1d   : > { %v5739_v60 = vmax.f32 %v5737_v25, 0.0  ;;  %v5740_v49 = vmax.f32 %v5738_v56, 0.0  ;;  %v10702_v25 = vcombine.high %v5971_v38, %v5987_v28  ;;  %v6000_v56 = vld [vmem:[#allocation20 + $0x808] sm:$0xff]  ;;  %v6211_v38 = vld [vmem:[#allocation20 + $0xea0] sm:$0xff] }
 0xa1f   : > { %v15244_v58 = vpack.c.bf16 %v5739_v60, %v5739_v60  ;;  %v15246_v8 = vpack.c.bf16 %v5740_v49, %v5740_v49  ;;  %v6016_v60 = vld [vmem:[#allocation20 + $0x888] sm:$0xff]  ;;  %v6003_v49 = vld [vmem:[#allocation20 + $0x820] sm:$0xff] }
 0xa20   : > { %v10728_v50 = vcombine.high %v6000_v56, %v6016_v60  ;;  %v10734_v10 = vcombine.high %v6003_v49, %v6019_v30  ;;  %v10727_v59 = vcombine.low %v6000_v56, %v6016_v60  ;;  %v6240_v56 = vld [vmem:[#allocation20 + $0xf88] sm:$0xff]  ;;  %v6227_v60 = vld [vmem:[#allocation20 + $0xf20] sm:$0xff] }
 0xa21   : > { %9015 = vmatprep.mubr.bf16.mxu1 %v15246_v8  ;;  %9097 = vmatprep.mubr.bf16.mxu0 %v15246_v8 }
 0xa22   : > { %9016 = vmatmul.mubr.bf16.vlgmr.msra.gmra.mrb[4].mxu1 %v15244_v58  ;;  %9098 = vmatmul.mubr.bf16.vlgmr.msra.gmra.mrb[8].mxu0 %v15244_v58 }
 0xa23   : > { %9025 = vmatpush1.bf16.msra.mxu1 %v10471_v39  ;;  %9148 = vmatpush1.bf16.msra.mxu0 %v10477_v6  ;;  %v5952_v39 = vld [vmem:[#allocation20 + $0x688] sm:$0xff]  ;;  %v5939_v6 = vld [vmem:[#allocation20 + $0x620] sm:$0xff] }
 0xa24   : > { %9056 = vmatprep.mubr.bf16.mxu1 %v15246_v8  ;;  %9179 = vmatprep.mubr.bf16.mxu0 %v15246_v8  ;;  %v10664_v63 = vcombine.high %v5936_v3, %v5952_v39  ;;  %v10670_v9 = vcombine.high %v5939_v6, %v5955_v53  ;;  %v10663_v45 = vcombine.low %v5936_v3, %v5952_v39  ;;  %v6176_v3 = vld [vmem:[#allocation20 + $0xd88] sm:$0xff]  ;;  %v6163_v39 = vld [vmem:[#allocation20 + $0xd20] sm:$0xff] }
 0xa25   : > { %9026 = vmatprep.subr.bf16.mxu1 %v10504_v12  ;;  %9149 = vmatprep.subr.bf16.mxu0 %v10510_v14  ;;  %v10669_v2 = vcombine.low %v5939_v6, %v5955_v53  ;;  %v6032_v12 = vld [vmem:[#allocation20 + $0x908] sm:$0xff]  ;;  %v6179_v6 = vld [vmem:[#allocation20 + $0xda0] sm:$0xff] }
 0xa26   : > { %v6048_v14 = vld [vmem:[#allocation20 + $0x988] sm:$0xff] }
 0xa27   : > { %9027 = vmatpush1.bf16.msra.mxu1 %v10503_v48  ;;  %9150 = vmatpush1.bf16.msra.mxu0 %v10509_v51  ;;  %v10733_v48 = vcombine.low %v6003_v49, %v6019_v30  ;;  %v10760_v51 = vcombine.high %v6032_v12, %v6048_v14  ;;  %v10759_v15 = vcombine.low %v6032_v12, %v6048_v14  ;;  %v6243_v49 = vld [vmem:[#allocation20 + $0xfa0] sm:$0xff]  ;;  %v5762_v12 = vld [vmem:[#allocation20 + $0x98] sm:$0xff]  ;;  %v5749_v14 = vld [vmem:[#allocation20 + $0x30] sm:$0xff] }
 0xa28   : > { %9028 = vmatprep.subr.bf16.mxu1 %v10536_v32  ;;  %9151 = vmatprep.subr.bf16.mxu0 %v10542_v26  ;;  %v10766_v32 = vcombine.high %v6035_v52, %v6051_v35  ;;  %v6064_v26 = vld [vmem:[#allocation20 + $0xa08] sm:$0xff] }
 0xa29   : > { %v10791_v43 = vcombine.low %v6064_v26, %v6080_v62 }
 0xa2b   : > { %9029 = vmatpush1.bf16.msra.mxu1 %v10535_v11  ;;  %9152 = vmatpush1.bf16.msra.mxu0 %v10541_v55  ;;  %v10765_v11 = vcombine.low %v6035_v52, %v6051_v35  ;;  %v10792_v55 = vcombine.high %v6064_v26, %v6080_v62  ;;  %v5765_v52 = vld [vmem:[#allocation20 + $0xb0] sm:$0xff]  ;;  %v5794_v26 = vld [vmem:[#allocation20 + $0x198] sm:$0xff] }
 0xa2c   : > { %9030 = vmatprep.subr.bf16.mxu1 %v10568_v44  ;;  %9153 = vmatprep.subr.bf16.mxu0 %v10574_v21  ;;  %v10798_v44 = vcombine.high %v6067_v42, %v6083_v23  ;;  %v6096_v21 = vld [vmem:[#allocation20 + $0xb08] sm:$0xff]  ;;  %v5781_v62 = vld [vmem:[#allocation20 + $0x130] sm:$0xff] }
 0xa2d   : > { %v10823_v16 = vcombine.low %v6096_v21, %v6112_v7 }
 0xa2f   : > { %9031 = vmatpush1.bf16.msra.mxu1 %v10567_v18  ;;  %9154 = vmatpush1.bf16.msra.mxu0 %v10573_v17  ;;  %v10797_v18 = vcombine.low %v6067_v42, %v6083_v23  ;;  %v10824_v17 = vcombine.high %v6096_v21, %v6112_v7  ;;  %v5797_v42 = vld [vmem:[#allocation20 + $0x1b0] sm:$0xff]  ;;  %v5826_v21 = vld [vmem:[#allocation20 + $0x298] sm:$0xff] }
 0xa30   : > { %9032 = vmatprep.subr.bf16.mxu1 %v10600_v1  ;;  %9155 = vmatprep.subr.bf16.mxu0 %v10606_v5  ;;  %v10830_v1 = vcombine.high %v6099_v22, %v6115_v46  ;;  %v6128_v5 = vld [vmem:[#allocation20 + $0xc08] sm:$0xff]  ;;  %v5813_v7 = vld [vmem:[#allocation20 + $0x230] sm:$0xff] }
 0xa31   : > { %v10855_v53 = vcombine.low %v6128_v5, %v6144_v36 }
 0xa33   : > { %9033 = vmatpush1.bf16.msra.mxu1 %v10599_v34  ;;  %9156 = vmatpush1.bf16.msra.mxu0 %v10605_v19  ;;  %v10829_v34 = vcombine.low %v6099_v22, %v6115_v46  ;;  %v10856_v19 = vcombine.high %v6128_v5, %v6144_v36  ;;  %v5829_v22 = vld [vmem:[#allocation20 + $0x2b0] sm:$0xff]  ;;  %v5858_v5 = vld [vmem:[#allocation20 + $0x398] sm:$0xff] }
 0xa34   : > { %9034 = vmatprep.subr.bf16.mxu1 %v10632_v61  ;;  %9157 = vmatprep.subr.bf16.mxu0 %v10638_v54  ;;  %v10862_v61 = vcombine.high %v6131_v57, %v6147_v27  ;;  %v6160_v54 = vld [vmem:[#allocation20 + $0xd08] sm:$0xff]  ;;  %v5845_v36 = vld [vmem:[#allocation20 + $0x330] sm:$0xff] }
 0xa35   : > { %v10887_v28 = vcombine.low %v6160_v54, %v6176_v3 }
 0xa37   : > { %9035 = vmatpush1.bf16.msra.mxu1 %v10631_v37  ;;  %9158 = vmatpush1.bf16.msra.mxu0 %v10637_v4  ;;  %v10861_v37 = vcombine.low %v6131_v57, %v6147_v27  ;;  %v10888_v4 = vcombine.high %v6160_v54, %v6176_v3  ;;  %v5861_v57 = vld [vmem:[#allocation20 + $0x3b0] sm:$0xff]  ;;  %v5890_v54 = vld [vmem:[#allocation20 + $0x498] sm:$0xff] }
 0xa38   : > { %9036 = vmatprep.subr.bf16.mxu1 %v10664_v63  ;;  %9159 = vmatprep.subr.bf16.mxu0 %v10670_v9  ;;  %v10894_v63 = vcombine.high %v6163_v39, %v6179_v6  ;;  %v6192_v9 = vld [vmem:[#allocation20 + $0xe08] sm:$0xff]  ;;  %v5877_v3 = vld [vmem:[#allocation20 + $0x430] sm:$0xff] }
 0xa39   : > { %v10919_v30 = vcombine.low %v6192_v9, %v6208_v24 }
 0xa3b   : > { %9037 = vmatpush1.bf16.msra.mxu1 %v10663_v45  ;;  %9160 = vmatpush1.bf16.msra.mxu0 %v10669_v2  ;;  %v10893_v45 = vcombine.low %v6163_v39, %v6179_v6  ;;  %v10920_v2 = vcombine.high %v6192_v9, %v6208_v24  ;;  %v5893_v39 = vld [vmem:[#allocation20 + $0x4b0] sm:$0xff]  ;;  %v5922_v9 = vld [vmem:[#allocation20 + $0x598] sm:$0xff] }
 0xa3c   : > { %9038 = vmatprep.subr.bf16.mxu1 %v10696_v41  ;;  %9161 = vmatprep.subr.bf16.mxu0 %v10702_v25  ;;  %v10926_v41 = vcombine.high %v6195_v20, %v6211_v38  ;;  %v6224_v25 = vld [vmem:[#allocation20 + $0xf08] sm:$0xff]  ;;  %v5909_v24 = vld [vmem:[#allocation20 + $0x530] sm:$0xff] }
 0xa3d   : > { %v10951_v35 = vcombine.low %v6224_v25, %v6240_v56 }
 0xa3f   : > { %9039 = vmatpush1.bf16.msra.mxu1 %v10695_v33  ;;  %9162 = vmatpush1.bf16.msra.mxu0 %v10701_v0  ;;  %v10925_v33 = vcombine.low %v6195_v20, %v6211_v38  ;;  %v10952_v0 = vcombine.high %v6224_v25, %v6240_v56  ;;  %v5925_v20 = vld [vmem:[#allocation20 + $0x5b0] sm:$0xff]  ;;  %v5954_v25 = vld [vmem:[#allocation20 + $0x698] sm:$0xff] }
 0xa40   : > { %9040 = vmatprep.subr.bf16.mxu1 %v10728_v50  ;;  %9163 = vmatprep.subr.bf16.mxu0 %v10734_v10  ;;  %v10958_v50 = vcombine.high %v6227_v60, %v6243_v49  ;;  %v5746_v10 = vld [vmem:[#allocation20 + $0x18] sm:$0xff]  ;;  %v5941_v56 = vld [vmem:[#allocation20 + $0x630] sm:$0xff] }
 0xa41   : > { %v10475_v23 = vcombine.low %v5746_v10, %v5762_v12 }
 0xa43   : > { %9041 = vmatpush1.bf16.msra.mxu1 %v10727_v59  ;;  %9164 = vmatpush1.bf16.msra.mxu0 %v10733_v48  ;;  %v10957_v59 = vcombine.low %v6227_v60, %v6243_v49  ;;  %v10476_v48 = vcombine.high %v5746_v10, %v5762_v12  ;;  %v5957_v60 = vld [vmem:[#allocation20 + $0x6b0] sm:$0xff]  ;;  %v5986_v10 = vld [vmem:[#allocation20 + $0x798] sm:$0xff] }
 0xa44   : > { %9042 = vmatprep.subr.bf16.mxu1 %v10760_v51  ;;  %9165 = vmatprep.subr.bf16.mxu0 %v10766_v32  ;;  %v10482_v51 = vcombine.high %v5749_v14, %v5765_v52  ;;  %v5778_v32 = vld [vmem:[#allocation20 + $0x118] sm:$0xff]  ;;  %v5973_v12 = vld [vmem:[#allocation20 + $0x730] sm:$0xff] }
 0xa45   : > { %v10507_v46 = vcombine.low %v5778_v32, %v5794_v26 }
 0xa47   : > { %9043 = vmatpush1.bf16.msra.mxu1 %v10759_v15  ;;  %9166 = vmatpush1.bf16.msra.mxu0 %v10765_v11  ;;  %v10481_v15 = vcombine.low %v5749_v14, %v5765_v52  ;;  %v10508_v11 = vcombine.high %v5778_v32, %v5794_v26  ;;  %v5989_v14 = vld [vmem:[#allocation20 + $0x7b0] sm:$0xff]  ;;  %v6018_v32 = vld [vmem:[#allocation20 + $0x898] sm:$0xff] }
 0xa48   : > { %9044 = vmatprep.subr.bf16.mxu1 %v10792_v55  ;;  %9167 = vmatprep.subr.bf16.mxu0 %v10798_v44  ;;  %v10514_v55 = vcombine.high %v5781_v62, %v5797_v42  ;;  %v5810_v44 = vld [vmem:[#allocation20 + $0x218] sm:$0xff]  ;;  %v6005_v26 = vld [vmem:[#allocation20 + $0x830] sm:$0xff] }
 0xa49   : > { %v10539_v27 = vcombine.low %v5810_v44, %v5826_v21 }
 0xa4b   : > { %9045 = vmatpush1.bf16.msra.mxu1 %v10791_v43  ;;  %9168 = vmatpush1.bf16.msra.mxu0 %v10797_v18  ;;  %v10513_v43 = vcombine.low %v5781_v62, %v5797_v42  ;;  %v10540_v18 = vcombine.high %v5810_v44, %v5826_v21  ;;  %v6021_v62 = vld [vmem:[#allocation20 + $0x8b0] sm:$0xff]  ;;  %v6050_v44 = vld [vmem:[#allocation20 + $0x998] sm:$0xff] }
 0xa4c   : > { %9046 = vmatprep.subr.bf16.mxu1 %v10824_v17  ;;  %9169 = vmatprep.subr.bf16.mxu0 %v10830_v1  ;;  %v10546_v17 = vcombine.high %v5813_v7, %v5829_v22  ;;  %v5842_v1 = vld [vmem:[#allocation20 + $0x318] sm:$0xff]  ;;  %v6037_v21 = vld [vmem:[#allocation20 + $0x930] sm:$0xff] }
 0xa4d   : > { %v10571_v6 = vcombine.low %v5842_v1, %v5858_v5 }
 0xa4f   : > { %9047 = vmatpush1.bf16.msra.mxu1 %v10823_v16  ;;  %9170 = vmatpush1.bf16.msra.mxu0 %v10829_v34  ;;  %v10545_v16 = vcombine.low %v5813_v7, %v5829_v22  ;;  %v10572_v34 = vcombine.high %v5842_v1, %v5858_v5  ;;  %v6053_v7 = vld [vmem:[#allocation20 + $0x9b0] sm:$0xff]  ;;  %v6082_v1 = vld [vmem:[#allocation20 + $0xa98] sm:$0xff] }
 0xa50   : > { %9048 = vmatprep.subr.bf16.mxu1 %v10856_v19  ;;  %9171 = vmatprep.subr.bf16.mxu0 %v10862_v61  ;;  %v10578_v19 = vcombine.high %v5845_v36, %v5861_v57  ;;  %v5874_v61 = vld [vmem:[#allocation20 + $0x418] sm:$0xff]  ;;  %v6069_v5 = vld [vmem:[#allocation20 + $0xa30] sm:$0xff] }
 0xa51   : > { %v10603_v38 = vcombine.low %v5874_v61, %v5890_v54 }
 0xa53   : > { %9049 = vmatpush1.bf16.msra.mxu1 %v10855_v53  ;;  %9172 = vmatpush1.bf16.msra.mxu0 %v10861_v37  ;;  %v10577_v53 = vcombine.low %v5845_v36, %v5861_v57  ;;  %v10604_v37 = vcombine.high %v5874_v61, %v5890_v54  ;;  %v6085_v36 = vld [vmem:[#allocation20 + $0xab0] sm:$0xff]  ;;  %v6114_v61 = vld [vmem:[#allocation20 + $0xb98] sm:$0xff] }
 0xa54   : > { %9050 = vmatprep.subr.bf16.mxu1 %v10888_v4  ;;  %9173 = vmatprep.subr.bf16.mxu0 %v10894_v63  ;;  %v10610_v4 = vcombine.high %v5877_v3, %v5893_v39  ;;  %v5906_v63 = vld [vmem:[#allocation20 + $0x518] sm:$0xff]  ;;  %v6101_v54 = vld [vmem:[#allocation20 + $0xb30] sm:$0xff] }
 0xa55   : > { %v10635_v49 = vcombine.low %v5906_v63, %v5922_v9 }
 0xa57   : > { %9051 = vmatpush1.bf16.msra.mxu1 %v10887_v28  ;;  %9174 = vmatpush1.bf16.msra.mxu0 %v10893_v45  ;;  %v10609_v28 = vcombine.low %v5877_v3, %v5893_v39  ;;  %v10636_v45 = vcombine.high %v5906_v63, %v5922_v9  ;;  %v6117_v3 = vld [vmem:[#allocation20 + $0xbb0] sm:$0xff]  ;;  %v6146_v63 = vld [vmem:[#allocation20 + $0xc98] sm:$0xff] }
 0xa58   : > { %9052 = vmatprep.subr.bf16.mxu1 %v10920_v2  ;;  %9175 = vmatprep.subr.bf16.mxu0 %v10926_v41  ;;  %v10642_v2 = vcombine.high %v5909_v24, %v5925_v20  ;;  %v5938_v41 = vld [vmem:[#allocation20 + $0x618] sm:$0xff]  ;;  %v6133_v9 = vld [vmem:[#allocation20 + $0xc30] sm:$0xff] }
 0xa59   : > { %v10667_v52 = vcombine.low %v5938_v41, %v5954_v25 }
 0xa5b   : > { %9053 = vmatpush1.bf16.msra.mxu1 %v10919_v30  ;;  %9176 = vmatpush1.bf16.msra.mxu0 %v10925_v33  ;;  %v10641_v30 = vcombine.low %v5909_v24, %v5925_v20  ;;  %v10668_v33 = vcombine.high %v5938_v41, %v5954_v25  ;;  %v6149_v24 = vld [vmem:[#allocation20 + $0xcb0] sm:$0xff]  ;;  %v6178_v41 = vld [vmem:[#allocation20 + $0xd98] sm:$0xff] }
 0xa5c   : > { %9054 = vmatprep.subr.bf16.mxu1 %v10952_v0  ;;  %9177 = vmatprep.subr.bf16.mxu0 %v10958_v50  ;;  %v10674_v0 = vcombine.high %v5941_v56, %v5957_v60  ;;  %v5970_v50 = vld [vmem:[#allocation20 + $0x718] sm:$0xff]  ;;  %v6165_v25 = vld [vmem:[#allocation20 + $0xd30] sm:$0xff] }
 0xa5d   : > { %v10699_v42 = vcombine.low %v5970_v50, %v5986_v10 }
 0xa5f   : > { %9055 = vmatpush1.bf16.msra.mxu1 %v10951_v35  ;;  %9178 = vmatpush1.bf16.msra.mxu0 %v10957_v59  ;;  %v10673_v35 = vcombine.low %v5941_v56, %v5957_v60  ;;  %v10700_v59 = vcombine.high %v5970_v50, %v5986_v10  ;;  %v6181_v56 = vld [vmem:[#allocation20 + $0xdb0] sm:$0xff]  ;;  %v6210_v50 = vld [vmem:[#allocation20 + $0xe98] sm:$0xff] }
 0xa60   : > { %9106 = vmatprep.subr.bf16.mxu1 %v10476_v48  ;;  %9229 = vmatprep.subr.bf16.mxu0 %v10482_v51  ;;  %v10706_v48 = vcombine.high %v5973_v12, %v5989_v14  ;;  %v6002_v51 = vld [vmem:[#allocation20 + $0x818] sm:$0xff]  ;;  %v6197_v10 = vld [vmem:[#allocation20 + $0xe30] sm:$0xff] }
 0xa61   : > { %v10731_v22 = vcombine.low %v6002_v51, %v6018_v32 }
 0xa62   : > { %9057 = vmatmul.mubr.bf16.vlgmr.msra.gmra.mrb[8].mxu1 %v15244_v58  ;;  %9180 = vmatmul.mubr.bf16.vlgmr.msra.gmra.mrb[12].mxu0 %v15244_v58 }
 0xa63   : > { %9107 = vmatpush1.bf16.msra.mxu1 %v10475_v23  ;;  %9138 = vmatprep.mubr.bf16.mxu1 %v15246_v8  ;;  %v10705_v23 = vcombine.low %v5973_v12, %v5989_v14  ;;  %v6213_v12 = vld [vmem:[#allocation20 + $0xeb0] sm:$0xff] }
 0xa64   : > { %9230 = vmatpush1.bf16.msra.mxu0 %v10481_v15  ;;  %9261 = vmatprep.mubr.bf16.mxu0 %v15246_v8  ;;  %v10732_v15 = vcombine.high %v6002_v51, %v6018_v32  ;;  %v6242_v51 = vld [vmem:[#allocation20 + $0xf98] sm:$0xff]  ;;  %v6229_v32 = vld [vmem:[#allocation20 + $0xf30] sm:$0xff] }
 0xa65   : > { %9108 = vmatprep.subr.bf16.mxu1 %v10508_v11  ;;  %9231 = vmatprep.subr.bf16.mxu0 %v10514_v55  ;;  %v10738_v11 = vcombine.high %v6005_v26, %v6021_v62  ;;  %v6034_v55 = vld [vmem:[#allocation20 + $0x918] sm:$0xff] }
 0xa66   : > { %v10763_v57 = vcombine.low %v6034_v55, %v6050_v44 }
 0xa67   : > { %9109 = vmatpush1.bf16.msra.mxu1 %v10507_v46  ;;  %v10737_v46 = vcombine.low %v6005_v26, %v6021_v62  ;;  %v6245_v26 = vld [vmem:[#allocation20 + $0xfb0] sm:$0xff] }
 0xa68   : > { %9232 = vmatpush1.bf16.msra.mxu0 %v10513_v43  ;;  %9110 = vmatprep.subr.bf16.mxu1 %v10540_v18  ;;  %v10764_v43 = vcombine.high %v6034_v55, %v6050_v44  ;;  %v10770_v18 = vcombine.high %v6037_v21, %v6053_v7  ;;  %v5764_v55 = vld [vmem:[#allocation20 + $0xa8] sm:$0xff]  ;;  %v5751_v44 = vld [vmem:[#allocation20 + $0x40] sm:$0xff] }
 0xa69   : > { %9233 = vmatprep.subr.bf16.mxu0 %v10546_v17  ;;  %v6066_v17 = vld [vmem:[#allocation20 + $0xa18] sm:$0xff] }
 0xa6a   : > { %v10795_v39 = vcombine.low %v6066_v17, %v6082_v1 }
 0xa6b   : > { %9111 = vmatpush1.bf16.msra.mxu1 %v10539_v27  ;;  %v10769_v27 = vcombine.low %v6037_v21, %v6053_v7  ;;  %v5767_v21 = vld [vmem:[#allocation20 + $0xc0] sm:$0xff] }
 0xa6c   : > { %9234 = vmatpush1.bf16.msra.mxu0 %v10545_v16  ;;  %9112 = vmatprep.subr.bf16.mxu1 %v10572_v34  ;;  %v10796_v16 = vcombine.high %v6066_v17, %v6082_v1  ;;  %v10802_v34 = vcombine.high %v6069_v5, %v6085_v36  ;;  %v5796_v17 = vld [vmem:[#allocation20 + $0x1a8] sm:$0xff] }
 0xa6d   : > { %9235 = vmatprep.subr.bf16.mxu0 %v10578_v19  ;;  %v6098_v19 = vld [vmem:[#allocation20 + $0xb18] sm:$0xff] }
 0xa6e   : > { %v10827_v20 = vcombine.low %v6098_v19, %v6114_v61 }
 0xa6f   : > { %9113 = vmatpush1.bf16.msra.mxu1 %v10571_v6  ;;  %v10801_v6 = vcombine.low %v6069_v5, %v6085_v36  ;;  %v5783_v5 = vld [vmem:[#allocation20 + $0x140] sm:$0xff] }
 0xa70   : > { %9236 = vmatpush1.bf16.msra.mxu0 %v10577_v53  ;;  %9114 = vmatprep.subr.bf16.mxu1 %v10604_v37  ;;  %v10828_v53 = vcombine.high %v6098_v19, %v6114_v61  ;;  %v10834_v37 = vcombine.high %v6101_v54, %v6117_v3  ;;  %v5799_v36 = vld [vmem:[#allocation20 + $0x1c0] sm:$0xff] }
 0xa71   : > { %9237 = vmatprep.subr.bf16.mxu0 %v10610_v4  ;;  %v6130_v4 = vld [vmem:[#allocation20 + $0xc18] sm:$0xff]  ;;  %v10518_v19 = vcombine.high %v5783_v5, %v5799_v36  ;;  %v5815_v61 = vld [vmem:[#allocation20 + $0x240] sm:$0xff] }
 0xa72   : > { %v10859_v60 = vcombine.low %v6130_v4, %v6146_v63 }
 0xa73   : > { %9115 = vmatpush1.bf16.msra.mxu1 %v10603_v38  ;;  %v10833_v38 = vcombine.low %v6101_v54, %v6117_v3  ;;  %v5831_v54 = vld [vmem:[#allocation20 + $0x2c0] sm:$0xff] }
 0xa74   : > { %9238 = vmatpush1.bf16.msra.mxu0 %v10609_v28  ;;  %9116 = vmatprep.subr.bf16.mxu1 %v10636_v45  ;;  %v10860_v28 = vcombine.high %v6130_v4, %v6146_v63  ;;  %v10866_v45 = vcombine.high %v6133_v9, %v6149_v24  ;;  %v5860_v4 = vld [vmem:[#allocation20 + $0x3a8] sm:$0xff]  ;;  %v5847_v63 = vld [vmem:[#allocation20 + $0x340] sm:$0xff] }
 0xa75   : > { %9239 = vmatprep.subr.bf16.mxu0 %v10642_v2  ;;  %v6162_v2 = vld [vmem:[#allocation20 + $0xd18] sm:$0xff] }
 0xa76   : > { %v10891_v14 = vcombine.low %v6162_v2, %v6178_v41 }
 0xa77   : > { %9117 = vmatpush1.bf16.msra.mxu1 %v10635_v49  ;;  %v10865_v49 = vcombine.low %v6133_v9, %v6149_v24  ;;  %v5863_v9 = vld [vmem:[#allocation20 + $0x3c0] sm:$0xff] }
 0xa78   : > { %9240 = vmatpush1.bf16.msra.mxu0 %v10641_v30  ;;  %9118 = vmatprep.subr.bf16.mxu1 %v10668_v33  ;;  %v10892_v30 = vcombine.high %v6162_v2, %v6178_v41  ;;  %v10898_v33 = vcombine.high %v6165_v25, %v6181_v56  ;;  %v5892_v2 = vld [vmem:[#allocation20 + $0x4a8] sm:$0xff]  ;;  %v5879_v41 = vld [vmem:[#allocation20 + $0x440] sm:$0xff] }
 0xa79   : > { %9241 = vmatprep.subr.bf16.mxu0 %v10674_v0  ;;  %v6194_v0 = vld [vmem:[#allocation20 + $0xe18] sm:$0xff] }
 0xa7a   : > { %v10923_v62 = vcombine.low %v6194_v0, %v6210_v50 }
 0xa7b   : > { %9119 = vmatpush1.bf16.msra.mxu1 %v10667_v52  ;;  %v10897_v52 = vcombine.low %v6165_v25, %v6181_v56  ;;  %v5895_v25 = vld [vmem:[#allocation20 + $0x4c0] sm:$0xff] }
 0xa7c   : > { %9242 = vmatpush1.bf16.msra.mxu0 %v10673_v35  ;;  %9120 = vmatprep.subr.bf16.mxu1 %v10700_v59  ;;  %v10924_v35 = vcombine.high %v6194_v0, %v6210_v50  ;;  %v10930_v59 = vcombine.high %v6197_v10, %v6213_v12  ;;  %v5924_v0 = vld [vmem:[#allocation20 + $0x5a8] sm:$0xff]  ;;  %v5911_v50 = vld [vmem:[#allocation20 + $0x540] sm:$0xff] }
 0xa7d   : > { %9243 = vmatprep.subr.bf16.mxu0 %v10706_v48  ;;  %v6226_v48 = vld [vmem:[#allocation20 + $0xf18] sm:$0xff] }
 0xa7e   : > { %v10955_v7 = vcombine.low %v6226_v48, %v6242_v51 }
 0xa7f   : > { %9121 = vmatpush1.bf16.msra.mxu1 %v10699_v42  ;;  %v10929_v42 = vcombine.low %v6197_v10, %v6213_v12  ;;  %v5927_v10 = vld [vmem:[#allocation20 + $0x5c0] sm:$0xff] }
 0xa80   : > { %9244 = vmatpush1.bf16.msra.mxu0 %v10705_v23  ;;  %9122 = vmatprep.subr.bf16.mxu1 %v10732_v15  ;;  %v10956_v23 = vcombine.high %v6226_v48, %v6242_v51  ;;  %v10962_v15 = vcombine.high %v6229_v32, %v6245_v26  ;;  %v5956_v48 = vld [vmem:[#allocation20 + $0x6a8] sm:$0xff]  ;;  %v5943_v51 = vld [vmem:[#allocation20 + $0x640] sm:$0xff] }
 0xa81   : > { %9245 = vmatprep.subr.bf16.mxu0 %v10738_v11  ;;  %v5748_v11 = vld [vmem:[#allocation20 + $0x28] sm:$0xff] }
 0xa82   : > { %v10479_v1 = vcombine.low %v5748_v11, %v5764_v55 }
 0xa83   : > { %9123 = vmatpush1.bf16.msra.mxu1 %v10731_v22  ;;  %v10961_v22 = vcombine.low %v6229_v32, %v6245_v26  ;;  %v5959_v32 = vld [vmem:[#allocation20 + $0x6c0] sm:$0xff] }
 0xa84   : > { %9246 = vmatpush1.bf16.msra.mxu0 %v10737_v46  ;;  %9124 = vmatprep.subr.bf16.mxu1 %v10764_v43  ;;  %v10480_v46 = vcombine.high %v5748_v11, %v5764_v55  ;;  %v10486_v43 = vcombine.high %v5751_v44, %v5767_v21  ;;  %v5988_v11 = vld [vmem:[#allocation20 + $0x7a8] sm:$0xff]  ;;  %v5975_v55 = vld [vmem:[#allocation20 + $0x740] sm:$0xff] }
 0xa85   : > { %9247 = vmatprep.subr.bf16.mxu0 %v10770_v18  ;;  %v5780_v18 = vld [vmem:[#allocation20 + $0x128] sm:$0xff] }
 0xa86   : > { %v10511_v3 = vcombine.low %v5780_v18, %v5796_v17 }
 0xa87   : > { %9125 = vmatpush1.bf16.msra.mxu1 %v10763_v57  ;;  %v10485_v57 = vcombine.low %v5751_v44, %v5767_v21  ;;  %v5991_v44 = vld [vmem:[#allocation20 + $0x7c0] sm:$0xff] }
 0xa88   : > { %9248 = vmatpush1.bf16.msra.mxu0 %v10769_v27  ;;  %9126 = vmatprep.subr.bf16.mxu1 %v10796_v16  ;;  %v10512_v27 = vcombine.high %v5780_v18, %v5796_v17  ;;  %v5812_v16 = vld [vmem:[#allocation20 + $0x228] sm:$0xff]  ;;  %v6007_v17 = vld [vmem:[#allocation20 + $0x840] sm:$0xff] }
 0xa89   : > { %9249 = vmatprep.subr.bf16.mxu0 %v10802_v34  ;;  %v5828_v34 = vld [vmem:[#allocation20 + $0x2a8] sm:$0xff] }
 0xa8a   : > { %v10543_v24 = vcombine.low %v5812_v16, %v5828_v34  ;;  %v6020_v18 = vld [vmem:[#allocation20 + $0x8a8] sm:$0xff] }
 0xa8b   : > { %9127 = vmatpush1.bf16.msra.mxu1 %v10795_v39  ;;  %v10517_v39 = vcombine.low %v5783_v5, %v5799_v36  ;;  %v10709_v36 = vcombine.low %v5975_v55, %v5991_v44 }
 0xa8c   : > { %9250 = vmatpush1.bf16.msra.mxu0 %v10801_v6  ;;  %9128 = vmatprep.subr.bf16.mxu1 %v10828_v53  ;;  %v10544_v6 = vcombine.high %v5812_v16, %v5828_v34  ;;  %v10550_v53 = vcombine.high %v5815_v61, %v5831_v54  ;;  %v6036_v16 = vld [vmem:[#allocation20 + $0x928] sm:$0xff] }
 0xa8d   : > { %9251 = vmatprep.subr.bf16.mxu0 %v10834_v37  ;;  %v5844_v37 = vld [vmem:[#allocation20 + $0x328] sm:$0xff] }
 0xa8e   : > { %v10575_v56 = vcombine.low %v5844_v37, %v5860_v4  ;;  %v6052_v34 = vld [vmem:[#allocation20 + $0x9a8] sm:$0xff] }
 0xa8f   : > { %9129 = vmatpush1.bf16.msra.mxu1 %v10827_v20  ;;  %v10549_v20 = vcombine.low %v5815_v61, %v5831_v54  ;;  %v6055_v61 = vld [vmem:[#allocation20 + $0x9c0] sm:$0xff] }
 0xa90   : > { %9252 = vmatpush1.bf16.msra.mxu0 %v10833_v38  ;;  %9130 = vmatprep.subr.bf16.mxu1 %v10860_v28  ;;  %v10576_v38 = vcombine.high %v5844_v37, %v5860_v4  ;;  %v10582_v28 = vcombine.high %v5847_v63, %v5863_v9  ;;  %v6084_v37 = vld [vmem:[#allocation20 + $0xaa8] sm:$0xff]  ;;  %v6071_v4 = vld [vmem:[#allocation20 + $0xa40] sm:$0xff] }
 0xa91   : > { %9253 = vmatprep.subr.bf16.mxu0 %v10866_v45  ;;  %v5876_v45 = vld [vmem:[#allocation20 + $0x428] sm:$0xff] }
 0xa92   : > { %v10607_v12 = vcombine.low %v5876_v45, %v5892_v2 }
 0xa93   : > { %9131 = vmatpush1.bf16.msra.mxu1 %v10859_v60  ;;  %v10581_v60 = vcombine.low %v5847_v63, %v5863_v9  ;;  %v6087_v63 = vld [vmem:[#allocation20 + $0xac0] sm:$0xff]  ;;  %v10767_v9 = vcombine.low %v6036_v16, %v6052_v34 }
 0xa94   : > { %9254 = vmatpush1.bf16.msra.mxu0 %v10865_v49  ;;  %9132 = vmatprep.subr.bf16.mxu1 %v10892_v30  ;;  %v10608_v49 = vcombine.high %v5876_v45, %v5892_v2  ;;  %v10614_v30 = vcombine.high %v5879_v41, %v5895_v25  ;;  %v6116_v45 = vld [vmem:[#allocation20 + $0xba8] sm:$0xff]  ;;  %v6103_v2 = vld [vmem:[#allocation20 + $0xb40] sm:$0xff] }
 0xa95   : > { %9255 = vmatprep.subr.bf16.mxu0 %v10898_v33  ;;  %v5908_v33 = vld [vmem:[#allocation20 + $0x528] sm:$0xff] }
 0xa96   : > { %v10639_v26 = vcombine.low %v5908_v33, %v5924_v0 }
 0xa97   : > { %9133 = vmatpush1.bf16.msra.mxu1 %v10891_v14  ;;  %v10613_v14 = vcombine.low %v5879_v41, %v5895_v25  ;;  %v6119_v41 = vld [vmem:[#allocation20 + $0xbc0] sm:$0xff] }
 0xa98   : > { %9256 = vmatpush1.bf16.msra.mxu0 %v10897_v52  ;;  %9134 = vmatprep.subr.bf16.mxu1 %v10924_v35  ;;  %v10640_v52 = vcombine.high %v5908_v33, %v5924_v0  ;;  %v10646_v35 = vcombine.high %v5911_v50, %v5927_v10  ;;  %v6148_v33 = vld [vmem:[#allocation20 + $0xca8] sm:$0xff]  ;;  %v6135_v0 = vld [vmem:[#allocation20 + $0xc40] sm:$0xff] }
 0xa99   : > { %9257 = vmatprep.subr.bf16.mxu0 %v10930_v59  ;;  %v5940_v59 = vld [vmem:[#allocation20 + $0x628] sm:$0xff] }
 0xa9a   : > { %v10671_v21 = vcombine.low %v5940_v59, %v5956_v48 }
 0xa9b   : > { %9135 = vmatpush1.bf16.msra.mxu1 %v10923_v62  ;;  %v10645_v62 = vcombine.low %v5911_v50, %v5927_v10  ;;  %v6151_v50 = vld [vmem:[#allocation20 + $0xcc0] sm:$0xff] }
 0xa9c   : > { %9258 = vmatpush1.bf16.msra.mxu0 %v10929_v42  ;;  %9136 = vmatprep.subr.bf16.mxu1 %v10956_v23  ;;  %v10672_v42 = vcombine.high %v5940_v59, %v5956_v48  ;;  %v10678_v23 = vcombine.high %v5943_v51, %v5959_v32  ;;  %v6180_v59 = vld [vmem:[#allocation20 + $0xda8] sm:$0xff]  ;;  %v6167_v48 = vld [vmem:[#allocation20 + $0xd40] sm:$0xff] }
 0xa9d   : > { %9259 = vmatprep.subr.bf16.mxu0 %v10962_v15  ;;  %v5972_v15 = vld [vmem:[#allocation20 + $0x728] sm:$0xff] }
 0xa9e   : > { %v10703_v5 = vcombine.low %v5972_v15, %v5988_v11 }
 0xa9f   : > { %9137 = vmatpush1.bf16.msra.mxu1 %v10955_v7  ;;  %v10677_v7 = vcombine.low %v5943_v51, %v5959_v32  ;;  %v6183_v51 = vld [vmem:[#allocation20 + $0xdc0] sm:$0xff] }
 0xaa0   : > { %9260 = vmatpush1.bf16.msra.mxu0 %v10961_v22  ;;  %9188 = vmatprep.subr.bf16.mxu1 %v10480_v46  ;;  %v10704_v22 = vcombine.high %v5972_v15, %v5988_v11  ;;  %v10710_v46 = vcombine.high %v5975_v55, %v5991_v44  ;;  %v6212_v15 = vld [vmem:[#allocation20 + $0xea8] sm:$0xff]  ;;  %v6199_v11 = vld [vmem:[#allocation20 + $0xe40] sm:$0xff] }
 0xaa1   : > { %9311 = vmatprep.subr.bf16.mxu0 %v10486_v43  ;;  %v6004_v43 = vld [vmem:[#allocation20 + $0x828] sm:$0xff]  ;;  %v6215_v55 = vld [vmem:[#allocation20 + $0xec0] sm:$0xff] }
 0xaa2   : > { %9139 = vmatmul.mubr.bf16.vlgmr.msra.gmra.mrb[12].mxu1 %v15244_v58  ;;  %v10735_v54 = vcombine.low %v6004_v43, %v6020_v18 }
 0xaa3   : > { %9262 = vmatmul.mubr.bf16.vlgmr.msra.gmra.mrb[16].mxu0 %v15244_v58  ;;  %9189 = vmatpush1.bf16.msra.mxu1 %v10479_v1  ;;  %v6023_v1 = vld [vmem:[#allocation20 + $0x8c0] sm:$0xff] }
 0xaa4   : > { %9220 = vmatprep.mubr.bf16.mxu1 %v15246_v8  ;;  %9312 = vmatpush1.bf16.msra.mxu0 %v10485_v57  ;;  %v10736_v57 = vcombine.high %v6004_v43, %v6020_v18  ;;  %v6244_v43 = vld [vmem:[#allocation20 + $0xfa8] sm:$0xff]  ;;  %v6231_v18 = vld [vmem:[#allocation20 + $0xf40] sm:$0xff] }
 0xaa5   : > { %9343 = vmatprep.mubr.bf16.mxu0 %v15246_v8  ;;  %9190 = vmatprep.subr.bf16.mxu1 %v10512_v27  ;;  %v10742_v27 = vcombine.high %v6007_v17, %v6023_v1 }
 0xaa6   : > { %9313 = vmatprep.subr.bf16.mxu0 %v10518_v19  ;;  %v6039_v19 = vld [vmem:[#allocation20 + $0x940] sm:$0xff] }
 0xaa7   : > { %9191 = vmatpush1.bf16.msra.mxu1 %v10511_v3  ;;  %v10741_v3 = vcombine.low %v6007_v17, %v6023_v1  ;;  %v6247_v17 = vld [vmem:[#allocation20 + $0xfc0] sm:$0xff] }
 0xaa8   : > { %9314 = vmatpush1.bf16.msra.mxu0 %v10517_v39  ;;  %9192 = vmatprep.subr.bf16.mxu1 %v10544_v6  ;;  %v10768_v39 = vcombine.high %v6036_v16, %v6052_v34  ;;  %v10774_v6 = vcombine.high %v6039_v19, %v6055_v61  ;;  %v5766_v16 = vld [vmem:[#allocation20 + $0xb8] sm:$0xff]  ;;  %v5753_v34 = vld [vmem:[#allocation20 + $0x50] sm:$0xff] }
 0xaa9   : > { %9315 = vmatprep.subr.bf16.mxu0 %v10550_v53  ;;  %v6068_v53 = vld [vmem:[#allocation20 + $0xa28] sm:$0xff] }
 0xaaa   : > { %v10799_v25 = vcombine.low %v6068_v53, %v6084_v37 }
 0xaab   : > { %9193 = vmatpush1.bf16.msra.mxu1 %v10543_v24  ;;  %v10773_v24 = vcombine.low %v6039_v19, %v6055_v61  ;;  %v5769_v19 = vld [vmem:[#allocation20 + $0xd0] sm:$0xff] }
 0xaac   : > { %9316 = vmatpush1.bf16.msra.mxu0 %v10549_v20  ;;  %9194 = vmatprep.subr.bf16.mxu1 %v10576_v38  ;;  %v10800_v20 = vcombine.high %v6068_v53, %v6084_v37  ;;  %v10806_v38 = vcombine.high %v6071_v4, %v6087_v63  ;;  %v5798_v53 = vld [vmem:[#allocation20 + $0x1b8] sm:$0xff] }
 0xaad   : > { %9317 = vmatprep.subr.bf16.mxu0 %v10582_v28  ;;  %v6100_v28 = vld [vmem:[#allocation20 + $0xb28] sm:$0xff] }
 0xaae   : > { %v10831_v10 = vcombine.low %v6100_v28, %v6116_v45 }
 0xaaf   : > { %9195 = vmatpush1.bf16.msra.mxu1 %v10575_v56  ;;  %v10805_v56 = vcombine.low %v6071_v4, %v6087_v63  ;;  %v5785_v4 = vld [vmem:[#allocation20 + $0x150] sm:$0xff] }
 0xab0   : > { %9318 = vmatpush1.bf16.msra.mxu0 %v10581_v60  ;;  %9196 = vmatprep.subr.bf16.mxu1 %v10608_v49  ;;  %v10832_v60 = vcombine.high %v6100_v28, %v6116_v45  ;;  %v10838_v49 = vcombine.high %v6103_v2, %v6119_v41  ;;  %v5801_v63 = vld [vmem:[#allocation20 + $0x1d0] sm:$0xff] }
 0xab1   : > { %9319 = vmatprep.subr.bf16.mxu0 %v10614_v30  ;;  %v6132_v30 = vld [vmem:[#allocation20 + $0xc28] sm:$0xff]  ;;  %v10522_v28 = vcombine.high %v5785_v4, %v5801_v63  ;;  %v5817_v45 = vld [vmem:[#allocation20 + $0x250] sm:$0xff] }
 0xab2   : > { %v10863_v32 = vcombine.low %v6132_v30, %v6148_v33 }
 0xab3   : > { %9197 = vmatpush1.bf16.msra.mxu1 %v10607_v12  ;;  %v10837_v12 = vcombine.low %v6103_v2, %v6119_v41  ;;  %v5833_v2 = vld [vmem:[#allocation20 + $0x2d0] sm:$0xff] }
 0xab4   : > { %9320 = vmatpush1.bf16.msra.mxu0 %v10613_v14  ;;  %9198 = vmatprep.subr.bf16.mxu1 %v10640_v52  ;;  %v10864_v14 = vcombine.high %v6132_v30, %v6148_v33  ;;  %v10870_v52 = vcombine.high %v6135_v0, %v6151_v50  ;;  %v5862_v30 = vld [vmem:[#allocation20 + $0x3b8] sm:$0xff]  ;;  %v5849_v33 = vld [vmem:[#allocation20 + $0x350] sm:$0xff] }
 0xab5   : > { %9321 = vmatprep.subr.bf16.mxu0 %v10646_v35  ;;  %v6164_v35 = vld [vmem:[#allocation20 + $0xd28] sm:$0xff] }
 0xab6   : > { %v10895_v44 = vcombine.low %v6164_v35, %v6180_v59 }
 0xab7   : > { %9199 = vmatpush1.bf16.msra.mxu1 %v10639_v26  ;;  %v10869_v26 = vcombine.low %v6135_v0, %v6151_v50  ;;  %v5865_v0 = vld [vmem:[#allocation20 + $0x3d0] sm:$0xff] }
 0xab8   : > { %9322 = vmatpush1.bf16.msra.mxu0 %v10645_v62  ;;  %9200 = vmatprep.subr.bf16.mxu1 %v10672_v42  ;;  %v10896_v62 = vcombine.high %v6164_v35, %v6180_v59  ;;  %v10902_v42 = vcombine.high %v6167_v48, %v6183_v51  ;;  %v5894_v35 = vld [vmem:[#allocation20 + $0x4b8] sm:$0xff]  ;;  %v5881_v59 = vld [vmem:[#allocation20 + $0x450] sm:$0xff] }
 0xab9   : > { %9323 = vmatprep.subr.bf16.mxu0 %v10678_v23  ;;  %v6196_v23 = vld [vmem:[#allocation20 + $0xe28] sm:$0xff] }
 0xaba   : > { %v10927_v1 = vcombine.low %v6196_v23, %v6212_v15 }
 0xabb   : > { %9201 = vmatpush1.bf16.msra.mxu1 %v10671_v21  ;;  %v10901_v21 = vcombine.low %v6167_v48, %v6183_v51  ;;  %v5897_v48 = vld [vmem:[#allocation20 + $0x4d0] sm:$0xff] }
 0xabc   : > { %9324 = vmatpush1.bf16.msra.mxu0 %v10677_v7  ;;  %9202 = vmatprep.subr.bf16.mxu1 %v10704_v22  ;;  %v10928_v7 = vcombine.high %v6196_v23, %v6212_v15  ;;  %v10934_v22 = vcombine.high %v6199_v11, %v6215_v55  ;;  %v5926_v23 = vld [vmem:[#allocation20 + $0x5b8] sm:$0xff]  ;;  %v5913_v15 = vld [vmem:[#allocation20 + $0x550] sm:$0xff] }
 0xabd   : > { %9325 = vmatprep.subr.bf16.mxu0 %v10710_v46  ;;  %v6228_v46 = vld [vmem:[#allocation20 + $0xf28] sm:$0xff] }
 0xabe   : > { %v10959_v61 = vcombine.low %v6228_v46, %v6244_v43 }
 0xabf   : > { %9203 = vmatpush1.bf16.msra.mxu1 %v10703_v5  ;;  %v10933_v5 = vcombine.low %v6199_v11, %v6215_v55  ;;  %v5929_v11 = vld [vmem:[#allocation20 + $0x5d0] sm:$0xff] }
 0xac0   : > { %9326 = vmatpush1.bf16.msra.mxu0 %v10709_v36  ;;  %9204 = vmatprep.subr.bf16.mxu1 %v10736_v57  ;;  %v10960_v36 = vcombine.high %v6228_v46, %v6244_v43  ;;  %v10966_v57 = vcombine.high %v6231_v18, %v6247_v17  ;;  %v5942_v46 = vld [vmem:[#allocation20 + $0x638] sm:$0xff] }
 0xac1   : > { %9327 = vmatprep.subr.bf16.mxu0 %v10742_v27  ;;  %v5750_v27 = vld [vmem:[#allocation20 + $0x38] sm:$0xff] }
 0xac2   : > { %v10483_v37 = vcombine.low %v5750_v27, %v5766_v16  ;;  %v5958_v43 = vld [vmem:[#allocation20 + $0x6b8] sm:$0xff] }
 0xac3   : > { %9205 = vmatpush1.bf16.msra.mxu1 %v10735_v54  ;;  %v10965_v54 = vcombine.low %v6231_v18, %v6247_v17  ;;  %v16122_v17 = vld [vmem:[#allocation43_spill] sm:$0xff] }
 0xac4   : > { %9328 = vmatpush1.bf16.msra.mxu0 %v10741_v3  ;;  %9206 = vmatprep.subr.bf16.mxu1 %v10768_v39  ;;  %v10484_v3 = vcombine.high %v5750_v27, %v5766_v16  ;;  %v10490_v39 = vcombine.high %v5753_v34, %v5769_v19  ;;  %v16123_v16 = vld [vmem:[#allocation46_spill] sm:$0xff] }
 0xac5   : > { %9329 = vmatprep.subr.bf16.mxu0 %v10774_v6  ;;  %v5782_v6 = vld [vmem:[#allocation20 + $0x138] sm:$0xff] }
 0xac6   : > { %v10515_v41 = vcombine.low %v5782_v6, %v5798_v53 }
 0xac7   : > { %9207 = vmatpush1.bf16.msra.mxu1 %v10767_v9  ;;  %v10489_v9 = vcombine.low %v5753_v34, %v5769_v19  ;;  %v10649_v19 = vcombine.low %v5913_v15, %v5929_v11 }
 0xac8   : > { %9330 = vmatpush1.bf16.msra.mxu0 %v10773_v24  ;;  %9208 = vmatprep.subr.bf16.mxu1 %v10800_v20  ;;  %v10516_v24 = vcombine.high %v5782_v6, %v5798_v53  ;;  %v5814_v20 = vld [vmem:[#allocation20 + $0x238] sm:$0xff] }
 0xac9   : > { %9331 = vmatprep.subr.bf16.mxu0 %v10806_v38  ;;  %v5830_v38 = vld [vmem:[#allocation20 + $0x2b8] sm:$0xff] }
 0xaca   : > { %v10547_v50 = vcombine.low %v5814_v20, %v5830_v38  ;;  %v5974_v6 = vld [vmem:[#allocation20 + $0x738] sm:$0xff] }
 0xacb   : > { %9209 = vmatpush1.bf16.msra.mxu1 %v10799_v25  ;;  %v10521_v25 = vcombine.low %v5785_v4, %v5801_v63  ;;  %v5990_v53 = vld [vmem:[#allocation20 + $0x7b8] sm:$0xff] }
 0xacc   : > { %9332 = vmatpush1.bf16.msra.mxu0 %v10805_v56  ;;  %9210 = vmatprep.subr.bf16.mxu1 %v10832_v60  ;;  %v10548_v56 = vcombine.high %v5814_v20, %v5830_v38  ;;  %v10554_v60 = vcombine.high %v5817_v45, %v5833_v2  ;;  %v5993_v20 = vld [vmem:[#allocation20 + $0x7d0] sm:$0xff] }
 0xacd   : > { %9333 = vmatprep.subr.bf16.mxu0 %v10838_v49  ;;  %v5846_v49 = vld [vmem:[#allocation20 + $0x338] sm:$0xff] }
 0xace   : > { %v10579_v51 = vcombine.low %v5846_v49, %v5862_v30 }
 0xacf   : > { %9211 = vmatpush1.bf16.msra.mxu1 %v10831_v10  ;;  %v10553_v10 = vcombine.low %v5817_v45, %v5833_v2 }
 0xad0   : > { %9334 = vmatpush1.bf16.msra.mxu0 %v10837_v12  ;;  %9212 = vmatprep.subr.bf16.mxu1 %v10864_v14  ;;  %v10580_v12 = vcombine.high %v5846_v49, %v5862_v30  ;;  %v10586_v14 = vcombine.high %v5849_v33, %v5865_v0  ;;  %v10708_v49 = vcombine.high %v5974_v6, %v5990_v53 }
 0xad1   : > { %9335 = vmatprep.subr.bf16.mxu0 %v10870_v52  ;;  %v5878_v52 = vld [vmem:[#allocation20 + $0x438] sm:$0xff] }
 0xad2   : > { %v10611_v55 = vcombine.low %v5878_v52, %v5894_v35 }
 0xad3   : > { %9213 = vmatpush1.bf16.msra.mxu1 %v10863_v32  ;;  %v10585_v32 = vcombine.low %v5849_v33, %v5865_v0 }
 0xad4   : > { %9336 = vmatpush1.bf16.msra.mxu0 %v10869_v26  ;;  %9214 = vmatprep.subr.bf16.mxu1 %v10896_v62  ;;  %v10612_v26 = vcombine.high %v5878_v52, %v5894_v35  ;;  %v10618_v62 = vcombine.high %v5881_v59, %v5897_v48  ;;  %v10707_v52 = vcombine.low %v5974_v6, %v5990_v53  ;;  %v6137_v6 = vld [vmem:[#allocation20 + $0xc50] sm:$0xff] }
 0xad5   : > { %9337 = vmatprep.subr.bf16.mxu0 %v10902_v42  ;;  %v5910_v42 = vld [vmem:[#allocation20 + $0x538] sm:$0xff]  ;;  %v6153_v53 = vld [vmem:[#allocation20 + $0xcd0] sm:$0xff] }
 0xad7   : > { %9215 = vmatpush1.bf16.msra.mxu1 %v10895_v44  ;;  %v15266_v44 = vld [vmem:[#allocation21] sm:$0xff] }
 0xad8   : > { %9338 = vmatpush1.bf16.msra.mxu0 %v10901_v21  ;;  %9216 = vmatprep.subr.bf16.mxu1 %v10928_v7  ;;  %v10617_v21 = vcombine.low %v5881_v59, %v5897_v48  ;;  %v10644_v7 = vcombine.high %v5910_v42, %v5926_v23  ;;  %v6266_v18 = vrot.slane %v15266_v44, %v16118_v40 }
 0xad9   : > { %9339 = vmatprep.subr.bf16.mxu0 %v10934_v22  ;;  %v10650_v22 = vcombine.high %v5913_v15, %v5929_v11  ;;  %v6270_v27 = vrot.slane %v15266_v44, %v16120_v13  ;;  %v6286_v34 = vrot.slane %v15266_v44, %v16123_v16 }
 0xadb   : > { %9217 = vmatpush1.bf16.msra.mxu1 %v10927_v1  ;;  %v6282_v1 = vrot.slane %v15266_v44, %v16122_v17 }
 0xadc   : > { %9340 = vmatpush1.bf16.msra.mxu0 %v10933_v5  ;;  %9218 = vmatprep.subr.bf16.mxu1 %v10960_v36  ;;  %v5945_v5 = vld [vmem:[#allocation20 + $0x650] sm:$0xff] }
 0xadd   : > { %9341 = vmatprep.subr.bf16.mxu0 %v10966_v57  ;;  %v5961_v36 = vld [vmem:[#allocation20 + $0x6d0] sm:$0xff]  ;;  %v10643_v57 = vcombine.low %v5910_v42, %v5926_v23 }
 0xadf   : > { %9219 = vmatpush1.bf16.msra.mxu1 %v10959_v61  ;;  %v10676_v61 = vcombine.high %v5942_v46, %v5958_v43 }
 0xae0   : > { %9342 = vmatpush1.bf16.msra.mxu0 %v10965_v54  ;;  %9270 = vmatprep.subr.bf16.mxu1 %v10484_v3 }
 0xae1   : > { %9393 = vmatprep.subr.bf16.mxu0 %v10490_v39  ;;  %v10682_v39 = vcombine.high %v5945_v5, %v5961_v36 }
 0xae2   : > { %9221 = vmatmul.mubr.bf16.vlgmr.msra.gmra.mrb[16].mxu1 %v15244_v58 }
 0xae3   : > { %9344 = vmatmul.mubr.bf16.vlgmr.msra.gmra.mrb[20].mxu0 %v15244_v58  ;;  %9271 = vmatpush1.bf16.msra.mxu1 %v10483_v37 }
 0xae4   : > { %9302 = vmatprep.mubr.bf16.mxu1 %v15246_v8  ;;  %9394 = vmatpush1.bf16.msra.mxu0 %v10489_v9 }
 0xae5   : > { %9425 = vmatprep.mubr.bf16.mxu0 %v15246_v8  ;;  %9272 = vmatprep.subr.bf16.mxu1 %v10516_v24  ;;  %v5977_v24 = vld [vmem:[#allocation20 + $0x750] sm:$0xff] }
 0xae6   : > { %9395 = vmatprep.subr.bf16.mxu0 %v10522_v28  ;;  %v10714_v0 = vcombine.high %v5977_v24, %v5993_v20  ;;  %v10713_v35 = vcombine.low %v5977_v24, %v5993_v20  ;;  %v10874_v20 = vcombine.high %v6137_v6, %v6153_v53 }
 0xae7   : > { %9273 = vmatpush1.bf16.msra.mxu1 %v10515_v41  ;;  %v10675_v41 = vcombine.low %v5942_v46, %v5958_v43 }
 0xae8   : > { %9396 = vmatpush1.bf16.msra.mxu0 %v10521_v25  ;;  %9274 = vmatprep.subr.bf16.mxu1 %v10548_v56 }
 0xae9   : > { %9397 = vmatprep.subr.bf16.mxu0 %v10554_v60  ;;  %v10681_v60 = vcombine.low %v5945_v5, %v5961_v36  ;;  %v6102_v5 = vld [vmem:[#allocation20 + $0xb38] sm:$0xff] }
 0xaea   : > { %v6118_v36 = vld [vmem:[#allocation20 + $0xbb8] sm:$0xff] }
 0xaeb   : > { %9275 = vmatpush1.bf16.msra.mxu1 %v10547_v50  ;;  %v6006_v50 = vld [vmem:[#allocation20 + $0x838] sm:$0xff] }
 0xaec   : > { %9398 = vmatpush1.bf16.msra.mxu0 %v10553_v10  ;;  %9276 = vmatprep.subr.bf16.mxu1 %v10580_v12  ;;  %v6022_v10 = vld [vmem:[#allocation20 + $0x8b8] sm:$0xff]  ;;  %v6009_v12 = vld [vmem:[#allocation20 + $0x850] sm:$0xff] }
 0xaed   : > { %9399 = vmatprep.subr.bf16.mxu0 %v10586_v14  ;;  %v6025_v14 = vld [vmem:[#allocation20 + $0x8d0] sm:$0xff]  ;;  %v10740_v59 = vcombine.high %v6006_v50, %v6022_v10  ;;  %v10739_v42 = vcombine.low %v6006_v50, %v6022_v10  ;;  %v6198_v50 = vld [vmem:[#allocation20 + $0xe38] sm:$0xff] }
 0xaee   : > { %v10746_v48 = vcombine.high %v6009_v12, %v6025_v14  ;;  %v10745_v23 = vcombine.low %v6009_v12, %v6025_v14  ;;  %v6214_v10 = vld [vmem:[#allocation20 + $0xeb8] sm:$0xff]  ;;  %v6201_v12 = vld [vmem:[#allocation20 + $0xe50] sm:$0xff] }
 0xaef   : > { %9277 = vmatpush1.bf16.msra.mxu1 %v10579_v51  ;;  %v6038_v51 = vld [vmem:[#allocation20 + $0x938] sm:$0xff]  ;;  %v6217_v14 = vld [vmem:[#allocation20 + $0xed0] sm:$0xff] }
 0xaf0   : > { %9400 = vmatpush1.bf16.msra.mxu0 %v10585_v32  ;;  %9278 = vmatprep.subr.bf16.mxu1 %v10612_v26  ;;  %v6054_v32 = vld [vmem:[#allocation20 + $0x9b8] sm:$0xff]  ;;  %v6041_v26 = vld [vmem:[#allocation20 + $0x950] sm:$0xff] }
 0xaf1   : > { %9401 = vmatprep.subr.bf16.mxu0 %v10618_v62  ;;  %v6057_v62 = vld [vmem:[#allocation20 + $0x9d0] sm:$0xff]  ;;  %v10772_v15 = vcombine.high %v6038_v51, %v6054_v32  ;;  %v10771_v46 = vcombine.low %v6038_v51, %v6054_v32  ;;  %v6230_v51 = vld [vmem:[#allocation20 + $0xf38] sm:$0xff] }
 0xaf2   : > { %v10778_v11 = vcombine.high %v6041_v26, %v6057_v62  ;;  %v10777_v43 = vcombine.low %v6041_v26, %v6057_v62  ;;  %v6246_v32 = vld [vmem:[#allocation20 + $0xfb8] sm:$0xff]  ;;  %v6233_v26 = vld [vmem:[#allocation20 + $0xf50] sm:$0xff] }
 0xaf3   : > { %9279 = vmatpush1.bf16.msra.mxu1 %v10611_v55  ;;  %v6070_v55 = vld [vmem:[#allocation20 + $0xa38] sm:$0xff]  ;;  %v6249_v62 = vld [vmem:[#allocation20 + $0xfd0] sm:$0xff] }
 0xaf4   : > { %9402 = vmatpush1.bf16.msra.mxu0 %v10617_v21  ;;  %9280 = vmatprep.subr.bf16.mxu1 %v10644_v7  ;;  %v6086_v21 = vld [vmem:[#allocation20 + $0xab8] sm:$0xff]  ;;  %v6073_v7 = vld [vmem:[#allocation20 + $0xa50] sm:$0xff] }
 0xaf5   : > { %v9017_v54 = vpop.f32.mrb[4].mxu1  ;;  %v9099_v3 = vpop.f32.mrb[8].mxu0  ;;  %9403 = vmatprep.subr.bf16.mxu0 %v10650_v22  ;;  %v6089_v22 = vld [vmem:[#allocation20 + $0xad0] sm:$0xff] }
 0xaf6   : > { %v15276_v37 = vadd.f32 %v9017_v54, %v6266_v18  ;;  %v15278_v4 = vadd.f32 %v9099_v3, %v6282_v1  ;;  %v9019_v63 = vpop.f32.mrb[5].mxu1  ;;  %v9101_v9 = vpop.f32.mrb[9].mxu0  ;;  %v10804_v18 = vcombine.high %v6070_v55, %v6086_v21  ;;  %v10810_v1 = vcombine.high %v6073_v7, %v6089_v22  ;;  %v6134_v3 = vld [vmem:[#allocation20 + $0xc38] sm:$0xff] }
 0xaf7   : > { %v15280_v38 = vadd.f32 %v9019_v63, %v6270_v27  ;;  %v15282_v28 = vadd.f32 %v9101_v9, %v6286_v34  ;;  %9281 = vmatpush1.bf16.msra.mxu1 %v10643_v57  ;;  %v9021_v45 = vpop.f32.mrb[6].mxu1  ;;  %v9103_v2 = vpop.f32.mrb[10].mxu0  ;;  %v6105_v57 = vld [vmem:[#allocation20 + $0xb50] sm:$0xff]  ;;  %v10803_v34 = vcombine.low %v6070_v55, %v6086_v21  ;;  %v10835_v63 = vcombine.low %v6102_v5, %v6118_v36  ;;  %v5752_v55 = vld [vmem:[#allocation20 + $0x48] sm:$0xff] }
 0xaf8   : > { %9404 = vmatpush1.bf16.msra.mxu0 %v10649_v19  ;;  %v9022_v25 = vpop.f32.mrb[7].mxu1  ;;  %v9104_v56 = vpop.f32.mrb[11].mxu0  ;;  %9282 = vmatprep.subr.bf16.mxu1 %v10676_v61  ;;  %v6121_v27 = vld [vmem:[#allocation20 + $0xbd0] sm:$0xff]  ;;  %v10809_v19 = vcombine.low %v6073_v7, %v6089_v22  ;;  %v10836_v61 = vcombine.high %v6102_v5, %v6118_v36  ;;  %v6166_v45 = vld [vmem:[#allocation20 + $0xd38] sm:$0xff]  ;;  %v5768_v21 = vld [vmem:[#allocation20 + $0xc8] sm:$0xff] }
 0xaf9   : > { %v9671_v30 = vcombine.low %v15276_v37, %v15280_v38  ;;  %v9688_v33 = vcombine.low %v15278_v4, %v15282_v28  ;;  %9405 = vmatprep.subr.bf16.mxu0 %v10682_v39  ;;  %v10842_v54 = vcombine.high %v6105_v57, %v6121_v27  ;;  %v6150_v39 = vld [vmem:[#allocation20 + $0xcb8] sm:$0xff]  ;;  %v10841_v9 = vcombine.low %v6105_v57, %v6121_v27  ;;  %v6185_v25 = vld [vmem:[#allocation20 + $0xdd0] sm:$0xff]  ;;  %v5755_v7 = vld [vmem:[#allocation20 + $0x60] sm:$0xff] }
 0xafa   : > { %v10868_v24 = vcombine.high %v6134_v3, %v6150_v39  ;;  %v6182_v2 = vld [vmem:[#allocation20 + $0xdb8] sm:$0xff]  ;;  %v10867_v56 = vcombine.low %v6134_v3, %v6150_v39  ;;  %v5771_v22 = vld [vmem:[#allocation20 + $0xe0] sm:$0xff]  ;;  %v5784_v5 = vld [vmem:[#allocation20 + $0x148] sm:$0xff]  ;;  %v10487_v57 = vcombine.low %v5752_v55, %v5768_v21 }
 0xafb   : > { %9283 = vmatpush1.bf16.msra.mxu1 %v10675_v41  ;;  %v6169_v41 = vld [vmem:[#allocation20 + $0xd50] sm:$0xff]  ;;  %v5800_v36 = vld [vmem:[#allocation20 + $0x1c8] sm:$0xff]  ;;  %v5787_v27 = vld [vmem:[#allocation20 + $0x160] sm:$0xff] }
 0xafc   : > { %9406 = vmatpush1.bf16.msra.mxu0 %v10681_v60  ;;  %9284 = vmatprep.subr.bf16.mxu1 %v10708_v49  ;;  %v10873_v60 = vcombine.low %v6137_v6, %v6153_v53  ;;  %v10900_v49 = vcombine.high %v6166_v45, %v6182_v2  ;;  %v5832_v3 = vld [vmem:[#allocation20 + $0x2c8] sm:$0xff]  ;;  %v5819_v6 = vld [vmem:[#allocation20 + $0x260] sm:$0xff] }
 0xafd   : > { %9407 = vmatprep.subr.bf16.mxu0 %v10714_v0  ;;  %v10906_v0 = vcombine.high %v6169_v41, %v6185_v25  ;;  %v5835_v53 = vld [vmem:[#allocation20 + $0x2e0] sm:$0xff] }
 0xaff   : > { %9285 = vmatpush1.bf16.msra.mxu1 %v10707_v52  ;;  %v10899_v52 = vcombine.low %v6166_v45, %v6182_v2  ;;  %v5848_v45 = vld [vmem:[#allocation20 + $0x348] sm:$0xff] }
 0xb00   : > { %9408 = vmatpush1.bf16.msra.mxu0 %v10713_v35  ;;  %9286 = vmatprep.subr.bf16.mxu1 %v10740_v59  ;;  %v10905_v35 = vcombine.low %v6169_v41, %v6185_v25  ;;  %v10932_v59 = vcombine.high %v6198_v50, %v6214_v10  ;;  %v5864_v2 = vld [vmem:[#allocation20 + $0x3c8] sm:$0xff]  ;;  %v5851_v41 = vld [vmem:[#allocation20 + $0x360] sm:$0xff] }
 0xb01   : > { %9409 = vmatprep.subr.bf16.mxu0 %v10746_v48  ;;  %v10938_v48 = vcombine.high %v6201_v12, %v6217_v14  ;;  %v5867_v25 = vld [vmem:[#allocation20 + $0x3e0] sm:$0xff] }
 0xb03   : > { %9287 = vmatpush1.bf16.msra.mxu1 %v10739_v42  ;;  %v10931_v42 = vcombine.low %v6198_v50, %v6214_v10  ;;  %v5880_v50 = vld [vmem:[#allocation20 + $0x448] sm:$0xff] }
 0xb04   : > { %9410 = vmatpush1.bf16.msra.mxu0 %v10745_v23  ;;  %9288 = vmatprep.subr.bf16.mxu1 %v10772_v15  ;;  %v10937_v23 = vcombine.low %v6201_v12, %v6217_v14  ;;  %v10964_v15 = vcombine.high %v6230_v51, %v6246_v32  ;;  %v5896_v10 = vld [vmem:[#allocation20 + $0x4c8] sm:$0xff]  ;;  %v5883_v12 = vld [vmem:[#allocation20 + $0x460] sm:$0xff] }
 0xb05   : > { %9411 = vmatprep.subr.bf16.mxu0 %v10778_v11  ;;  %v10970_v11 = vcombine.high %v6233_v26, %v6249_v62  ;;  %v5899_v14 = vld [vmem:[#allocation20 + $0x4e0] sm:$0xff] }
 0xb07   : > { %9289 = vmatpush1.bf16.msra.mxu1 %v10771_v46  ;;  %v10963_v46 = vcombine.low %v6230_v51, %v6246_v32  ;;  %v5912_v51 = vld [vmem:[#allocation20 + $0x548] sm:$0xff] }
 0xb08   : > { %9412 = vmatpush1.bf16.msra.mxu0 %v10777_v43  ;;  %9290 = vmatprep.subr.bf16.mxu1 %v10804_v18  ;;  %v10969_v43 = vcombine.low %v6233_v26, %v6249_v62  ;;  %v10488_v18 = vcombine.high %v5752_v55, %v5768_v21  ;;  %v5928_v32 = vld [vmem:[#allocation20 + $0x5c8] sm:$0xff]  ;;  %v5915_v26 = vld [vmem:[#allocation20 + $0x560] sm:$0xff] }
 0xb09   : > { %9413 = vmatprep.subr.bf16.mxu0 %v10810_v1  ;;  %v10494_v1 = vcombine.high %v5755_v7, %v5771_v22  ;;  %v5931_v62 = vld [vmem:[#allocation20 + $0x5e0] sm:$0xff]  ;;  %v5944_v21 = vld [vmem:[#allocation20 + $0x648] sm:$0xff] }
 0xb0a   : > { %v10654_v55 = vcombine.high %v5915_v26, %v5931_v62 }
 0xb0b   : > { %9291 = vmatpush1.bf16.msra.mxu1 %v10803_v34  ;;  %v5803_v34 = vld [vmem:[#allocation20 + $0x1e0] sm:$0xff] }
 0xb0c   : > { %9414 = vmatpush1.bf16.msra.mxu0 %v10809_v19  ;;  %9292 = vmatprep.subr.bf16.mxu1 %v10836_v61  ;;  %v10493_v19 = vcombine.low %v5755_v7, %v5771_v22  ;;  %v10520_v61 = vcombine.high %v5784_v5, %v5800_v36  ;;  %v10526_v39 = vcombine.high %v5787_v27, %v5803_v34  ;;  %v5960_v7 = vld [vmem:[#allocation20 + $0x6c8] sm:$0xff] }
 0xb0d   : > { %9415 = vmatprep.subr.bf16.mxu0 %v10842_v54  ;;  %v5816_v54 = vld [vmem:[#allocation20 + $0x248] sm:$0xff]  ;;  %v6274_v22 = vrot.slane %v15266_v44, %v16119_v31 }
 0xb0f   : > { %9293 = vmatpush1.bf16.msra.mxu1 %v10835_v63  ;;  %v10519_v63 = vcombine.low %v5784_v5, %v5800_v36  ;;  %v10647_v36 = vcombine.low %v5912_v51, %v5928_v32 }
 0xb10   : > { %9416 = vmatpush1.bf16.msra.mxu0 %v10841_v9  ;;  %9294 = vmatprep.subr.bf16.mxu1 %v10868_v24  ;;  %v10525_v9 = vcombine.low %v5787_v27, %v5803_v34  ;;  %v10552_v24 = vcombine.high %v5816_v54, %v5832_v3  ;;  %v10680_v27 = vcombine.high %v5944_v21, %v5960_v7 }
 0xb11   : > { %9417 = vmatprep.subr.bf16.mxu0 %v10874_v20  ;;  %v10558_v20 = vcombine.high %v5819_v6, %v5835_v53 }
 0xb13   : > { %9295 = vmatpush1.bf16.msra.mxu1 %v10867_v56  ;;  %v10551_v56 = vcombine.low %v5816_v54, %v5832_v3  ;;  %v5976_v54 = vld [vmem:[#allocation20 + $0x748] sm:$0xff] }
 0xb14   : > { %9418 = vmatpush1.bf16.msra.mxu0 %v10873_v60  ;;  %9296 = vmatprep.subr.bf16.mxu1 %v10900_v49  ;;  %v10557_v60 = vcombine.low %v5819_v6, %v5835_v53  ;;  %v10584_v49 = vcombine.high %v5848_v45, %v5864_v2  ;;  %v5992_v3 = vld [vmem:[#allocation20 + $0x7c8] sm:$0xff] }
 0xb15   : > { %9419 = vmatprep.subr.bf16.mxu0 %v10906_v0  ;;  %v10590_v0 = vcombine.high %v5851_v41, %v5867_v25 }
 0xb17   : > { %9297 = vmatpush1.bf16.msra.mxu1 %v10899_v52  ;;  %v10583_v52 = vcombine.low %v5848_v45, %v5864_v2 }
 0xb18   : > { %9420 = vmatpush1.bf16.msra.mxu0 %v10905_v35  ;;  %9298 = vmatprep.subr.bf16.mxu1 %v10932_v59  ;;  %v10589_v35 = vcombine.low %v5851_v41, %v5867_v25  ;;  %v10616_v59 = vcombine.high %v5880_v50, %v5896_v10  ;;  %v10679_v25 = vcombine.low %v5944_v21, %v5960_v7  ;;  %v6043_v21 = vld [vmem:[#allocation20 + $0x960] sm:$0xff] }
 0xb19   : > { %9421 = vmatprep.subr.bf16.mxu0 %v10938_v48  ;;  %v10622_v48 = vcombine.high %v5883_v12, %v5899_v14  ;;  %v6059_v7 = vld [vmem:[#allocation20 + $0x9e0] sm:$0xff] }
 0xb1b   : > { %9299 = vmatpush1.bf16.msra.mxu1 %v10931_v42  ;;  %v10615_v42 = vcombine.low %v5880_v50, %v5896_v10 }
 0xb1c   : > { %9422 = vmatpush1.bf16.msra.mxu0 %v10937_v23  ;;  %9300 = vmatprep.subr.bf16.mxu1 %v10964_v15  ;;  %v15292_v23 = vld [vmem:[#allocation21 + $0x8] sm:$0xff]  ;;  %v10621_v15 = vcombine.low %v5883_v12, %v5899_v14 }
 0xb1d   : > { %9423 = vmatprep.subr.bf16.mxu0 %v10970_v11  ;;  %v10648_v11 = vcombine.high %v5912_v51, %v5928_v32  ;;  %v6302_v5 = vrot.slane %v15292_v23, %v16120_v13  ;;  %v6008_v14 = vld [vmem:[#allocation20 + $0x848] sm:$0xff]  ;;  %v10711_v32 = vcombine.low %v5976_v54, %v5992_v3 }
 0xb1f   : > { %9301 = vmatpush1.bf16.msra.mxu1 %v10963_v46  ;;  %v6298_v46 = vrot.slane %v15292_v23, %v16118_v40 }
 0xb20   : > { %9424 = vmatpush1.bf16.msra.mxu0 %v10969_v43  ;;  %9352 = vmatprep.subr.bf16.mxu1 %v10488_v18  ;;  %v5947_v43 = vld [vmem:[#allocation20 + $0x660] sm:$0xff] }
 0xb21   : > { %9475 = vmatprep.subr.bf16.mxu0 %v10494_v1  ;;  %v5963_v18 = vld [vmem:[#allocation20 + $0x6e0] sm:$0xff]  ;;  %v6278_v1 = vrot.slane %v15266_v44, %v16121_v47 }
 0xb22   : > { %9303 = vmatmul.mubr.bf16.vlgmr.msra.gmra.mrb[20].mxu1 %v15244_v58 }
 0xb23   : > { %9426 = vmatmul.mubr.bf16.vlgmr.msra.gmra.mrb[24].mxu0 %v15244_v58  ;;  %9353 = vmatpush1.bf16.msra.mxu1 %v10487_v57  ;;  %v10653_v57 = vcombine.low %v5915_v26, %v5931_v62 }
 0xb24   : > { %9384 = vmatprep.mubr.bf16.mxu1 %v15246_v8  ;;  %9476 = vmatpush1.bf16.msra.mxu0 %v10493_v19 }
 0xb25   : > { %9507 = vmatprep.mubr.bf16.mxu0 %v15246_v8  ;;  %9354 = vmatprep.subr.bf16.mxu1 %v10520_v61  ;;  %v10686_v61 = vcombine.high %v5947_v43, %v5963_v18 }
 0xb26   : > { %9477 = vmatprep.subr.bf16.mxu0 %v10526_v39 }
 0xb27   : > { %9355 = vmatpush1.bf16.msra.mxu1 %v10519_v63 }
 0xb28   : > { %9478 = vmatpush1.bf16.msra.mxu0 %v10525_v9  ;;  %9356 = vmatprep.subr.bf16.mxu1 %v10552_v24  ;;  %v5979_v9 = vld [vmem:[#allocation20 + $0x760] sm:$0xff] }
 0xb29   : > { %9479 = vmatprep.subr.bf16.mxu0 %v10558_v20  ;;  %v5995_v24 = vld [vmem:[#allocation20 + $0x7e0] sm:$0xff] }
 0xb2a   : > { %v10718_v12 = vcombine.high %v5979_v9, %v5995_v24  ;;  %v10717_v26 = vcombine.low %v5979_v9, %v5995_v24  ;;  %v6136_v9 = vld [vmem:[#allocation20 + $0xc48] sm:$0xff] }
 0xb2b   : > { %9357 = vmatpush1.bf16.msra.mxu1 %v10551_v56  ;;  %v6152_v24 = vld [vmem:[#allocation20 + $0xcc8] sm:$0xff] }
 0xb2c   : > { %9480 = vmatpush1.bf16.msra.mxu0 %v10557_v60  ;;  %9358 = vmatprep.subr.bf16.mxu1 %v10584_v49  ;;  %v10685_v49 = vcombine.low %v5947_v43, %v5963_v18  ;;  %v6088_v43 = vld [vmem:[#allocation20 + $0xac8] sm:$0xff]  ;;  %v6075_v18 = vld [vmem:[#allocation20 + $0xa60] sm:$0xff] }
 0xb2d   : > { %9481 = vmatprep.subr.bf16.mxu0 %v10590_v0  ;;  %v10712_v0 = vcombine.high %v5976_v54, %v5992_v3  ;;  %v6123_v54 = vld [vmem:[#allocation20 + $0xbe0] sm:$0xff] }
 0xb2f   : > { %9359 = vmatpush1.bf16.msra.mxu1 %v10583_v52  ;;  %v6024_v52 = vld [vmem:[#allocation20 + $0x8c8] sm:$0xff] }
 0xb30   : > { %9482 = vmatpush1.bf16.msra.mxu0 %v10589_v35  ;;  %9360 = vmatprep.subr.bf16.mxu1 %v10616_v59  ;;  %v6011_v35 = vld [vmem:[#allocation20 + $0x860] sm:$0xff]  ;;  %v10744_v62 = vcombine.high %v6008_v14, %v6024_v52  ;;  %v10743_v37 = vcombine.low %v6008_v14, %v6024_v52  ;;  %v10871_v14 = vcombine.low %v6136_v9, %v6152_v24 }
 0xb31   : > { %9483 = vmatprep.subr.bf16.mxu0 %v10622_v48  ;;  %v6027_v59 = vld [vmem:[#allocation20 + $0x8e0] sm:$0xff]  ;;  %v9679_v48 = vrot.slane %v9671_v30, %v15158_v29 }
 0xb32   : > { %v10749_v38 = vcombine.low %v6011_v35, %v6027_v59 }
 0xb33   : > { %9361 = vmatpush1.bf16.msra.mxu1 %v10615_v42 }
 0xb34   : > { %9484 = vmatpush1.bf16.msra.mxu0 %v10621_v15  ;;  %9362 = vmatprep.subr.bf16.mxu1 %v10648_v11  ;;  %v10750_v15 = vcombine.high %v6011_v35, %v6027_v59  ;;  %v6040_v11 = vld [vmem:[#allocation20 + $0x948] sm:$0xff] }
 0xb35   : > { %v9058_v34 = vpop.f32.mrb[8].mxu1  ;;  %v9181_v19 = vpop.f32.mrb[12].mxu0  ;;  %9485 = vmatprep.subr.bf16.mxu0 %v10654_v55  ;;  %v6056_v55 = vld [vmem:[#allocation20 + $0x9c8] sm:$0xff] }
 0xb36   : > { %v9059_v39 = vadd.f32 %v9058_v34, %v6274_v22  ;;  %v15302_v6 = vadd.f32 %v9181_v19, %v6298_v46  ;;  %v9060_v53 = vpop.f32.mrb[9].mxu1  ;;  %v9183_v63 = vpop.f32.mrb[13].mxu0  ;;  %v10776_v30 = vcombine.high %v6040_v11, %v6056_v55  ;;  %v10782_v22 = vcombine.high %v6043_v21, %v6059_v7  ;;  %v6072_v46 = vld [vmem:[#allocation20 + $0xa48] sm:$0xff] }
 0xb37   : > { %v9061_v20 = vadd.f32 %v9060_v53, %v6278_v1  ;;  %v15304_v45 = vadd.f32 %v9183_v63, %v6302_v5  ;;  %v9062_v2 = vpop.f32.mrb[10].mxu1  ;;  %v9185_v41 = vpop.f32.mrb[14].mxu0  ;;  %9363 = vmatpush1.bf16.msra.mxu1 %v10647_v36  ;;  %v6091_v1 = vld [vmem:[#allocation20 + $0xae0] sm:$0xff]  ;;  %v10775_v5 = vcombine.low %v6040_v11, %v6056_v55  ;;  %v10781_v36 = vcombine.low %v6043_v21, %v6059_v7  ;;  %v6104_v34 = vld [vmem:[#allocation20 + $0xb48] sm:$0xff] }
 0xb38   : > { %9486 = vmatpush1.bf16.msra.mxu0 %v10653_v57  ;;  %v9063_v56 = vpop.f32.mrb[11].mxu1  ;;  %v9186_v60 = vpop.f32.mrb[15].mxu0  ;;  %9364 = vmatprep.subr.bf16.mxu1 %v10680_v27  ;;  %v10808_v57 = vcombine.high %v6072_v46, %v6088_v43  ;;  %v10814_v27 = vcombine.high %v6075_v18, %v6091_v1  ;;  %v6120_v19 = vld [vmem:[#allocation20 + $0xbc8] sm:$0xff]  ;;  %v10807_v3 = vcombine.low %v6072_v46, %v6088_v43  ;;  %v6155_v2 = vld [vmem:[#allocation20 + $0xce0] sm:$0xff]  ;;  %v5754_v43 = vld [vmem:[#allocation20 + $0x58] sm:$0xff] }
 0xb39   : > { %v9672_v50 = vcombine.low %v9059_v39, %v9061_v20  ;;  %v9705_v10 = vcombine.low %v15302_v6, %v15304_v45  ;;  %9487 = vmatprep.subr.bf16.mxu0 %v10686_v61  ;;  %v6107_v61 = vld [vmem:[#allocation20 + $0xb60] sm:$0xff]  ;;  %v10813_v39 = vcombine.low %v6075_v18, %v6091_v1  ;;  %v10840_v53 = vcombine.high %v6104_v34, %v6120_v19  ;;  %v6232_v55 = vld [vmem:[#allocation20 + $0xf48] sm:$0xff]  ;;  %v5770_v18 = vld [vmem:[#allocation20 + $0xd8] sm:$0xff] }
 0xb3a   : > { %v10846_v63 = vcombine.high %v6107_v61, %v6123_v54  ;;  %v6139_v20 = vld [vmem:[#allocation20 + $0xc60] sm:$0xff]  ;;  %v10839_v41 = vcombine.low %v6104_v34, %v6120_v19  ;;  %v10872_v56 = vcombine.high %v6136_v9, %v6152_v24  ;;  %v6248_v21 = vld [vmem:[#allocation20 + $0xfc8] sm:$0xff]  ;;  %v5757_v1 = vld [vmem:[#allocation20 + $0x70] sm:$0xff] }
 0xb3b   : > { %v9686_v51 = vrot.slane %v9672_v50, %v15158_v29  ;;  %9365 = vmatpush1.bf16.msra.mxu1 %v10679_v25  ;;  %v10845_v25 = vcombine.low %v6107_v61, %v6123_v54  ;;  %v10878_v60 = vcombine.high %v6139_v20, %v6155_v2  ;;  %v6171_v50 = vld [vmem:[#allocation20 + $0xd60] sm:$0xff]  ;;  %v10877_v52 = vcombine.low %v6139_v20, %v6155_v2  ;;  %v5786_v19 = vld [vmem:[#allocation20 + $0x158] sm:$0xff]  ;;  %v5821_v2 = vld [vmem:[#allocation20 + $0x270] sm:$0xff] }
 0xb3c   : > { %9488 = vmatpush1.bf16.msra.mxu0 %v10685_v49  ;;  %9366 = vmatprep.subr.bf16.mxu1 %v10712_v0  ;;  %v6168_v49 = vld [vmem:[#allocation20 + $0xd48] sm:$0xff]  ;;  %v6235_v7 = vld [vmem:[#allocation20 + $0xf60] sm:$0xff]  ;;  %v5802_v61 = vld [vmem:[#allocation20 + $0x1d8] sm:$0xff]  ;;  %v10491_v54 = vcombine.low %v5754_v43, %v5770_v18 }
 0xb3d   : > { %v9687_v42 = vcombine.low %v9679_v48, %v9686_v51  ;;  %9489 = vmatprep.subr.bf16.mxu0 %v10718_v12  ;;  %v6184_v0 = vld [vmem:[#allocation20 + $0xdc8] sm:$0xff]  ;;  %v6187_v12 = vld [vmem:[#allocation20 + $0xde0] sm:$0xff]  ;;  %v5818_v9 = vld [vmem:[#allocation20 + $0x258] sm:$0xff] }
 0xb3e   : > { %v10904_v35 = vcombine.high %v6168_v49, %v6184_v0  ;;  %v10910_v59 = vcombine.high %v6171_v50, %v6187_v12  ;;  %v6200_v48 = vld [vmem:[#allocation20 + $0xe48] sm:$0xff]  ;;  %v5834_v24 = vld [vmem:[#allocation20 + $0x2d8] sm:$0xff] }
 0xb3f   : > { %9815 = vst [vmem:[%s12665_s28] sm:$0xff] %v9687_v42  ;;  %9367 = vmatpush1.bf16.msra.mxu1 %v10711_v32  ;;  %v6216_v51 = vld [vmem:[#allocation20 + $0xec8] sm:$0xff]  ;;  %v6203_v32 = vld [vmem:[#allocation20 + $0xe60] sm:$0xff]  ;;  %v10909_v42 = vcombine.low %v6171_v50, %v6187_v12  ;;  %v5866_v50 = vld [vmem:[#allocation20 + $0x3d8] sm:$0xff] }
 0xb40   : > { %9490 = vmatpush1.bf16.msra.mxu0 %v10717_v26  ;;  %9368 = vmatprep.subr.bf16.mxu1 %v10744_v62  ;;  %v6219_v26 = vld [vmem:[#allocation20 + $0xee0] sm:$0xff]  ;;  %v10903_v62 = vcombine.low %v6168_v49, %v6184_v0  ;;  %v5850_v0 = vld [vmem:[#allocation20 + $0x358] sm:$0xff]  ;;  %v5853_v12 = vld [vmem:[#allocation20 + $0x370] sm:$0xff] }
 0xb41   : > { %9491 = vmatprep.subr.bf16.mxu0 %v10750_v15  ;;  %v10936_v15 = vcombine.high %v6200_v48, %v6216_v51  ;;  %v10942_v11 = vcombine.high %v6203_v32, %v6219_v26  ;;  %v6108_v45 = vld [vmem:[#allocation20 + $0xb68] sm:$0xff] }
 0xb43   : > { %9369 = vmatpush1.bf16.msra.mxu1 %v10743_v37  ;;  %v6251_v37 = vld [vmem:[#allocation20 + $0xfe0] sm:$0xff] }
 0xb44   : > { %9492 = vmatpush1.bf16.msra.mxu0 %v10749_v38  ;;  %9370 = vmatprep.subr.bf16.mxu1 %v10776_v30  ;;  %v10935_v38 = vcombine.low %v6200_v48, %v6216_v51  ;;  %v10941_v30 = vcombine.low %v6203_v32, %v6219_v26  ;;  %v10974_v46 = vcombine.high %v6235_v7, %v6251_v37  ;;  %v5882_v51 = vld [vmem:[#allocation20 + $0x458] sm:$0xff]  ;;  %v5885_v26 = vld [vmem:[#allocation20 + $0x470] sm:$0xff] }
 0xb45   : > { %9493 = vmatprep.subr.bf16.mxu0 %v10782_v22  ;;  %v10968_v22 = vcombine.high %v6232_v55, %v6248_v21  ;;  %v5898_v32 = vld [vmem:[#allocation20 + $0x4d8] sm:$0xff] }
 0xb47   : > { %9371 = vmatpush1.bf16.msra.mxu1 %v10775_v5  ;;  %v5773_v5 = vld [vmem:[#allocation20 + $0xf0] sm:$0xff] }
 0xb48   : > { %9494 = vmatpush1.bf16.msra.mxu0 %v10781_v36  ;;  %9372 = vmatprep.subr.bf16.mxu1 %v10808_v57  ;;  %v10967_v36 = vcombine.low %v6232_v55, %v6248_v21  ;;  %v10973_v57 = vcombine.low %v6235_v7, %v6251_v37  ;;  %v10498_v34 = vcombine.high %v5757_v1, %v5773_v5  ;;  %v5914_v21 = vld [vmem:[#allocation20 + $0x558] sm:$0xff]  ;;  %v5917_v37 = vld [vmem:[#allocation20 + $0x570] sm:$0xff] }
 0xb49   : > { %9495 = vmatprep.subr.bf16.mxu0 %v10814_v27  ;;  %v10492_v27 = vcombine.high %v5754_v43, %v5770_v18  ;;  %v5930_v7 = vld [vmem:[#allocation20 + $0x5d8] sm:$0xff] }
 0xb4a   : > { %v5946_v18 = vld [vmem:[#allocation20 + $0x658] sm:$0xff] }
 0xb4b   : > { %9373 = vmatpush1.bf16.msra.mxu1 %v10807_v3  ;;  %v5789_v3 = vld [vmem:[#allocation20 + $0x170] sm:$0xff] }
 0xb4c   : > { %9496 = vmatpush1.bf16.msra.mxu0 %v10813_v39  ;;  %9374 = vmatprep.subr.bf16.mxu1 %v10840_v53  ;;  %v5805_v39 = vld [vmem:[#allocation20 + $0x1f0] sm:$0xff]  ;;  %v10497_v53 = vcombine.low %v5757_v1, %v5773_v5  ;;  %v5962_v1 = vld [vmem:[#allocation20 + $0x6d8] sm:$0xff] }
 0xb4d   : > { %9497 = vmatprep.subr.bf16.mxu0 %v10846_v63  ;;  %v10524_v63 = vcombine.high %v5786_v19, %v5802_v61  ;;  %v10530_v20 = vcombine.high %v5789_v3, %v5805_v39  ;;  %v16124_v5 = vld [vmem:[#allocation44_spill] sm:$0xff] }
 0xb4f   : > { %9375 = vmatpush1.bf16.msra.mxu1 %v10839_v41  ;;  %v5837_v41 = vld [vmem:[#allocation20 + $0x2f0] sm:$0xff] }
 0xb50   : > { %9498 = vmatpush1.bf16.msra.mxu0 %v10845_v25  ;;  %9376 = vmatprep.subr.bf16.mxu1 %v10872_v56  ;;  %v10523_v25 = vcombine.low %v5786_v19, %v5802_v61  ;;  %v10529_v56 = vcombine.low %v5789_v3, %v5805_v39  ;;  %v10562_v49 = vcombine.high %v5821_v2, %v5837_v41  ;;  %v16125_v19 = vld [vmem:[#allocation47_spill] sm:$0xff] }
 0xb51   : > { %9499 = vmatprep.subr.bf16.mxu0 %v10878_v60  ;;  %v10556_v60 = vcombine.high %v5818_v9, %v5834_v24  ;;  %v6294_v61 = vrot.slane %v15266_v44, %v16125_v19  ;;  %v6318_v3 = vrot.slane %v15292_v23, %v16123_v16 }
 0xb53   : > { %9377 = vmatpush1.bf16.msra.mxu1 %v10871_v14  ;;  %v5869_v14 = vld [vmem:[#allocation20 + $0x3f0] sm:$0xff] }
 0xb54   : > { %9500 = vmatpush1.bf16.msra.mxu0 %v10877_v52  ;;  %9378 = vmatprep.subr.bf16.mxu1 %v10904_v35  ;;  %v10555_v52 = vcombine.low %v5818_v9, %v5834_v24  ;;  %v10561_v35 = vcombine.low %v5821_v2, %v5837_v41  ;;  %v10594_v48 = vcombine.high %v5853_v12, %v5869_v14  ;;  %v5978_v24 = vld [vmem:[#allocation20 + $0x758] sm:$0xff] }
 0xb55   : > { %9501 = vmatprep.subr.bf16.mxu0 %v10910_v59  ;;  %v10588_v59 = vcombine.high %v5850_v0, %v5866_v50 }
 0xb57   : > { %9379 = vmatpush1.bf16.msra.mxu1 %v10903_v62  ;;  %v5901_v62 = vld [vmem:[#allocation20 + $0x4f0] sm:$0xff] }
 0xb58   : > { %9502 = vmatpush1.bf16.msra.mxu0 %v10909_v42  ;;  %9380 = vmatprep.subr.bf16.mxu1 %v10936_v15  ;;  %v10587_v42 = vcombine.low %v5850_v0, %v5866_v50  ;;  %v10593_v15 = vcombine.low %v5853_v12, %v5869_v14  ;;  %v10626_v55 = vcombine.high %v5885_v26, %v5901_v62 }
 0xb59   : > { %9503 = vmatprep.subr.bf16.mxu0 %v10942_v11  ;;  %v10620_v11 = vcombine.high %v5882_v51, %v5898_v32  ;;  %v10683_v12 = vcombine.low %v5946_v18, %v5962_v1 }
 0xb5b   : > { %9381 = vmatpush1.bf16.msra.mxu1 %v10935_v38  ;;  %v5933_v38 = vld [vmem:[#allocation20 + $0x5f0] sm:$0xff] }
 0xb5c   : > { %9504 = vmatpush1.bf16.msra.mxu0 %v10941_v30  ;;  %9382 = vmatprep.subr.bf16.mxu1 %v10968_v22  ;;  %v10619_v30 = vcombine.low %v5882_v51, %v5898_v32  ;;  %v10625_v22 = vcombine.low %v5885_v26, %v5901_v62  ;;  %v10658_v43 = vcombine.high %v5917_v37, %v5933_v38  ;;  %v6010_v62 = vld [vmem:[#allocation20 + $0x858] sm:$0xff] }
 0xb5d   : > { %9505 = vmatprep.subr.bf16.mxu0 %v10974_v46  ;;  %v10652_v46 = vcombine.high %v5914_v21, %v5930_v7  ;;  %v10657_v39 = vcombine.low %v5917_v37, %v5933_v38 }
 0xb5f   : > { %9383 = vmatpush1.bf16.msra.mxu1 %v10967_v36  ;;  %v6290_v36 = vrot.slane %v15266_v44, %v16124_v5 }
 0xb60   : > { %9506 = vmatpush1.bf16.msra.mxu0 %v10973_v57  ;;  %9434 = vmatprep.subr.bf16.mxu1 %v10492_v27  ;;  %v5949_v57 = vld [vmem:[#allocation20 + $0x670] sm:$0xff] }
 0xb61   : > { %9557 = vmatprep.subr.bf16.mxu0 %v10498_v34  ;;  %v5965_v27 = vld [vmem:[#allocation20 + $0x6f0] sm:$0xff]  ;;  %v6314_v34 = vrot.slane %v15292_v23, %v16122_v17 }
 0xb62   : > { %9385 = vmatmul.mubr.bf16.vlgmr.msra.gmra.mrb[24].mxu1 %v15244_v58  ;;  %v10690_v9 = vcombine.high %v5949_v57, %v5965_v27 }
 0xb63   : > { %9508 = vmatmul.mubr.bf16.vlgmr.msra.gmra.mrb[28].mxu0 %v15244_v58  ;;  %9435 = vmatpush1.bf16.msra.mxu1 %v10491_v54  ;;  %v10651_v54 = vcombine.low %v5914_v21, %v5930_v7  ;;  %v9696_v21 = vrot.slane %v9688_v33, %v15158_v29 }
 0xb64   : > { %9466 = vmatprep.mubr.bf16.mxu1 %v15246_v8  ;;  %9558 = vmatpush1.bf16.msra.mxu0 %v10497_v53  ;;  %v10684_v53 = vcombine.high %v5946_v18, %v5962_v1  ;;  %v6058_v18 = vld [vmem:[#allocation20 + $0x9d8] sm:$0xff]  ;;  %v6045_v1 = vld [vmem:[#allocation20 + $0x970] sm:$0xff] }
 0xb65   : > { %9589 = vmatprep.mubr.bf16.mxu0 %v15246_v8  ;;  %9436 = vmatprep.subr.bf16.mxu1 %v10524_v63 }
 0xb66   : > { %9559 = vmatprep.subr.bf16.mxu0 %v10530_v20  ;;  %v5994_v20 = vld [vmem:[#allocation20 + $0x7d8] sm:$0xff] }
 0xb67   : > { %9437 = vmatpush1.bf16.msra.mxu1 %v10523_v25  ;;  %v10715_v37 = vcombine.low %v5978_v24, %v5994_v20 }
 0xb68   : > { %9560 = vmatpush1.bf16.msra.mxu0 %v10529_v56  ;;  %9438 = vmatprep.subr.bf16.mxu1 %v10556_v60  ;;  %v5981_v56 = vld [vmem:[#allocation20 + $0x770] sm:$0xff] }
 0xb69   : > { %9561 = vmatprep.subr.bf16.mxu0 %v10562_v49  ;;  %v5997_v60 = vld [vmem:[#allocation20 + $0x7f0] sm:$0xff] }
 0xb6a   : > { %v10722_v26 = vcombine.high %v5981_v56, %v5997_v60  ;;  %v10721_v38 = vcombine.low %v5981_v56, %v5997_v60 }
 0xb6b   : > { %9439 = vmatpush1.bf16.msra.mxu1 %v10555_v52 }
 0xb6c   : > { %9562 = vmatpush1.bf16.msra.mxu0 %v10561_v35  ;;  %9440 = vmatprep.subr.bf16.mxu1 %v10588_v59  ;;  %v10689_v59 = vcombine.low %v5949_v57, %v5965_v27  ;;  %v6074_v27 = vld [vmem:[#allocation20 + $0xa58] sm:$0xff] }
 0xb6d   : > { %9563 = vmatprep.subr.bf16.mxu0 %v10594_v48  ;;  %v10716_v48 = vcombine.high %v5978_v24, %v5994_v20  ;;  %v6122_v24 = vld [vmem:[#allocation20 + $0xbd8] sm:$0xff]  ;;  %v6109_v20 = vld [vmem:[#allocation20 + $0xb70] sm:$0xff] }
 0xb6f   : > { %9441 = vmatpush1.bf16.msra.mxu1 %v10587_v42  ;;  %v6026_v42 = vld [vmem:[#allocation20 + $0x8d8] sm:$0xff] }
 0xb70   : > { %9564 = vmatpush1.bf16.msra.mxu0 %v10593_v15  ;;  %9442 = vmatprep.subr.bf16.mxu1 %v10620_v11  ;;  %v6013_v11 = vld [vmem:[#allocation20 + $0x870] sm:$0xff]  ;;  %v10747_v4 = vcombine.low %v6010_v62, %v6026_v42 }
 0xb71   : > { %9565 = vmatprep.subr.bf16.mxu0 %v10626_v55  ;;  %v6029_v55 = vld [vmem:[#allocation20 + $0x8f0] sm:$0xff] }
 0xb72   : > { %v10753_v28 = vcombine.low %v6013_v11, %v6029_v55 }
 0xb73   : > { %9443 = vmatpush1.bf16.msra.mxu1 %v10619_v30  ;;  %v10748_v30 = vcombine.high %v6010_v62, %v6026_v42  ;;  %v6189_v62 = vld [vmem:[#allocation20 + $0xdf0] sm:$0xff] }
 0xb74   : > { %9566 = vmatpush1.bf16.msra.mxu0 %v10625_v22  ;;  %9444 = vmatprep.subr.bf16.mxu1 %v10652_v46  ;;  %v10754_v46 = vcombine.high %v6013_v11, %v6029_v55 }
 0xb75   : > { %v9140_v63 = vpop.f32.mrb[12].mxu1  ;;  %9567 = vmatprep.subr.bf16.mxu0 %v10658_v43  ;;  %v6042_v43 = vld [vmem:[#allocation20 + $0x958] sm:$0xff] }
 0xb76   : > { %v9141_v2 = vadd.f32 %v9140_v63, %v6290_v36  ;;  %v9263_v41 = vpop.f32.mrb[16].mxu0  ;;  %v9142_v25 = vpop.f32.mrb[13].mxu1  ;;  %v6061_v36 = vld [vmem:[#allocation20 + $0x9f0] sm:$0xff]  ;;  %v10780_v33 = vcombine.high %v6042_v43, %v6058_v18 }
 0xb77   : > { %v15326_v49 = vadd.f32 %v9263_v41, %v6314_v34  ;;  %v9143_v44 = vadd.f32 %v9142_v25, %v6294_v61  ;;  %v9265_v0 = vpop.f32.mrb[17].mxu0  ;;  %v9144_v50 = vpop.f32.mrb[14].mxu1  ;;  %9445 = vmatpush1.bf16.msra.mxu1 %v10651_v54  ;;  %v10786_v57 = vcombine.high %v6045_v1, %v6061_v36  ;;  %v6090_v34 = vld [vmem:[#allocation20 + $0xad8] sm:$0xff]  ;;  %v6077_v61 = vld [vmem:[#allocation20 + $0xa70] sm:$0xff] }
 0xb78   : > { %v15328_v14 = vadd.f32 %v9265_v0, %v6318_v3  ;;  %v9267_v52 = vpop.f32.mrb[18].mxu0  ;;  %9568 = vmatpush1.bf16.msra.mxu0 %v10657_v39  ;;  %v9145_v35 = vpop.f32.mrb[15].mxu1  ;;  %9446 = vmatprep.subr.bf16.mxu1 %v10684_v53  ;;  %v6093_v54 = vld [vmem:[#allocation20 + $0xaf0] sm:$0xff]  ;;  %v10779_v3 = vcombine.low %v6042_v43, %v6058_v18  ;;  %v10785_v39 = vcombine.low %v6045_v1, %v6061_v36  ;;  %v6154_v0 = vld [vmem:[#allocation20 + $0xcd8] sm:$0xff] }
 0xb79   : > { %v9689_v51 = vcombine.low %v9141_v2, %v9143_v44  ;;  %v9268_v32 = vpop.f32.mrb[19].mxu0  ;;  %9569 = vmatprep.subr.bf16.mxu0 %v10690_v9  ;;  %v10812_v53 = vcombine.high %v6074_v27, %v6090_v34  ;;  %v10818_v63 = vcombine.high %v6077_v61, %v6093_v54  ;;  %v6106_v9 = vld [vmem:[#allocation20 + $0xb58] sm:$0xff]  ;;  %v6125_v2 = vld [vmem:[#allocation20 + $0xbf0] sm:$0xff]  ;;  %v10811_v41 = vcombine.low %v6074_v27, %v6090_v34 }
 0xb7a   : > { %v9722_v15 = vcombine.low %v15326_v49, %v15328_v14  ;;  %v10817_v25 = vcombine.low %v6077_v61, %v6093_v54  ;;  %v10844_v56 = vcombine.high %v6106_v9, %v6122_v24  ;;  %v10850_v60 = vcombine.high %v6109_v20, %v6125_v2  ;;  %v6138_v44 = vld [vmem:[#allocation20 + $0xc58] sm:$0xff]  ;;  %v6141_v50 = vld [vmem:[#allocation20 + $0xc70] sm:$0xff]  ;;  %v5756_v61 = vld [vmem:[#allocation20 + $0x68] sm:$0xff] }
 0xb7b   : > { %v9703_v7 = vrot.slane %v9689_v51, %v15158_v29  ;;  %9447 = vmatpush1.bf16.msra.mxu1 %v10683_v12  ;;  %v6157_v12 = vld [vmem:[#allocation20 + $0xcf0] sm:$0xff]  ;;  %v10843_v52 = vcombine.low %v6106_v9, %v6122_v24  ;;  %v10849_v35 = vcombine.low %v6109_v20, %v6125_v2  ;;  %v6170_v51 = vld [vmem:[#allocation20 + $0xd58] sm:$0xff]  ;;  %v10875_v42 = vcombine.low %v6138_v44, %v6154_v0  ;;  %v5772_v54 = vld [vmem:[#allocation20 + $0xe8] sm:$0xff] }
 0xb7c   : > { %9570 = vmatpush1.bf16.msra.mxu0 %v10689_v59  ;;  %9448 = vmatprep.subr.bf16.mxu1 %v10716_v48  ;;  %v10876_v59 = vcombine.high %v6138_v44, %v6154_v0  ;;  %v10882_v48 = vcombine.high %v6141_v50, %v6157_v12  ;;  %v6186_v32 = vld [vmem:[#allocation20 + $0xdd8] sm:$0xff]  ;;  %v10881_v11 = vcombine.low %v6141_v50, %v6157_v12  ;;  %v5804_v9 = vld [vmem:[#allocation20 + $0x1e8] sm:$0xff] }
 0xb7d   : > { %v9704_v22 = vcombine.low %v9696_v21, %v9703_v7  ;;  %9571 = vmatprep.subr.bf16.mxu0 %v10722_v26  ;;  %v6173_v26 = vld [vmem:[#allocation20 + $0xd70] sm:$0xff]  ;;  %v10908_v55 = vcombine.high %v6170_v51, %v6186_v32  ;;  %v6202_v7 = vld [vmem:[#allocation20 + $0xe58] sm:$0xff]  ;;  %v10495_v24 = vcombine.low %v5756_v61, %v5772_v54  ;;  %v5820_v2 = vld [vmem:[#allocation20 + $0x268] sm:$0xff] }
 0xb7e   : > { %v10914_v21 = vcombine.high %v6173_v26, %v6189_v62  ;;  %v6234_v1 = vld [vmem:[#allocation20 + $0xf58] sm:$0xff]  ;;  %v5868_v44 = vld [vmem:[#allocation20 + $0x3e8] sm:$0xff] }
 0xb7f   : > { %9816 = vst [vmem:[%s12665_s28 + $0x8] sm:$0xff] %v9704_v22  ;;  %9449 = vmatpush1.bf16.msra.mxu1 %v10715_v37  ;;  %v6218_v37 = vld [vmem:[#allocation20 + $0xed8] sm:$0xff]  ;;  %v10907_v22 = vcombine.low %v6170_v51, %v6186_v32  ;;  %v5884_v12 = vld [vmem:[#allocation20 + $0x468] sm:$0xff] }
 0xb80   : > { %9572 = vmatpush1.bf16.msra.mxu0 %v10721_v38  ;;  %9450 = vmatprep.subr.bf16.mxu1 %v10748_v30  ;;  %v6205_v38 = vld [vmem:[#allocation20 + $0xe70] sm:$0xff]  ;;  %v10940_v43 = vcombine.high %v6202_v7, %v6218_v37  ;;  %v6250_v36 = vld [vmem:[#allocation20 + $0xfd8] sm:$0xff]  ;;  %v5932_v51 = vld [vmem:[#allocation20 + $0x5e8] sm:$0xff] }
 0xb81   : > { %9573 = vmatprep.subr.bf16.mxu0 %v10754_v46  ;;  %v6221_v30 = vld [vmem:[#allocation20 + $0xef0] sm:$0xff]  ;;  %v10913_v46 = vcombine.low %v6173_v26, %v6189_v62  ;;  %v10972_v27 = vcombine.high %v6234_v1, %v6250_v36  ;;  %v6110_v14 = vld [vmem:[#allocation20 + $0xb78] sm:$0xff] }
 0xb82   : > { %v10946_v18 = vcombine.high %v6205_v38, %v6221_v30  ;;  %v15341_v26 = vld [vmem:[#allocation21 + $0x10] sm:$0xff] }
 0xb83   : > { %9451 = vmatpush1.bf16.msra.mxu1 %v10747_v4  ;;  %v6237_v4 = vld [vmem:[#allocation20 + $0xf70] sm:$0xff] }
 0xb84   : > { %9574 = vmatpush1.bf16.msra.mxu0 %v10753_v28  ;;  %9452 = vmatprep.subr.bf16.mxu1 %v10780_v33  ;;  %v6253_v28 = vld [vmem:[#allocation20 + $0xff0] sm:$0xff]  ;;  %v10939_v33 = vcombine.low %v6202_v7, %v6218_v37  ;;  %v6310_v7 = vrot.slane %v15292_v23, %v16121_v47 }
 0xb85   : > { %9575 = vmatprep.subr.bf16.mxu0 %v10786_v57  ;;  %v10945_v57 = vcombine.low %v6205_v38, %v6221_v30  ;;  %v10978_v34 = vcombine.high %v6237_v4, %v6253_v28  ;;  %v6334_v38 = vrot.slane %v15341_v26, %v16120_v13 }
 0xb87   : > { %9453 = vmatpush1.bf16.msra.mxu1 %v10779_v3  ;;  %v10971_v3 = vcombine.low %v6234_v1, %v6250_v36 }
 0xb88   : > { %9576 = vmatpush1.bf16.msra.mxu0 %v10785_v39  ;;  %9454 = vmatprep.subr.bf16.mxu1 %v10812_v53  ;;  %v10977_v39 = vcombine.low %v6237_v4, %v6253_v28  ;;  %v10496_v53 = vcombine.high %v5756_v61, %v5772_v54 }
 0xb89   : > { %9577 = vmatprep.subr.bf16.mxu0 %v10818_v63  ;;  %v5788_v63 = vld [vmem:[#allocation20 + $0x168] sm:$0xff] }
 0xb8a   : > { %v10528_v20 = vcombine.high %v5788_v63, %v5804_v9 }
 0xb8b   : > { %9455 = vmatpush1.bf16.msra.mxu1 %v10811_v41  ;;  %v5836_v41 = vld [vmem:[#allocation20 + $0x2e8] sm:$0xff] }
 0xb8c   : > { %9578 = vmatpush1.bf16.msra.mxu0 %v10817_v25  ;;  %9456 = vmatprep.subr.bf16.mxu1 %v10844_v56  ;;  %v10527_v25 = vcombine.low %v5788_v63, %v5804_v9  ;;  %v10560_v56 = vcombine.high %v5820_v2, %v5836_v41  ;;  %v10559_v0 = vcombine.low %v5820_v2, %v5836_v41  ;;  %v6028_v63 = vld [vmem:[#allocation20 + $0x8e8] sm:$0xff] }
 0xb8d   : > { %9579 = vmatprep.subr.bf16.mxu0 %v10850_v60  ;;  %v5852_v60 = vld [vmem:[#allocation20 + $0x368] sm:$0xff] }
 0xb8e   : > { %v10592_v50 = vcombine.high %v5852_v60, %v5868_v44 }
 0xb8f   : > { %9457 = vmatpush1.bf16.msra.mxu1 %v10843_v52  ;;  %v5900_v52 = vld [vmem:[#allocation20 + $0x4e8] sm:$0xff] }
 0xb90   : > { %9580 = vmatpush1.bf16.msra.mxu0 %v10849_v35  ;;  %9458 = vmatprep.subr.bf16.mxu1 %v10876_v59  ;;  %v10591_v35 = vcombine.low %v5852_v60, %v5868_v44  ;;  %v10624_v59 = vcombine.high %v5884_v12, %v5900_v52  ;;  %v10623_v32 = vcombine.low %v5884_v12, %v5900_v52  ;;  %v6060_v60 = vld [vmem:[#allocation20 + $0x9e8] sm:$0xff] }
 0xb91   : > { %9581 = vmatprep.subr.bf16.mxu0 %v10882_v48  ;;  %v5916_v48 = vld [vmem:[#allocation20 + $0x568] sm:$0xff] }
 0xb92   : > { %v10656_v62 = vcombine.high %v5916_v48, %v5932_v51  ;;  %v10655_v37 = vcombine.low %v5916_v48, %v5932_v51  ;;  %v6092_v12 = vld [vmem:[#allocation20 + $0xae8] sm:$0xff] }
 0xb93   : > { %9459 = vmatpush1.bf16.msra.mxu1 %v10875_v42  ;;  %v5948_v42 = vld [vmem:[#allocation20 + $0x668] sm:$0xff] }
 0xb94   : > { %9582 = vmatpush1.bf16.msra.mxu0 %v10881_v11  ;;  %9460 = vmatprep.subr.bf16.mxu1 %v10908_v55  ;;  %v5964_v11 = vld [vmem:[#allocation20 + $0x6e8] sm:$0xff]  ;;  %v6306_v55 = vrot.slane %v15292_v23, %v16119_v31 }
 0xb95   : > { %9583 = vmatprep.subr.bf16.mxu0 %v10914_v21  ;;  %v6330_v21 = vrot.slane %v15341_v26, %v16118_v40  ;;  %v10688_v30 = vcombine.high %v5948_v42, %v5964_v11  ;;  %v6140_v48 = vld [vmem:[#allocation20 + $0xc68] sm:$0xff] }
 0xb96   : > { %v6156_v51 = vld [vmem:[#allocation20 + $0xce8] sm:$0xff] }
 0xb97   : > { %9461 = vmatpush1.bf16.msra.mxu1 %v10907_v22 }
 0xb98   : > { %9584 = vmatpush1.bf16.msra.mxu0 %v10913_v46  ;;  %9462 = vmatprep.subr.bf16.mxu1 %v10940_v43  ;;  %v5980_v46 = vld [vmem:[#allocation20 + $0x768] sm:$0xff] }
 0xb99   : > { %9585 = vmatprep.subr.bf16.mxu0 %v10946_v18  ;;  %v5996_v43 = vld [vmem:[#allocation20 + $0x7e8] sm:$0xff] }
 0xb9a   : > { %v10720_v54 = vcombine.high %v5980_v46, %v5996_v43  ;;  %v10719_v2 = vcombine.low %v5980_v46, %v5996_v43  ;;  %v6252_v46 = vld [vmem:[#allocation20 + $0xfe8] sm:$0xff] }
 0xb9b   : > { %9463 = vmatpush1.bf16.msra.mxu1 %v10939_v33 }
 0xb9c   : > { %9586 = vmatpush1.bf16.msra.mxu0 %v10945_v57  ;;  %9464 = vmatprep.subr.bf16.mxu1 %v10972_v27  ;;  %v10687_v27 = vcombine.low %v5948_v42, %v5964_v11  ;;  %v6172_v42 = vld [vmem:[#allocation20 + $0xd68] sm:$0xff] }
 0xb9d   : > { %9587 = vmatprep.subr.bf16.mxu0 %v10978_v34  ;;  %v6188_v11 = vld [vmem:[#allocation20 + $0xde8] sm:$0xff] }
 0xb9f   : > { %9465 = vmatpush1.bf16.msra.mxu1 %v10971_v3 }
 0xba0   : > { %9588 = vmatpush1.bf16.msra.mxu0 %v10977_v39  ;;  %9516 = vmatprep.subr.bf16.mxu1 %v10496_v53  ;;  %v6012_v53 = vld [vmem:[#allocation20 + $0x868] sm:$0xff] }
 0xba1   : > { %v10752_v41 = vcombine.high %v6012_v53, %v6028_v63  ;;  %v10751_v44 = vcombine.low %v6012_v53, %v6028_v63  ;;  %v5854_v63 = vld [vmem:[#allocation20 + $0x378] sm:$0xff] }
 0xba2   : > { %9467 = vmatmul.mubr.bf16.vlgmr.msra.gmra.mrb[28].mxu1 %v15244_v58 }
 0xba3   : > { %9590 = vmatmul.mubr.bf16.vlgmr.msra.gmra.mrb[32].mxu0 %v15244_v58  ;;  %9517 = vmatpush1.bf16.msra.mxu1 %v10495_v24  ;;  %v9713_v24 = vrot.slane %v9705_v10, %v15158_v29  ;;  %v6124_v10 = vld [vmem:[#allocation20 + $0xbe8] sm:$0xff] }
 0xba4   : > { %9548 = vmatprep.mubr.bf16.mxu1 %v15246_v8  ;;  %9518 = vmatprep.subr.bf16.mxu1 %v10528_v20 }
 0xba7   : > { %9519 = vmatpush1.bf16.msra.mxu1 %v10527_v25 }
 0xba8   : > { %9520 = vmatprep.subr.bf16.mxu1 %v10560_v56  ;;  %v6044_v56 = vld [vmem:[#allocation20 + $0x968] sm:$0xff] }
 0xba9   : > { %v10783_v52 = vcombine.low %v6044_v56, %v6060_v60 }
 0xbab   : > { %9521 = vmatpush1.bf16.msra.mxu1 %v10559_v0  ;;  %v10784_v0 = vcombine.high %v6044_v56, %v6060_v60 }
 0xbac   : > { %9522 = vmatprep.subr.bf16.mxu1 %v10592_v50  ;;  %v6076_v50 = vld [vmem:[#allocation20 + $0xa68] sm:$0xff] }
 0xbad   : > { %v10816_v6 = vcombine.high %v6076_v50, %v6092_v12 }
 0xbaf   : > { %9523 = vmatpush1.bf16.msra.mxu1 %v10591_v35  ;;  %v10815_v35 = vcombine.low %v6076_v50, %v6092_v12  ;;  %v5950_v12 = vld [vmem:[#allocation20 + $0x678] sm:$0xff] }
 0xbb0   : > { %9524 = vmatprep.subr.bf16.mxu1 %v10624_v59  ;;  %v10848_v59 = vcombine.high %v6108_v45, %v6124_v10 }
 0xbb3   : > { %9525 = vmatpush1.bf16.msra.mxu1 %v10623_v32  ;;  %v10847_v32 = vcombine.low %v6108_v45, %v6124_v10  ;;  %v6346_v10 = vrot.slane %v15341_v26, %v16122_v17 }
 0xbb4   : > { %9526 = vmatprep.subr.bf16.mxu1 %v10656_v62  ;;  %v10880_v62 = vcombine.high %v6140_v48, %v6156_v51 }
 0xbb5   : > { %v9222_v22 = vpop.f32.mrb[16].mxu1 }
 0xbb6   : > { %v9223_v18 = vadd.f32 %v9222_v22, %v6306_v55  ;;  %v9345_v1 = vpop.f32.mrb[20].mxu0  ;;  %v9224_v36 = vpop.f32.mrb[17].mxu1  ;;  %v10879_v55 = vcombine.low %v6140_v48, %v6156_v51  ;;  %v6236_v22 = vld [vmem:[#allocation20 + $0xf68] sm:$0xff]  ;;  %v6350_v48 = vrot.slane %v15341_v26, %v16123_v16 }
 0xbb7   : > { %v15351_v4 = vadd.f32 %v9345_v1, %v6330_v21  ;;  %v9225_v28 = vadd.f32 %v9224_v36, %v6310_v7  ;;  %v9347_v33 = vpop.f32.mrb[21].mxu0  ;;  %v9226_v57 = vpop.f32.mrb[18].mxu1  ;;  %9527 = vmatpush1.bf16.msra.mxu1 %v10655_v37  ;;  %v10912_v21 = vcombine.high %v6172_v42, %v6188_v11  ;;  %v6204_v7 = vld [vmem:[#allocation20 + $0xe68] sm:$0xff]  ;;  %v5758_v1 = vld [vmem:[#allocation20 + $0x78] sm:$0xff] }
 0xbb8   : > { %v15353_v23 = vadd.f32 %v9347_v33, %v6334_v38  ;;  %v9349_v34 = vpop.f32.mrb[22].mxu0  ;;  %v9227_v61 = vpop.f32.mrb[19].mxu1  ;;  %9528 = vmatprep.subr.bf16.mxu1 %v10688_v30  ;;  %v6220_v37 = vld [vmem:[#allocation20 + $0xee8] sm:$0xff]  ;;  %v10911_v38 = vcombine.low %v6172_v42, %v6188_v11  ;;  %v5774_v36 = vld [vmem:[#allocation20 + $0xf8] sm:$0xff] }
 0xbb9   : > { %v9706_v3 = vcombine.low %v9223_v18, %v9225_v28  ;;  %v9350_v39 = vpop.f32.mrb[23].mxu0  ;;  %v10944_v30 = vcombine.high %v6204_v7, %v6220_v37  ;;  %v10943_v43 = vcombine.low %v6204_v7, %v6220_v37  ;;  %v10976_v18 = vcombine.high %v6236_v22, %v6252_v46  ;;  %v5790_v57 = vld [vmem:[#allocation20 + $0x178] sm:$0xff] }
 0xbba   : > { %v9739_v9 = vcombine.low %v15351_v4, %v15353_v23  ;;  %v10975_v28 = vcombine.low %v6236_v22, %v6252_v46  ;;  %v10500_v33 = vcombine.high %v5758_v1, %v5774_v36  ;;  %v10499_v34 = vcombine.low %v5758_v1, %v5774_v36  ;;  %v5998_v42 = vld [vmem:[#allocation20 + $0x7f8] sm:$0xff] }
 0xbbb   : > { %v9720_v20 = vrot.slane %v9706_v3, %v15158_v29  ;;  %9529 = vmatpush1.bf16.msra.mxu1 %v10687_v27  ;;  %v5806_v27 = vld [vmem:[#allocation20 + $0x1f8] sm:$0xff] }
 0xbbc   : > { %9530 = vmatprep.subr.bf16.mxu1 %v10720_v54  ;;  %v10532_v61 = vcombine.high %v5790_v57, %v5806_v27  ;;  %v5822_v54 = vld [vmem:[#allocation20 + $0x278] sm:$0xff]  ;;  %v10531_v39 = vcombine.low %v5790_v57, %v5806_v27 }
 0xbbd   : > { %v9721_v25 = vcombine.low %v9713_v24, %v9720_v20  ;;  %v5838_v3 = vld [vmem:[#allocation20 + $0x2f8] sm:$0xff] }
 0xbbe   : > { %v10564_v53 = vcombine.high %v5822_v54, %v5838_v3  ;;  %v5870_v24 = vld [vmem:[#allocation20 + $0x3f8] sm:$0xff]  ;;  %v10563_v20 = vcombine.low %v5822_v54, %v5838_v3 }
 0xbbf   : > { %9817 = vst [vmem:[%s12665_s28 + $0x10] sm:$0xff] %v9721_v25  ;;  %9531 = vmatpush1.bf16.msra.mxu1 %v10719_v2  ;;  %v10596_v2 = vcombine.high %v5854_v63, %v5870_v24  ;;  %v5902_v25 = vld [vmem:[#allocation20 + $0x4f8] sm:$0xff]  ;;  %v10595_v56 = vcombine.low %v5854_v63, %v5870_v24 }
 0xbc0   : > { %9532 = vmatprep.subr.bf16.mxu1 %v10752_v41  ;;  %v5886_v41 = vld [vmem:[#allocation20 + $0x478] sm:$0xff] }
 0xbc1   : > { %v10628_v60 = vcombine.high %v5886_v41, %v5902_v25  ;;  %v10627_v50 = vcombine.low %v5886_v41, %v5902_v25  ;;  %v6030_v57 = vld [vmem:[#allocation20 + $0x8f8] sm:$0xff] }
 0xbc2   : > { %v6062_v63 = vld [vmem:[#allocation20 + $0x9f8] sm:$0xff] }
 0xbc3   : > { %9533 = vmatpush1.bf16.msra.mxu1 %v10751_v44  ;;  %v5918_v44 = vld [vmem:[#allocation20 + $0x578] sm:$0xff] }
 0xbc4   : > { %9534 = vmatprep.subr.bf16.mxu1 %v10784_v0  ;;  %v5934_v0 = vld [vmem:[#allocation20 + $0x5f8] sm:$0xff] }
 0xbc5   : > { %v6094_v41 = vld [vmem:[#allocation20 + $0xaf8] sm:$0xff] }
 0xbc7   : > { %9535 = vmatpush1.bf16.msra.mxu1 %v10783_v52  ;;  %v5966_v52 = vld [vmem:[#allocation20 + $0x6f8] sm:$0xff] }
 0xbc8   : > { %9536 = vmatprep.subr.bf16.mxu1 %v10816_v6  ;;  %v11789_v6 = vld [vmem:[#allocation21 + $0x8] sm:$0xff]  ;;  %v10692_v51 = vcombine.high %v5950_v12, %v5966_v52  ;;  %v10691_v22 = vcombine.low %v5950_v12, %v5966_v52  ;;  %v6174_v12 = vld [vmem:[#allocation20 + $0xd78] sm:$0xff] }
 0xbc9   : > { %v6322_v45 = vrot.slane %v11789_v6, %v16124_v5  ;;  %v6190_v52 = vld [vmem:[#allocation20 + $0xdf8] sm:$0xff] }
 0xbcb   : > { %9537 = vmatpush1.bf16.msra.mxu1 %v10815_v35  ;;  %v6326_v35 = vrot.slane %v11789_v6, %v16125_v19 }
 0xbcc   : > { %9538 = vmatprep.subr.bf16.mxu1 %v10848_v59  ;;  %v10659_v59 = vcombine.low %v5918_v44, %v5934_v0 }
 0xbcf   : > { %9539 = vmatpush1.bf16.msra.mxu1 %v10847_v32 }
 0xbd0   : > { %9540 = vmatprep.subr.bf16.mxu1 %v10880_v62  ;;  %v5982_v62 = vld [vmem:[#allocation20 + $0x778] sm:$0xff] }
 0xbd1   : > { %v10724_v1 = vcombine.high %v5982_v62, %v5998_v42  ;;  %v10723_v54 = vcombine.low %v5982_v62, %v5998_v42 }
 0xbd3   : > { %9541 = vmatpush1.bf16.msra.mxu1 %v10879_v55 }
 0xbd4   : > { %9542 = vmatprep.subr.bf16.mxu1 %v10912_v21 }
 0xbd7   : > { %9543 = vmatpush1.bf16.msra.mxu1 %v10911_v38 }
 0xbd8   : > { %9544 = vmatprep.subr.bf16.mxu1 %v10944_v30 }
 0xbdb   : > { %9545 = vmatpush1.bf16.msra.mxu1 %v10943_v43 }
 0xbdc   : > { %9546 = vmatprep.subr.bf16.mxu1 %v10976_v18 }
 0xbdf   : > { %9547 = vmatpush1.bf16.msra.mxu1 %v10975_v28 }
 0xbe0   : > { %9598 = vmatprep.subr.bf16.mxu1 %v10500_v33  ;;  %v6014_v33 = vld [vmem:[#allocation20 + $0x878] sm:$0xff] }
 0xbe1   : > { %v10756_v3 = vcombine.high %v6014_v33, %v6030_v57  ;;  %v10755_v24 = vcombine.low %v6014_v33, %v6030_v57 }
 0xbe2   : > { %9549 = vmatmul.mubr.bf16.vlgmr.msra.gmra.mrb[32].mxu1 %v15244_v58 }
 0xbe3   : > { %9599 = vmatpush1.bf16.msra.mxu1 %v10499_v34  ;;  %9630 = vmatprep.mubr.bf16.mxu1 %v15246_v8  ;;  %v10660_v8 = vcombine.high %v5918_v44, %v5934_v0  ;;  %v9730_v34 = vrot.slane %v9722_v15, %v15158_v29  ;;  %v6126_v15 = vld [vmem:[#allocation20 + $0xbf8] sm:$0xff] }
 0xbe4   : > { %9600 = vmatprep.subr.bf16.mxu1 %v10532_v61  ;;  %v6142_v44 = vld [vmem:[#allocation20 + $0xc78] sm:$0xff] }
 0xbe5   : > { %v6158_v0 = vld [vmem:[#allocation20 + $0xcf8] sm:$0xff] }
 0xbe6   : > { %v10883_v6 = vcombine.low %v6142_v44, %v6158_v0 }
 0xbe7   : > { %9601 = vmatpush1.bf16.msra.mxu1 %v10531_v39 }
 0xbe8   : > { %9602 = vmatprep.subr.bf16.mxu1 %v10564_v53  ;;  %v6046_v53 = vld [vmem:[#allocation20 + $0x978] sm:$0xff] }
 0xbe9   : > { %v10787_v25 = vcombine.low %v6046_v53, %v6062_v63 }
 0xbeb   : > { %9603 = vmatpush1.bf16.msra.mxu1 %v10563_v20  ;;  %v10788_v20 = vcombine.high %v6046_v53, %v6062_v63  ;;  %v6354_v63 = vrot.slane %v15341_v26, %v16124_v5 }
 0xbec   : > { %9604 = vmatprep.subr.bf16.mxu1 %v10596_v2  ;;  %v6078_v2 = vld [vmem:[#allocation20 + $0xa78] sm:$0xff] }
 0xbed   : > { %v10820_v49 = vcombine.high %v6078_v2, %v6094_v41 }
 0xbef   : > { %9605 = vmatpush1.bf16.msra.mxu1 %v10595_v56  ;;  %v10819_v56 = vcombine.low %v6078_v2, %v6094_v41 }
 0xbf0   : > { %9606 = vmatprep.subr.bf16.mxu1 %v10628_v60  ;;  %v10852_v60 = vcombine.high %v6110_v14, %v6126_v15 }
 0xbf3   : > { %9607 = vmatpush1.bf16.msra.mxu1 %v10627_v50  ;;  %v10851_v50 = vcombine.low %v6110_v14, %v6126_v15 }
 0xbf4   : > { %9608 = vmatprep.subr.bf16.mxu1 %v10660_v8  ;;  %v10884_v8 = vcombine.high %v6142_v44, %v6158_v0 }
 0xbf5   : > { %v9304_v32 = vpop.f32.mrb[20].mxu1 }
 0xbf6   : > { %v9305_v11 = vadd.f32 %v9304_v32, %v6322_v45  ;;  %v9427_v55 = vpop.f32.mrb[24].mxu0  ;;  %v9306_v21 = vpop.f32.mrb[21].mxu1  ;;  %v10916_v45 = vcombine.high %v6174_v12, %v6190_v52  ;;  %v6254_v32 = vld [vmem:[#allocation20 + $0xff8] sm:$0xff] }
 0xbf7   : > { %v15371_v7 = vadd.f32 %v9427_v55, %v6346_v10  ;;  %v9307_v37 = vadd.f32 %v9306_v21, %v6326_v35  ;;  %v9429_v38 = vpop.f32.mrb[25].mxu0  ;;  %v9308_v30 = vpop.f32.mrb[22].mxu1  ;;  %9609 = vmatpush1.bf16.msra.mxu1 %v10659_v59  ;;  %v6206_v10 = vld [vmem:[#allocation20 + $0xe78] sm:$0xff]  ;;  %v10915_v59 = vcombine.low %v6174_v12, %v6190_v52  ;;  %v6338_v21 = vrot.slane %v15341_v26, %v16119_v31 }
 0xbf8   : > { %v15373_v46 = vadd.f32 %v9429_v38, %v6350_v48  ;;  %v9431_v43 = vpop.f32.mrb[26].mxu0  ;;  %v9309_v18 = vpop.f32.mrb[23].mxu1  ;;  %9610 = vmatprep.subr.bf16.mxu1 %v10692_v51  ;;  %v6222_v35 = vld [vmem:[#allocation20 + $0xef8] sm:$0xff]  ;;  %v6342_v38 = vrot.slane %v15341_v26, %v16121_v47 }
 0xbf9   : > { %v9723_v36 = vcombine.low %v9305_v11, %v9307_v37  ;;  %v9432_v28 = vpop.f32.mrb[27].mxu0  ;;  %v10948_v48 = vcombine.high %v6206_v10, %v6222_v35  ;;  %v6238_v51 = vld [vmem:[#allocation20 + $0xf78] sm:$0xff]  ;;  %v10947_v62 = vcombine.low %v6206_v10, %v6222_v35 }
 0xbfa   : > { %v9756_v27 = vcombine.low %v15371_v7, %v15373_v46  ;;  %v10980_v42 = vcombine.high %v6238_v51, %v6254_v32  ;;  %v10979_v11 = vcombine.low %v6238_v51, %v6254_v32  ;;  %v15384_v55 = vld [vmem:[#allocation21 + $0x18] sm:$0xff] }
 0xbfb   : > { %v9737_v61 = vrot.slane %v9723_v36, %v15158_v29  ;;  %9611 = vmatpush1.bf16.msra.mxu1 %v10691_v22  ;;  %v6362_v37 = vrot.slane %v15384_v55, %v16118_v40  ;;  %v6366_v30 = vrot.slane %v15384_v55, %v16120_v13  ;;  %v9747_v13 = vrot.slane %v9739_v9, %v15158_v29 }
 0xbfc   : > { %9612 = vmatprep.subr.bf16.mxu1 %v10724_v1  ;;  %v6382_v2 = vrot.slane %v15384_v55, %v16123_v16  ;;  %v9764_v16 = vrot.slane %v9756_v27, %v15158_v29  ;;  %v6370_v12 = vrot.slane %v15384_v55, %v16119_v31  ;;  %v6374_v52 = vrot.slane %v15384_v55, %v16121_v47 }
 0xbfd   : > { %v9738_v39 = vcombine.low %v9730_v34, %v9737_v61  ;;  %v6386_v31 = vrot.slane %v15384_v55, %v16124_v5  ;;  %v6390_v47 = vrot.slane %v15384_v55, %v16125_v19 }
 0xbff   : > { %9818 = vst [vmem:[%s12665_s28 + $0x18] sm:$0xff] %v9738_v39  ;;  %9613 = vmatpush1.bf16.msra.mxu1 %v10723_v54 }
 0xc00   : > { %9614 = vmatprep.subr.bf16.mxu1 %v10756_v3 }
 0xc03   : > { %9615 = vmatpush1.bf16.msra.mxu1 %v10755_v24  ;;  %v6378_v24 = vrot.slane %v15384_v55, %v16122_v17 }
 0xc04   : > { %9616 = vmatprep.subr.bf16.mxu1 %v10788_v20  ;;  %v6358_v20 = vrot.slane %v15341_v26, %v16125_v19 }
 0xc07   : > { %9617 = vmatpush1.bf16.msra.mxu1 %v10787_v25 }
 0xc08   : > { %9618 = vmatprep.subr.bf16.mxu1 %v10820_v49 }
 0xc0b   : > { %9619 = vmatpush1.bf16.msra.mxu1 %v10819_v56 }
 0xc0c   : > { %9620 = vmatprep.subr.bf16.mxu1 %v10852_v60 }
 0xc0f   : > { %9621 = vmatpush1.bf16.msra.mxu1 %v10851_v50 }
 0xc10   : > { %9622 = vmatprep.subr.bf16.mxu1 %v10884_v8 }
 0xc13   : > { %9623 = vmatpush1.bf16.msra.mxu1 %v10883_v6 }
 0xc14   : > { %9624 = vmatprep.subr.bf16.mxu1 %v10916_v45 }
 0xc17   : > { %9625 = vmatpush1.bf16.msra.mxu1 %v10915_v59 }
 0xc18   : > { %9626 = vmatprep.subr.bf16.mxu1 %v10948_v48 }
 0xc1b   : > { %9627 = vmatpush1.bf16.msra.mxu1 %v10947_v62 }
 0xc1c   : > { %9628 = vmatprep.subr.bf16.mxu1 %v10980_v42 }
 0xc1f   : > { %9629 = vmatpush1.bf16.msra.mxu1 %v10979_v11 }
 0xc22   : > { %9631 = vmatmul.mubr.bf16.vlgmr.msra.gmra.mrb[36].mxu1 %v15244_v58 }
 0xc35   : > { %v9386_v22 = vpop.f32.mrb[24].mxu1 }
 0xc36   : > { %v9387_v43 = vadd.f32 %v9386_v22, %v6338_v21  ;;  %v9509_v18 = vpop.f32.mrb[28].mxu0  ;;  %v9388_v1 = vpop.f32.mrb[25].mxu1 }
 0xc37   : > { %v9510_v58 = vadd.f32 %v9509_v18, %v6362_v37  ;;  %v9389_v36 = vadd.f32 %v9388_v1, %v6342_v38  ;;  %v9511_v28 = vpop.f32.mrb[29].mxu0  ;;  %v9390_v33 = vpop.f32.mrb[26].mxu1 }
 0xc38   : > { %v9512_v57 = vadd.f32 %v9511_v28, %v6366_v30  ;;  %v9513_v34 = vpop.f32.mrb[30].mxu0  ;;  %v9391_v61 = vpop.f32.mrb[27].mxu1 }
 0xc39   : > { %v9740_v54 = vcombine.low %v9387_v43, %v9389_v36  ;;  %v9514_v40 = vpop.f32.mrb[31].mxu0 }
 0xc3a   : > { %v9773_v3 = vcombine.low %v9510_v58, %v9512_v57 }
 0xc3b   : > { %v9754_v39 = vrot.slane %v9740_v54, %v15158_v29 }
 0xc3c   : > { %v9781_v46 = vrot.slane %v9773_v3, %v15158_v29 }
 0xc3d   : > { %v9755_v53 = vcombine.low %v9747_v13, %v9754_v39 }
 0xc3f   : > { %9819 = vst [vmem:[%s12665_s28 + $0x20] sm:$0xff] %v9755_v53 }
 0xc75   : > { %v9468_v41 = vpop.f32.mrb[28].mxu1 }
 0xc76   : > { %v9469_v25 = vadd.f32 %v9468_v41, %v6354_v63  ;;  %v9591_v4 = vpop.f32.mrb[32].mxu0  ;;  %v9470_v23 = vpop.f32.mrb[29].mxu1 }
 0xc77   : > { %v9592_v9 = vadd.f32 %v9591_v4, %v6378_v24  ;;  %v9471_v49 = vadd.f32 %v9470_v23, %v6358_v20  ;;  %v9593_v14 = vpop.f32.mrb[33].mxu0  ;;  %v9472_v15 = vpop.f32.mrb[30].mxu1 }
 0xc78   : > { %v9594_v56 = vadd.f32 %v9593_v14, %v6382_v2  ;;  %v9595_v60 = vpop.f32.mrb[34].mxu0  ;;  %v9473_v44 = vpop.f32.mrb[31].mxu1 }
 0xc79   : > { %v9757_v0 = vcombine.low %v9469_v25, %v9471_v49  ;;  %v9596_v17 = vpop.f32.mrb[35].mxu0 }
 0xc7a   : > { %v9790_v50 = vcombine.low %v9592_v9, %v9594_v56 }
 0xc7b   : > { %v9771_v26 = vrot.slane %v9757_v0, %v15158_v29 }
 0xc7c   : > { %v9798_v30 = vrot.slane %v9790_v50, %v15158_v29 }
 0xc7d   : > { %v9772_v8 = vcombine.low %v9764_v16, %v9771_v26 }
 0xc7f   : > { %9820 = vst [vmem:[%s12665_s28 + $0x28] sm:$0xff] %v9772_v8 }
 0xcb5   : > { %v9550_v6 = vpop.f32.mrb[32].mxu1 }
 0xcb6   : > { %v9551_v45 = vadd.f32 %v9550_v6, %v6370_v12  ;;  %v9552_v10 = vpop.f32.mrb[33].mxu1 }
 0xcb7   : > { %v9553_v35 = vadd.f32 %v9552_v10, %v6374_v52  ;;  %v9554_v59 = vpop.f32.mrb[34].mxu1 }
 0xcb8   : > { %v9555_v48 = vpop.f32.mrb[35].mxu1 }
 0xcb9   : > { %v9774_v7 = vcombine.low %v9551_v45, %v9553_v35 }
 0xcbb   : > { %v9788_v27 = vrot.slane %v9774_v7, %v15158_v29 }
 0xcbd   : > { %v9789_v51 = vcombine.low %v9781_v46, %v9788_v27 }
 0xcbf   : > { %9821 = vst [vmem:[%s12665_s28 + $0x30] sm:$0xff] %v9789_v51 }
 0xcf5   : > { %v9632_v32 = vpop.f32.mrb[36].mxu1 }
 0xcf6   : > { %v9633_v62 = vadd.f32 %v9632_v32, %v6386_v31  ;;  %v9634_v42 = vpop.f32.mrb[37].mxu1 }
 0xcf7   : > { %v9635_v11 = vadd.f32 %v9634_v42, %v6390_v47  ;;  %v9636_v21 = vpop.f32.mrb[38].mxu1 }
 0xcf8   : > { %v9637_v37 = vpop.f32.mrb[39].mxu1 }
 0xcf9   : > { %v9791_v38 = vcombine.low %v9633_v62, %v9635_v11 }
 0xcfb   : > { %v9805_v22 = vrot.slane %v9791_v38, %v15158_v29 }
 0xcfd   : > { %v9806_v5 = vcombine.low %v9798_v30, %v9805_v22 }
 0xcff   : > { %9822 = vst [vmem:[%s12665_s28 + $0x38] sm:$0xff] %v9806_v5 }
 0xd00   : > { %12139 = shalt.err (!%p12136_p4)
}
 0xd01   : > { %s12140_s20 = scalar_lea.hbm %s15432_s21, 1024  ;;  %s12144_s3 = scalar_lea.hbm %s16126_s23, 2048 }
 0xd02   : > { %p12141_p7 = scmp.ne.s32.totalorder %s15432_s21, %s12140_s20  ;;  %p12145_p13 = scmp.lt.u32.totalorder %s15432_s21, %s16126_s23 }
 0xd03   : > { %p12146_p1 = scmp.lt.u32.totalorder %s12144_s3, %s12140_s20  ;;  %p12148_p6 = scmp.lt.u32.totalorder %s12140_s20, %s15432_s21 }
 0xd04   : > { %p12142_p8 = pnand %p12141_p7, %p16127_p5 }
 0xd05   : > { %p12147_p0 = por %p12146_p1, %p12145_p13 }
 0xd06   : > { %p12143_p11 = pneg %p12142_p8 }
 0xd07   : > { %p12149_p9 = por %p12148_p6, %p12147_p0 }
 0xd09   : > { %p12150_p12 = pnand %p12149_p9, %p12143_p11 }
 0xd0b   : > { %12153 = shalt.err (!%p12150_p12)
}
 0xd0c   : > { %11143 = dma.vmem_to_hbm [thread:$0]  (%p16127_p5), %s15434_s19, 1024, %s15432_s21, %s9824_s15  }
 0xd0d PF: > { %s16128_s16 = sld [smem:[#allocation34_spill]]  ;;  %s16129_s17 = sld [smem:[#allocation32_spill]] }
 0xd0e   : > { %s16130_s13 = sld [smem:[#allocation37_spill]] }
 0xd13   : > { %p11210_p10 = scmp.ge.s32.totalorder %s16128_s16, 2  ;;  %s9850_s27 = sand.u32 1, %s16129_s17  }
 0xd14   : > { %p16131_p2 = scmp.ne.s32.totalorder %s16130_s13, 0  ;;  %s9851_s22 = scalar_lea.sflag [#allocation5], %s9850_s27 }
 0xd16   : > { %p11183_p3 = pnand %p11210_p10, %p16131_p2 }
 0xd18   : > { %12203 = dma.done.wait (!%p11183_p3), %s9851_s22, 1024  }
 0xd19   : > { %12205 = vsyncadd (!%p11183_p3), %s9851_s22, 4294966272  ;;  %s16132_s28 = sld [smem:[#allocation35_spill]]  ;;  %s16133_s30 = sld [smem:[#allocation33_spill]] }
 0xd1a   : > { %s16134_s27 = sld [smem:[#allocation36_spill]]  ;;  %s16135_s25 = smov %s12212_s26 }
 0xd1f   : > { %p30_p4 = scmp.ge.s32.totalorder %s16132_s28, 4   ;;  %s16136_s26 = smov %s16133_s30 }
 0xd21   :  { %32 = sbr.rel (!%p30_p4) target bundleno = 16 (0x10), region = 176 }
 0xd28   :  { %9856 = vsyncpa [#allocation4], 1 }
 0xd29   :  { %9858 = vsyncpa [#allocation4 + $0x1], 1 }
 0xd2a   :  { %9859 = vsyncpa [#allocation7], 1 }
 0xd2b   :  { %9860 = vsyncpa [#allocation10], 1 }
 0xd2c   :  { %9861 = vsyncpa [#allocation13], 1 }
 0xd2d   :  { %9862 = vsyncpa [#allocation16], 1 }
 0xd2e   :  { %9863 = vsyncpa [#allocation19], 1 }
 0xd2f   :  { %9864 = vsyncpa [#allocation22], 1 }
 0xd30   :  { %9865 = vsyncpa [#allocation5], 1 }
 0xd31   :  { %9867 = vsyncpa [#allocation5 + $0x1], 1 }

</bundles_post_ra>
